<compile_context>
chip_gen: v5e
topology: v5e:2x2
jax: 0.10.0
libtpu: 0.0.40
codegen_flags: <defaults>
</compile_context>

<pallas_src>
import jax
import jax.numpy as jnp
from jax import lax
from jax.experimental import pallas as pl
from jax.experimental.pallas import tpu as pltpu


def resblock_kernel(x_ref, w1_ref, w2_ref, gamma_ref, beta_ref,
                    out_ref, pad_ref):
    """x_ref/out_ref: [N*H, W*C] lane-dense activation views.
    w1_ref/w2_ref : [3, (W+2)*C, W*C] block-Toeplitz conv weights (per dy).
    gamma/beta    : [1, C].
    pad_ref       : [N, H+2, (W+2)*C] zero-haloed scratch, reused by both convs.
    """
    N, Hp, WpC = pad_ref.shape
    H = Hp - 2
    NH, WC = x_ref.shape
    C = gamma_ref.shape[1]
    W = WC // C
    NHW = NH * W
    eps = 1e-5
    inv_nhw = 1.0 / NHW

    def conv3x3(w_ref):
        # 3 full-lane-width row views x 3 block-Toeplitz dots; f32 accumulate
        # in registers (no staging scratch).
        acc = None
        for dy in range(3):
            rows = pad_ref[:, dy:dy + H, :].reshape(NH, WpC)
            part = jnp.dot(rows, w_ref[dy], preferred_element_type=jnp.float32)
            acc = part if acc is None else acc + part
        return acc                                            # [NH, WC] f32

    # ---- padded conv input: one full-tile memset, then the interior ----
    # (halo stays zero for BOTH convs; the interior is overwritten with z
    #  before conv2.)
    pad_ref[...] = jnp.zeros_like(pad_ref)
    pad_ref[:, 1:H + 1, C:C + WC] = x_ref[...].reshape(N, H, WC)

    # ---- conv1 ----
    y1 = conv3x3(w1_ref)                                      # [NH, WC]

    # ---- BatchNorm (training batch stats, single pass) + ReLU ----
    s1 = jnp.sum(y1, axis=0, keepdims=True)                   # [1, WC]
    s2 = jnp.sum(y1 * y1, axis=0, keepdims=True)              # [1, WC]
    # Fold the W lane-blocks into per-channel sums (static lane slices only;
    # avoids lane<->sublane reshapes).
    s1c = s1[:, 0:C]
    s2c = s2[:, 0:C]
    for w in range(1, W):
        s1c = s1c + s1[:, w * C:(w + 1) * C]
        s2c = s2c + s2[:, w * C:(w + 1) * C]
    mean = s1c * inv_nhw                                      # [1, C]
    var = s2c * inv_nhw - mean * mean                         # biased variance
    scale_c = gamma_ref[...] * lax.rsqrt(var + eps)           # [1, C]
    shift_c = beta_ref[...] - mean * scale_c                  # [1, C]
    # Expand back to the lane-dense [1, W*C] pattern (tiny lane concat).
    scale = jnp.concatenate([scale_c] * W, axis=1)            # [1, WC]
    shift = jnp.concatenate([shift_c] * W, axis=1)            # [1, WC]
    z = jnp.maximum(y1 * scale + shift, 0.0)                  # [NH, WC]

    # ---- conv2 input: reuse the padded scratch (halo still zero) ----
    pad_ref[:, 1:H + 1, C:C + WC] = z.reshape(N, H, WC)

    # ---- conv2 + residual (residual read straight from lane-dense x) ----
    out_ref[...] = x_ref[...] + conv3x3(w2_ref)


def _block_toeplitz(w_oihw, W):
    """[Cout,Cin,3,3] -> [3, (W+2)*Cin, W*Cout] block-Toeplitz matrices.

    T[dy, (w+dx)*C + ci, w*C + co] = w[co, ci, dy, dx], so a 3x3 'same' conv
    along the W axis becomes one dense dot per kernel row dy.
    """
    C = w_oihw.shape[0]
    mats = []
    for dy in range(3):
        t = jnp.zeros(((W + 2) * C, W * C), jnp.float32)
        for dx in range(3):
            shift = jnp.pad(jnp.eye(W, dtype=jnp.float32), ((dx, 2 - dx), (0, 0)))
            blk = w_oihw[:, :, dy, dx].T.astype(jnp.float32)   # [ci, co]
            t = t + jnp.kron(shift, blk)
        mats.append(t)
    return jnp.stack(mats)                                     # [3, (W+2)C, W*C]


@jax.jit
def resblock_forward(x_nchw, w1, w2, gamma, beta):
    """x_nchw: [N,C,H,W] (PyTorch layout); w1,w2: [Cout,Cin,3,3]; gamma,beta: [C]."""
    N, C, H, W = x_nchw.shape
    # Lane-dense 2D activation view [N*H, W*C] (free reshape from NHWC).
    x2d = jnp.transpose(x_nchw, (0, 2, 3, 1)).astype(jnp.float32) \
             .reshape(N * H, W * C)
    # TODO(synk): in a real model precompute these once per weight update
    # (they are data-independent) instead of per forward call.
    w1t = _block_toeplitz(w1, W)
    w2t = _block_toeplitz(w2, W)

    vmem = pl.BlockSpec(memory_space=pltpu.MemorySpace.VMEM)
    out2d = pl.pallas_call(
        resblock_kernel,
        out_shape=jax.ShapeDtypeStruct((N * H, W * C), jnp.float32),
        in_specs=[vmem] * 5,
        out_specs=vmem,
        scratch_shapes=[
            pltpu.VMEM((N, H + 2, (W + 2) * C), jnp.float32),  # zero-haloed acts
        ],
        compiler_params=pltpu.CompilerParams(
            vmem_limit_bytes=32 * 1024 * 1024),
    )(x2d, w1t, w2t,
      gamma.reshape(1, C).astype(jnp.float32),
      beta.reshape(1, C).astype(jnp.float32))

    out_nhwc = out2d.reshape(N, H, W, C)
    return jnp.transpose(out_nhwc, (0, 3, 1, 2))               # NCHW


def _reference_forward(x_nchw, w1, w2, gamma, beta):
    """Pure-JAX reference (mirrors the PyTorch training-mode forward)."""
    dn = jax.lax.conv_dimension_numbers(x_nchw.shape, w1.shape,
                                        ('NCHW', 'OIHW', 'NCHW'))
    y = jax.lax.conv_general_dilated(x_nchw, w1, (1, 1), 'SAME',
                                     dimension_numbers=dn)
    mean = jnp.mean(y, axis=(0, 2, 3), keepdims=True)
    var = jnp.mean((y - mean) ** 2, axis=(0, 2, 3), keepdims=True)
    y = gamma.reshape(1, -1, 1, 1) * (y - mean) * jax.lax.rsqrt(var + 1e-5) \
        + beta.reshape(1, -1, 1, 1)
    y = jnp.maximum(y, 0.0)
    y = jax.lax.conv_general_dilated(y, w2, (1, 1), 'SAME',
                                     dimension_numbers=dn)
    return x_nchw + y


if __name__ == "__main__":
    # Small shapes consistent with the module: n channels, 3x3 kernel, bn=True.
    N, C, H, W = 2, 32, 16, 16

    key = jax.random.PRNGKey(0)
    kx, k1, k2, kg, kb = jax.random.split(key, 5)

    x = jax.random.normal(kx, (N, C, H, W), jnp.float32)
    fan_in_std = (2.0 / (C * 9)) ** 0.5
    w1 = jax.random.normal(k1, (C, C, 3, 3), jnp.float32) * fan_in_std
    w2 = jax.random.normal(k2, (C, C, 3, 3), jnp.float32) * fan_in_std
    gamma = 1.0 + 0.1 * jax.random.normal(kg, (C,), jnp.float32)
    beta = 0.1 * jax.random.normal(kb, (C,), jnp.float32)

    out = jax.block_until_ready(resblock_forward(x, w1, w2, gamma, beta))
    ref = jax.block_until_ready(_reference_forward(x, w1, w2, gamma, beta))

    assert out.shape == (N, C, H, W)
    assert jnp.allclose(out, ref, rtol=1e-3, atol=1e-3), "mismatch vs reference"

    print("KERNEL_OK")
</pallas_src>

<mosaic_0001>
module attributes {stable_mosaic.version = 11 : i64} {
  func.func @resblock_kernel(%arg0: memref<32x512xf32, #tpu.memory_space<vmem>>, %arg1: memref<3x576x512xf32, #tpu.memory_space<vmem>>, %arg2: memref<3x576x512xf32, #tpu.memory_space<vmem>>, %arg3: memref<1x32xf32, #tpu.memory_space<vmem>>, %arg4: memref<1x32xf32, #tpu.memory_space<vmem>>, %arg5: memref<32x512xf32, #tpu.memory_space<vmem>>, %arg6: memref<2x18x576xf32, #tpu.memory_space<vmem>>) attributes {dimension_semantics = [], scalar_prefetch = 0 : i64, scratch_operands = 1 : i64, tpu.core_type = #tpu.core_type<tc>} {
    %cst = arith.constant 0.000000e+00 : f32
    %0 = vector.broadcast %cst : f32 to vector<2x18x576xf32>
    %c0 = arith.constant 0 : index
    %c0_0 = arith.constant 0 : index
    %c0_1 = arith.constant 0 : index
    %1 = vector.load %arg6[%c0, %c0_0, %c0_1] : memref<2x18x576xf32, #tpu.memory_space<vmem>>, vector<2x18x576xf32>
    tpu.vector_store %arg6[%c0, %c0_0, %c0_1], %0 {strides = array<i32>} : memref<2x18x576xf32, #tpu.memory_space<vmem>>, vector<2x18x576xf32>,
    %c0_2 = arith.constant 0 : index
    %c0_3 = arith.constant 0 : index
    %2 = vector.load %arg0[%c0_2, %c0_3] : memref<32x512xf32, #tpu.memory_space<vmem>>, vector<32x512xf32>
    %3 = vector.shape_cast %2 : vector<32x512xf32> to vector<2x16x512xf32>
    %c0_4 = arith.constant 0 : index
    %c1 = arith.constant 1 : index
    %c32 = arith.constant 32 : index
    %4 = vector.load %arg6[%c0_4, %c1, %c32] : memref<2x18x576xf32, #tpu.memory_space<vmem>>, vector<2x16x512xf32>
    tpu.vector_store %arg6[%c0_4, %c1, %c32], %3 {strides = array<i32>} : memref<2x18x576xf32, #tpu.memory_space<vmem>>, vector<2x16x512xf32>,
    %c0_5 = arith.constant 0 : index
    %c0_6 = arith.constant 0 : index
    %c0_7 = arith.constant 0 : index
    %5 = vector.load %arg6[%c0_5, %c0_6, %c0_7] : memref<2x18x576xf32, #tpu.memory_space<vmem>>, vector<2x16x576xf32>
    %6 = vector.shape_cast %5 : vector<2x16x576xf32> to vector<32x576xf32>
    %c0_8 = arith.constant 0 : index
    %c0_9 = arith.constant 0 : index
    %c0_10 = arith.constant 0 : index
    %7 = vector.load %arg1[%c0_8, %c0_9, %c0_10] : memref<3x576x512xf32, #tpu.memory_space<vmem>>, vector<1x576x512xf32>
    %8 = vector.shape_cast %7 : vector<1x576x512xf32> to vector<576x512xf32>
    %cst_11 = arith.constant dense<0.000000e+00> : vector<32x512xf32>
    %9 = tpu.matmul %6, %8, %cst_11 {dimension_numbers = #tpu.dot_dimension_numbers<[1], [0], [0], [1], [0, 0, 1, 1], [], []>} : vector<32x576xf32>, vector<576x512xf32>, vector<32x512xf32> -> vector<32x512xf32>
    %c0_12 = arith.constant 0 : index
    %c1_13 = arith.constant 1 : index
    %c0_14 = arith.constant 0 : index
    %10 = vector.load %arg6[%c0_12, %c1_13, %c0_14] : memref<2x18x576xf32, #tpu.memory_space<vmem>>, vector<2x16x576xf32>
    %11 = vector.shape_cast %10 : vector<2x16x576xf32> to vector<32x576xf32>
    %c1_15 = arith.constant 1 : index
    %c0_16 = arith.constant 0 : index
    %c0_17 = arith.constant 0 : index
    %12 = vector.load %arg1[%c1_15, %c0_16, %c0_17] : memref<3x576x512xf32, #tpu.memory_space<vmem>>, vector<1x576x512xf32>
    %13 = vector.shape_cast %12 : vector<1x576x512xf32> to vector<576x512xf32>
    %cst_18 = arith.constant dense<0.000000e+00> : vector<32x512xf32>
    %14 = tpu.matmul %11, %13, %cst_18 {dimension_numbers = #tpu.dot_dimension_numbers<[1], [0], [0], [1], [0, 0, 1, 1], [], []>} : vector<32x576xf32>, vector<576x512xf32>, vector<32x512xf32> -> vector<32x512xf32>
    %15 = arith.addf %9, %14 : vector<32x512xf32>
    %c0_19 = arith.constant 0 : index
    %c2 = arith.constant 2 : index
    %c0_20 = arith.constant 0 : index
    %16 = vector.load %arg6[%c0_19, %c2, %c0_20] : memref<2x18x576xf32, #tpu.memory_space<vmem>>, vector<2x16x576xf32>
    %17 = vector.shape_cast %16 : vector<2x16x576xf32> to vector<32x576xf32>
    %c2_21 = arith.constant 2 : index
    %c0_22 = arith.constant 0 : index
    %c0_23 = arith.constant 0 : index
    %18 = vector.load %arg1[%c2_21, %c0_22, %c0_23] : memref<3x576x512xf32, #tpu.memory_space<vmem>>, vector<1x576x512xf32>
    %19 = vector.shape_cast %18 : vector<1x576x512xf32> to vector<576x512xf32>
    %cst_24 = arith.constant dense<0.000000e+00> : vector<32x512xf32>
    %20 = tpu.matmul %17, %19, %cst_24 {dimension_numbers = #tpu.dot_dimension_numbers<[1], [0], [0], [1], [0, 0, 1, 1], [], []>} : vector<32x576xf32>, vector<576x512xf32>, vector<32x512xf32> -> vector<32x512xf32>
    %21 = arith.addf %15, %20 : vector<32x512xf32>
    %cst_25 = arith.constant dense<0.000000e+00> : vector<512xf32>
    %22 = vector.multi_reduction <add>, %21, %cst_25 [0] : vector<32x512xf32> to vector<512xf32>
    %23 = vector.shape_cast %22 : vector<512xf32> to vector<1x512xf32>
    %24 = arith.mulf %21, %21 : vector<32x512xf32>
    %cst_26 = arith.constant dense<0.000000e+00> : vector<512xf32>
    %25 = vector.multi_reduction <add>, %24, %cst_26 [0] : vector<32x512xf32> to vector<512xf32>
    %26 = vector.shape_cast %25 : vector<512xf32> to vector<1x512xf32>
    %27 = vector.extract_strided_slice %23 {offsets = [0, 0], sizes = [1, 32], strides = [1, 1]} : vector<1x512xf32> to vector<1x32xf32>
    %28 = vector.extract_strided_slice %26 {offsets = [0, 0], sizes = [1, 32], strides = [1, 1]} : vector<1x512xf32> to vector<1x32xf32>
    %29 = vector.extract_strided_slice %23 {offsets = [0, 32], sizes = [1, 32], strides = [1, 1]} : vector<1x512xf32> to vector<1x32xf32>
    %30 = arith.addf %27, %29 : vector<1x32xf32>
    %31 = vector.extract_strided_slice %26 {offsets = [0, 32], sizes = [1, 32], strides = [1, 1]} : vector<1x512xf32> to vector<1x32xf32>
    %32 = arith.addf %28, %31 : vector<1x32xf32>
    %33 = vector.extract_strided_slice %23 {offsets = [0, 64], sizes = [1, 32], strides = [1, 1]} : vector<1x512xf32> to vector<1x32xf32>
    %34 = arith.addf %30, %33 : vector<1x32xf32>
    %35 = vector.extract_strided_slice %26 {offsets = [0, 64], sizes = [1, 32], strides = [1, 1]} : vector<1x512xf32> to vector<1x32xf32>
    %36 = arith.addf %32, %35 : vector<1x32xf32>
    %37 = vector.extract_strided_slice %23 {offsets = [0, 96], sizes = [1, 32], strides = [1, 1]} : vector<1x512xf32> to vector<1x32xf32>
    %38 = arith.addf %34, %37 : vector<1x32xf32>
    %39 = vector.extract_strided_slice %26 {offsets = [0, 96], sizes = [1, 32], strides = [1, 1]} : vector<1x512xf32> to vector<1x32xf32>
    %40 = arith.addf %36, %39 : vector<1x32xf32>
    %41 = vector.extract_strided_slice %23 {offsets = [0, 128], sizes = [1, 32], strides = [1, 1]} : vector<1x512xf32> to vector<1x32xf32>
    %42 = arith.addf %38, %41 : vector<1x32xf32>
    %43 = vector.extract_strided_slice %26 {offsets = [0, 128], sizes = [1, 32], strides = [1, 1]} : vector<1x512xf32> to vector<1x32xf32>
    %44 = arith.addf %40, %43 : vector<1x32xf32>
    %45 = vector.extract_strided_slice %23 {offsets = [0, 160], sizes = [1, 32], strides = [1, 1]} : vector<1x512xf32> to vector<1x32xf32>
    %46 = arith.addf %42, %45 : vector<1x32xf32>
    %47 = vector.extract_strided_slice %26 {offsets = [0, 160], sizes = [1, 32], strides = [1, 1]} : vector<1x512xf32> to vector<1x32xf32>
    %48 = arith.addf %44, %47 : vector<1x32xf32>
    %49 = vector.extract_strided_slice %23 {offsets = [0, 192], sizes = [1, 32], strides = [1, 1]} : vector<1x512xf32> to vector<1x32xf32>
    %50 = arith.addf %46, %49 : vector<1x32xf32>
    %51 = vector.extract_strided_slice %26 {offsets = [0, 192], sizes = [1, 32], strides = [1, 1]} : vector<1x512xf32> to vector<1x32xf32>
    %52 = arith.addf %48, %51 : vector<1x32xf32>
    %53 = vector.extract_strided_slice %23 {offsets = [0, 224], sizes = [1, 32], strides = [1, 1]} : vector<1x512xf32> to vector<1x32xf32>
    %54 = arith.addf %50, %53 : vector<1x32xf32>
    %55 = vector.extract_strided_slice %26 {offsets = [0, 224], sizes = [1, 32], strides = [1, 1]} : vector<1x512xf32> to vector<1x32xf32>
    %56 = arith.addf %52, %55 : vector<1x32xf32>
    %57 = vector.extract_strided_slice %23 {offsets = [0, 256], sizes = [1, 32], strides = [1, 1]} : vector<1x512xf32> to vector<1x32xf32>
    %58 = arith.addf %54, %57 : vector<1x32xf32>
    %59 = vector.extract_strided_slice %26 {offsets = [0, 256], sizes = [1, 32], strides = [1, 1]} : vector<1x512xf32> to vector<1x32xf32>
    %60 = arith.addf %56, %59 : vector<1x32xf32>
    %61 = vector.extract_strided_slice %23 {offsets = [0, 288], sizes = [1, 32], strides = [1, 1]} : vector<1x512xf32> to vector<1x32xf32>
    %62 = arith.addf %58, %61 : vector<1x32xf32>
    %63 = vector.extract_strided_slice %26 {offsets = [0, 288], sizes = [1, 32], strides = [1, 1]} : vector<1x512xf32> to vector<1x32xf32>
    %64 = arith.addf %60, %63 : vector<1x32xf32>
    %65 = vector.extract_strided_slice %23 {offsets = [0, 320], sizes = [1, 32], strides = [1, 1]} : vector<1x512xf32> to vector<1x32xf32>
    %66 = arith.addf %62, %65 : vector<1x32xf32>
    %67 = vector.extract_strided_slice %26 {offsets = [0, 320], sizes = [1, 32], strides = [1, 1]} : vector<1x512xf32> to vector<1x32xf32>
    %68 = arith.addf %64, %67 : vector<1x32xf32>
    %69 = vector.extract_strided_slice %23 {offsets = [0, 352], sizes = [1, 32], strides = [1, 1]} : vector<1x512xf32> to vector<1x32xf32>
    %70 = arith.addf %66, %69 : vector<1x32xf32>
    %71 = vector.extract_strided_slice %26 {offsets = [0, 352], sizes = [1, 32], strides = [1, 1]} : vector<1x512xf32> to vector<1x32xf32>
    %72 = arith.addf %68, %71 : vector<1x32xf32>
    %73 = vector.extract_strided_slice %23 {offsets = [0, 384], sizes = [1, 32], strides = [1, 1]} : vector<1x512xf32> to vector<1x32xf32>
    %74 = arith.addf %70, %73 : vector<1x32xf32>
    %75 = vector.extract_strided_slice %26 {offsets = [0, 384], sizes = [1, 32], strides = [1, 1]} : vector<1x512xf32> to vector<1x32xf32>
    %76 = arith.addf %72, %75 : vector<1x32xf32>
    %77 = vector.extract_strided_slice %23 {offsets = [0, 416], sizes = [1, 32], strides = [1, 1]} : vector<1x512xf32> to vector<1x32xf32>
    %78 = arith.addf %74, %77 : vector<1x32xf32>
    %79 = vector.extract_strided_slice %26 {offsets = [0, 416], sizes = [1, 32], strides = [1, 1]} : vector<1x512xf32> to vector<1x32xf32>
    %80 = arith.addf %76, %79 : vector<1x32xf32>
    %81 = vector.extract_strided_slice %23 {offsets = [0, 448], sizes = [1, 32], strides = [1, 1]} : vector<1x512xf32> to vector<1x32xf32>
    %82 = arith.addf %78, %81 : vector<1x32xf32>
    %83 = vector.extract_strided_slice %26 {offsets = [0, 448], sizes = [1, 32], strides = [1, 1]} : vector<1x512xf32> to vector<1x32xf32>
    %84 = arith.addf %80, %83 : vector<1x32xf32>
    %85 = vector.extract_strided_slice %23 {offsets = [0, 480], sizes = [1, 32], strides = [1, 1]} : vector<1x512xf32> to vector<1x32xf32>
    %86 = arith.addf %82, %85 : vector<1x32xf32>
    %87 = vector.extract_strided_slice %26 {offsets = [0, 480], sizes = [1, 32], strides = [1, 1]} : vector<1x512xf32> to vector<1x32xf32>
    %88 = arith.addf %84, %87 : vector<1x32xf32>
    %cst_27 = arith.constant 0.001953125 : f32
    %89 = vector.broadcast %cst_27 : f32 to vector<1x32xf32>
    %90 = arith.mulf %86, %89 : vector<1x32xf32>
    %cst_28 = arith.constant 0.001953125 : f32
    %91 = vector.broadcast %cst_28 : f32 to vector<1x32xf32>
    %92 = arith.mulf %88, %91 : vector<1x32xf32>
    %93 = arith.mulf %90, %90 : vector<1x32xf32>
    %94 = arith.subf %92, %93 : vector<1x32xf32>
    %c0_29 = arith.constant 0 : index
    %c0_30 = arith.constant 0 : index
    %95 = vector.load %arg3[%c0_29, %c0_30] : memref<1x32xf32, #tpu.memory_space<vmem>>, vector<1x32xf32>
    %cst_31 = arith.constant 9.99999974E-6 : f32
    %96 = vector.broadcast %cst_31 : f32 to vector<1x32xf32>
    %97 = arith.addf %94, %96 : vector<1x32xf32>
    %98 = math.rsqrt %97 : vector<1x32xf32>
    %99 = arith.mulf %95, %98 : vector<1x32xf32>
    %c0_32 = arith.constant 0 : index
    %c0_33 = arith.constant 0 : index
    %100 = vector.load %arg4[%c0_32, %c0_33] : memref<1x32xf32, #tpu.memory_space<vmem>>, vector<1x32xf32>
    %101 = arith.mulf %90, %99 : vector<1x32xf32>
    %102 = arith.subf %100, %101 : vector<1x32xf32>
    %103 = tpu.concatenate %99, %99, %99, %99, %99, %99, %99, %99, %99, %99, %99, %99, %99, %99, %99, %99 in 1 : vector<1x32xf32>, vector<1x32xf32>, vector<1x32xf32>, vector<1x32xf32>, vector<1x32xf32>, vector<1x32xf32>, vector<1x32xf32>, vector<1x32xf32>, vector<1x32xf32>, vector<1x32xf32>, vector<1x32xf32>, vector<1x32xf32>, vector<1x32xf32>, vector<1x32xf32>, vector<1x32xf32>, vector<1x32xf32> -> vector<1x512xf32>
    %104 = tpu.concatenate %102, %102, %102, %102, %102, %102, %102, %102, %102, %102, %102, %102, %102, %102, %102, %102 in 1 : vector<1x32xf32>, vector<1x32xf32>, vector<1x32xf32>, vector<1x32xf32>, vector<1x32xf32>, vector<1x32xf32>, vector<1x32xf32>, vector<1x32xf32>, vector<1x32xf32>, vector<1x32xf32>, vector<1x32xf32>, vector<1x32xf32>, vector<1x32xf32>, vector<1x32xf32>, vector<1x32xf32>, vector<1x32xf32> -> vector<1x512xf32>
    %105 = vector.broadcast %103 : vector<1x512xf32> to vector<32x512xf32>
    %106 = arith.mulf %21, %105 : vector<32x512xf32>
    %107 = vector.broadcast %104 : vector<1x512xf32> to vector<32x512xf32>
    %108 = arith.addf %106, %107 : vector<32x512xf32>
    %cst_34 = arith.constant 0.000000e+00 : f32
    %109 = vector.broadcast %cst_34 : f32 to vector<32x512xf32>
    %110 = arith.maximumf %108, %109 : vector<32x512xf32>
    %111 = vector.shape_cast %110 : vector<32x512xf32> to vector<2x16x512xf32>
    %c0_35 = arith.constant 0 : index
    %c1_36 = arith.constant 1 : index
    %c32_37 = arith.constant 32 : index
    %112 = vector.load %arg6[%c0_35, %c1_36, %c32_37] : memref<2x18x576xf32, #tpu.memory_space<vmem>>, vector<2x16x512xf32>
    tpu.vector_store %arg6[%c0_35, %c1_36, %c32_37], %111 {strides = array<i32>} : memref<2x18x576xf32, #tpu.memory_space<vmem>>, vector<2x16x512xf32>,
    %c0_38 = arith.constant 0 : index
    %c0_39 = arith.constant 0 : index
    %113 = vector.load %arg0[%c0_38, %c0_39] : memref<32x512xf32, #tpu.memory_space<vmem>>, vector<32x512xf32>
    %c0_40 = arith.constant 0 : index
    %c0_41 = arith.constant 0 : index
    %c0_42 = arith.constant 0 : index
    %114 = vector.load %arg6[%c0_40, %c0_41, %c0_42] : memref<2x18x576xf32, #tpu.memory_space<vmem>>, vector<2x16x576xf32>
    %115 = vector.shape_cast %114 : vector<2x16x576xf32> to vector<32x576xf32>
    %c0_43 = arith.constant 0 : index
    %c0_44 = arith.constant 0 : index
    %c0_45 = arith.constant 0 : index
    %116 = vector.load %arg2[%c0_43, %c0_44, %c0_45] : memref<3x576x512xf32, #tpu.memory_space<vmem>>, vector<1x576x512xf32>
    %117 = vector.shape_cast %116 : vector<1x576x512xf32> to vector<576x512xf32>
    %cst_46 = arith.constant dense<0.000000e+00> : vector<32x512xf32>
    %118 = tpu.matmul %115, %117, %cst_46 {dimension_numbers = #tpu.dot_dimension_numbers<[1], [0], [0], [1], [0, 0, 1, 1], [], []>} : vector<32x576xf32>, vector<576x512xf32>, vector<32x512xf32> -> vector<32x512xf32>
    %c0_47 = arith.constant 0 : index
    %c1_48 = arith.constant 1 : index
    %c0_49 = arith.constant 0 : index
    %119 = vector.load %arg6[%c0_47, %c1_48, %c0_49] : memref<2x18x576xf32, #tpu.memory_space<vmem>>, vector<2x16x576xf32>
    %120 = vector.shape_cast %119 : vector<2x16x576xf32> to vector<32x576xf32>
    %c1_50 = arith.constant 1 : index
    %c0_51 = arith.constant 0 : index
    %c0_52 = arith.constant 0 : index
    %121 = vector.load %arg2[%c1_50, %c0_51, %c0_52] : memref<3x576x512xf32, #tpu.memory_space<vmem>>, vector<1x576x512xf32>
    %122 = vector.shape_cast %121 : vector<1x576x512xf32> to vector<576x512xf32>
    %cst_53 = arith.constant dense<0.000000e+00> : vector<32x512xf32>
    %123 = tpu.matmul %120, %122, %cst_53 {dimension_numbers = #tpu.dot_dimension_numbers<[1], [0], [0], [1], [0, 0, 1, 1], [], []>} : vector<32x576xf32>, vector<576x512xf32>, vector<32x512xf32> -> vector<32x512xf32>
    %124 = arith.addf %118, %123 : vector<32x512xf32>
    %c0_54 = arith.constant 0 : index
    %c2_55 = arith.constant 2 : index
    %c0_56 = arith.constant 0 : index
    %125 = vector.load %arg6[%c0_54, %c2_55, %c0_56] : memref<2x18x576xf32, #tpu.memory_space<vmem>>, vector<2x16x576xf32>
    %126 = vector.shape_cast %125 : vector<2x16x576xf32> to vector<32x576xf32>
    %c2_57 = arith.constant 2 : index
    %c0_58 = arith.constant 0 : index
    %c0_59 = arith.constant 0 : index
    %127 = vector.load %arg2[%c2_57, %c0_58, %c0_59] : memref<3x576x512xf32, #tpu.memory_space<vmem>>, vector<1x576x512xf32>
    %128 = vector.shape_cast %127 : vector<1x576x512xf32> to vector<576x512xf32>
    %cst_60 = arith.constant dense<0.000000e+00> : vector<32x512xf32>
    %129 = tpu.matmul %126, %128, %cst_60 {dimension_numbers = #tpu.dot_dimension_numbers<[1], [0], [0], [1], [0, 0, 1, 1], [], []>} : vector<32x576xf32>, vector<576x512xf32>, vector<32x512xf32> -> vector<32x512xf32>
    %130 = arith.addf %124, %129 : vector<32x512xf32>
    %131 = arith.addf %113, %130 : vector<32x512xf32>
    %c0_61 = arith.constant 0 : index
    %c0_62 = arith.constant 0 : index
    %132 = vector.load %arg5[%c0_61, %c0_62] : memref<32x512xf32, #tpu.memory_space<vmem>>, vector<32x512xf32>
    tpu.vector_store %arg5[%c0_61, %c0_62], %131 {strides = array<i32>} : memref<32x512xf32, #tpu.memory_space<vmem>>, vector<32x512xf32>,
    return
  }
}

</mosaic_0001>

<bundles_post_ra>
// kernel: resblock_forward.1
= control target key start
LH: loop header
LB: loop body
LE: loop exit
PB: predicated region body
PF: predicated region fallthrough
CT: control target
= control target key end

     0   :  { %vm84_vm0 = vcmask 1040384   ;;  %s7832_s30 = smov 32   ;;  %vm24_vm1 = vcmask 523264   ;;  %v7833_v28 = vmov 0.0   ;;  %vm211_vm2 = vcmask 261121   ;;  %s7835_s26 = smov 96   ;;  %s15760_s0 = inlined_call_operand.vmem [shape: f32[32,512], index: 0, kind: input, shape index: {}]   ;;  %s15761_s1 = inlined_call_operand.vmem [shape: f32[3,576,512], index: 1, kind: input, shape index: {}]   ;;  %s15762_s3 = inlined_call_operand.vmem [shape: f32[1,32], index: 3, kind: input, shape index: {}]   ;;  %s15763_s4 = inlined_call_operand.vmem [shape: f32[1,32], index: 4, kind: input, shape index: {}]   ;;  %s15764_s2 = inlined_call_operand.vmem [shape: f32[3,576,512], index: 2, kind: input, shape index: {}]   ;;  %s15765_s5 = inlined_call_operand.vmem [shape: f32[32,512], index: 5, kind: output, shape index: {}]  }
   0x1   :  { %v53_v0 = vld [vmem:[%s15760_s0 + $0x8] sm:$0xff]  ;;  %v55_v4 = vld [vmem:[%s15760_s0 + $0x18] sm:$0xff]  ;;  %v54_v5 = vld [vmem:[%s15760_s0 + $0x10] sm:$0xff]  ;;  %25 = vst.msk [vmem:[#allocation2 + $0x20] sm:$0xff] %vm24_vm1, %v7833_v28  ;;  %vm157_vm3 = vcmask 261120   ;;  %vm35_vm4 = vcmask 517120  }
   0x2   :  { %v57_v1 = vld [vmem:[%s15760_s0 + $0x28] sm:$0xff]  ;;  %v86_v2 = vrot.slane %v53_v0, 7  ;;  %v58_v6 = vld [vmem:[%s15760_s0 + $0x30] sm:$0xff]  ;;  %v88_v7 = vrot.slane %v55_v4, 7  ;;  %v59_v8 = vld [vmem:[%s15760_s0 + $0x38] sm:$0xff]  ;;  %v87_v10 = vrot.slane %v54_v5, 7 }
   0x3   :  { %v91_v3 = vrot.slane %v57_v1, 7  ;;  %v93_v11 = vrot.slane %v58_v6, 7  ;;  %v95_v12 = vrot.slane %v59_v8, 7  ;;  %v52_v15 = vld [vmem:[%s15760_s0] sm:$0xff]  ;;  %v7906_v20 = vld [vmem:[%s15760_s0 + $0x68] sm:$0xff]  ;;  %v62_v24 = vld [vmem:[%s15760_s0 + $0x50] sm:$0xff] }
   0x4   :  { %111 = vrot.lane.b32.xlu0 %v86_v2, %s7832_s30  ;;  %115 = vrot.lane.b32.xlu2 %v88_v7, %s7832_s30  ;;  %v56_v16 = vld [vmem:[%s15760_s0 + $0x20] sm:$0xff]  ;;  %v85_v17 = vrot.slane %v52_v15, 7  ;;  %v61_v21 = vld [vmem:[%s15760_s0 + $0x48] sm:$0xff]  ;;  %v103_v25 = vrot.slane %v7906_v20, 7  ;;  %20 = vst [vmem:[#allocation2] sm:$0xff] %v7833_v28  ;;  %v99_v30 = vrot.slane %v62_v24, 7 }
   0x5   :  { %v92_v9 = vsel %vm84_vm0, %v86_v2, %v91_v3  ;;  %v94_v13 = vsel %vm84_vm0, %v87_v10, %v93_v11  ;;  %v96_v14 = vsel %vm84_vm0, %v88_v7, %v95_v12  ;;  %v89_v18 = vrot.slane %v56_v16, 7  ;;  %v6726_v22 = vld [vmem:[%s15761_s1 + $0xee0] sm:$0xff]  ;;  %21 = vst [vmem:[#allocation2 + $0x8] sm:$0xff] %v7833_v28  ;;  %v66_v31 = vld [vmem:[%s15760_s0 + $0x70] sm:$0xff]  ;;  %v67_v33 = vld [vmem:[%s15760_s0 + $0x78] sm:$0xff] }
   0x6   :  { %119 = vrot.lane.b32.xlu1 %v92_v9, %s7832_s30  ;;  %v6790_v23 = vld [vmem:[%s15761_s1 + $0x10e0] sm:$0xff]  ;;  %1021 = vmatpush.msra.mxu2 %v6726_v22  ;;  %v98_v29 = vrot.slane %v61_v21, 7  ;;  %22 = vst [vmem:[#allocation2 + $0x10] sm:$0xff] %v7833_v28  ;;  %v105_v34 = vrot.slane %v66_v31, 7  ;;  %v63_v35 = vld [vmem:[%s15760_s0 + $0x58] sm:$0xff]  ;;  %v107_v36 = vrot.slane %v67_v33, 7 }
   0x7   :  { %v90_v19 = vsel %vm84_vm0, %v85_v17, %v89_v18  ;;  %1050 = vmatpush.msra.mxu3 %v6790_v23  ;;  %v6722_v26 = vld [vmem:[%s15761_s1 + $0xec0] sm:$0xff]  ;;  %23 = vst [vmem:[#allocation2 + $0x18] sm:$0xff] %v7833_v28  ;;  %v100_v37 = vrot.slane %v63_v35, 7  ;;  %vm219_vm5 = vcmask 1040640   ;;  %vm206_vm6 = vcmask 1047809  }
   0x8   :  { %v6786_v27 = vld [vmem:[%s15761_s1 + $0x10c0] sm:$0xff]  ;;  %1022 = vmatpush.msra.mxu2 %v6722_v26  ;;  %v104_v32 = vsel %vm84_vm0, %v98_v29, %v103_v25  ;;  %26 = vst [vmem:[#allocation2 + $0x28] sm:$0xff] %v7833_v28  ;;  %v106_v38 = vsel %vm84_vm0, %v99_v30, %v105_v34  ;;  %vm213_vm7 = vcmask 1047808   ;;  %vm599_vm8 = vcmask 1046528  }
   0x9   :  { %1051 = vmatpush.msra.mxu3 %v6786_v27  ;;  %30 = vst.msk [vmem:[#allocation2 + $0x48] sm:$0xff] %vm24_vm1, %v7833_v28  ;;  %v108_v39 = vsel %vm84_vm0, %v100_v37, %v107_v36  ;;  %v60_v40 = vld [vmem:[%s15760_s0 + $0x40] sm:$0xff]  ;;  %vm224_vm9 = vcmask 253952   ;;  %vm2173_vm10 = vcmask 1045504   ;;  %vm3364_vm14 = vcmask 785408  }
   0xa   :  { %31 = vst [vmem:[#allocation2 + $0x50] sm:$0x3] %v7833_v28  ;;  %v64_v41 = vld [vmem:[%s15760_s0 + $0x60] sm:$0xff]  ;;  %v97_v42 = vrot.slane %v60_v40, 7 }
   0xb   :  { %32 = vst [vmem:[#allocation2 + $0x58] sm:$0x3] %v7833_v28  ;;  %v101_v43 = vrot.slane %v64_v41, 7  ;;  %v6718_v45 = vld [vmem:[%s15761_s1 + $0xea0] sm:$0xff] }
   0xc   :  { %113 = vrot.lane.b32.xlu0 %v87_v10, %s7832_s30  ;;  %123 = vrot.lane.b32.xlu2 %v96_v14, %s7832_s30  ;;  %33 = vst [vmem:[#allocation2 + $0x60] sm:$0x3] %v7833_v28  ;;  %v6782_v46 = vld [vmem:[%s15761_s1 + $0x10a0] sm:$0xff] }
   0xd   :  { %34 = vst [vmem:[#allocation2 + $0x68] sm:$0x3] %v7833_v28  ;;  %v102_v44 = vsel %vm84_vm0, %v97_v42, %v101_v43  ;;  %v6714_v47 = vld [vmem:[%s15761_s1 + $0xe80] sm:$0xff]  ;;  %1023 = vmatpush.msra.mxu2 %v6718_v45  ;;  %1052 = vmatpush.msra.mxu3 %v6782_v46 }
   0xe   :  { %121 = vrot.lane.b32.xlu1 %v94_v13, %s7832_s30  ;;  %37 = vst [vmem:[#allocation2 + $0x78] sm:$0xff] %v7833_v28  ;;  %v6778_v48 = vld [vmem:[%s15761_s1 + $0x1080] sm:$0xff] }
   0xf   :  { %38 = vst [vmem:[#allocation2 + $0x80] sm:$0xff] %v7833_v28  ;;  %v6598_v49 = vld [vmem:[%s15761_s1 + $0xae0] sm:$0xff]  ;;  %1024 = vmatpush.msra.mxu2 %v6714_v47  ;;  %1053 = vmatpush.msra.mxu3 %v6778_v48 }
  0x10   :  { %39 = vst [vmem:[#allocation2 + $0x88] sm:$0xff] %v7833_v28  ;;  %v6662_v50 = vld [vmem:[%s15761_s1 + $0xce0] sm:$0xff]  ;;  %963 = vmatpush.msra.mxu0 %v6598_v49 }
  0x11   :  { %40 = vst [vmem:[#allocation2 + $0x90] sm:$0xff] %v7833_v28  ;;  %992 = vmatpush.msra.mxu1 %v6662_v50  ;;  %v6710_v51 = vld [vmem:[%s15761_s1 + $0xe60] sm:$0xff] }
  0x12   :  { %41 = vst.msk [vmem:[#allocation2 + $0x98] sm:$0xff] %vm24_vm1, %v7833_v28  ;;  %v6774_v52 = vld [vmem:[%s15761_s1 + $0x1060] sm:$0xff]  ;;  %1025 = vmatpush.msra.mxu2 %v6710_v51 }
  0x13   :  { %42 = vst [vmem:[#allocation2 + $0xa0] sm:$0xff] %v7833_v28  ;;  %v6594_v53 = vld [vmem:[%s15761_s1 + $0xac0] sm:$0xff]  ;;  %1054 = vmatpush.msra.mxu3 %v6774_v52 }
  0x14   :  { %109 = vrot.lane.b32.xlu0 %v85_v17, %s7832_s30  ;;  %127 = vrot.lane.b32.xlu2 %v91_v3, %s7832_s30  ;;  %46 = vst.msk [vmem:[#allocation2 + $0xc0] sm:$0xff] %vm24_vm1, %v7833_v28  ;;  %v6658_v54 = vld [vmem:[%s15761_s1 + $0xcc0] sm:$0xff] }
  0x15   :  { %47 = vst [vmem:[#allocation2 + $0xc8] sm:$0x3] %v7833_v28  ;;  %964 = vmatpush.msra.mxu0 %v6594_v53  ;;  %v6706_v55 = vld [vmem:[%s15761_s1 + $0xe40] sm:$0xff]  ;;  %993 = vmatpush.msra.mxu1 %v6658_v54  ;;  %v6663_v53 = vld [vmem:[%s15761_s1 + $0xce8] sm:$0xff] }
  0x16   :  { %117 = vrot.lane.b32.xlu1 %v90_v19, %s7832_s30  ;;  %48 = vst [vmem:[#allocation2 + $0xd0] sm:$0x3] %v7833_v28  ;;  %v6770_v56 = vld [vmem:[%s15761_s1 + $0x1040] sm:$0xff]  ;;  %1026 = vmatpush.msra.mxu2 %v6706_v55  ;;  %v6599_v55 = vld [vmem:[%s15761_s1 + $0xae8] sm:$0xff] }
  0x17   :  { %49 = vst [vmem:[#allocation2 + $0xd8] sm:$0x3] %v7833_v28  ;;  %1055 = vmatpush.msra.mxu3 %v6770_v56  ;;  %v6590_v57 = vld [vmem:[%s15761_s1 + $0xaa0] sm:$0xff]  ;;  %v6659_v56 = vld [vmem:[%s15761_s1 + $0xcc8] sm:$0xff] }
  0x18   :  { %50 = vst [vmem:[#allocation2 + $0xe0] sm:$0x3] %v7833_v28  ;;  %v6654_v58 = vld [vmem:[%s15761_s1 + $0xca0] sm:$0xff]  ;;  %965 = vmatpush.msra.mxu0 %v6590_v57  ;;  %v6727_v57 = vld [vmem:[%s15761_s1 + $0xee8] sm:$0xff] }
  0x19   :  { %v6702_v59 = vld [vmem:[%s15761_s1 + $0xe20] sm:$0xff]  ;;  %994 = vmatpush.msra.mxu1 %v6654_v58  ;;  %36 = vst.msk [vmem:[#allocation2 + $0x70] sm:$0x3] %vm35_vm4, %v7833_v28 }
  0x1a   :  { %v6766_v60 = vld [vmem:[%s15761_s1 + $0x1020] sm:$0xff]  ;;  %1027 = vmatpush.msra.mxu2 %v6702_v59  ;;  %51 = vst.msk [vmem:[#allocation2 + $0xe8] sm:$0x3] %vm35_vm4, %v7833_v28 }
  0x1b   :  { %v6586_v61 = vld [vmem:[%s15761_s1 + $0xa80] sm:$0xff]  ;;  %1056 = vmatpush.msra.mxu3 %v6766_v60 }
  0x1c   :  { %129 = vrot.lane.b32.xlu0 %v93_v11, %s7832_s30  ;;  %125 = vrot.lane.b32.xlu2 %v89_v18, %s7832_s30  ;;  %v6650_v62 = vld [vmem:[%s15761_s1 + $0xc80] sm:$0xff] }
  0x1d   :  { %v6698_v63 = vld [vmem:[%s15761_s1 + $0xe00] sm:$0xff]  ;;  %966 = vmatpush.msra.mxu0 %v6586_v61  ;;  %995 = vmatpush.msra.mxu1 %v6650_v62 }
  0x1e   :  { %131 = vrot.lane.b32.xlu1 %v95_v12, %s7832_s30  ;;  %v6762_v0 = vld [vmem:[%s15761_s1 + $0x1000] sm:$0xff]  ;;  %1028 = vmatpush.msra.mxu2 %v6698_v63 }
  0x1f   :  { %v6582_v1 = vld [vmem:[%s15761_s1 + $0xa60] sm:$0xff]  ;;  %1057 = vmatpush.msra.mxu3 %v6762_v0 }
  0x20   :  { %v6646_v2 = vld [vmem:[%s15761_s1 + $0xc60] sm:$0xff]  ;;  %967 = vmatpush.msra.mxu0 %v6582_v1 }
  0x21   :  { %v6694_v3 = vld [vmem:[%s15761_s1 + $0xde0] sm:$0xff]  ;;  %996 = vmatpush.msra.mxu1 %v6646_v2  ;;  %v6595_v2 = vld [vmem:[%s15761_s1 + $0xac8] sm:$0xff] }
  0x22   :  { %v6758_v4 = vld [vmem:[%s15761_s1 + $0xfe0] sm:$0xff]  ;;  %1029 = vmatpush.msra.mxu2 %v6694_v3 }
  0x23   :  { %v6578_v5 = vld [vmem:[%s15761_s1 + $0xa40] sm:$0xff]  ;;  %1058 = vmatpush.msra.mxu3 %v6758_v4 }
  0x24   :  { %135 = vrot.lane.b32.xlu0 %v98_v29, %s7832_s30  ;;  %143 = vrot.lane.b32.xlu2 %v104_v32, %s7832_s30  ;;  %v6642_v6 = vld [vmem:[%s15761_s1 + $0xc40] sm:$0xff] }
  0x25   :  { %968 = vmatpush.msra.mxu0 %v6578_v5  ;;  %v6690_v7 = vld [vmem:[%s15761_s1 + $0xdc0] sm:$0xff]  ;;  %997 = vmatpush.msra.mxu1 %v6642_v6  ;;  %v6655_v5 = vld [vmem:[%s15761_s1 + $0xca8] sm:$0xff] }
  0x26   :  { %137 = vrot.lane.b32.xlu1 %v99_v30, %s7832_s30  ;;  %v6754_v8 = vld [vmem:[%s15761_s1 + $0xfc0] sm:$0xff]  ;;  %1030 = vmatpush.msra.mxu2 %v6690_v7 }
  0x27   :  { %1059 = vmatpush.msra.mxu3 %v6754_v8  ;;  %v6574_v10 = vld [vmem:[%s15761_s1 + $0xa20] sm:$0xff]  ;;  %v6723_v8 = vld [vmem:[%s15761_s1 + $0xec8] sm:$0xff] }
  0x28   :  { %v6638_v11 = vld [vmem:[%s15761_s1 + $0xc20] sm:$0xff]  ;;  %969 = vmatpush.msra.mxu0 %v6574_v10  ;;  %v6591_v10 = vld [vmem:[%s15761_s1 + $0xaa8] sm:$0xff] }
  0x29   :  { %v6686_v12 = vld [vmem:[%s15761_s1 + $0xda0] sm:$0xff]  ;;  %998 = vmatpush.msra.mxu1 %v6638_v11 }
  0x2a   :  { %v6750_v13 = vld [vmem:[%s15761_s1 + $0xfa0] sm:$0xff]  ;;  %1031 = vmatpush.msra.mxu2 %v6686_v12  ;;  %v6651_v12 = vld [vmem:[%s15761_s1 + $0xc88] sm:$0xff] }
  0x2b   :  { %v6570_v14 = vld [vmem:[%s15761_s1 + $0xa00] sm:$0xff]  ;;  %1060 = vmatpush.msra.mxu3 %v6750_v13  ;;  %v6719_v13 = vld [vmem:[%s15761_s1 + $0xea8] sm:$0xff] }
  0x2c   :  { %145 = vrot.lane.b32.xlu0 %v106_v38, %s7832_s30  ;;  %147 = vrot.lane.b32.xlu2 %v108_v39, %s7832_s30  ;;  %v6634_v15 = vld [vmem:[%s15761_s1 + $0xc00] sm:$0xff] }
  0x2d   :  { %v6682_v16 = vld [vmem:[%s15761_s1 + $0xd80] sm:$0xff]  ;;  %970 = vmatpush.msra.mxu0 %v6570_v14  ;;  %999 = vmatpush.msra.mxu1 %v6634_v15  ;;  %v6587_v14 = vld [vmem:[%s15761_s1 + $0xa88] sm:$0xff] }
  0x2e   :  { %139 = vrot.lane.b32.xlu1 %v100_v37, %s7832_s30  ;;  %v6746_v17 = vld [vmem:[%s15761_s1 + $0xf80] sm:$0xff]  ;;  %1032 = vmatpush.msra.mxu2 %v6682_v16  ;;  %v6647_v16 = vld [vmem:[%s15761_s1 + $0xc68] sm:$0xff] }
  0x2f   :  { %v6566_v18 = vld [vmem:[%s15761_s1 + $0x9e0] sm:$0xff]  ;;  %1061 = vmatpush.msra.mxu3 %v6746_v17 }
  0x30   :  { %v6630_v19 = vld [vmem:[%s15761_s1 + $0xbe0] sm:$0xff]  ;;  %971 = vmatpush.msra.mxu0 %v6566_v18  ;;  %v6715_v18 = vld [vmem:[%s15761_s1 + $0xe88] sm:$0xff] }
  0x31   :  { %v6678_v20 = vld [vmem:[%s15761_s1 + $0xd60] sm:$0xff]  ;;  %1000 = vmatpush.msra.mxu1 %v6630_v19 }
  0x32   :  { %v6742_v21 = vld [vmem:[%s15761_s1 + $0xf60] sm:$0xff]  ;;  %1033 = vmatpush.msra.mxu2 %v6678_v20  ;;  %v6583_v20 = vld [vmem:[%s15761_s1 + $0xa68] sm:$0xff] }
  0x33   :  { %v6562_v22 = vld [vmem:[%s15761_s1 + $0x9c0] sm:$0xff]  ;;  %1062 = vmatpush.msra.mxu3 %v6742_v21  ;;  %v6643_v21 = vld [vmem:[%s15761_s1 + $0xc48] sm:$0xff] }
  0x34   :  { %133 = vrot.lane.b32.xlu0 %v97_v42, %s7832_s30  ;;  %151 = vrot.lane.b32.xlu2 %v103_v25, %s7832_s30  ;;  %v6626_v23 = vld [vmem:[%s15761_s1 + $0xbc0] sm:$0xff] }
  0x35   :  { %v6674_v24 = vld [vmem:[%s15761_s1 + $0xd40] sm:$0xff]  ;;  %972 = vmatpush.msra.mxu0 %v6562_v22  ;;  %1001 = vmatpush.msra.mxu1 %v6626_v23 }
  0x36   :  { %141 = vrot.lane.b32.xlu1 %v102_v44, %s7832_s30  ;;  %v6738_v25 = vld [vmem:[%s15761_s1 + $0xf40] sm:$0xff]  ;;  %1034 = vmatpush.msra.mxu2 %v6674_v24  ;;  %v6711_v24 = vld [vmem:[%s15761_s1 + $0xe68] sm:$0xff] }
  0x37   :  { %1063 = vmatpush.msra.mxu3 %v6738_v25  ;;  %v6558_v27 = vld [vmem:[%s15761_s1 + $0x9a0] sm:$0xff] }
  0x38   :  { %v6622_v29 = vld [vmem:[%s15761_s1 + $0xba0] sm:$0xff]  ;;  %973 = vmatpush.msra.mxu0 %v6558_v27 }
  0x39   :  { %v6670_v30 = vld [vmem:[%s15761_s1 + $0xd20] sm:$0xff]  ;;  %1002 = vmatpush.msra.mxu1 %v6622_v29 }
  0x3a   :  { %v6734_v31 = vld [vmem:[%s15761_s1 + $0xf20] sm:$0xff]  ;;  %1035 = vmatpush.msra.mxu2 %v6670_v30 }
  0x3b   :  { %v6554_v32 = vld [vmem:[%s15761_s1 + $0x980] sm:$0xff]  ;;  %1064 = vmatpush.msra.mxu3 %v6734_v31 }
  0x3c   :  { %153 = vrot.lane.b32.xlu0 %v105_v34, %s7832_s30  ;;  %149 = vrot.lane.b32.xlu2 %v101_v43, %s7832_s30  ;;  %v6618_v33 = vld [vmem:[%s15761_s1 + $0xb80] sm:$0xff] }
  0x3d   :  { %v6666_v34 = vld [vmem:[%s15761_s1 + $0xd00] sm:$0xff]  ;;  %974 = vmatpush.msra.mxu0 %v6554_v32  ;;  %1003 = vmatpush.msra.mxu1 %v6618_v33  ;;  %v6579_v32 = vld [vmem:[%s15761_s1 + $0xa48] sm:$0xff] }
  0x3e   :  { %155 = vrot.lane.b32.xlu1 %v107_v36, %s7832_s30  ;;  %v6730_v35 = vld [vmem:[%s15761_s1 + $0xf00] sm:$0xff]  ;;  %1036 = vmatpush.msra.mxu2 %v6666_v34 }
  0x3f   :  { %v6550_v36 = vld [vmem:[%s15761_s1 + $0x960] sm:$0xff]  ;;  %1065 = vmatpush.msra.mxu3 %v6730_v35 }
  0x40   :  { %v6614_v37 = vld [vmem:[%s15761_s1 + $0xb60] sm:$0xff]  ;;  %975 = vmatpush.msra.mxu0 %v6550_v36  ;;  %1137 = vmatpush.msrb.mxu2 %v6663_v53  ;;  %v6639_v36 = vld [vmem:[%s15761_s1 + $0xc28] sm:$0xff] }
  0x41   :  { %v6546_v38 = vld [vmem:[%s15761_s1 + $0x940] sm:$0xff]  ;;  %1004 = vmatpush.msra.mxu1 %v6614_v37  ;;  %1166 = vmatpush.msrb.mxu3 %v6727_v57  ;;  %v6707_v37 = vld [vmem:[%s15761_s1 + $0xe48] sm:$0xff] }
  0x42   :  { %v6610_v39 = vld [vmem:[%s15761_s1 + $0xb40] sm:$0xff]  ;;  %976 = vmatpush.msra.mxu0 %v6546_v38  ;;  %1138 = vmatpush.msrb.mxu2 %v6659_v56 }
  0x43   :  { %1005 = vmatpush.msra.mxu1 %v6610_v39  ;;  %v6542_v41 = vld [vmem:[%s15761_s1 + $0x920] sm:$0xff]  ;;  %1167 = vmatpush.msrb.mxu3 %v6723_v8  ;;  %v6575_v39 = vld [vmem:[%s15761_s1 + $0xa28] sm:$0xff] }
  0x44   :  { %v6606_v42 = vld [vmem:[%s15761_s1 + $0xb20] sm:$0xff]  ;;  %977 = vmatpush.msra.mxu0 %v6542_v41  ;;  %1139 = vmatpush.msrb.mxu2 %v6655_v5 }
  0x45   :  { %1006 = vmatpush.msra.mxu1 %v6606_v42  ;;  %v6538_v43 = vld [vmem:[%s15761_s1 + $0x900] sm:$0xff]  ;;  %1168 = vmatpush.msrb.mxu3 %v6719_v13  ;;  %v6635_v42 = vld [vmem:[%s15761_s1 + $0xc08] sm:$0xff] }
  0x46   :  { %v6602_v44 = vld [vmem:[%s15761_s1 + $0xb00] sm:$0xff]  ;;  %978 = vmatpush.msra.mxu0 %v6538_v43  ;;  %1140 = vmatpush.msrb.mxu2 %v6651_v12  ;;  %v6691_v12 = vld [vmem:[%s15761_s1 + $0xdc8] sm:$0xff] }
  0x47   :  { %1007 = vmatpush.msra.mxu1 %v6602_v44  ;;  %v6822_v54 = vld [vmem:[%s15761_s1 + $0x11e0] sm:$0xff]  ;;  %1169 = vmatpush.msrb.mxu3 %v6715_v18  ;;  %v6687_v18 = vld [vmem:[%s15761_s1 + $0xda8] sm:$0xff] }
  0x48   :  { %1087 = vmatpush.msrb.mxu0 %v6822_v54  ;;  %v6814_v19 = vld [vmem:[%s15761_s1 + $0x11a0] sm:$0xff]  ;;  %1141 = vmatpush.msrb.mxu2 %v6647_v16  ;;  %v6627_v54 = vld [vmem:[%s15761_s1 + $0xbc8] sm:$0xff] }
  0x49   :  { %1108 = vmatpush.msrb.mxu1 %v6599_v55  ;;  %1170 = vmatpush.msrb.mxu3 %v6711_v24  ;;  %v6810_v41 = vld [vmem:[%s15761_s1 + $0x1180] sm:$0xff]  ;;  %v6695_v55 = vld [vmem:[%s15761_s1 + $0xde8] sm:$0xff] }
  0x4a   :  { %1142 = vmatpush.msrb.mxu2 %v6643_v21  ;;  %v6619_v16 = vld [vmem:[%s15761_s1 + $0xb88] sm:$0xff] }
  0x4b   :  { %1109 = vmatpush.msrb.mxu1 %v6595_v2  ;;  %1171 = vmatpush.msrb.mxu3 %v6707_v37  ;;  %v6615_v21 = vld [vmem:[%s15761_s1 + $0xb68] sm:$0xff] }
  0x4c   :  { %1143 = vmatpush.msrb.mxu2 %v6639_v36  ;;  %v6607_v36 = vld [vmem:[%s15761_s1 + $0xb28] sm:$0xff] }
  0x4d   :  { %1110 = vmatpush.msrb.mxu1 %v6591_v10  ;;  %v6623_v10 = vld [vmem:[%s15761_s1 + $0xba8] sm:$0xff] }
  0x4e   :  { %1144 = vmatpush.msrb.mxu2 %v6635_v42  ;;  %v6675_v37 = vld [vmem:[%s15761_s1 + $0xd48] sm:$0xff] }
  0x4f   :  { %1111 = vmatpush.msrb.mxu1 %v6587_v14  ;;  %v6559_v14 = vld [vmem:[%s15761_s1 + $0x9a8] sm:$0xff] }
  0x50   :  { %v6671_v42 = vld [vmem:[%s15761_s1 + $0xd28] sm:$0xff] }
  0x51   :  { %1112 = vmatpush.msrb.mxu1 %v6583_v20 }
  0x53   :  { %1113 = vmatpush.msrb.mxu1 %v6579_v32 }
  0x55   :  { %1114 = vmatpush.msrb.mxu1 %v6575_v39  ;;  %v6543_v39 = vld [vmem:[%s15761_s1 + $0x928] sm:$0xff] }
  0x5e   :  { %v8071_v9 = vpop.permute.xlu2 %115 }
  0x5f   :  { %212 = vst.msk [vmem:[#allocation2 + $0x20] sm:$0xfe] %vm211_vm2, %v8071_v9 }
  0x66   :  { %v8123_v26 = vpop.permute.xlu2 %123 }
  0x67   :  { %218 = vst.msk [vmem:[#allocation2 + $0x48] sm:$0xff] %vm157_vm3, %v8123_v26 }
  0x6e   :  { %v8163_v40 = vpop.permute.xlu2 %127 }
  0x76   :  { %v112_v28 = vpop.permute.xlu0 %111  ;;  %v126_v46 = vpop.permute.xlu2 %125 }
  0x77   :  { %v164_v47 = vsel %vm157_vm3, %v126_v46, %v8163_v40  ;;  %220 = vst.msk [vmem:[#allocation2 + $0x50] sm:$0x1] %vm219_vm5, %v126_v46 }
  0x78   :  { %v120_v45 = vpop.permute.xlu1 %119  ;;  %221 = vst [vmem:[#allocation2 + $0x58] sm:$0x1] %v164_v47  ;;  %v6631_v47 = vld [vmem:[%s15761_s1 + $0xbe8] sm:$0xff] }
  0x79   :  { %1145 = vmatpush.msrb.mxu2 %v6631_v47 }
  0x7b   :  { %1146 = vmatpush.msrb.mxu2 %v6627_v54  ;;  %v6664_v54 = vld [vmem:[%s15761_s1 + $0xcf0] sm:$0xff] }
  0x7d   :  { %1147 = vmatpush.msrb.mxu2 %v6623_v10  ;;  %v6584_v10 = vld [vmem:[%s15761_s1 + $0xa70] sm:$0xff] }
  0x7e   :  { %v114_v48 = vpop.permute.xlu0 %113  ;;  %v8185_v52 = vpop.permute.xlu2 %143  ;;  %v554_v46 = vld [vmem:[#allocation2 + $0x50] sm:$0x1] }
  0x7f   :  { %v159_v49 = vsel %vm157_vm3, %v112_v28, %v114_v48  ;;  %v160_v50 = vsel %vm157_vm3, %v114_v48, %v8071_v9  ;;  %v6818_v9 = vld [vmem:[%s15761_s1 + $0x11c0] sm:$0xff]  ;;  %v555_v44 = vld [vmem:[#allocation2 + $0x58] sm:$0x1]  ;;  %v615_v57 = vrot.slane %v554_v46, 1  ;;  %1148 = vmatpush.msrb.mxu2 %v6619_v16 }
  0x80   :  { %v122_v51 = vpop.permute.xlu1 %121  ;;  %209 = vst [vmem:[#allocation2 + $0x10] sm:$0xfe] %v159_v49  ;;  %1088 = vmatpush.msrb.mxu0 %v6818_v9  ;;  %v6806_v48 = vld [vmem:[%s15761_s1 + $0x1160] sm:$0xff]  ;;  %v6699_v49 = vld [vmem:[%s15761_s1 + $0xe08] sm:$0xff]  ;;  %v617_v53 = vrot.slane %v555_v44, 1 }
  0x81   :  { %210 = vst [vmem:[#allocation2 + $0x18] sm:$0xfe] %v160_v50  ;;  %v8203_v58 = vsel %vm157_vm3, %v120_v45, %v122_v51  ;;  %v8207_v59 = vsel %vm157_vm3, %v122_v51, %v8123_v26  ;;  %v6567_v50 = vld [vmem:[%s15761_s1 + $0x9e8] sm:$0xff]  ;;  %1149 = vmatpush.msrb.mxu2 %v6615_v21 }
  0x82   :  { %v607_v0 = vrot.slane %v8203_v58, 1  ;;  %v610_v7 = vrot.slane %v8207_v59, 1  ;;  %1089 = vmatpush.msrb.mxu0 %v6814_v19  ;;  %v6555_v19 = vld [vmem:[%s15761_s1 + $0x988] sm:$0xff] }
  0x83   :  { %v6791_v44 = vld [vmem:[%s15761_s1 + $0x10e8] sm:$0xff] }
  0x84   :  { %1090 = vmatpush.msrb.mxu0 %v6810_v41  ;;  %v6603_v41 = vld [vmem:[%s15761_s1 + $0xb08] sm:$0xff] }
  0x86   :  { %v110_v60 = vpop.permute.xlu0 %109  ;;  %v8212_v1 = vpop.permute.xlu2 %147  ;;  %1091 = vmatpush.msrb.mxu0 %v6806_v48  ;;  %v6667_v48 = vld [vmem:[%s15761_s1 + $0xd08] sm:$0xff] }
  0x87   :  { %v158_v61 = vsel %vm157_vm3, %v110_v60, %v112_v28  ;;  %207 = vst.msk [vmem:[#allocation2] sm:$0xfe] %vm206_vm6, %v110_v60  ;;  %v551_v63 = vld [vmem:[#allocation2 + $0x10] sm:$0xfe]  ;;  %v6703_v28 = vld [vmem:[%s15761_s1 + $0xe28] sm:$0xff] }
  0x88   :  { %v118_v62 = vpop.permute.xlu1 %117  ;;  %208 = vst [vmem:[#allocation2 + $0x8] sm:$0xfe] %v158_v61  ;;  %v606_v3 = vrot.slane %v551_v63, 1  ;;  %v552_v4 = vld [vmem:[#allocation2 + $0x18] sm:$0xfe]  ;;  %1172 = vmatpush.msrb.mxu3 %v6703_v28  ;;  %v6802_v63 = vld [vmem:[%s15761_s1 + $0x1140] sm:$0xff] }
  0x89   :  { %214 = vst.msk [vmem:[#allocation2 + $0x28] sm:$0xff] %vm213_vm7, %v118_v62  ;;  %v609_v6 = vrot.slane %v552_v4, 1  ;;  %v8257_v17 = vsel %vm157_vm3, %v118_v62, %v120_v45  ;;  %v6571_v45 = vld [vmem:[%s15761_s1 + $0xa08] sm:$0xff]  ;;  %1092 = vmatpush.msrb.mxu0 %v6802_v63 }
  0x8a   :  { %v8234_v11 = vsel %vm599_vm8, %v606_v3, %v607_v0  ;;  %235 = vst.msk [vmem:[#allocation2 + $0xc0] sm:$0xff] %vm157_vm3, %v8212_v1  ;;  %v604_v30 = vrot.slane %v8257_v17, 1  ;;  %1115 = vmatpush.msrb.mxu1 %v6571_v45  ;;  %v6563_v62 = vld [vmem:[%s15761_s1 + $0x9c8] sm:$0xff]  ;;  %1173 = vmatpush.msrb.mxu3 %v6699_v49  ;;  %v6600_v45 = vld [vmem:[%s15761_s1 + $0xaf0] sm:$0xff] }
  0x8b   :  { %1037 = vmatmul.f32.vlgmr.msra.gmra.mxu2 %v8234_v11  ;;  %v8251_v15 = vsel %vm599_vm8, %v609_v6, %v610_v7  ;;  %v6539_v28 = vld [vmem:[%s15761_s1 + $0x908] sm:$0xff] }
  0x8c   :  { %1066 = vmatmul.f32.vlgmr.msra.gmra.mxu3 %v8251_v15  ;;  %1116 = vmatpush.msrb.mxu1 %v6567_v50  ;;  %v8358_v9 = vsel %vm599_vm8, %v604_v30, %v617_v53  ;;  %v6787_v49 = vld [vmem:[%s15761_s1 + $0x10c8] sm:$0xff] }
  0x8d   :  { %1174 = vmatpush.msrb.mxu3 %v6695_v55  ;;  %v6779_v63 = vld [vmem:[%s15761_s1 + $0x1088] sm:$0xff] }
  0x8e   :  { %v130_v22 = vpop.permute.xlu0 %129  ;;  %v549_v23 = vld [vmem:[#allocation2] sm:$0xfe]  ;;  %v8278_v31 = vpop.permute.xlu2 %151  ;;  %1117 = vmatpush.msrb.mxu1 %v6563_v62  ;;  %v6660_v62 = vld [vmem:[%s15761_s1 + $0xcd0] sm:$0xff] }
  0x8f   :  { %v165_v25 = vsel %vm157_vm3, %v8163_v40, %v130_v22  ;;  %v600_v27 = vrot.slane %v549_v23, 1  ;;  %v550_v29 = vld [vmem:[#allocation2 + $0x8] sm:$0xfe]  ;;  %1175 = vmatpush.msrb.mxu3 %v6691_v12  ;;  %v6652_v12 = vld [vmem:[%s15761_s1 + $0xc90] sm:$0xff] }
  0x90   :  { %v132_v26 = vpop.permute.xlu1 %131  ;;  %222 = vst [vmem:[#allocation2 + $0x60] sm:$0x1] %v165_v25  ;;  %v8284_v34 = vld [vmem:[#allocation2 + $0x28] sm:$0xff]  ;;  %v603_v35 = vrot.slane %v550_v29, 1  ;;  %1118 = vmatpush.msrb.mxu1 %v6559_v14 }
  0x91   :  { %v166_v33 = vsel %vm157_vm3, %v130_v22, %v132_v26  ;;  %v601_v38 = vrot.slane %v8284_v34, 1  ;;  %225 = vst.msk [vmem:[#allocation2 + $0x70] sm:$0x1] %vm224_vm9, %v132_v26  ;;  %v6683_v22 = vld [vmem:[%s15761_s1 + $0xd88] sm:$0xff]  ;;  %1176 = vmatpush.msrb.mxu3 %v6687_v18 }
  0x92   :  { %223 = vst [vmem:[#allocation2 + $0x68] sm:$0x1] %v166_v33  ;;  %v8300_v40 = vsel %vm599_vm8, %v603_v35, %v604_v30  ;;  %v6551_v25 = vld [vmem:[%s15761_s1 + $0x968] sm:$0xff]  ;;  %1119 = vmatpush.msrb.mxu1 %v6555_v19 }
  0x93   :  { %v8309_v43 = vsel %vm599_vm8, %v600_v27, %v601_v38  ;;  %1008 = vmatmul.f32.vlgmr.msra.gmra.mxu1 %v8300_v40  ;;  %v8367_v13 = vsel %vm599_vm8, %v601_v38, %v615_v57  ;;  %v6611_v26 = vld [vmem:[%s15761_s1 + $0xb48] sm:$0xff]  ;;  %v6794_v27 = vld [vmem:[%s15761_s1 + $0x1100] sm:$0xff]  ;;  %1177 = vmatpush.msrb.mxu3 %v6683_v22 }
  0x94   :  { %979 = vmatmul.f32.vlgmr.msra.gmra.mxu0 %v8309_v43  ;;  %v6679_v33 = vld [vmem:[%s15761_s1 + $0xd68] sm:$0xff]  ;;  %1120 = vmatpush.msrb.mxu1 %v6551_v25 }
  0x95   :  { %v6547_v35 = vld [vmem:[%s15761_s1 + $0x948] sm:$0xff]  ;;  %1150 = vmatpush.msrb.mxu2 %v6611_v26  ;;  %1178 = vmatpush.msrb.mxu3 %v6679_v33  ;;  %v6576_v33 = vld [vmem:[%s15761_s1 + $0xa30] sm:$0xff] }
  0x96   :  { %v8331_v51 = vpop.permute.xlu0 %135  ;;  %v150_v61 = vpop.permute.xlu2 %149  ;;  %1121 = vmatpush.msrb.mxu1 %v6547_v35  ;;  %v6775_v14 = vld [vmem:[%s15761_s1 + $0x1068] sm:$0xff]  ;;  %v6644_v35 = vld [vmem:[%s15761_s1 + $0xc50] sm:$0xff] }
  0x97   :  { %v556_v60 = vld [vmem:[#allocation2 + $0x60] sm:$0x1]  ;;  %v173_v5 = vsel %vm157_vm3, %v150_v61, %v8278_v31  ;;  %236 = vst.msk [vmem:[#allocation2 + $0xc8] sm:$0x1] %vm219_vm5, %v150_v61  ;;  %1151 = vmatpush.msrb.mxu2 %v6607_v36  ;;  %1179 = vmatpush.msrb.mxu3 %v6675_v37  ;;  %v6592_v61 = vld [vmem:[%s15761_s1 + $0xab0] sm:$0xff]  ;;  %v6767_v36 = vld [vmem:[%s15761_s1 + $0x1028] sm:$0xff] }
  0x98   :  { %v138_v56 = vpop.permute.xlu1 %137  ;;  %v619_v3 = vrot.slane %v556_v60, 1  ;;  %237 = vst [vmem:[#allocation2 + $0xd0] sm:$0x1] %v173_v5  ;;  %1122 = vmatpush.msrb.mxu1 %v6543_v39  ;;  %v6819_v5 = vld [vmem:[%s15761_s1 + $0x11c8] sm:$0xff] }
  0x99   :  { %v168_v2 = vsel %vm157_vm3, %v8331_v51, %v138_v56  ;;  %v557_v4 = vld [vmem:[#allocation2 + $0x68] sm:$0x1]  ;;  %1152 = vmatpush.msrb.mxu2 %v6603_v41  ;;  %1180 = vmatpush.msrb.mxu3 %v6671_v42  ;;  %v6572_v42 = vld [vmem:[%s15761_s1 + $0xa10] sm:$0xff] }
  0x9a   :  { %228 = vst [vmem:[#allocation2 + $0x88] sm:$0xfe] %v168_v2  ;;  %v621_v6 = vrot.slane %v557_v4, 1  ;;  %v8353_v8 = vsel %vm599_vm8, %v607_v0, %v619_v3  ;;  %1123 = vmatpush.msrb.mxu1 %v6539_v28  ;;  %v6588_v3 = vld [vmem:[%s15761_s1 + $0xa90] sm:$0xff]  ;;  %v6763_v28 = vld [vmem:[%s15761_s1 + $0x1008] sm:$0xff] }
  0x9b   :  { %1040 = vmatmul.f32.gmra.mxu2 %v8353_v8  ;;  %1011 = vmatmul.f32.gmra.mxu1 %v8358_v9  ;;  %v6656_v4 = vld [vmem:[%s15761_s1 + $0xcb0] sm:$0xff] }
  0x9c   :  { %v8374_v0 = vsel %vm599_vm8, %v610_v7, %v621_v6  ;;  %982 = vmatmul.f32.gmra.mxu0 %v8367_v13  ;;  %v6798_v7 = vld [vmem:[%s15761_s1 + $0x1120] sm:$0xff]  ;;  %1253 = vmatpush.msra.mxu2 %v6600_v45  ;;  %v6811_v45 = vld [vmem:[%s15761_s1 + $0x1188] sm:$0xff] }
  0x9d   :  { %1069 = vmatmul.f32.gmra.mxu3 %v8374_v0  ;;  %1093 = vmatpush.msrb.mxu0 %v6798_v7  ;;  %v6815_v7 = vld [vmem:[%s15761_s1 + $0x11a8] sm:$0xff] }
  0x9e   :  { %v146_v20 = vpop.permute.xlu0 %145  ;;  %1181 = vmatpush.msrb.mxu3 %v6667_v48  ;;  %v564_v39 = vld [vmem:[#allocation2 + $0xc8] sm:$0x1] }
  0x9f   :  { %v8401_v23 = vsel %vm157_vm3, %v8185_v52, %v146_v20  ;;  %1094 = vmatpush.msrb.mxu0 %v6794_v27  ;;  %v8453_v46 = vsel %vm157_vm3, %v146_v20, %v8212_v1  ;;  %v6596_v1 = vld [vmem:[%s15761_s1 + $0xad0] sm:$0xff] }
  0xa0   :  { %v140_v24 = vpop.permute.xlu1 %139  ;;  %v632_v32 = vrot.slane %v8401_v23, 1  ;;  %v635_v60 = vrot.slane %v8453_v46, 1  ;;  %1254 = vmatpush.msra.mxu2 %v6596_v1  ;;  %1282 = vmatpush.msra.mxu3 %v6664_v54  ;;  %v565_v41 = vld [vmem:[#allocation2 + $0xd0] sm:$0x1]  ;;  %v640_v1 = vrot.slane %v564_v39, 1 }
  0xa1   :  { %v169_v29 = vsel %vm157_vm3, %v138_v56, %v140_v24  ;;  %230 = vst.msk [vmem:[#allocation2 + $0x98] sm:$0xfe] %vm211_vm2, %v140_v24  ;;  %v561_v30 = vld [vmem:[#allocation2 + $0x88] sm:$0xfe]  ;;  %1195 = vmatpush.msra.mxu0 %v6791_v44  ;;  %v6580_v24 = vld [vmem:[%s15761_s1 + $0xa50] sm:$0xff]  ;;  %v642_v48 = vrot.slane %v565_v41, 1 }
  0xa2   :  { %229 = vst [vmem:[#allocation2 + $0x90] sm:$0xfe] %v169_v29  ;;  %v631_v34 = vrot.slane %v561_v30, 1  ;;  %v6783_v56 = vld [vmem:[%s15761_s1 + $0x10a8] sm:$0xff]  ;;  %1255 = vmatpush.msra.mxu2 %v6592_v61  ;;  %1283 = vmatpush.msra.mxu3 %v6660_v62  ;;  %v6640_v44 = vld [vmem:[%s15761_s1 + $0xc30] sm:$0xff] }
  0xa3   :  { %1196 = vmatpush.msra.mxu0 %v6787_v49  ;;  %v6636_v49 = vld [vmem:[%s15761_s1 + $0xc10] sm:$0xff]  ;;  %v6735_v41 = vld [vmem:[%s15761_s1 + $0xf28] sm:$0xff] }
  0xa4   :  { %v8430_v38 = vsel %vm599_vm8, %v631_v34, %v632_v32  ;;  %1256 = vmatpush.msra.mxu2 %v6588_v3  ;;  %1284 = vmatpush.msra.mxu3 %v6656_v4  ;;  %v6755_v3 = vld [vmem:[%s15761_s1 + $0xfc8] sm:$0xff]  ;;  %v6612_v39 = vld [vmem:[%s15761_s1 + $0xb50] sm:$0xff] }
  0xa5   :  { %1043 = vmatmul.f32.gmra.mxu2 %v8430_v38  ;;  %1197 = vmatpush.msra.mxu0 %v6783_v56 }
  0xa6   :  { %v134_v47 = vpop.permute.xlu0 %133  ;;  %1257 = vmatpush.msra.mxu2 %v6584_v10  ;;  %1285 = vmatpush.msra.mxu3 %v6652_v12  ;;  %v553_v10 = vld [vmem:[#allocation2 + $0x20] sm:$0xfe]  ;;  %v6560_v12 = vld [vmem:[%s15761_s1 + $0x9b0] sm:$0xff] }
  0xa7   :  { %v167_v50 = vsel %vm157_vm3, %v134_v47, %v8331_v51  ;;  %226 = vst.msk [vmem:[#allocation2 + $0x78] sm:$0xfe] %vm206_vm6, %v134_v47  ;;  %v6823_v51 = vld [vmem:[%s15761_s1 + $0x11e8] sm:$0xff]  ;;  %1198 = vmatpush.msra.mxu0 %v6779_v63  ;;  %v6568_v47 = vld [vmem:[%s15761_s1 + $0x9f0] sm:$0xff] }
  0xa8   :  { %v142_v53 = vpop.permute.xlu1 %141  ;;  %227 = vst [vmem:[#allocation2 + $0x80] sm:$0xfe] %v167_v50  ;;  %1232 = vmatpush.msra.mxu1 %v6823_v51  ;;  %1258 = vmatpush.msra.mxu2 %v6580_v24  ;;  %v6759_v50 = vld [vmem:[%s15761_s1 + $0xfe8] sm:$0xff]  ;;  %v6632_v63 = vld [vmem:[%s15761_s1 + $0xbf0] sm:$0xff] }
  0xa9   :  { %v562_v55 = vld [vmem:[#allocation2 + $0x90] sm:$0xfe]  ;;  %231 = vst.msk [vmem:[#allocation2 + $0xa0] sm:$0xff] %vm213_vm7, %v142_v53  ;;  %v8504_v6 = vsel %vm157_vm3, %v142_v53, %v8185_v52  ;;  %v6771_v52 = vld [vmem:[%s15761_s1 + $0x1048] sm:$0xff]  ;;  %1199 = vmatpush.msra.mxu0 %v6775_v14 }
  0xaa   :  { %v634_v57 = vrot.slane %v562_v55, 1  ;;  %1233 = vmatpush.msra.mxu1 %v6819_v5  ;;  %v629_v29 = vrot.slane %v8504_v6, 1  ;;  %1259 = vmatpush.msra.mxu2 %v6576_v33  ;;  %v6807_v53 = vld [vmem:[%s15761_s1 + $0x1168] sm:$0xff]  ;;  %v6564_v55 = vld [vmem:[%s15761_s1 + $0x9d0] sm:$0xff] }
  0xab   :  { %1200 = vmatpush.msra.mxu0 %v6771_v52  ;;  %v250_v5 = vld [vmem:[#allocation2 + $0x48] sm:$0xff]  ;;  %v6628_v14 = vld [vmem:[%s15761_s1 + $0xbd0] sm:$0xff] }
  0xac   :  { %v8490_v2 = vsel %vm599_vm8, %v634_v57, %v635_v60  ;;  %1234 = vmatpush.msra.mxu1 %v6815_v7  ;;  %1260 = vmatpush.msra.mxu2 %v6572_v42  ;;  %v8582_v62 = vsel %vm599_vm8, %v629_v29, %v642_v48  ;;  %v6624_v52 = vld [vmem:[%s15761_s1 + $0xbb0] sm:$0xff]  ;;  %v6747_v7 = vld [vmem:[%s15761_s1 + $0xf88] sm:$0xff] }
  0xad   :  { %1072 = vmatmul.f32.gmra.mxu3 %v8490_v2  ;;  %1201 = vmatpush.msra.mxu0 %v6767_v36  ;;  %v6620_v24 = vld [vmem:[%s15761_s1 + $0xb90] sm:$0xff]  ;;  %v6739_v33 = vld [vmem:[%s15761_s1 + $0xf48] sm:$0xff] }
  0xae   :  { %v154_v16 = vpop.permute.xlu0 %153  ;;  %v559_v18 = vld [vmem:[#allocation2 + $0x78] sm:$0xfe]  ;;  %1235 = vmatpush.msra.mxu1 %v6811_v45  ;;  %1261 = vmatpush.msra.mxu2 %v6568_v47  ;;  %v6792_v36 = vld [vmem:[%s15761_s1 + $0x10f0] sm:$0xff]  ;;  %v6731_v47 = vld [vmem:[%s15761_s1 + $0xf08] sm:$0xff] }
  0xaf   :  { %v174_v19 = vsel %vm157_vm3, %v8278_v31, %v154_v16  ;;  %v625_v21 = vrot.slane %v559_v18, 1  ;;  %v560_v22 = vld [vmem:[#allocation2 + $0x80] sm:$0xfe]  ;;  %v6648_v31 = vld [vmem:[%s15761_s1 + $0xc70] sm:$0xff]  ;;  %1202 = vmatpush.msra.mxu0 %v6763_v28 }
  0xb0   :  { %v156_v20 = vpop.permute.xlu1 %155  ;;  %238 = vst [vmem:[#allocation2 + $0xd8] sm:$0x1] %v174_v19  ;;  %v256_v26 = vld [vmem:[#allocation2 + $0xa0] sm:$0xff]  ;;  %v628_v27 = vrot.slane %v560_v22, 1  ;;  %1286 = vmatpush.msra.mxu3 %v6648_v31  ;;  %1236 = vmatpush.msra.mxu1 %v6807_v53  ;;  %v6556_v18 = vld [vmem:[%s15761_s1 + $0x990] sm:$0xff]  ;;  %v6799_v19 = vld [vmem:[%s15761_s1 + $0x1128] sm:$0xff] }
  0xb1   :  { %v175_v25 = vsel %vm157_vm3, %v154_v16, %v156_v20  ;;  %v626_v30 = vrot.slane %v256_v26, 1  ;;  %240 = vst.msk [vmem:[#allocation2 + $0xe8] sm:$0x1] %vm224_vm9, %v156_v20  ;;  %1203 = vmatpush.msra.mxu0 %v6759_v50  ;;  %1262 = vmatpush.msra.mxu2 %v6564_v55  ;;  %v6751_v16 = vld [vmem:[%s15761_s1 + $0xfa8] sm:$0xff]  ;;  %v612_v20 = vrot.slane %v553_v10, 1  ;;  %v6552_v22 = vld [vmem:[%s15761_s1 + $0x970] sm:$0xff] }
  0xb2   :  { %239 = vst [vmem:[#allocation2 + $0xe0] sm:$0x1] %v175_v25  ;;  %v8536_v34 = vsel %vm599_vm8, %v628_v27, %v629_v29  ;;  %1287 = vmatpush.msra.mxu3 %v6644_v35  ;;  %v6743_v25 = vld [vmem:[%s15761_s1 + $0xf68] sm:$0xff]  ;;  %v6548_v27 = vld [vmem:[%s15761_s1 + $0x950] sm:$0xff]  ;;  %v6597_v10 = vld [vmem:[%s15761_s1 + $0xad8] sm:$0xff] }
  0xb3   :  { %v8545_v37 = vsel %vm599_vm8, %v625_v21, %v626_v30  ;;  %1014 = vmatmul.f32.gmra.mxu1 %v8536_v34  ;;  %v8591_v4 = vsel %vm599_vm8, %v626_v30, %v640_v1  ;;  %1204 = vmatpush.msra.mxu0 %v6755_v3  ;;  %v613_v21 = vrot.slane %v250_v5, 1  ;;  %v6795_v29 = vld [vmem:[%s15761_s1 + $0x1108] sm:$0xff]  ;;  %v558_v31 = vld [vmem:[#allocation2 + $0x70] sm:$0x1]  ;;  %v563_v1 = vld [vmem:[#allocation2 + $0x98] sm:$0xfe] }
  0xb4   :  { %985 = vmatmul.f32.gmra.mxu0 %v8545_v37  ;;  %1288 = vmatpush.msra.mxu3 %v6640_v44  ;;  %v6616_v30 = vld [vmem:[%s15761_s1 + $0xb70] sm:$0xff]  ;;  %v623_v42 = vrot.slane %v558_v31, 1  ;;  %v637_v3 = vrot.slane %v563_v1, 1 }
  0xb5   :  { %1263 = vmatpush.msra.mxu2 %v6560_v12  ;;  %1205 = vmatpush.msra.mxu0 %v6751_v16  ;;  %v8636_v26 = vsel %vm599_vm8, %v612_v20, %v613_v21  ;;  %v6544_v35 = vld [vmem:[%s15761_s1 + $0x930] sm:$0xff] }
  0xb6   :  { %1289 = vmatpush.msra.mxu3 %v6636_v49  ;;  %v6540_v44 = vld [vmem:[%s15761_s1 + $0x910] sm:$0xff]  ;;  %v8680_v48 = vsel %vm599_vm8, %v613_v21, %v623_v42  ;;  %v8684_v49 = vld [vmem:[#allocation2 + $0xc0] sm:$0xff] }
  0xb7   :  { %v566_v54 = vld [vmem:[#allocation2 + $0xd8] sm:$0x1]  ;;  %1264 = vmatpush.msra.mxu2 %v6556_v18  ;;  %1206 = vmatpush.msra.mxu0 %v6747_v7  ;;  %v6788_v28 = vld [vmem:[%s15761_s1 + $0x10d0] sm:$0xff]  ;;  %v638_v5 = vrot.slane %v8684_v49, 1 }
  0xb8   :  { %v644_v51 = vrot.slane %v566_v54, 1  ;;  %1290 = vmatpush.msra.mxu3 %v6632_v63  ;;  %v6608_v45 = vld [vmem:[%s15761_s1 + $0xb30] sm:$0xff]  ;;  %v568_v7 = vld [vmem:[#allocation2 + $0xe8] sm:$0x1] }
  0xb9   :  { %v567_v56 = vld [vmem:[#allocation2 + $0xe0] sm:$0x1]  ;;  %1265 = vmatpush.msra.mxu2 %v6552_v22  ;;  %1207 = vmatpush.msra.mxu0 %v6743_v25  ;;  %v6824_v50 = vld [vmem:[%s15761_s1 + $0x11f0] sm:$0xff] }
  0xba   :  { %v646_v57 = vrot.slane %v567_v56, 1  ;;  %v8579_v61 = vsel %vm599_vm8, %v632_v32, %v644_v51  ;;  %1291 = vmatpush.msra.mxu3 %v6628_v14  ;;  %v6728_v53 = vld [vmem:[%s15761_s1 + $0xef0] sm:$0xff]  ;;  %v6601_v51 = vld [vmem:[%s15761_s1 + $0xaf8] sm:$0xff] }
  0xbb   :  { %1046 = vmatmul.f32.gmra.mxu2 %v8579_v61  ;;  %1017 = vmatmul.f32.gmra.mxu1 %v8582_v62  ;;  %v6604_v54 = vld [vmem:[%s15761_s1 + $0xb10] sm:$0xff]  ;;  %v6593_v14 = vld [vmem:[%s15761_s1 + $0xab8] sm:$0xff] }
  0xbc   :  { %v8598_v32 = vsel %vm599_vm8, %v635_v60, %v646_v57  ;;  %988 = vmatmul.f32.gmra.mxu0 %v8591_v4  ;;  %v6803_v60 = vld [vmem:[%s15761_s1 + $0x1148] sm:$0xff]  ;;  %1292 = vmatpush.msra.mxu3 %v6624_v52  ;;  %v6784_v55 = vld [vmem:[%s15761_s1 + $0x10b0] sm:$0xff] }
  0xbd   :  { %1075 = vmatmul.f32.gmra.mxu3 %v8598_v32  ;;  %1237 = vmatpush.msra.mxu1 %v6803_v60  ;;  %v6724_v56 = vld [vmem:[%s15761_s1 + $0xed0] sm:$0xff]  ;;  %v8727_v60 = vsel %vm599_vm8, %v637_v3, %v638_v5  ;;  %v6561_v3 = vld [vmem:[%s15761_s1 + $0x9b8] sm:$0xff] }
  0xbe   :  { %1293 = vmatpush.msra.mxu3 %v6620_v24  ;;  %1266 = vmatpush.msra.mxu2 %v6548_v27  ;;  %v6820_v57 = vld [vmem:[%s15761_s1 + $0x11d0] sm:$0xff]  ;;  %v6585_v24 = vld [vmem:[%s15761_s1 + $0xa78] sm:$0xff]  ;;  %v648_v27 = vrot.slane %v568_v7, 1 }
  0xbf   :  { %1238 = vmatpush.msra.mxu1 %v6799_v19  ;;  %1208 = vmatpush.msra.mxu0 %v6739_v33  ;;  %v6780_v63 = vld [vmem:[%s15761_s1 + $0x1090] sm:$0xff]  ;;  %v6589_v19 = vld [vmem:[%s15761_s1 + $0xa98] sm:$0xff] }
  0xc0   :  { %1294 = vmatpush.msra.mxu3 %v6616_v30  ;;  %1267 = vmatpush.msra.mxu2 %v6544_v35  ;;  %v6720_v12 = vld [vmem:[%s15761_s1 + $0xeb0] sm:$0xff]  ;;  %v6581_v30 = vld [vmem:[%s15761_s1 + $0xa58] sm:$0xff]  ;;  %v8771_v35 = vsel %vm599_vm8, %v638_v5, %v648_v27 }
  0xc1   :  { %1239 = vmatpush.msra.mxu1 %v6795_v29  ;;  %1209 = vmatpush.msra.mxu0 %v6735_v41  ;;  %v6716_v16 = vld [vmem:[%s15761_s1 + $0xe90] sm:$0xff]  ;;  %v6577_v41 = vld [vmem:[%s15761_s1 + $0xa38] sm:$0xff] }
  0xc2   :  { %1295 = vmatpush.msra.mxu3 %v6612_v39  ;;  %1268 = vmatpush.msra.mxu2 %v6540_v44  ;;  %v6816_v18 = vld [vmem:[%s15761_s1 + $0x11b0] sm:$0xff]  ;;  %v6553_v7 = vld [vmem:[%s15761_s1 + $0x978] sm:$0xff] }
  0xc3   :  { %1153 = vmatmul.f32.vlgmr.msrb.gmra.mxu2 %v8300_v40  ;;  %1124 = vmatmul.f32.vlgmr.msrb.gmra.mxu1 %v8309_v43  ;;  %v6776_v52 = vld [vmem:[%s15761_s1 + $0x1070] sm:$0xff]  ;;  %v6773_v27 = vld [vmem:[%s15761_s1 + $0x1058] sm:$0xff] }
  0xc4   :  { %6826 = vmatmul.msk.f32.vlgmr.msrb.gmra.mxu0 %vm24_vm1, %v8636_v26  ;;  %1340 = vmatpush.msrb.mxu1 %v6792_v36  ;;  %v6712_v20 = vld [vmem:[%s15761_s1 + $0xe70] sm:$0xff] }
  0xc5   :  { %1182 = vmatmul.f32.vlgmr.msrb.gmra.mxu3 %v8234_v11  ;;  %1210 = vmatpush.msra.mxu0 %v6731_v47  ;;  %v6772_v21 = vld [vmem:[%s15761_s1 + $0x1050] sm:$0xff] }
  0xc6   :  { %1341 = vmatpush.msrb.mxu1 %v6788_v28  ;;  %1296 = vmatpush.msra.mxu3 %v6608_v45  ;;  %v6812_v22 = vld [vmem:[%s15761_s1 + $0x1190] sm:$0xff]  ;;  %v6573_v45 = vld [vmem:[%s15761_s1 + $0xa18] sm:$0xff] }
  0xc7   :  { %1377 = vmatpush.msrb.mxu2 %v6824_v50  ;;  %1311 = vmatpush.msrb.mxu0 %v6728_v53  ;;  %v6708_v25 = vld [vmem:[%s15761_s1 + $0xe50] sm:$0xff]  ;;  %v6569_v53 = vld [vmem:[%s15761_s1 + $0x9f8] sm:$0xff] }
  0xc8   :  { %1297 = vmatpush.msra.mxu3 %v6604_v54  ;;  %1342 = vmatpush.msrb.mxu1 %v6784_v55  ;;  %v6768_v29 = vld [vmem:[%s15761_s1 + $0x1030] sm:$0xff]  ;;  %v6565_v55 = vld [vmem:[%s15761_s1 + $0x9d8] sm:$0xff] }
  0xc9   :  { %1312 = vmatpush.msrb.mxu0 %v6724_v56  ;;  %1378 = vmatpush.msrb.mxu2 %v6820_v57  ;;  %v6808_v31 = vld [vmem:[%s15761_s1 + $0x1170] sm:$0xff]  ;;  %v6793_v56 = vld [vmem:[%s15761_s1 + $0x10f8] sm:$0xff] }
  0xca   :  { %1398 = vmatpush.msrb.mxu3 %v6601_v51  ;;  %1343 = vmatpush.msrb.mxu1 %v6780_v63  ;;  %v6704_v33 = vld [vmem:[%s15761_s1 + $0xe30] sm:$0xff]  ;;  %v6789_v63 = vld [vmem:[%s15761_s1 + $0x10d8] sm:$0xff] }
  0xcb   :  { %1156 = vmatmul.f32.gmra.mxu2 %v8358_v9  ;;  %1127 = vmatmul.f32.gmra.mxu1 %v8367_v13  ;;  %v6764_v36 = vld [vmem:[%s15761_s1 + $0x1010] sm:$0xff] }
  0xcc   :  { %6827 = vmatmul.msk.f32.gmra.mxu0 %vm24_vm1, %v8680_v48  ;;  %1399 = vmatpush.msrb.mxu3 %v6597_v10  ;;  %v6804_v39 = vld [vmem:[%s15761_s1 + $0x1150] sm:$0xff] }
  0xcd   :  { %1185 = vmatmul.f32.gmra.mxu3 %v8353_v8  ;;  %1313 = vmatpush.msrb.mxu0 %v6720_v12  ;;  %v6700_v42 = vld [vmem:[%s15761_s1 + $0xe10] sm:$0xff]  ;;  %v6785_v12 = vld [vmem:[%s15761_s1 + $0x10b8] sm:$0xff] }
  0xce   :  { %1400 = vmatpush.msrb.mxu3 %v6593_v14  ;;  %1379 = vmatpush.msrb.mxu2 %v6816_v18  ;;  %v6760_v44 = vld [vmem:[%s15761_s1 + $0xff0] sm:$0xff]  ;;  %v6557_v14 = vld [vmem:[%s15761_s1 + $0x998] sm:$0xff] }
  0xcf   :  { %1314 = vmatpush.msrb.mxu0 %v6716_v16  ;;  %1344 = vmatpush.msrb.mxu1 %v6776_v52  ;;  %v6800_v28 = vld [vmem:[%s15761_s1 + $0x1130] sm:$0xff]  ;;  %v6781_v52 = vld [vmem:[%s15761_s1 + $0x1098] sm:$0xff] }
  0xd0   :  { %1401 = vmatpush.msrb.mxu3 %v6589_v19  ;;  %1380 = vmatpush.msrb.mxu2 %v6812_v22  ;;  %v6696_v47 = vld [vmem:[%s15761_s1 + $0xdf0] sm:$0xff]  ;;  %v6549_v22 = vld [vmem:[%s15761_s1 + $0x958] sm:$0xff] }
  0xd1   :  { %1315 = vmatpush.msrb.mxu0 %v6712_v20  ;;  %1345 = vmatpush.msrb.mxu1 %v6772_v21  ;;  %v6756_v49 = vld [vmem:[%s15761_s1 + $0xfd0] sm:$0xff]  ;;  %v6777_v21 = vld [vmem:[%s15761_s1 + $0x1078] sm:$0xff] }
  0xd2   :  { %1402 = vmatpush.msrb.mxu3 %v6585_v24  ;;  %1381 = vmatpush.msrb.mxu2 %v6808_v31  ;;  %v6796_v50 = vld [vmem:[%s15761_s1 + $0x1110] sm:$0xff] }
  0xd3   :  { %1159 = vmatmul.f32.gmra.mxu2 %v8536_v34  ;;  %1130 = vmatmul.f32.gmra.mxu1 %v8545_v37  ;;  %v6692_v1 = vld [vmem:[%s15761_s1 + $0xdd0] sm:$0xff] }
  0xd4   :  { %6828 = vmatmul.msk.f32.gmra.mxu0 %vm24_vm1, %v8727_v60  ;;  %1346 = vmatpush.msrb.mxu1 %v6768_v29  ;;  %v6752_v54 = vld [vmem:[%s15761_s1 + $0xfb0] sm:$0xff]  ;;  %v6545_v29 = vld [vmem:[%s15761_s1 + $0x938] sm:$0xff] }
  0xd5   :  { %1188 = vmatmul.f32.gmra.mxu3 %v8430_v38  ;;  %1316 = vmatpush.msrb.mxu0 %v6708_v25  ;;  %v6688_v51 = vld [vmem:[%s15761_s1 + $0xdb0] sm:$0xff] }
  0xd6   :  { %1403 = vmatpush.msrb.mxu3 %v6581_v30  ;;  %1347 = vmatpush.msrb.mxu1 %v6764_v36  ;;  %v6748_v57 = vld [vmem:[%s15761_s1 + $0xf90] sm:$0xff]  ;;  %v6665_v30 = vld [vmem:[%s15761_s1 + $0xcf8] sm:$0xff] }
  0xd7   :  { %1317 = vmatpush.msrb.mxu0 %v6704_v33  ;;  %1382 = vmatpush.msrb.mxu2 %v6804_v39  ;;  %v6684_v5 = vld [vmem:[%s15761_s1 + $0xd90] sm:$0xff]  ;;  %v6729_v33 = vld [vmem:[%s15761_s1 + $0xef8] sm:$0xff] }
  0xd8   :  { %1404 = vmatpush.msrb.mxu3 %v6577_v41  ;;  %1348 = vmatpush.msrb.mxu1 %v6760_v44  ;;  %v6744_v10 = vld [vmem:[%s15761_s1 + $0xf70] sm:$0xff]  ;;  %v6541_v36 = vld [vmem:[%s15761_s1 + $0x918] sm:$0xff] }
  0xd9   :  { %1318 = vmatpush.msrb.mxu0 %v6700_v42  ;;  %1383 = vmatpush.msrb.mxu2 %v6800_v28  ;;  %v6680_v16 = vld [vmem:[%s15761_s1 + $0xd70] sm:$0xff]  ;;  %v6769_v39 = vld [vmem:[%s15761_s1 + $0x1038] sm:$0xff] }
  0xda   :  { %1405 = vmatpush.msrb.mxu3 %v6573_v45  ;;  %1349 = vmatpush.msrb.mxu1 %v6756_v49  ;;  %v6740_v18 = vld [vmem:[%s15761_s1 + $0xf50] sm:$0xff]  ;;  %v6825_v41 = vld [vmem:[%s15761_s1 + $0x11f8] sm:$0xff] }
  0xdb   :  { %1162 = vmatmul.f32.gmra.mxu2 %v8582_v62  ;;  %1133 = vmatmul.f32.gmra.mxu1 %v8591_v4  ;;  %v6676_v19 = vld [vmem:[%s15761_s1 + $0xd50] sm:$0xff]  ;;  %v6661_v42 = vld [vmem:[%s15761_s1 + $0xcd8] sm:$0xff] }
  0xdc   :  { %6829 = vmatmul.msk.f32.gmra.mxu0 %vm24_vm1, %v8771_v35  ;;  %1384 = vmatpush.msrb.mxu2 %v6796_v50  ;;  %v6736_v20 = vld [vmem:[%s15761_s1 + $0xf30] sm:$0xff]  ;;  %v6725_v44 = vld [vmem:[%s15761_s1 + $0xed8] sm:$0xff] }
  0xdd   :  { %1191 = vmatmul.f32.gmra.mxu3 %v8579_v61  ;;  %1319 = vmatpush.msrb.mxu0 %v6696_v47  ;;  %v6672_v24 = vld [vmem:[%s15761_s1 + $0xd30] sm:$0xff]  ;;  %v6765_v28 = vld [vmem:[%s15761_s1 + $0x1018] sm:$0xff] }
  0xde   :  { %1406 = vmatpush.msrb.mxu3 %v6569_v53  ;;  %1350 = vmatpush.msrb.mxu1 %v6752_v54  ;;  %v6732_v25 = vld [vmem:[%s15761_s1 + $0xf10] sm:$0xff]  ;;  %v6657_v45 = vld [vmem:[%s15761_s1 + $0xcb8] sm:$0xff] }
  0xdf   :  { %1320 = vmatpush.msrb.mxu0 %v6692_v1  ;;  %v6668_v31 = vld [vmem:[%s15761_s1 + $0xd10] sm:$0xff]  ;;  %v6821_v47 = vld [vmem:[%s15761_s1 + $0x11d8] sm:$0xff] }
  0xe0   :  { %1407 = vmatpush.msrb.mxu3 %v6565_v55  ;;  %1351 = vmatpush.msrb.mxu1 %v6748_v57  ;;  %v6721_v49 = vld [vmem:[%s15761_s1 + $0xeb8] sm:$0xff] }
  0xe1   :  { %1321 = vmatpush.msrb.mxu0 %v6688_v51  ;;  %v6653_v50 = vld [vmem:[%s15761_s1 + $0xc98] sm:$0xff] }
  0xe2   :  { %1408 = vmatpush.msrb.mxu3 %v6561_v3  ;;  %1352 = vmatpush.msrb.mxu1 %v6744_v10  ;;  %v6817_v53 = vld [vmem:[%s15761_s1 + $0x11b8] sm:$0xff] }
  0xe3   :  { %1269 = vmatmul.f32.vlgmr.msra.gmra.mxu2 %v8309_v43  ;;  %6830 = vmatmul.msk.f32.vlgmr.msra.gmra.mxu1 %vm24_vm1, %v8636_v26  ;;  %v6761_v1 = vld [vmem:[%s15761_s1 + $0xff8] sm:$0xff] }
  0xe4   :  { %1211 = vmatmul.f32.vlgmr.msra.gmra.mxu0 %v8251_v15  ;;  %1485 = vmatpush.msra.mxu2 %v6793_v56  ;;  %v6717_v54 = vld [vmem:[%s15761_s1 + $0xe98] sm:$0xff] }
  0xe5   :  { %1298 = vmatmul.f32.vlgmr.msra.gmra.mxu3 %v8300_v40  ;;  %1322 = vmatpush.msrb.mxu0 %v6684_v5  ;;  %v6649_v55 = vld [vmem:[%s15761_s1 + $0xc78] sm:$0xff] }
  0xe6   :  { %1486 = vmatpush.msra.mxu2 %v6789_v63  ;;  %1409 = vmatpush.msrb.mxu3 %v6557_v14  ;;  %v6813_v51 = vld [vmem:[%s15761_s1 + $0x1198] sm:$0xff] }
  0xe7   :  { %1323 = vmatpush.msrb.mxu0 %v6680_v16  ;;  %1353 = vmatpush.msrb.mxu1 %v6740_v18  ;;  %v6757_v56 = vld [vmem:[%s15761_s1 + $0xfd8] sm:$0xff] }
  0xe8   :  { %1487 = vmatpush.msra.mxu2 %v6785_v12  ;;  %1410 = vmatpush.msrb.mxu3 %v6553_v7  ;;  %v6713_v57 = vld [vmem:[%s15761_s1 + $0xe78] sm:$0xff] }
  0xe9   :  { %1324 = vmatpush.msrb.mxu0 %v6676_v19  ;;  %1354 = vmatpush.msrb.mxu1 %v6736_v20  ;;  %v6645_v63 = vld [vmem:[%s15761_s1 + $0xc58] sm:$0xff] }
  0xea   :  { %1488 = vmatpush.msra.mxu2 %v6781_v52  ;;  %1411 = vmatpush.msrb.mxu3 %v6549_v22  ;;  %v6809_v3 = vld [vmem:[%s15761_s1 + $0x1178] sm:$0xff] }
  0xeb   :  { %1272 = vmatmul.f32.gmra.mxu2 %v8367_v13  ;;  %6831 = vmatmul.msk.f32.gmra.mxu1 %vm24_vm1, %v8680_v48  ;;  %v6753_v5 = vld [vmem:[%s15761_s1 + $0xfb8] sm:$0xff] }
  0xec   :  { %1214 = vmatmul.f32.gmra.mxu0 %v8374_v0  ;;  %1489 = vmatpush.msra.mxu2 %v6777_v21  ;;  %v6709_v10 = vld [vmem:[%s15761_s1 + $0xe58] sm:$0xff] }
  0xed   :  { %1301 = vmatmul.f32.gmra.mxu3 %v8358_v9  ;;  %1325 = vmatpush.msrb.mxu0 %v6672_v24  ;;  %v6641_v12 = vld [vmem:[%s15761_s1 + $0xc38] sm:$0xff] }
  0xee   :  { %1355 = vmatpush.msrb.mxu1 %v6732_v25  ;;  %1490 = vmatpush.msra.mxu2 %v6773_v27  ;;  %v6749_v14 = vld [vmem:[%s15761_s1 + $0xf98] sm:$0xff] }
  0xef   :  { %1412 = vmatpush.msrb.mxu3 %v6545_v29  ;;  %1326 = vmatpush.msrb.mxu0 %v6668_v31  ;;  %v6805_v16 = vld [vmem:[%s15761_s1 + $0x1158] sm:$0xff]  ;;  %v513_v29 = vld [vmem:[%s15761_s1 + $0x7e0] sm:$0xff] }
  0xf0   :  { %1456 = vmatpush.msra.mxu1 %v6729_v33  ;;  %1491 = vmatpush.msra.mxu2 %v6769_v39  ;;  %v6705_v18 = vld [vmem:[%s15761_s1 + $0xe38] sm:$0xff] }
  0xf1   :  { %1427 = vmatpush.msra.mxu0 %v6665_v30  ;;  %1413 = vmatpush.msrb.mxu3 %v6541_v36  ;;  %v6637_v52 = vld [vmem:[%s15761_s1 + $0xc18] sm:$0xff]  ;;  %v509_v36 = vld [vmem:[%s15761_s1 + $0x7c0] sm:$0xff] }
  0xf2   :  { %1457 = vmatpush.msra.mxu1 %v6725_v44  ;;  %1492 = vmatpush.msra.mxu2 %v6765_v28  ;;  %v6745_v7 = vld [vmem:[%s15761_s1 + $0xf78] sm:$0xff] }
  0xf3   :  { %1275 = vmatmul.f32.gmra.mxu2 %v8545_v37  ;;  %6832 = vmatmul.msk.f32.gmra.mxu1 %vm24_vm1, %v8727_v60  ;;  %v6801_v19 = vld [vmem:[%s15761_s1 + $0x1138] sm:$0xff] }
  0xf4   :  { %1217 = vmatmul.f32.gmra.mxu0 %v8490_v2  ;;  %1522 = vmatpush.msra.mxu3 %v6825_v41  ;;  %v6633_v20 = vld [vmem:[%s15761_s1 + $0xbf8] sm:$0xff]  ;;  %v449_v41 = vld [vmem:[%s15761_s1 + $0x5e0] sm:$0xff] }
  0xf5   :  { %1304 = vmatmul.f32.gmra.mxu3 %v8536_v34  ;;  %1428 = vmatpush.msra.mxu0 %v6661_v42  ;;  %v6741_v21 = vld [vmem:[%s15761_s1 + $0xf58] sm:$0xff]  ;;  %v505_v42 = vld [vmem:[%s15761_s1 + $0x7a0] sm:$0xff] }
  0xf6   :  { %1523 = vmatpush.msra.mxu3 %v6821_v47  ;;  %1458 = vmatpush.msra.mxu1 %v6721_v49  ;;  %v6797_v22 = vld [vmem:[%s15761_s1 + $0x1118] sm:$0xff]  ;;  %v501_v47 = vld [vmem:[%s15761_s1 + $0x780] sm:$0xff] }
  0xf7   :  { %1429 = vmatpush.msra.mxu0 %v6657_v45  ;;  %1493 = vmatpush.msra.mxu2 %v6761_v1  ;;  %v6697_v24 = vld [vmem:[%s15761_s1 + $0xdf8] sm:$0xff]  ;;  %v445_v45 = vld [vmem:[%s15761_s1 + $0x5c0] sm:$0xff] }
  0xf8   :  { %1524 = vmatpush.msra.mxu3 %v6817_v53  ;;  %1459 = vmatpush.msra.mxu1 %v6717_v54  ;;  %v6629_v25 = vld [vmem:[%s15761_s1 + $0xbd8] sm:$0xff]  ;;  %v441_v53 = vld [vmem:[%s15761_s1 + $0x5a0] sm:$0xff] }
  0xf9   :  { %1430 = vmatpush.msra.mxu0 %v6653_v50  ;;  %1494 = vmatpush.msra.mxu2 %v6757_v56  ;;  %v6737_v27 = vld [vmem:[%s15761_s1 + $0xf38] sm:$0xff]  ;;  %v497_v1 = vld [vmem:[%s15761_s1 + $0x760] sm:$0xff] }
  0xfa   :  { %1525 = vmatpush.msra.mxu3 %v6813_v51  ;;  %1460 = vmatpush.msra.mxu1 %v6713_v57  ;;  %v6693_v31 = vld [vmem:[%s15761_s1 + $0xdd8] sm:$0xff]  ;;  %v493_v51 = vld [vmem:[%s15761_s1 + $0x740] sm:$0xff] }
  0xfb   :  { %1278 = vmatmul.f32.gmra.mxu2 %v8591_v4  ;;  %6833 = vmatmul.msk.f32.gmra.mxu1 %vm24_vm1, %v8771_v35  ;;  %v6625_v30 = vld [vmem:[%s15761_s1 + $0xbb8] sm:$0xff] }
  0xfc   :  { %1220 = vmatmul.f32.gmra.mxu0 %v8598_v32  ;;  %1526 = vmatpush.msra.mxu3 %v6809_v3  ;;  %v6733_v33 = vld [vmem:[%s15761_s1 + $0xf18] sm:$0xff]  ;;  %v433_v3 = vld [vmem:[%s15761_s1 + $0x560] sm:$0xff] }
  0xfd   :  { %1307 = vmatmul.f32.gmra.mxu3 %v8582_v62  ;;  %1431 = vmatpush.msra.mxu0 %v6649_v55  ;;  %v6621_v39 = vld [vmem:[%s15761_s1 + $0xb98] sm:$0xff]  ;;  %v437_v55 = vld [vmem:[%s15761_s1 + $0x580] sm:$0xff] }
  0xfe   :  { %1495 = vmatpush.msra.mxu2 %v6753_v5  ;;  %1461 = vmatpush.msra.mxu1 %v6709_v10  ;;  %v6685_v44 = vld [vmem:[%s15761_s1 + $0xd98] sm:$0xff]  ;;  %v489_v10 = vld [vmem:[%s15761_s1 + $0x720] sm:$0xff] }
  0xff   :  { %1432 = vmatpush.msra.mxu0 %v6645_v63  ;;  %1527 = vmatpush.msra.mxu3 %v6805_v16  ;;  %v6617_v28 = vld [vmem:[%s15761_s1 + $0xb78] sm:$0xff]  ;;  %v321_v63 = vld [vmem:[%s15761_s1 + $0x1e0] sm:$0xff] }
 0x100   :  { %1496 = vmatpush.msra.mxu2 %v6749_v14  ;;  %1462 = vmatpush.msra.mxu1 %v6705_v18  ;;  %v6681_v49 = vld [vmem:[%s15761_s1 + $0xd78] sm:$0xff]  ;;  %v317_v14 = vld [vmem:[%s15761_s1 + $0x1c0] sm:$0xff] }
 0x101   :  { %1433 = vmatpush.msra.mxu0 %v6641_v12  ;;  %1528 = vmatpush.msra.mxu3 %v6801_v19  ;;  %v6613_v50 = vld [vmem:[%s15761_s1 + $0xb58] sm:$0xff]  ;;  %v385_v12 = vld [vmem:[%s15761_s1 + $0x3e0] sm:$0xff] }
 0x102   :  { %1497 = vmatpush.msra.mxu2 %v6745_v7  ;;  %v6609_v54 = vld [vmem:[%s15761_s1 + $0xb38] sm:$0xff]  ;;  %v485_v18 = vld [vmem:[%s15761_s1 + $0x700] sm:$0xff] }
 0x103   :  { %6834 = vmatmul.msk.f32.vlgmr.msrb.gmra.mxu2 %vm24_vm1, %v8636_v26  ;;  %1356 = vmatmul.f32.vlgmr.msrb.gmra.mxu1 %v8251_v15  ;;  %v6673_v56 = vld [vmem:[%s15761_s1 + $0xd38] sm:$0xff]  ;;  %v381_v7 = vld [vmem:[%s15761_s1 + $0x3c0] sm:$0xff] }
 0x104   :  { %1327 = vmatmul.f32.vlgmr.msrb.gmra.mxu0 %v8234_v11  ;;  %1498 = vmatpush.msra.mxu2 %v6741_v21  ;;  %v6605_v57 = vld [vmem:[%s15761_s1 + $0xb18] sm:$0xff]  ;;  %v313_v19 = vld [vmem:[%s15761_s1 + $0x1a0] sm:$0xff] }
 0x105   :  { %1414 = vmatmul.f32.vlgmr.msrb.gmra.mxu3 %v8309_v43  ;;  %v6701_v43 = vld [vmem:[%s15761_s1 + $0xe18] sm:$0xff]  ;;  %1434 = vmatpush.msra.mxu0 %v6637_v52  ;;  %v425_v21 = vld [vmem:[%s15761_s1 + $0x520] sm:$0xff] }
 0x106   :  { %1463 = vmatpush.msra.mxu1 %v6701_v43  ;;  %1529 = vmatpush.msra.mxu3 %v6797_v22  ;;  %v6669_v5 = vld [vmem:[%s15761_s1 + $0xd18] sm:$0xff]  ;;  %v377_v43 = vld [vmem:[%s15761_s1 + $0x3a0] sm:$0xff] }
 0x107   :  { %1435 = vmatpush.msra.mxu0 %v6633_v20  ;;  %1499 = vmatpush.msra.mxu2 %v6737_v27  ;;  %v309_v20 = vld [vmem:[%s15761_s1 + $0x180] sm:$0xff] }
 0x108   :  { %1464 = vmatpush.msra.mxu1 %v6697_v24  ;;  %1640 = vmatpush.msrb.mxu3 %v513_v29  ;;  %v481_v22 = vld [vmem:[%s15761_s1 + $0x6e0] sm:$0xff] }
 0x109   :  { %1436 = vmatpush.msra.mxu0 %v6629_v25  ;;  %1500 = vmatpush.msra.mxu2 %v6733_v33  ;;  %v421_v25 = vld [vmem:[%s15761_s1 + $0x500] sm:$0xff] }
 0x10a   :  { %1465 = vmatpush.msra.mxu1 %v6693_v31  ;;  %1641 = vmatpush.msrb.mxu3 %v509_v36  ;;  %v301_v27 = vld [vmem:[%s15761_s1 + $0x140] sm:$0xff] }
 0x10b   :  { %6835 = vmatmul.msk.f32.gmra.mxu2 %vm24_vm1, %v8680_v48  ;;  %1359 = vmatmul.f32.gmra.mxu1 %v8374_v0  ;;  %v417_v31 = vld [vmem:[%s15761_s1 + $0x4e0] sm:$0xff] }
 0x10c   :  { %1330 = vmatmul.f32.gmra.mxu0 %v8353_v8  ;;  %1611 = vmatpush.msrb.mxu2 %v449_v41  ;;  %v413_v41 = vld [vmem:[%s15761_s1 + $0x4c0] sm:$0xff] }
 0x10d   :  { %1417 = vmatmul.f32.gmra.mxu3 %v8367_v13  ;;  %v6689_v13 = vld [vmem:[%s15761_s1 + $0xdb8] sm:$0xff]  ;;  %1437 = vmatpush.msra.mxu0 %v6625_v30  ;;  %v473_v30 = vld [vmem:[%s15761_s1 + $0x6a0] sm:$0xff] }
 0x10e   :  { %1466 = vmatpush.msra.mxu1 %v6689_v13  ;;  %1642 = vmatpush.msrb.mxu3 %v505_v42  ;;  %v9154_v24 = vpop.f32.mrf.mxu2  ;;  %v365_v13 = vld [vmem:[%s15761_s1 + $0x340] sm:$0xff] }
 0x10f   :  { %1438 = vmatpush.msra.mxu0 %v6621_v39  ;;  %1612 = vmatpush.msrb.mxu2 %v445_v45  ;;  %v9177_v29 = vpop.f32.mrf.mxu3  ;;  %v297_v39 = vld [vmem:[%s15761_s1 + $0x120] sm:$0xff] }
 0x110   :  { %1467 = vmatpush.msra.mxu1 %v6685_v44  ;;  %1643 = vmatpush.msrb.mxu3 %v501_v47  ;;  %v9124_v16 = vpop.f32.mrf.mxu1  ;;  %v469_v42 = vld [vmem:[%s15761_s1 + $0x680] sm:$0xff] }
 0x111   :  { %1439 = vmatpush.msra.mxu0 %v6617_v28  ;;  %1613 = vmatpush.msrb.mxu2 %v441_v53  ;;  %v9132_v52 = vpop.f32.mrf.mxu0  ;;  %v409_v28 = vld [vmem:[%s15761_s1 + $0x4a0] sm:$0xff] }
 0x112   :  { %1468 = vmatpush.msra.mxu1 %v6681_v49  ;;  %1644 = vmatpush.msrb.mxu3 %v497_v1  ;;  %v289_v45 = vld [vmem:[%s15761_s1 + $0xe0] sm:$0xff] }
 0x113   :  { %6836 = vmatmul.msk.f32.gmra.mxu2 %vm24_vm1, %v8727_v60  ;;  %1362 = vmatmul.f32.gmra.mxu1 %v8490_v2  ;;  %v405_v49 = vld [vmem:[%s15761_s1 + $0x480] sm:$0xff] }
 0x114   :  { %1333 = vmatmul.f32.gmra.mxu0 %v8430_v38  ;;  %1614 = vmatpush.msrb.mxu2 %v437_v55  ;;  %v401_v55 = vld [vmem:[%s15761_s1 + $0x460] sm:$0xff] }
 0x115   :  { %1420 = vmatmul.f32.gmra.mxu3 %v8545_v37  ;;  %v6677_v37 = vld [vmem:[%s15761_s1 + $0xd58] sm:$0xff]  ;;  %1440 = vmatpush.msra.mxu0 %v6613_v50  ;;  %v461_v50 = vld [vmem:[%s15761_s1 + $0x640] sm:$0xff] }
 0x116   :  { %1469 = vmatpush.msra.mxu1 %v6677_v37  ;;  %1645 = vmatpush.msrb.mxu3 %v493_v51  ;;  %v353_v37 = vld [vmem:[%s15761_s1 + $0x2e0] sm:$0xff] }
 0x117   :  { %1441 = vmatpush.msra.mxu0 %v6609_v54  ;;  %1615 = vmatpush.msrb.mxu2 %v433_v3  ;;  %v285_v54 = vld [vmem:[%s15761_s1 + $0xc0] sm:$0xff] }
 0x118   :  { %1470 = vmatpush.msra.mxu1 %v6673_v56  ;;  %1646 = vmatpush.msrb.mxu3 %v489_v10  ;;  %v9185_v33 = vpop.f32.mrf.mxu1  ;;  %v457_v51 = vld [vmem:[%s15761_s1 + $0x620] sm:$0xff]  ;;  %v450_v10 = vld [vmem:[%s15761_s1 + $0x5e8] sm:$0xff] }
 0x119   :  { %1442 = vmatpush.msra.mxu0 %v6605_v57  ;;  %v9187_v36 = vpop.f32.mrf.mxu0  ;;  %v349_v56 = vld [vmem:[%s15761_s1 + $0x2c0] sm:$0xff] }
 0x11a   :  { %1471 = vmatpush.msra.mxu1 %v6669_v5  ;;  %1647 = vmatpush.msrb.mxu3 %v485_v18  ;;  %v393_v5 = vld [vmem:[%s15761_s1 + $0x420] sm:$0xff] }
 0x11b   :  { %6837 = vmatmul.msk.f32.gmra.mxu2 %vm24_vm1, %v8771_v35  ;;  %1365 = vmatmul.f32.gmra.mxu1 %v8598_v32  ;;  %v273_v18 = vld [vmem:[%s15761_s1 + $0x60] sm:$0xff] }
 0x11c   :  { %1336 = vmatmul.f32.gmra.mxu0 %v8579_v61  ;;  %1582 = vmatpush.msrb.mxu1 %v385_v12 }
 0x11d   :  { %1423 = vmatmul.f32.gmra.mxu3 %v8591_v4  ;;  %1553 = vmatpush.msrb.mxu0 %v321_v63  ;;  %v429_v4 = vld [vmem:[%s15761_s1 + $0x540] sm:$0xff] }
 0x11e   :  { %1616 = vmatpush.msrb.mxu2 %v429_v4  ;;  %1583 = vmatpush.msrb.mxu1 %v381_v7  ;;  %v9203_v44 = vpop.f32.mrf.mxu2  ;;  %v277_v63 = vld [vmem:[%s15761_s1 + $0x80] sm:$0xff] }
 0x11f   :  { %1554 = vmatpush.msrb.mxu0 %v317_v14  ;;  %1648 = vmatpush.msrb.mxu3 %v481_v22  ;;  %v341_v14 = vld [vmem:[%s15761_s1 + $0x280] sm:$0xff] }
 0x120   :  { %1584 = vmatpush.msrb.mxu1 %v377_v43  ;;  %1617 = vmatpush.msrb.mxu2 %v425_v21  ;;  %v9226_v47 = vpop.f32.mrf.mxu3  ;;  %v337_v7 = vld [vmem:[%s15761_s1 + $0x260] sm:$0xff] }
 0x121   :  { %1555 = vmatpush.msrb.mxu0 %v313_v19  ;;  %v389_v19 = vld [vmem:[%s15761_s1 + $0x400] sm:$0xff] }
 0x122   :  { %1618 = vmatpush.msrb.mxu2 %v421_v25  ;;  %v269_v43 = vld [vmem:[%s15761_s1 + $0x40] sm:$0xff] }
 0x123   :  { %1501 = vmatmul.f32.vlgmr.msra.gmra.mxu2 %v8251_v15  ;;  %1472 = vmatmul.f32.vlgmr.msra.gmra.mxu1 %v8234_v11  ;;  %v373_v15 = vld [vmem:[%s15761_s1 + $0x380] sm:$0xff] }
 0x124   :  { %1443 = vmatmul.f32.vlgmr.msra.gmra.mxu0 %v8300_v40  ;;  %v305_v11 = vld [vmem:[%s15761_s1 + $0x160] sm:$0xff]  ;;  %1585 = vmatpush.msrb.mxu1 %v373_v15 }
 0x125   :  { %6838 = vmatmul.msk.f32.vlgmr.msra.gmra.mxu3 %vm24_vm1, %v8636_v26  ;;  %1556 = vmatpush.msrb.mxu0 %v309_v20  ;;  %v477_v40 = vld [vmem:[%s15761_s1 + $0x6c0] sm:$0xff] }
 0x126   :  { %v369_v26 = vld [vmem:[%s15761_s1 + $0x360] sm:$0xff]  ;;  %1649 = vmatpush.msrb.mxu3 %v477_v40  ;;  %1619 = vmatpush.msrb.mxu2 %v417_v31  ;;  %v9342_v31 = vld [vmem:[#allocation2 + $0x10] sm:$0xff] }
 0x127   :  { %1557 = vmatpush.msrb.mxu0 %v305_v11  ;;  %1586 = vmatpush.msrb.mxu1 %v369_v26  ;;  %v333_v20 = vld [vmem:[%s15761_s1 + $0x240] sm:$0xff]  ;;  %v442_v11 = vld [vmem:[%s15761_s1 + $0x5a8] sm:$0xff] }
 0x128   :  { %1650 = vmatpush.msrb.mxu3 %v473_v30  ;;  %1620 = vmatpush.msrb.mxu2 %v413_v41  ;;  %v9267_v57 = vpop.f32.mrf.mxu2  ;;  %v265_v21 = vld [vmem:[%s15761_s1 + $0x20] sm:$0xff]  ;;  %v9344_v30 = vld [vmem:[#allocation2 + $0x18] sm:$0xff]  ;;  %v322_v41 = vld [vmem:[%s15761_s1 + $0x1e8] sm:$0xff] }
 0x129   :  { %1558 = vmatpush.msrb.mxu0 %v301_v27  ;;  %1587 = vmatpush.msrb.mxu1 %v365_v13  ;;  %v329_v15 = vld [vmem:[%s15761_s1 + $0x220] sm:$0xff] }
 0x12a   :  { %1651 = vmatpush.msrb.mxu3 %v469_v42  ;;  %1621 = vmatpush.msrb.mxu2 %v409_v28  ;;  %v261_v40 = vld [vmem:[%s15761_s1] sm:$0xff]  ;;  %v9356_v42 = vld [vmem:[#allocation2 + $0x8] sm:$0xff] }
 0x12b   :  { %1504 = vmatmul.f32.gmra.mxu2 %v8374_v0  ;;  %1475 = vmatmul.f32.gmra.mxu1 %v8353_v8  ;;  %v361_v0 = vld [vmem:[%s15761_s1 + $0x320] sm:$0xff]  ;;  %v318_v28 = vld [vmem:[%s15761_s1 + $0x1c8] sm:$0xff] }
 0x12c   :  { %1446 = vmatmul.f32.gmra.mxu0 %v8358_v9  ;;  %v293_v8 = vld [vmem:[%s15761_s1 + $0x100] sm:$0xff]  ;;  %1588 = vmatpush.msrb.mxu1 %v361_v0  ;;  %v378_v0 = vld [vmem:[%s15761_s1 + $0x3a8] sm:$0xff] }
 0x12d   :  { %6839 = vmatmul.msk.f32.gmra.mxu3 %vm24_vm1, %v8680_v48  ;;  %1559 = vmatpush.msrb.mxu0 %v297_v39  ;;  %v465_v9 = vld [vmem:[%s15761_s1 + $0x660] sm:$0xff] }
 0x12e   :  { %v357_v48 = vld [vmem:[%s15761_s1 + $0x300] sm:$0xff]  ;;  %1652 = vmatpush.msrb.mxu3 %v465_v9  ;;  %1622 = vmatpush.msrb.mxu2 %v405_v49  ;;  %v434_v49 = vld [vmem:[%s15761_s1 + $0x568] sm:$0xff] }
 0x12f   :  { %1560 = vmatpush.msrb.mxu0 %v293_v8  ;;  %1589 = vmatpush.msrb.mxu1 %v357_v48  ;;  %v325_v27 = vld [vmem:[%s15761_s1 + $0x200] sm:$0xff]  ;;  %v438_v8 = vld [vmem:[%s15761_s1 + $0x588] sm:$0xff] }
 0x130   :  { %v9234_v53 = vpop.f32.mrf.mxu1  ;;  %1653 = vmatpush.msrb.mxu3 %v461_v50  ;;  %1623 = vmatpush.msrb.mxu2 %v401_v55  ;;  %v9275_v3 = vpop.f32.mrf.mxu3  ;;  %v9346_v13 = vld [vmem:[#allocation2] sm:$0xff] }
 0x131   :  { %v9236_v1 = vpop.f32.mrf.mxu0  ;;  %1561 = vmatpush.msrb.mxu0 %v289_v45  ;;  %1590 = vmatpush.msrb.mxu1 %v353_v37  ;;  %v545_v39 = vld [vmem:[%s15761_s1 + $0x8e0] sm:$0xff]  ;;  %v374_v45 = vld [vmem:[%s15761_s1 + $0x388] sm:$0xff] }
 0x132   :  { %1654 = vmatpush.msrb.mxu3 %v457_v51  ;;  %v541_v9 = vld [vmem:[%s15761_s1 + $0x8c0] sm:$0xff]  ;;  %v314_v37 = vld [vmem:[%s15761_s1 + $0x1a8] sm:$0xff] }
 0x133   :  { %1507 = vmatmul.f32.gmra.mxu2 %v8490_v2  ;;  %1478 = vmatmul.f32.gmra.mxu1 %v8430_v38  ;;  %v281_v38 = vld [vmem:[%s15761_s1 + $0xa0] sm:$0xff]  ;;  %v430_v51 = vld [vmem:[%s15761_s1 + $0x548] sm:$0xff] }
 0x134   :  { %1449 = vmatmul.f32.gmra.mxu0 %v8536_v34  ;;  %v397_v2 = vld [vmem:[%s15761_s1 + $0x440] sm:$0xff]  ;;  %1591 = vmatpush.msrb.mxu1 %v349_v56 }
 0x135   :  { %6840 = vmatmul.msk.f32.gmra.mxu3 %vm24_vm1, %v8727_v60  ;;  %1562 = vmatpush.msrb.mxu0 %v285_v54  ;;  %v453_v34 = vld [vmem:[%s15761_s1 + $0x600] sm:$0xff] }
 0x136   :  { %v345_v60 = vld [vmem:[%s15761_s1 + $0x2a0] sm:$0xff]  ;;  %1624 = vmatpush.msrb.mxu2 %v397_v2  ;;  %1655 = vmatpush.msrb.mxu3 %v453_v34  ;;  %v370_v2 = vld [vmem:[%s15761_s1 + $0x368] sm:$0xff] }
 0x137   :  { %1563 = vmatpush.msrb.mxu0 %v281_v38  ;;  %1592 = vmatpush.msrb.mxu1 %v345_v60  ;;  %v537_v54 = vld [vmem:[%s15761_s1 + $0x8a0] sm:$0xff]  ;;  %v310_v38 = vld [vmem:[%s15761_s1 + $0x188] sm:$0xff] }
 0x138   :  { %v9283_v12 = vpop.f32.mrf.mxu1  ;;  %1625 = vmatpush.msrb.mxu2 %v393_v5  ;;  %1756 = vmatpush.msra.mxu3 %v450_v10  ;;  %v306_v34 = vld [vmem:[%s15761_s1 + $0x168] sm:$0xff]  ;;  %v533_v5 = vld [vmem:[%s15761_s1 + $0x880] sm:$0xff] }
 0x139   :  { %v9288_v4 = vpop.f32.mrf.mxu0  ;;  %1564 = vmatpush.msrb.mxu0 %v277_v63  ;;  %1593 = vmatpush.msrb.mxu1 %v341_v14  ;;  %v9405_v60 = vld [vmem:[#allocation2 + $0x28] sm:$0xff] }
 0x13a   :  { %1626 = vmatpush.msrb.mxu2 %v389_v19  ;;  %v366_v63 = vld [vmem:[%s15761_s1 + $0x348] sm:$0xff]  ;;  %v529_v19 = vld [vmem:[%s15761_s1 + $0x860] sm:$0xff] }
 0x13b   :  { %1510 = vmatmul.f32.gmra.mxu2 %v8598_v32  ;;  %1481 = vmatmul.f32.gmra.mxu1 %v8579_v61  ;;  %v386_v32 = vld [vmem:[%s15761_s1 + $0x3e8] sm:$0xff] }
 0x13c   :  { %1452 = vmatmul.f32.gmra.mxu0 %v8582_v62  ;;  %v446_v61 = vld [vmem:[%s15761_s1 + $0x5c8] sm:$0xff]  ;;  %1594 = vmatpush.msrb.mxu1 %v337_v7 }
 0x13d   :  { %6841 = vmatmul.msk.f32.gmra.mxu3 %vm24_vm1, %v8771_v35  ;;  %1565 = vmatpush.msrb.mxu0 %v273_v18  ;;  %v382_v35 = vld [vmem:[%s15761_s1 + $0x3c8] sm:$0xff] }
 0x13e   :  { %v9316_v62 = vpop.f32.mrf.mxu2  ;;  %1727 = vmatpush.msra.mxu2 %v386_v32  ;;  %1595 = vmatpush.msrb.mxu1 %v333_v20  ;;  %v302_v10 = vld [vmem:[%s15761_s1 + $0x148] sm:$0xff] }
 0x13f   :  { %1566 = vmatpush.msrb.mxu0 %v269_v43  ;;  %1757 = vmatpush.msra.mxu3 %v446_v61  ;;  %v426_v14 = vld [vmem:[%s15761_s1 + $0x528] sm:$0xff] }
 0x140   :  { %v9324_v22 = vpop.f32.mrf.mxu3  ;;  %v9332_v25 = vpop.f32.mrf.mxu1  ;;  %1728 = vmatpush.msra.mxu2 %v382_v35  ;;  %1596 = vmatpush.msrb.mxu1 %v329_v15  ;;  %v362_v7 = vld [vmem:[%s15761_s1 + $0x328] sm:$0xff]  ;;  %v525_v35 = vld [vmem:[%s15761_s1 + $0x840] sm:$0xff] }
 0x141   :  { %15771 = vst [vmem:[#allocation3_spill] sm:$0xff] %v9332_v25  ;;  %v9337_v26 = vpop.f32.mrf.mxu0  ;;  %1567 = vmatpush.msrb.mxu0 %v265_v21  ;;  %1758 = vmatpush.msra.mxu3 %v442_v11  ;;  %v298_v32 = vld [vmem:[%s15761_s1 + $0x128] sm:$0xff] }
 0x142   :  { %1597 = vmatpush.msrb.mxu1 %v325_v27  ;;  %1729 = vmatpush.msra.mxu2 %v378_v0  ;;  %v422_v20 = vld [vmem:[%s15761_s1 + $0x508] sm:$0xff]  ;;  %v9454_v27 = vld [vmem:[#allocation2 + $0x78] sm:$0xff] }
 0x143   :  { %1568 = vmatpush.msrb.mxu0 %v261_v40  ;;  %1627 = vmatmul.f32.vlgmr.msrb.gmra.mxu2 %v9342_v31  ;;  %v358_v21 = vld [vmem:[%s15761_s1 + $0x308] sm:$0xff] }
 0x144   :  { %1569 = vmatmul.f32.vlgmr.msrb.gmra.mxu0 %v9346_v13  ;;  %1598 = vmatmul.f32.vlgmr.msrb.gmra.mxu1 %v9356_v42  ;;  %v294_v11 = vld [vmem:[%s15761_s1 + $0x108] sm:$0xff] }
 0x145   :  { %1656 = vmatmul.f32.vlgmr.msrb.gmra.mxu3 %v9344_v30  ;;  %1677 = vmatpush.msra.mxu0 %v545_v39  ;;  %v354_v40 = vld [vmem:[%s15761_s1 + $0x2e8] sm:$0xff] }
 0x146   :  { %1698 = vmatpush.msra.mxu1 %v322_v41  ;;  %v9372_v48 = vpop.f32.mrf.mxu2  ;;  %1759 = vmatpush.msra.mxu3 %v438_v8  ;;  %v9456_v39 = vld [vmem:[#allocation2 + $0x88] sm:$0xff]  ;;  %v9460_v41 = vld [vmem:[#allocation2 + $0x90] sm:$0xff] }
 0x147   :  { %15772 = vst [vmem:[#allocation4_spill] sm:$0xff] %v9372_v48  ;;  %1678 = vmatpush.msra.mxu0 %v541_v9  ;;  %1730 = vmatpush.msra.mxu2 %v374_v45  ;;  %v290_v0 = vld [vmem:[%s15761_s1 + $0xe8] sm:$0xff]  ;;  %v521_v45 = vld [vmem:[%s15761_s1 + $0x820] sm:$0xff] }
 0x148   :  { %v9380_v50 = vpop.f32.mrf.mxu3  ;;  %1699 = vmatpush.msra.mxu1 %v318_v28  ;;  %v9388_v55 = vpop.f32.mrf.mxu1  ;;  %1760 = vmatpush.msra.mxu3 %v434_v49  ;;  %v350_v8 = vld [vmem:[%s15761_s1 + $0x2c8] sm:$0xff]  ;;  %v9468_v28 = vld [vmem:[#allocation2 + $0x80] sm:$0xff] }
 0x149   :  { %15773 = vst [vmem:[#allocation5_spill] sm:$0xff] %v9380_v50  ;;  %v9393_v56 = vpop.f32.mrf.mxu0  ;;  %1679 = vmatpush.msra.mxu0 %v537_v54  ;;  %1731 = vmatpush.msra.mxu2 %v370_v2  ;;  %v418_v9 = vld [vmem:[%s15761_s1 + $0x4e8] sm:$0xff]  ;;  %v517_v2 = vld [vmem:[%s15761_s1 + $0x800] sm:$0xff] }
 0x14a   :  { %15774 = vst [vmem:[#allocation6_spill] sm:$0xff] %v9388_v55  ;;  %1700 = vmatpush.msra.mxu1 %v314_v37  ;;  %1761 = vmatpush.msra.mxu3 %v430_v51  ;;  %v286_v37 = vld [vmem:[%s15761_s1 + $0xc8] sm:$0xff]  ;;  %v6862_v50 = vld [vmem:[%s15761_s1 + $0x1220] sm:$0xff] }
 0x14b   :  { %1630 = vmatmul.f32.gmra.mxu2 %v8203_v58  ;;  %1680 = vmatpush.msra.mxu0 %v533_v5  ;;  %v346_v54 = vld [vmem:[%s15761_s1 + $0x2a8] sm:$0xff] }
 0x14c   :  { %1572 = vmatmul.f32.gmra.mxu0 %v9405_v60  ;;  %1701 = vmatpush.msra.mxu1 %v310_v38  ;;  %v414_v38 = vld [vmem:[%s15761_s1 + $0x4c8] sm:$0xff] }
 0x14d   :  { %1601 = vmatmul.f32.gmra.mxu1 %v8257_v17  ;;  %1659 = vmatmul.f32.gmra.mxu3 %v8207_v59  ;;  %v342_v5 = vld [vmem:[%s15761_s1 + $0x288] sm:$0xff] }
 0x14e   :  { %1702 = vmatpush.msra.mxu1 %v306_v34  ;;  %v9422_v18 = vpop.f32.mrf.mxu2  ;;  %1732 = vmatpush.msra.mxu2 %v366_v63  ;;  %v282_v63 = vld [vmem:[%s15761_s1 + $0xa8] sm:$0xff] }
 0x14f   :  { %15775 = vst [vmem:[#allocation7_spill] sm:$0xff] %v9422_v18  ;;  %1762 = vmatpush.msra.mxu3 %v426_v14  ;;  %1681 = vmatpush.msra.mxu0 %v529_v19  ;;  %v410_v14 = vld [vmem:[%s15761_s1 + $0x4a8] sm:$0xff] }
 0x150   :  { %v9430_v43 = vpop.f32.mrf.mxu3  ;;  %1703 = vmatpush.msra.mxu1 %v302_v10  ;;  %v9438_v61 = vpop.f32.mrf.mxu1  ;;  %1733 = vmatpush.msra.mxu2 %v362_v7  ;;  %v278_v7 = vld [vmem:[%s15761_s1 + $0x88] sm:$0xff] }
 0x151   :  { %15776 = vst [vmem:[#allocation8_spill] sm:$0xff] %v9430_v43  ;;  %v9446_v15 = vpop.f32.mrf.mxu0  ;;  %1763 = vmatpush.msra.mxu3 %v422_v20  ;;  %1682 = vmatpush.msra.mxu0 %v525_v35  ;;  %v338_v19 = vld [vmem:[%s15761_s1 + $0x268] sm:$0xff]  ;;  %v9516_v20 = vld [vmem:[#allocation2 + $0xa0] sm:$0xff] }
 0x152   :  { %15777 = vst [vmem:[#allocation9_spill] sm:$0xff] %v9438_v61  ;;  %1704 = vmatpush.msra.mxu1 %v298_v32  ;;  %1734 = vmatpush.msra.mxu2 %v358_v21  ;;  %v406_v32 = vld [vmem:[%s15761_s1 + $0x488] sm:$0xff] }
 0x153   :  { %1633 = vmatmul.f32.gmra.mxu2 %v9456_v39  ;;  %1764 = vmatpush.msra.mxu3 %v418_v9  ;;  %v274_v21 = vld [vmem:[%s15761_s1 + $0x68] sm:$0xff] }
 0x154   :  { %1575 = vmatmul.f32.gmra.mxu0 %v9454_v27  ;;  %1705 = vmatpush.msra.mxu1 %v294_v11  ;;  %v334_v35 = vld [vmem:[%s15761_s1 + $0x248] sm:$0xff] }
 0x155   :  { %1735 = vmatpush.msra.mxu2 %v354_v40  ;;  %1604 = vmatmul.f32.gmra.mxu1 %v9468_v28  ;;  %v402_v11 = vld [vmem:[%s15761_s1 + $0x468] sm:$0xff] }
 0x156   :  { %1662 = vmatmul.f32.gmra.mxu3 %v9460_v41  ;;  %v9478_v49 = vpop.f32.mrf.mxu2  ;;  %1706 = vmatpush.msra.mxu1 %v290_v0  ;;  %v514_v0 = vld [vmem:[%s15761_s1 + $0x7e8] sm:$0xff] }
 0x157   :  { %15778 = vst [vmem:[#allocation10_spill] sm:$0xff] %v9478_v49  ;;  %1736 = vmatpush.msra.mxu2 %v350_v8  ;;  %1683 = vmatpush.msra.mxu0 %v521_v45  ;;  %v270_v9 = vld [vmem:[%s15761_s1 + $0x48] sm:$0xff] }
 0x158   :  { %v9486_v51 = vpop.f32.mrf.mxu3  ;;  %v9494_v34 = vpop.f32.mrf.mxu1  ;;  %1707 = vmatpush.msra.mxu1 %v286_v37  ;;  %1765 = vmatpush.msra.mxu3 %v414_v38  ;;  %v330_v45 = vld [vmem:[%s15761_s1 + $0x228] sm:$0xff] }
 0x159   :  { %15779 = vst [vmem:[#allocation11_spill] sm:$0xff] %v9486_v51  ;;  %1737 = vmatpush.msra.mxu2 %v346_v54  ;;  %v9502_v10 = vpop.f32.mrf.mxu0  ;;  %1684 = vmatpush.msra.mxu0 %v517_v2  ;;  %v398_v37 = vld [vmem:[%s15761_s1 + $0x448] sm:$0xff] }
 0x15a   :  { %15780 = vst [vmem:[#allocation12_spill] sm:$0xff] %v9494_v34  ;;  %1708 = vmatpush.msra.mxu1 %v282_v63  ;;  %1766 = vmatpush.msra.mxu3 %v410_v14  ;;  %v510_v38 = vld [vmem:[%s15761_s1 + $0x7c8] sm:$0xff]  ;;  %v6886_v34 = vld [vmem:[%s15761_s1 + $0x12e0] sm:$0xff] }
 0x15b   :  { %1738 = vmatpush.msra.mxu2 %v342_v5  ;;  %v266_v63 = vld [vmem:[%s15761_s1 + $0x28] sm:$0xff]  ;;  %1785 = vmatpush.msrb.mxu0 %v514_v0 }
 0x15c   :  { %1578 = vmatmul.f32.gmra.mxu0 %v9516_v20  ;;  %1636 = vmatmul.f32.gmra.mxu2 %v8401_v23  ;;  %v326_v5 = vld [vmem:[%s15761_s1 + $0x208] sm:$0xff] }
 0x15d   :  { %1709 = vmatpush.msra.mxu1 %v278_v7  ;;  %1739 = vmatpush.msra.mxu2 %v338_v19  ;;  %v394_v14 = vld [vmem:[%s15761_s1 + $0x428] sm:$0xff]  ;;  %v9566_v19 = vld [vmem:[#allocation2 + $0x20] sm:$0xff] }
 0x15e   :  { %1767 = vmatpush.msra.mxu3 %v406_v32  ;;  %v9529_v40 = vpop.f32.mrf.mxu2  ;;  %1607 = vmatmul.f32.gmra.mxu1 %v8504_v6  ;;  %v262_v7 = vld [vmem:[%s15761_s1 + $0x8] sm:$0xff] }
 0x15f   :  { %15781 = vst [vmem:[#allocation13_spill] sm:$0xff] %v9529_v40  ;;  %1665 = vmatmul.f32.gmra.mxu3 %v8453_v46  ;;  %1710 = vmatpush.msra.mxu1 %v274_v21  ;;  %v390_v32 = vld [vmem:[%s15761_s1 + $0x408] sm:$0xff]  ;;  %v323_v21 = vld [vmem:[%s15761_s1 + $0x1f0] sm:$0xff] }
 0x160   :  { %v9536_v8 = vpop.f32.mrf.mxu3  ;;  %1740 = vmatpush.msra.mxu2 %v334_v35  ;;  %v9547_v54 = vpop.f32.mrf.mxu1  ;;  %1768 = vmatpush.msra.mxu3 %v402_v11  ;;  %v319_v35 = vld [vmem:[%s15761_s1 + $0x1d0] sm:$0xff]  ;;  %v10474_v61 = vld [vmem:[#allocation2 + $0x28] sm:$0xff] }
 0x161   :  { %15782 = vst [vmem:[#allocation14_spill] sm:$0xff] %v9536_v8  ;;  %v9552_v2 = vpop.f32.mrf.mxu0  ;;  %1711 = vmatpush.msra.mxu1 %v270_v9  ;;  %1786 = vmatpush.msrb.mxu0 %v510_v38  ;;  %v387_v11 = vld [vmem:[%s15761_s1 + $0x3f0] sm:$0xff]  ;;  %v474_v8 = vld [vmem:[%s15761_s1 + $0x6a8] sm:$0xff]  ;;  %v15768_v48 = vrot.slane %v10474_v61, 2 }
 0x162   :  { %15783 = vst [vmem:[#allocation15_spill] sm:$0xff] %v9547_v54  ;;  %1741 = vmatpush.msra.mxu2 %v330_v45  ;;  %1769 = vmatpush.msra.mxu3 %v398_v37  ;;  %v546_v45 = vld [vmem:[%s15761_s1 + $0x8e8] sm:$0xff]  ;;  %v315_v38 = vld [vmem:[%s15761_s1 + $0x1b0] sm:$0xff] }
 0x163   :  { %15784 = vst [vmem:[#allocation16_spill] sm:$0xff] %v9552_v2  ;;  %1712 = vmatpush.msra.mxu1 %v266_v63  ;;  %v506_v37 = vld [vmem:[%s15761_s1 + $0x7a8] sm:$0xff]  ;;  %v383_v63 = vld [vmem:[%s15761_s1 + $0x3d0] sm:$0xff]  ;;  %v6958_v2 = vld [vmem:[%s15761_s1 + $0x1520] sm:$0xff] }
 0x164   :  { %1742 = vmatpush.msra.mxu2 %v326_v5  ;;  %1770 = vmatpush.msra.mxu3 %v394_v14  ;;  %v490_v54 = vld [vmem:[%s15761_s1 + $0x728] sm:$0xff] }
 0x165   :  { %6842 = vmatmul.msk.f32.vlgmr.msra.gmra.mxu0 %vm24_vm1, %v9566_v19  ;;  %1713 = vmatpush.msra.mxu1 %v262_v7  ;;  %v502_v7 = vld [vmem:[%s15761_s1 + $0x788] sm:$0xff] }
 0x166   :  { %1743 = vmatmul.f32.vlgmr.msra.gmra.mxu2 %v9356_v42  ;;  %v9583_v0 = vpop.f32.mrf.mxu2  ;;  %1771 = vmatpush.msra.mxu3 %v390_v32  ;;  %v542_v32 = vld [vmem:[%s15761_s1 + $0x8c8] sm:$0xff] }
 0x167   :  { %15785 = vst [vmem:[#allocation17_spill] sm:$0xff] %v9583_v0  ;;  %1843 = vmatpush.msrb.mxu2 %v323_v21  ;;  %1714 = vmatmul.f32.vlgmr.msra.gmra.mxu1 %v9346_v13  ;;  %v311_v21 = vld [vmem:[%s15761_s1 + $0x190] sm:$0xff] }
 0x168   :  { %v9585_v9 = vpop.f32.mrf.mxu3  ;;  %1772 = vmatmul.f32.vlgmr.msra.gmra.mxu3 %v9342_v31  ;;  %v9601_v5 = vpop.f32.mrf.mxu1  ;;  %1822 = vmatpush.msrb.mxu1 %v546_v45  ;;  %v375_v45 = vld [vmem:[%s15761_s1 + $0x390] sm:$0xff] }
 0x169   :  { %15786 = vst [vmem:[#allocation18_spill] sm:$0xff] %v9585_v9  ;;  %1844 = vmatpush.msrb.mxu2 %v319_v35  ;;  %1872 = vmatpush.msrb.mxu3 %v387_v11  ;;  %v9603_v14 = vpop.f32.mrf.mxu0  ;;  %v379_v35 = vld [vmem:[%s15761_s1 + $0x3b0] sm:$0xff]  ;;  %v494_v9 = vld [vmem:[%s15761_s1 + $0x748] sm:$0xff] }
 0x16a   :  { %15787 = vst [vmem:[#allocation19_spill] sm:$0xff] %v9601_v5  ;;  %1787 = vmatpush.msrb.mxu0 %v506_v37  ;;  %1823 = vmatpush.msrb.mxu1 %v542_v32  ;;  %v307_v11 = vld [vmem:[%s15761_s1 + $0x170] sm:$0xff]  ;;  %v9623_v37 = vld [vmem:[#allocation2 + $0x48] sm:$0xff] }
 0x16b   :  { %15788 = vst [vmem:[#allocation20_spill] sm:$0xff] %v9603_v14  ;;  %1845 = vmatpush.msrb.mxu2 %v315_v38  ;;  %1873 = vmatpush.msrb.mxu3 %v383_v63  ;;  %v498_v38 = vld [vmem:[%s15761_s1 + $0x768] sm:$0xff]  ;;  %v303_v63 = vld [vmem:[%s15761_s1 + $0x150] sm:$0xff] }
 0x16c   :  { %1788 = vmatpush.msrb.mxu0 %v502_v7  ;;  %v371_v32 = vld [vmem:[%s15761_s1 + $0x370] sm:$0xff] }
 0x16d   :  { %1846 = vmatpush.msrb.mxu2 %v311_v21  ;;  %1874 = vmatpush.msrb.mxu3 %v379_v35  ;;  %v538_v35 = vld [vmem:[%s15761_s1 + $0x8a8] sm:$0xff]  ;;  %v367_v0 = vld [vmem:[%s15761_s1 + $0x350] sm:$0xff] }
 0x16e   :  { %6843 = vmatmul.msk.f32.gmra.mxu0 %vm24_vm1, %v9623_v37  ;;  %1746 = vmatmul.f32.gmra.mxu2 %v8257_v17  ;;  %v9634_v7 = vpop.f32.mrf.mxu2  ;;  %v263_v5 = vld [vmem:[%s15761_s1 + $0x10] sm:$0xff] }
 0x16f   :  { %15789 = vst [vmem:[#allocation21_spill] sm:$0xff] %v9634_v7  ;;  %1847 = vmatpush.msrb.mxu2 %v307_v11  ;;  %1875 = vmatpush.msrb.mxu3 %v375_v45  ;;  %v299_v11 = vld [vmem:[%s15761_s1 + $0x130] sm:$0xff]  ;;  %v534_v7 = vld [vmem:[%s15761_s1 + $0x888] sm:$0xff] }
 0x170   :  { %v9639_v21 = vpop.f32.mrf.mxu3  ;;  %1717 = vmatmul.f32.gmra.mxu1 %v9405_v60  ;;  %1775 = vmatmul.f32.gmra.mxu3 %v8203_v58  ;;  %v9652_v45 = vpop.f32.mrf.mxu1 }
 0x171   :  { %15790 = vst [vmem:[#allocation22_spill] sm:$0xff] %v9639_v21  ;;  %1789 = vmatpush.msrb.mxu0 %v498_v38  ;;  %1848 = vmatpush.msrb.mxu2 %v303_v63  ;;  %v9657_v21 = vpop.f32.mrf.mxu0  ;;  %v295_v38 = vld [vmem:[%s15761_s1 + $0x110] sm:$0xff] }
 0x172   :  { %15791 = vst [vmem:[#allocation23_spill] sm:$0xff] %v9652_v45  ;;  %1876 = vmatpush.msrb.mxu3 %v371_v32  ;;  %1824 = vmatpush.msrb.mxu1 %v538_v35  ;;  %v363_v63 = vld [vmem:[%s15761_s1 + $0x330] sm:$0xff]  ;;  %v486_v32 = vld [vmem:[%s15761_s1 + $0x708] sm:$0xff]  ;;  %v9674_v35 = vld [vmem:[#allocation2 + $0x98] sm:$0xff] }
 0x173   :  { %15792 = vst [vmem:[#allocation24_spill] sm:$0xff] %v9657_v21  ;;  %1790 = vmatpush.msrb.mxu0 %v494_v9  ;;  %1849 = vmatpush.msrb.mxu2 %v299_v11  ;;  %v291_v45 = vld [vmem:[%s15761_s1 + $0xf0] sm:$0xff] }
 0x174   :  { %1877 = vmatpush.msrb.mxu3 %v367_v0  ;;  %1825 = vmatpush.msrb.mxu1 %v534_v7  ;;  %v359_v9 = vld [vmem:[%s15761_s1 + $0x310] sm:$0xff] }
 0x175   :  { %1791 = vmatpush.msrb.mxu0 %v490_v54  ;;  %1850 = vmatpush.msrb.mxu2 %v295_v38  ;;  %v482_v54 = vld [vmem:[%s15761_s1 + $0x6e8] sm:$0xff]  ;;  %v287_v7 = vld [vmem:[%s15761_s1 + $0xd0] sm:$0xff] }
 0x176   :  { %1878 = vmatpush.msrb.mxu3 %v363_v63  ;;  %6844 = vmatmul.msk.f32.gmra.mxu0 %vm24_vm1, %v9674_v35  ;;  %v9684_v0 = vpop.f32.mrf.mxu2  ;;  %v355_v38 = vld [vmem:[%s15761_s1 + $0x2f0] sm:$0xff]  ;;  %v530_v63 = vld [vmem:[%s15761_s1 + $0x868] sm:$0xff] }
 0x177   :  { %15793 = vst [vmem:[#allocation25_spill] sm:$0xff] %v9684_v0  ;;  %1792 = vmatpush.msrb.mxu0 %v486_v32  ;;  %1749 = vmatmul.f32.gmra.mxu2 %v9468_v28  ;;  %v351_v0 = vld [vmem:[%s15761_s1 + $0x2d0] sm:$0xff] }
 0x178   :  { %v9693_v11 = vpop.f32.mrf.mxu3  ;;  %1851 = vmatpush.msrb.mxu2 %v291_v45  ;;  %1879 = vmatpush.msrb.mxu3 %v359_v9  ;;  %v9701_v32 = vpop.f32.mrf.mxu1  ;;  %v283_v45 = vld [vmem:[%s15761_s1 + $0xb0] sm:$0xff] }
 0x179   :  { %15794 = vst [vmem:[#allocation26_spill] sm:$0xff] %v9693_v11  ;;  %1720 = vmatmul.f32.gmra.mxu1 %v9454_v27  ;;  %1778 = vmatmul.f32.gmra.mxu3 %v9456_v39  ;;  %v478_v11 = vld [vmem:[%s15761_s1 + $0x6c8] sm:$0xff]  ;;  %v9711_v9 = vpop.f32.mrf.mxu0 }
 0x17a   :  { %15795 = vst [vmem:[#allocation27_spill] sm:$0xff] %v9701_v32  ;;  %1793 = vmatpush.msrb.mxu0 %v482_v54  ;;  %1852 = vmatpush.msrb.mxu2 %v287_v7  ;;  %v526_v32 = vld [vmem:[%s15761_s1 + $0x848] sm:$0xff]  ;;  %v347_v54 = vld [vmem:[%s15761_s1 + $0x2b0] sm:$0xff] }
 0x17b   :  { %15796 = vst [vmem:[#allocation28_spill] sm:$0xff] %v9711_v9  ;;  %1880 = vmatpush.msrb.mxu3 %v355_v38  ;;  %1826 = vmatpush.msrb.mxu1 %v530_v63  ;;  %v279_v9 = vld [vmem:[%s15761_s1 + $0x90] sm:$0xff]  ;;  %v470_v7 = vld [vmem:[%s15761_s1 + $0x688] sm:$0xff] }
 0x17c   :  { %1794 = vmatpush.msrb.mxu0 %v478_v11  ;;  %1853 = vmatpush.msrb.mxu2 %v283_v45  ;;  %v275_v38 = vld [vmem:[%s15761_s1 + $0x70] sm:$0xff]  ;;  %v9739_v45 = vld [vmem:[#allocation2 + $0xc0] sm:$0xff] }
 0x17d   :  { %1881 = vmatpush.msrb.mxu3 %v351_v0  ;;  %1827 = vmatpush.msrb.mxu1 %v526_v32  ;;  %v343_v11 = vld [vmem:[%s15761_s1 + $0x290] sm:$0xff] }
 0x17e   :  { %1795 = vmatpush.msrb.mxu0 %v474_v8  ;;  %1854 = vmatpush.msrb.mxu2 %v279_v9  ;;  %v9737_v63 = vpop.f32.mrf.mxu2  ;;  %v466_v8 = vld [vmem:[%s15761_s1 + $0x668] sm:$0xff]  ;;  %v271_v32 = vld [vmem:[%s15761_s1 + $0x50] sm:$0xff] }
 0x17f   :  { %15797 = vst [vmem:[#allocation29_spill] sm:$0xff] %v9737_v63  ;;  %1882 = vmatpush.msrb.mxu3 %v347_v54  ;;  %6845 = vmatmul.msk.f32.gmra.mxu0 %vm24_vm1, %v9739_v45  ;;  %v339_v54 = vld [vmem:[%s15761_s1 + $0x270] sm:$0xff]  ;;  %v518_v63 = vld [vmem:[%s15761_s1 + $0x808] sm:$0xff] }
 0x180   :  { %v9743_v0 = vpop.f32.mrf.mxu3  ;;  %1796 = vmatpush.msrb.mxu0 %v470_v7  ;;  %1752 = vmatmul.f32.gmra.mxu2 %v8504_v6  ;;  %v9752_v9 = vpop.f32.mrf.mxu1  ;;  %v522_v7 = vld [vmem:[%s15761_s1 + $0x828] sm:$0xff] }
 0x181   :  { %15798 = vst [vmem:[#allocation30_spill] sm:$0xff] %v9743_v0  ;;  %1855 = vmatpush.msrb.mxu2 %v275_v38  ;;  %1883 = vmatpush.msrb.mxu3 %v343_v11  ;;  %v9760_v0 = vpop.f32.mrf.mxu0  ;;  %v267_v38 = vld [vmem:[%s15761_s1 + $0x30] sm:$0xff] }
 0x182   :  { %15799 = vst [vmem:[#allocation31_spill] sm:$0xff] %v9752_v9  ;;  %1723 = vmatmul.f32.gmra.mxu1 %v9516_v20  ;;  %1781 = vmatmul.f32.gmra.mxu3 %v8401_v23  ;;  %v462_v9 = vld [vmem:[%s15761_s1 + $0x648] sm:$0xff]  ;;  %v335_v11 = vld [vmem:[%s15761_s1 + $0x250] sm:$0xff] }
 0x183   :  { %15800 = vst [vmem:[#allocation32_spill] sm:$0xff] %v9760_v0  ;;  %1797 = vmatpush.msrb.mxu0 %v466_v8  ;;  %1856 = vmatpush.msrb.mxu2 %v271_v32  ;;  %v458_v0 = vld [vmem:[%s15761_s1 + $0x628] sm:$0xff]  ;;  %v331_v8 = vld [vmem:[%s15761_s1 + $0x230] sm:$0xff] }
 0x184   :  { %1884 = vmatpush.msrb.mxu3 %v339_v54  ;;  %1828 = vmatpush.msrb.mxu1 %v522_v7  ;;  %v454_v32 = vld [vmem:[%s15761_s1 + $0x608] sm:$0xff]  ;;  %v547_v54 = vld [vmem:[%s15761_s1 + $0x8f0] sm:$0xff] }
 0x185   :  { %1798 = vmatpush.msrb.mxu0 %v462_v9  ;;  %1857 = vmatpush.msrb.mxu2 %v267_v38  ;;  %v327_v9 = vld [vmem:[%s15761_s1 + $0x210] sm:$0xff] }
 0x186   :  { %1885 = vmatpush.msrb.mxu3 %v335_v11  ;;  %1829 = vmatpush.msrb.mxu1 %v518_v63  ;;  %v9791_v7 = vpop.f32.mrf.mxu2  ;;  %v451_v63 = vld [vmem:[%s15761_s1 + $0x5f0] sm:$0xff] }
 0x187   :  { %15801 = vst [vmem:[#allocation33_spill] sm:$0xff] %v9791_v7  ;;  %1799 = vmatpush.msrb.mxu0 %v458_v0  ;;  %1858 = vmatpush.msrb.mxu2 %v263_v5  ;;  %v515_v5 = vld [vmem:[%s15761_s1 + $0x7f0] sm:$0xff] }
 0x188   :  { %v9796_v38 = vpop.f32.mrf.mxu3  ;;  %1886 = vmatpush.msrb.mxu3 %v331_v8  ;;  %1859 = vmatmul.f32.vlgmr.msrb.gmra.mxu2 %v9346_v13  ;;  %v9799_v11 = vpop.f32.mrf.mxu1  ;;  %v324_v8 = vld [vmem:[%s15761_s1 + $0x1f8] sm:$0xff]  ;;  %v539_v7 = vld [vmem:[%s15761_s1 + $0x8b0] sm:$0xff] }
 0x189   :  { %15802 = vst [vmem:[#allocation34_spill] sm:$0xff] %v9796_v38  ;;  %1800 = vmatpush.msrb.mxu0 %v454_v32  ;;  %1967 = vmatpush.msra.mxu2 %v547_v54  ;;  %v9807_v0 = vpop.f32.mrf.mxu0  ;;  %v543_v32 = vld [vmem:[%s15761_s1 + $0x8d0] sm:$0xff]  ;;  %v320_v38 = vld [vmem:[%s15761_s1 + $0x1d8] sm:$0xff] }
 0x18a   :  { %15803 = vst [vmem:[#allocation35_spill] sm:$0xff] %v9799_v11  ;;  %1801 = vmatmul.f32.vlgmr.msrb.gmra.mxu0 %v9344_v30  ;;  %1887 = vmatpush.msrb.mxu3 %v327_v9  ;;  %v447_v54 = vld [vmem:[%s15761_s1 + $0x5d0] sm:$0xff] }
 0x18b   :  { %15804 = vst [vmem:[#allocation36_spill] sm:$0xff] %v9807_v0  ;;  %6846 = vmatmul.msk.f32.vlgmr.msrb.gmra.mxu1 %vm24_vm1, %v9566_v19  ;;  %1888 = vmatmul.f32.vlgmr.msrb.gmra.mxu3 %v9356_v42  ;;  %v511_v9 = vld [vmem:[%s15761_s1 + $0x7d0] sm:$0xff] }
 0x18c   :  { %1901 = vmatpush.msra.mxu0 %v451_v63  ;;  %1930 = vmatpush.msra.mxu1 %v515_v5  ;;  %v443_v42 = vld [vmem:[%s15761_s1 + $0x5b0] sm:$0xff]  ;;  %v316_v63 = vld [vmem:[%s15761_s1 + $0x1b8] sm:$0xff] }
 0x18d   :  { %1988 = vmatpush.msra.mxu3 %v324_v8  ;;  %1968 = vmatpush.msra.mxu2 %v543_v32  ;;  %v507_v11 = vld [vmem:[%s15761_s1 + $0x7b0] sm:$0xff] }
 0x18e   :  { %1902 = vmatpush.msra.mxu0 %v447_v54  ;;  %1931 = vmatpush.msra.mxu1 %v511_v9  ;;  %v9840_v5 = vpop.f32.mrf.mxu2  ;;  %v439_v8 = vld [vmem:[%s15761_s1 + $0x590] sm:$0xff]  ;;  %v312_v54 = vld [vmem:[%s15761_s1 + $0x198] sm:$0xff] }
 0x18f   :  { %15805 = vst [vmem:[#allocation37_spill] sm:$0xff] %v9840_v5  ;;  %1989 = vmatpush.msra.mxu3 %v320_v38  ;;  %v503_v32 = vld [vmem:[%s15761_s1 + $0x790] sm:$0xff]  ;;  %1969 = vmatpush.msra.mxu2 %v539_v7 }
 0x190   :  { %v9848_v0 = vpop.f32.mrf.mxu3  ;;  %1903 = vmatpush.msra.mxu0 %v443_v42  ;;  %1932 = vmatpush.msra.mxu1 %v507_v11  ;;  %v9853_v9 = vpop.f32.mrf.mxu1  ;;  %v435_v7 = vld [vmem:[%s15761_s1 + $0x570] sm:$0xff]  ;;  %v308_v42 = vld [vmem:[%s15761_s1 + $0x178] sm:$0xff] }
 0x191   :  { %15806 = vst [vmem:[#allocation38_spill] sm:$0xff] %v9848_v0  ;;  %1990 = vmatpush.msra.mxu3 %v316_v63  ;;  %1862 = vmatmul.f32.gmra.mxu2 %v9405_v60  ;;  %v9856_v38 = vpop.f32.mrf.mxu0  ;;  %v499_v11 = vld [vmem:[%s15761_s1 + $0x770] sm:$0xff] }
 0x192   :  { %15807 = vst [vmem:[#allocation39_spill] sm:$0xff] %v9853_v9  ;;  %1904 = vmatpush.msra.mxu0 %v439_v8  ;;  %1933 = vmatpush.msra.mxu1 %v503_v32  ;;  %v535_v63 = vld [vmem:[%s15761_s1 + $0x890] sm:$0xff] }
 0x193   :  { %15808 = vst [vmem:[#allocation40_spill] sm:$0xff] %v9856_v38  ;;  %1804 = vmatmul.f32.gmra.mxu0 %v8207_v59  ;;  %1991 = vmatpush.msra.mxu3 %v312_v54  ;;  %v431_v8 = vld [vmem:[%s15761_s1 + $0x550] sm:$0xff]  ;;  %v304_v54 = vld [vmem:[%s15761_s1 + $0x158] sm:$0xff] }
 0x194   :  { %6847 = vmatmul.msk.f32.gmra.mxu1 %vm24_vm1, %v9623_v37  ;;  %1891 = vmatmul.f32.gmra.mxu3 %v8257_v17  ;;  %v495_v32 = vld [vmem:[%s15761_s1 + $0x750] sm:$0xff] }
 0x195   :  { %1905 = vmatpush.msra.mxu0 %v435_v7  ;;  %1934 = vmatpush.msra.mxu1 %v499_v11  ;;  %v531_v0 = vld [vmem:[%s15761_s1 + $0x870] sm:$0xff]  ;;  %v300_v11 = vld [vmem:[%s15761_s1 + $0x138] sm:$0xff] }
 0x196   :  { %1992 = vmatpush.msra.mxu3 %v308_v42  ;;  %1970 = vmatpush.msra.mxu2 %v535_v63  ;;  %v427_v9 = vld [vmem:[%s15761_s1 + $0x530] sm:$0xff]  ;;  %v9892_v7 = vpop.f32.mrf.mxu2 }
 0x197   :  { %v491_v5 = vld [vmem:[%s15761_s1 + $0x730] sm:$0xff]  ;;  %15809 = vst [vmem:[#allocation41_spill] sm:$0xff] %v9892_v7  ;;  %1906 = vmatpush.msra.mxu0 %v431_v8  ;;  %1935 = vmatpush.msra.mxu1 %v495_v32  ;;  %v296_v8 = vld [vmem:[%s15761_s1 + $0x118] sm:$0xff] }
 0x198   :  { %v9897_v38 = vpop.f32.mrf.mxu3  ;;  %1993 = vmatpush.msra.mxu3 %v304_v54  ;;  %v423_v42 = vld [vmem:[%s15761_s1 + $0x510] sm:$0xff]  ;;  %1971 = vmatpush.msra.mxu2 %v531_v0  ;;  %v9905_v21 = vpop.f32.mrf.mxu1 }
 0x199   :  { %15810 = vst [vmem:[#allocation42_spill] sm:$0xff] %v9897_v38  ;;  %v487_v63 = vld [vmem:[%s15761_s1 + $0x710] sm:$0xff]  ;;  %1907 = vmatpush.msra.mxu0 %v427_v9  ;;  %1936 = vmatpush.msra.mxu1 %v491_v5  ;;  %v9910_v32 = vpop.f32.mrf.mxu0  ;;  %v292_v5 = vld [vmem:[%s15761_s1 + $0xf8] sm:$0xff] }
 0x19a   :  { %15811 = vst [vmem:[#allocation43_spill] sm:$0xff] %v9905_v21  ;;  %1994 = vmatpush.msra.mxu3 %v300_v11  ;;  %1865 = vmatmul.f32.gmra.mxu2 %v9454_v27  ;;  %v419_v54 = vld [vmem:[%s15761_s1 + $0x4f0] sm:$0xff]  ;;  %v284_v21 = vld [vmem:[%s15761_s1 + $0xb8] sm:$0xff] }
 0x19b   :  { %15812 = vst [vmem:[#allocation44_spill] sm:$0xff] %v9910_v32  ;;  %1908 = vmatpush.msra.mxu0 %v423_v42  ;;  %1937 = vmatpush.msra.mxu1 %v487_v63  ;;  %v483_v0 = vld [vmem:[%s15761_s1 + $0x6f0] sm:$0xff]  ;;  %v288_v63 = vld [vmem:[%s15761_s1 + $0xd8] sm:$0xff]  ;;  %v7090_v32 = vld [vmem:[%s15761_s1 + $0x1940] sm:$0xff] }
 0x19c   :  { %1807 = vmatmul.f32.gmra.mxu0 %v9460_v41  ;;  %1995 = vmatpush.msra.mxu3 %v296_v8  ;;  %v527_v9 = vld [vmem:[%s15761_s1 + $0x850] sm:$0xff] }
 0x19d   :  { %6848 = vmatmul.msk.f32.gmra.mxu1 %vm24_vm1, %v9674_v35  ;;  %1894 = vmatmul.f32.gmra.mxu3 %v9468_v28  ;;  %v415_v11 = vld [vmem:[%s15761_s1 + $0x4d0] sm:$0xff] }
 0x19e   :  { %v479_v42 = vld [vmem:[%s15761_s1 + $0x6d0] sm:$0xff]  ;;  %1909 = vmatpush.msra.mxu0 %v419_v54  ;;  %1938 = vmatpush.msra.mxu1 %v483_v0  ;;  %v9941_v38 = vpop.f32.mrf.mxu2 }
 0x19f   :  { %v523_v8 = vld [vmem:[%s15761_s1 + $0x830] sm:$0xff]  ;;  %15813 = vst [vmem:[#allocation45_spill] sm:$0xff] %v9941_v38  ;;  %1996 = vmatpush.msra.mxu3 %v292_v5  ;;  %1972 = vmatpush.msra.mxu2 %v527_v9 }
 0x1a0   :  { %v411_v28 = vld [vmem:[%s15761_s1 + $0x4b0] sm:$0xff]  ;;  %v9949_v0 = vpop.f32.mrf.mxu3  ;;  %1910 = vmatpush.msra.mxu0 %v415_v11  ;;  %1939 = vmatpush.msra.mxu1 %v479_v42  ;;  %v9954_v7 = vpop.f32.mrf.mxu1  ;;  %v280_v11 = vld [vmem:[%s15761_s1 + $0x98] sm:$0xff] }
 0x1a1   :  { %v475_v54 = vld [vmem:[%s15761_s1 + $0x6b0] sm:$0xff]  ;;  %15814 = vst [vmem:[#allocation46_spill] sm:$0xff] %v9949_v0  ;;  %1997 = vmatpush.msra.mxu3 %v288_v63  ;;  %1973 = vmatpush.msra.mxu2 %v523_v8  ;;  %v9962_v38 = vpop.f32.mrf.mxu0  ;;  %v276_v8 = vld [vmem:[%s15761_s1 + $0x78] sm:$0xff] }
 0x1a2   :  { %15815 = vst [vmem:[#allocation47_spill] sm:$0xff] %v9954_v7  ;;  %v407_v5 = vld [vmem:[%s15761_s1 + $0x490] sm:$0xff]  ;;  %1911 = vmatpush.msra.mxu0 %v411_v28  ;;  %1940 = vmatpush.msra.mxu1 %v475_v54 }
 0x1a3   :  { %v471_v9 = vld [vmem:[%s15761_s1 + $0x690] sm:$0xff]  ;;  %15816 = vst [vmem:[#allocation48_spill] sm:$0xff] %v9962_v38  ;;  %1998 = vmatpush.msra.mxu3 %v284_v21  ;;  %1868 = vmatmul.f32.gmra.mxu2 %v9516_v20 }
 0x1a4   :  { %1912 = vmatpush.msra.mxu0 %v407_v5  ;;  %1941 = vmatpush.msra.mxu1 %v471_v9  ;;  %v403_v42 = vld [vmem:[%s15761_s1 + $0x470] sm:$0xff]  ;;  %v272_v9 = vld [vmem:[%s15761_s1 + $0x58] sm:$0xff] }
 0x1a5   :  { %v467_v63 = vld [vmem:[%s15761_s1 + $0x670] sm:$0xff]  ;;  %1810 = vmatmul.f32.gmra.mxu0 %v8453_v46  ;;  %1999 = vmatpush.msra.mxu3 %v280_v11  ;;  %v516_v11 = vld [vmem:[%s15761_s1 + $0x7f8] sm:$0xff] }
 0x1a6   :  { %v519_v21 = vld [vmem:[%s15761_s1 + $0x810] sm:$0xff]  ;;  %6849 = vmatmul.msk.f32.gmra.mxu1 %vm24_vm1, %v9739_v45  ;;  %1897 = vmatmul.f32.gmra.mxu3 %v8504_v6  ;;  %v9990_v5 = vpop.f32.mrf.mxu2 }
 0x1a7   :  { %v399_v28 = vld [vmem:[%s15761_s1 + $0x450] sm:$0xff]  ;;  %15817 = vst [vmem:[#allocation49_spill] sm:$0xff] %v9990_v5  ;;  %1913 = vmatpush.msra.mxu0 %v403_v42  ;;  %1942 = vmatpush.msra.mxu1 %v467_v63  ;;  %v268_v5 = vld [vmem:[%s15761_s1 + $0x38] sm:$0xff] }
 0x1a8   :  { %v463_v54 = vld [vmem:[%s15761_s1 + $0x650] sm:$0xff]  ;;  %v9998_v0 = vpop.f32.mrf.mxu3  ;;  %2000 = vmatpush.msra.mxu3 %v276_v8  ;;  %1974 = vmatpush.msra.mxu2 %v519_v21  ;;  %v10006_v63 = vpop.f32.mrf.mxu1 }
 0x1a9   :  { %15818 = vst [vmem:[#allocation50_spill] sm:$0xff] %v9998_v0  ;;  %v395_v7 = vld [vmem:[%s15761_s1 + $0x430] sm:$0xff]  ;;  %1914 = vmatpush.msra.mxu0 %v399_v28  ;;  %1943 = vmatpush.msra.mxu1 %v463_v54  ;;  %v10011_v38 = vpop.f32.mrf.mxu0  ;;  %v264_v28 = vld [vmem:[%s15761_s1 + $0x18] sm:$0xff] }
 0x1aa   :  { %v459_v42 = vld [vmem:[%s15761_s1 + $0x630] sm:$0xff]  ;;  %15819 = vst [vmem:[#allocation51_spill] sm:$0xff] %v10006_v63  ;;  %2001 = vmatpush.msra.mxu3 %v272_v9  ;;  %2075 = vmatpush.msrb.mxu2 %v516_v11  ;;  %v388_v54 = vld [vmem:[%s15761_s1 + $0x3f8] sm:$0xff]  ;;  %v7797_v63 = vld [vmem:[#allocation2 + $0x8] sm:$0xff] }
 0x1ab   :  { %15820 = vst [vmem:[#allocation52_spill] sm:$0xff] %v10011_v38  ;;  %v391_v8 = vld [vmem:[%s15761_s1 + $0x410] sm:$0xff]  ;;  %1915 = vmatpush.msra.mxu0 %v395_v7  ;;  %1944 = vmatpush.msra.mxu1 %v459_v42  ;;  %v452_v9 = vld [vmem:[%s15761_s1 + $0x5f8] sm:$0xff] }
 0x1ac   :  { %v455_v21 = vld [vmem:[%s15761_s1 + $0x610] sm:$0xff]  ;;  %2002 = vmatpush.msra.mxu3 %v268_v5  ;;  %6850 = vmatmul.msk.f32.vlgmr.msra.gmra.mxu2 %vm24_vm1, %v9566_v19  ;;  %v512_v7 = vld [vmem:[%s15761_s1 + $0x7d8] sm:$0xff] }
 0x1ad   :  { %1916 = vmatpush.msra.mxu0 %v391_v8  ;;  %1945 = vmatpush.msra.mxu1 %v455_v21  ;;  %v548_v5 = vld [vmem:[%s15761_s1 + $0x8f8] sm:$0xff] }
 0x1ae   :  { %1917 = vmatmul.f32.vlgmr.msra.gmra.mxu0 %v9342_v31  ;;  %2003 = vmatpush.msra.mxu3 %v264_v28  ;;  %v10037_v11 = vpop.f32.mrf.mxu2  ;;  %v384_v42 = vld [vmem:[%s15761_s1 + $0x3d8] sm:$0xff] }
 0x1af   :  { %15821 = vst [vmem:[#allocation53_spill] sm:$0xff] %v10037_v11  ;;  %1946 = vmatmul.f32.vlgmr.msra.gmra.mxu1 %v9344_v30  ;;  %2004 = vmatmul.f32.vlgmr.msra.gmra.mxu3 %v9346_v13  ;;  %v448_v31 = vld [vmem:[%s15761_s1 + $0x5d8] sm:$0xff] }
 0x1b0   :  { %v10047_v8 = vpop.f32.mrf.mxu3  ;;  %2017 = vmatpush.msrb.mxu0 %v388_v54  ;;  %2046 = vmatpush.msrb.mxu1 %v452_v9  ;;  %v508_v21 = vld [vmem:[%s15761_s1 + $0x7b8] sm:$0xff]  ;;  %v10055_v13 = vpop.f32.mrf.mxu1 }
 0x1b1   :  { %15822 = vst [vmem:[#allocation54_spill] sm:$0xff] %v10047_v8  ;;  %v544_v30 = vld [vmem:[%s15761_s1 + $0x8d8] sm:$0xff]  ;;  %2076 = vmatpush.msrb.mxu2 %v512_v7  ;;  %2112 = vmatpush.msrb.mxu3 %v548_v5  ;;  %v10063_v9 = vpop.f32.mrf.mxu0 }
 0x1b2   :  { %15823 = vst [vmem:[#allocation55_spill] sm:$0xff] %v10055_v13  ;;  %v380_v28 = vld [vmem:[%s15761_s1 + $0x3b8] sm:$0xff]  ;;  %2018 = vmatpush.msrb.mxu0 %v384_v42  ;;  %2047 = vmatpush.msrb.mxu1 %v448_v31  ;;  %v7110_v13 = vld [vmem:[%s15761_s1 + $0x19e0] sm:$0xff] }
 0x1b3   :  { %v444_v54 = vld [vmem:[%s15761_s1 + $0x5b8] sm:$0xff]  ;;  %15824 = vst [vmem:[#allocation56_spill] sm:$0xff] %v10063_v9  ;;  %2077 = vmatpush.msrb.mxu2 %v508_v21  ;;  %2113 = vmatpush.msrb.mxu3 %v544_v30  ;;  %v7102_v9 = vld [vmem:[%s15761_s1 + $0x19a0] sm:$0xff] }
 0x1b4   :  { %v504_v0 = vld [vmem:[%s15761_s1 + $0x798] sm:$0xff]  ;;  %2019 = vmatpush.msrb.mxu0 %v380_v28  ;;  %2048 = vmatpush.msrb.mxu1 %v444_v54 }
 0x1b5   :  { %v540_v7 = vld [vmem:[%s15761_s1 + $0x8b8] sm:$0xff]  ;;  %2078 = vmatpush.msrb.mxu2 %v504_v0 }
 0x1b6   :  { %v376_v5 = vld [vmem:[%s15761_s1 + $0x398] sm:$0xff]  ;;  %2114 = vmatpush.msrb.mxu3 %v540_v7  ;;  %6851 = vmatmul.msk.f32.gmra.mxu2 %vm24_vm1, %v9623_v37  ;;  %v10085_v30 = vpop.f32.mrf.mxu2 }
 0x1b7   :  { %v440_v42 = vld [vmem:[%s15761_s1 + $0x598] sm:$0xff]  ;;  %2020 = vmatpush.msrb.mxu0 %v376_v5  ;;  %15825 = vst [vmem:[#allocation57_spill] sm:$0xff] %v10085_v30  ;;  %1949 = vmatmul.f32.gmra.mxu1 %v8207_v59 }
 0x1b8   :  { %v500_v31 = vld [vmem:[%s15761_s1 + $0x778] sm:$0xff]  ;;  %1920 = vmatmul.f32.gmra.mxu0 %v8203_v58  ;;  %2049 = vmatpush.msrb.mxu1 %v440_v42  ;;  %v10094_v54 = vpop.f32.mrf.mxu3  ;;  %v10112_v8 = vpop.f32.mrf.mxu1 }
 0x1b9   :  { %v372_v21 = vld [vmem:[%s15761_s1 + $0x378] sm:$0xff]  ;;  %15826 = vst [vmem:[#allocation58_spill] sm:$0xff] %v10094_v54  ;;  %2079 = vmatpush.msrb.mxu2 %v500_v31  ;;  %2007 = vmatmul.f32.gmra.mxu3 %v9405_v60  ;;  %v10110_v54 = vpop.f32.mrf.mxu0 }
 0x1ba   :  { %v436_v0 = vld [vmem:[%s15761_s1 + $0x578] sm:$0xff]  ;;  %2021 = vmatpush.msrb.mxu0 %v372_v21  ;;  %15827 = vst [vmem:[#allocation59_spill] sm:$0xff] %v10110_v54 }
 0x1bb   :  { %v496_v28 = vld [vmem:[%s15761_s1 + $0x758] sm:$0xff]  ;;  %15828 = vst [vmem:[#allocation60_spill] sm:$0xff] %v10112_v8  ;;  %2050 = vmatpush.msrb.mxu1 %v436_v0 }
 0x1bc   :  { %v368_v7 = vld [vmem:[%s15761_s1 + $0x358] sm:$0xff]  ;;  %2080 = vmatpush.msrb.mxu2 %v496_v28 }
 0x1bd   :  { %v536_v5 = vld [vmem:[%s15761_s1 + $0x898] sm:$0xff]  ;;  %2022 = vmatpush.msrb.mxu0 %v368_v7 }
 0x1be   :  { %v432_v42 = vld [vmem:[%s15761_s1 + $0x558] sm:$0xff]  ;;  %2115 = vmatpush.msrb.mxu3 %v536_v5  ;;  %v10135_v8 = vpop.f32.mrf.mxu2  ;;  %6852 = vmatmul.msk.f32.gmra.mxu2 %vm24_vm1, %v9674_v35 }
 0x1bf   :  { %v492_v31 = vld [vmem:[%s15761_s1 + $0x738] sm:$0xff]  ;;  %2051 = vmatpush.msrb.mxu1 %v432_v42  ;;  %15829 = vst [vmem:[#allocation61_spill] sm:$0xff] %v10135_v8 }
 0x1c0   :  { %v364_v30 = vld [vmem:[%s15761_s1 + $0x338] sm:$0xff]  ;;  %2081 = vmatpush.msrb.mxu2 %v492_v31  ;;  %1923 = vmatmul.f32.gmra.mxu0 %v9456_v39  ;;  %v10149_v42 = vpop.f32.mrf.mxu3 }
 0x1c1   :  { %v532_v60 = vld [vmem:[%s15761_s1 + $0x878] sm:$0xff]  ;;  %2023 = vmatpush.msrb.mxu0 %v364_v30  ;;  %15830 = vst [vmem:[#allocation62_spill] sm:$0xff] %v10149_v42  ;;  %1952 = vmatmul.f32.gmra.mxu1 %v9460_v41 }
 0x1c2   :  { %v428_v21 = vld [vmem:[%s15761_s1 + $0x538] sm:$0xff]  ;;  %2116 = vmatpush.msrb.mxu3 %v532_v60  ;;  %v10158_v60 = vpop.f32.mrf.mxu0 }
 0x1c3   :  { %v488_v54 = vld [vmem:[%s15761_s1 + $0x718] sm:$0xff]  ;;  %2052 = vmatpush.msrb.mxu1 %v428_v21  ;;  %2010 = vmatmul.f32.gmra.mxu3 %v9454_v27 }
 0x1c4   :  { %v360_v0 = vld [vmem:[%s15761_s1 + $0x318] sm:$0xff]  ;;  %2082 = vmatpush.msrb.mxu2 %v488_v54 }
 0x1c5   :  { %v424_v28 = vld [vmem:[%s15761_s1 + $0x518] sm:$0xff]  ;;  %2024 = vmatpush.msrb.mxu0 %v360_v0  ;;  %v10167_v0 = vpop.f32.mrf.mxu1 }
 0x1c6   :  { %v484_v7 = vld [vmem:[%s15761_s1 + $0x6f8] sm:$0xff]  ;;  %2053 = vmatpush.msrb.mxu1 %v424_v28  ;;  %6853 = vmatmul.msk.f32.gmra.mxu2 %vm24_vm1, %v9739_v45 }
 0x1c7   :  { %v356_v30 = vld [vmem:[%s15761_s1 + $0x2f8] sm:$0xff]  ;;  %2083 = vmatpush.msrb.mxu2 %v484_v7 }
 0x1c8   :  { %v420_v54 = vld [vmem:[%s15761_s1 + $0x4f8] sm:$0xff]  ;;  %2025 = vmatpush.msrb.mxu0 %v356_v30 }
 0x1c9   :  { %v480_v5 = vld [vmem:[%s15761_s1 + $0x6d8] sm:$0xff]  ;;  %2054 = vmatpush.msrb.mxu1 %v420_v54  ;;  %1926 = vmatmul.f32.gmra.mxu0 %v8401_v23 }
 0x1ca   :  { %v352_v31 = vld [vmem:[%s15761_s1 + $0x2d8] sm:$0xff]  ;;  %2084 = vmatpush.msrb.mxu2 %v480_v5  ;;  %1955 = vmatmul.f32.gmra.mxu1 %v8453_v46 }
 0x1cb   :  { %v528_v39 = vld [vmem:[%s15761_s1 + $0x858] sm:$0xff]  ;;  %2026 = vmatpush.msrb.mxu0 %v352_v31  ;;  %v10187_v31 = vpop.f32.mrf.mxu2  ;;  %2013 = vmatmul.f32.gmra.mxu3 %v9516_v20 }
 0x1cc   :  { %v416_v21 = vld [vmem:[%s15761_s1 + $0x4d8] sm:$0xff]  ;;  %2117 = vmatpush.msrb.mxu3 %v528_v39 }
 0x1cd   :  { %v476_v41 = vld [vmem:[%s15761_s1 + $0x6b8] sm:$0xff]  ;;  %2055 = vmatpush.msrb.mxu1 %v416_v21 }
 0x1ce   :  { %v348_v28 = vld [vmem:[%s15761_s1 + $0x2b8] sm:$0xff]  ;;  %2085 = vmatpush.msrb.mxu2 %v476_v41  ;;  %v10197_v41 = vpop.f32.mrf.mxu3 }
 0x1cf   :  { %v524_v27 = vld [vmem:[%s15761_s1 + $0x838] sm:$0xff]  ;;  %2027 = vmatpush.msrb.mxu0 %v348_v28  ;;  %15831 = vst [vmem:[#allocation63_spill] sm:$0xff] %v10197_v41 }
 0x1d0   :  { %v412_v7 = vld [vmem:[%s15761_s1 + $0x4b8] sm:$0xff]  ;;  %2118 = vmatpush.msrb.mxu3 %v524_v27 }
 0x1d1   :  { %v472_v30 = vld [vmem:[%s15761_s1 + $0x698] sm:$0xff]  ;;  %2056 = vmatpush.msrb.mxu1 %v412_v7  ;;  %v10206_v7 = vpop.f32.mrf.mxu0 }
 0x1d2   :  { %v344_v54 = vld [vmem:[%s15761_s1 + $0x298] sm:$0xff]  ;;  %2086 = vmatpush.msrb.mxu2 %v472_v30 }
 0x1d3   :  { %v408_v5 = vld [vmem:[%s15761_s1 + $0x498] sm:$0xff]  ;;  %2028 = vmatpush.msrb.mxu0 %v344_v54 }
 0x1d4   :  { %v468_v39 = vld [vmem:[%s15761_s1 + $0x678] sm:$0xff]  ;;  %2057 = vmatpush.msrb.mxu1 %v408_v5  ;;  %v10215_v5 = vpop.f32.mrf.mxu1 }
 0x1d5   :  { %v340_v21 = vld [vmem:[%s15761_s1 + $0x278] sm:$0xff]  ;;  %2087 = vmatpush.msrb.mxu2 %v468_v39 }
 0x1d6   :  { %v404_v28 = vld [vmem:[%s15761_s1 + $0x478] sm:$0xff]  ;;  %2029 = vmatpush.msrb.mxu0 %v340_v21  ;;  %v10250_v11 = vpop.f32.mrf.mxu3 }
 0x1d7   :  { %v464_v27 = vld [vmem:[%s15761_s1 + $0x658] sm:$0xff]  ;;  %2058 = vmatpush.msrb.mxu1 %v404_v28 }
 0x1d8   :  { %v336_v30 = vld [vmem:[%s15761_s1 + $0x258] sm:$0xff]  ;;  %2088 = vmatpush.msrb.mxu2 %v464_v27  ;;  %v10239_v27 = vpop.f32.mrf.mxu2 }
 0x1d9   :  { %v520_v54 = vld [vmem:[%s15761_s1 + $0x818] sm:$0xff]  ;;  %2030 = vmatpush.msrb.mxu0 %v336_v30 }
 0x1da   :  { %v400_v42 = vld [vmem:[%s15761_s1 + $0x458] sm:$0xff]  ;;  %2119 = vmatpush.msrb.mxu3 %v520_v54  ;;  %v7046_v54 = vld [vmem:[%s15761_s1 + $0x17e0] sm:$0xff] }
 0x1db   :  { %v460_v39 = vld [vmem:[%s15761_s1 + $0x638] sm:$0xff]  ;;  %2059 = vmatpush.msrb.mxu1 %v400_v42  ;;  %6854 = vmatmul.msk.f32.vlgmr.msrb.gmra.mxu3 %vm24_vm1, %v9566_v19  ;;  %v6974_v19 = vld [vmem:[%s15761_s1 + $0x15a0] sm:$0xff] }
 0x1dc   :  { %v332_v8 = vld [vmem:[%s15761_s1 + $0x238] sm:$0xff]  ;;  %2089 = vmatpush.msrb.mxu2 %v460_v39  ;;  %2624 = vmatpush.msra.mxu3 %v7110_v13  ;;  %v6918_v39 = vld [vmem:[%s15761_s1 + $0x13e0] sm:$0xff] }
 0x1dd   :  { %v396_v20 = vld [vmem:[%s15761_s1 + $0x438] sm:$0xff]  ;;  %2031 = vmatpush.msrb.mxu0 %v332_v8  ;;  %v10252_v8 = vpop.f32.mrf.mxu0  ;;  %v6982_v13 = vld [vmem:[%s15761_s1 + $0x15e0] sm:$0xff] }
 0x1de   :  { %v456_v21 = vld [vmem:[%s15761_s1 + $0x618] sm:$0xff]  ;;  %2060 = vmatpush.msrb.mxu1 %v396_v20  ;;  %v7042_v20 = vld [vmem:[%s15761_s1 + $0x17c0] sm:$0xff] }
 0x1df   :  { %v328_v28 = vld [vmem:[%s15761_s1 + $0x218] sm:$0xff]  ;;  %2090 = vmatpush.msrb.mxu2 %v456_v21  ;;  %v7798_v21 = vld [vmem:[#allocation2 + $0x10] sm:$0xff] }
 0x1e0   :  { %v392_v30 = vld [vmem:[%s15761_s1 + $0x418] sm:$0xff]  ;;  %2032 = vmatpush.msrb.mxu0 %v328_v28  ;;  %v6914_v28 = vld [vmem:[%s15761_s1 + $0x13c0] sm:$0xff] }
 0x1e1   :  { %v7796_v42 = vld [vmem:[#allocation2 + $0x18] sm:$0xff]  ;;  %2033 = vmatmul.f32.vlgmr.msrb.gmra.mxu0 %v7797_v63  ;;  %2061 = vmatpush.msrb.mxu1 %v392_v30  ;;  %v7106_v63 = vld [vmem:[%s15761_s1 + $0x19c0] sm:$0xff]  ;;  %v10266_v30 = vpop.f32.mrf.mxu1 }
 0x1e2   :  { %2091 = vmatmul.f32.vlgmr.msrb.gmra.mxu2 %v7796_v42  ;;  %2062 = vmatmul.f32.vlgmr.msrb.gmra.mxu1 %v7798_v21  ;;  %v7038_v42 = vld [vmem:[%s15761_s1 + $0x17a0] sm:$0xff] }
 0x1e3   :  { %2595 = vmatpush.msra.mxu2 %v7046_v54  ;;  %2537 = vmatpush.msra.mxu0 %v6918_v39  ;;  %v6978_v54 = vld [vmem:[%s15761_s1 + $0x15c0] sm:$0xff] }
 0x1e4   :  { %2566 = vmatpush.msra.mxu1 %v6982_v13  ;;  %v6910_v21 = vld [vmem:[%s15761_s1 + $0x13a0] sm:$0xff]  ;;  %2625 = vmatpush.msra.mxu3 %v7106_v63 }
 0x1e5   :  { %2596 = vmatpush.msra.mxu2 %v7042_v20  ;;  %2538 = vmatpush.msra.mxu0 %v6914_v28  ;;  %v7034_v39 = vld [vmem:[%s15761_s1 + $0x1780] sm:$0xff]  ;;  %v10291_v20 = vpop.f32.mrf.mxu2  ;;  %v10304_v38 = vpop.f32.mrf.mxu0 }
 0x1e6   :  { %2567 = vmatpush.msra.mxu1 %v6978_v54  ;;  %v6906_v13 = vld [vmem:[%s15761_s1 + $0x1380] sm:$0xff]  ;;  %2626 = vmatpush.msra.mxu3 %v7102_v9 }
 0x1e7   :  { %2597 = vmatpush.msra.mxu2 %v7038_v42  ;;  %2539 = vmatpush.msra.mxu0 %v6910_v21  ;;  %v6970_v28 = vld [vmem:[%s15761_s1 + $0x1580] sm:$0xff]  ;;  %v10302_v42 = vpop.f32.mrf.mxu3 }
 0x1e8   :  { %2568 = vmatpush.msra.mxu1 %v6974_v19  ;;  %v7030_v63 = vld [vmem:[%s15761_s1 + $0x1760] sm:$0xff]  ;;  %15832 = vst [vmem:[#allocation64_spill] sm:$0xff] %v10302_v42  ;;  %6855 = vmatmul.msk.f32.gmra.mxu3 %vm24_vm1, %v9623_v37  ;;  %v6939_v42 = vld [vmem:[%s15761_s1 + $0x1488] sm:$0xff] }
 0x1e9   :  { %2598 = vmatpush.msra.mxu2 %v7034_v39  ;;  %v7098_v54 = vld [vmem:[%s15761_s1 + $0x1980] sm:$0xff]  ;;  %2540 = vmatpush.msra.mxu0 %v6906_v13  ;;  %v10320_v13 = vpop.f32.mrf.mxu1 }
 0x1ea   :  { %2094 = vmatmul.f32.gmra.mxu2 %v8207_v59  ;;  %2036 = vmatmul.f32.gmra.mxu0 %v8257_v17  ;;  %v6902_v9 = vld [vmem:[%s15761_s1 + $0x1360] sm:$0xff]  ;;  %15833 = vst [vmem:[#allocation65_spill] sm:$0xff] %v10320_v13 }
 0x1eb   :  { %2569 = vmatpush.msra.mxu1 %v6970_v28  ;;  %v6966_v21 = vld [vmem:[%s15761_s1 + $0x1560] sm:$0xff]  ;;  %2599 = vmatpush.msra.mxu2 %v7030_v63 }
 0x1ec   :  { %2627 = vmatpush.msra.mxu3 %v7098_v54  ;;  %v7026_v19 = vld [vmem:[%s15761_s1 + $0x1740] sm:$0xff]  ;;  %2065 = vmatmul.f32.gmra.mxu1 %v8203_v58 }
 0x1ed   :  { %v7094_v39 = vld [vmem:[%s15761_s1 + $0x1960] sm:$0xff]  ;;  %2541 = vmatpush.msra.mxu0 %v6902_v9  ;;  %2570 = vmatpush.msra.mxu1 %v6966_v21  ;;  %v10359_v40 = vpop.f32.mrf.mxu0 }
 0x1ee   :  { %v6898_v28 = vld [vmem:[%s15761_s1 + $0x1340] sm:$0xff]  ;;  %2600 = vmatpush.msra.mxu2 %v7026_v19  ;;  %2628 = vmatpush.msra.mxu3 %v7094_v39  ;;  %v10349_v19 = vpop.f32.mrf.mxu2  ;;  %15836 = vst [vmem:[#allocation68_spill] sm:$0xff] %v10359_v40  ;;  %v2146_v40 = vld [vmem:[#allocation2 + $0x90] sm:$0xfc] }
 0x1ef   :  { %v6962_v63 = vld [vmem:[%s15761_s1 + $0x1540] sm:$0xff]  ;;  %2542 = vmatpush.msra.mxu0 %v6898_v28  ;;  %15834 = vst [vmem:[#allocation66_spill] sm:$0xff] %v10349_v19 }
 0x1f0   :  { %v7022_v54 = vld [vmem:[%s15761_s1 + $0x1720] sm:$0xff]  ;;  %2571 = vmatpush.msra.mxu1 %v6962_v63  ;;  %2629 = vmatpush.msra.mxu3 %v7090_v32  ;;  %v10357_v63 = vpop.f32.mrf.mxu3 }
 0x1f1   :  { %v6894_v37 = vld [vmem:[%s15761_s1 + $0x1320] sm:$0xff]  ;;  %2601 = vmatpush.msra.mxu2 %v7022_v54  ;;  %15835 = vst [vmem:[#allocation67_spill] sm:$0xff] %v10357_v63  ;;  %6856 = vmatmul.msk.f32.gmra.mxu3 %vm24_vm1, %v9674_v35 }
 0x1f2   :  { %v7018_v9 = vld [vmem:[%s15761_s1 + $0x1700] sm:$0xff]  ;;  %2543 = vmatpush.msra.mxu0 %v6894_v37  ;;  %2572 = vmatpush.msra.mxu1 %v6958_v2  ;;  %v7799_v2 = vld [vmem:[#allocation2 + $0x90] sm:$0xff] }
 0x1f3   :  { %v7086_v21 = vld [vmem:[%s15761_s1 + $0x1920] sm:$0xff]  ;;  %2602 = vmatpush.msra.mxu2 %v7018_v9 }
 0x1f4   :  { %v6890_v39 = vld [vmem:[%s15761_s1 + $0x1300] sm:$0xff]  ;;  %2630 = vmatpush.msra.mxu3 %v7086_v21  ;;  %2097 = vmatmul.f32.gmra.mxu2 %v7799_v2  ;;  %v10373_v21 = vpop.f32.mrf.mxu1  ;;  %v7801_v2 = vld [vmem:[#allocation2 + $0x88] sm:$0xff] }
 0x1f5   :  { %v6954_v28 = vld [vmem:[%s15761_s1 + $0x1500] sm:$0xff]  ;;  %2544 = vmatpush.msra.mxu0 %v6890_v39  ;;  %15837 = vst [vmem:[#allocation69_spill] sm:$0xff] %v10373_v21  ;;  %2068 = vmatmul.f32.gmra.mxu1 %v7801_v2  ;;  %v10414_v51 = vpop.f32.mrf.mxu0 }
 0x1f6   :  { %v7014_v32 = vld [vmem:[%s15761_s1 + $0x16e0] sm:$0xff]  ;;  %2573 = vmatpush.msra.mxu1 %v6954_v28  ;;  %15840 = vst [vmem:[#allocation72_spill] sm:$0xff] %v10414_v51 }
 0x1f7   :  { %v7082_v54 = vld [vmem:[%s15761_s1 + $0x1900] sm:$0xff]  ;;  %2603 = vmatpush.msra.mxu2 %v7014_v32  ;;  %2545 = vmatpush.msra.mxu0 %v6886_v34  ;;  %v10401_v34 = vpop.f32.mrf.mxu2 }
 0x1f8   :  { %v7800_v37 = vld [vmem:[#allocation2 + $0x80] sm:$0xff]  ;;  %2631 = vmatpush.msra.mxu3 %v7082_v54  ;;  %15838 = vst [vmem:[#allocation70_spill] sm:$0xff] %v10401_v34  ;;  %v10412_v14 = vpop.f32.mrf.mxu3 }
 0x1f9   :  { %2039 = vmatmul.f32.gmra.mxu0 %v7800_v37  ;;  %v6950_v9 = vld [vmem:[%s15761_s1 + $0x14e0] sm:$0xff]  ;;  %15839 = vst [vmem:[#allocation71_spill] sm:$0xff] %v10412_v14  ;;  %6857 = vmatmul.msk.f32.gmra.mxu3 %vm24_vm1, %v9739_v45 }
 0x1fa   :  { %v7010_v39 = vld [vmem:[%s15761_s1 + $0x16c0] sm:$0xff]  ;;  %2574 = vmatpush.msra.mxu1 %v6950_v9 }
 0x1fb   :  { %v7078_v28 = vld [vmem:[%s15761_s1 + $0x18e0] sm:$0xff]  ;;  %2604 = vmatpush.msra.mxu2 %v7010_v39 }
 0x1fc   :  { %v6882_v37 = vld [vmem:[%s15761_s1 + $0x12c0] sm:$0xff]  ;;  %2632 = vmatpush.msra.mxu3 %v7078_v28  ;;  %2100 = vmatmul.f32.gmra.mxu2 %v8453_v46 }
 0x1fd   :  { %v6946_v32 = vld [vmem:[%s15761_s1 + $0x14c0] sm:$0xff]  ;;  %2546 = vmatpush.msra.mxu0 %v6882_v37  ;;  %2071 = vmatmul.f32.gmra.mxu1 %v8401_v23  ;;  %v10466_v43 = vpop.f32.mrf.mxu0 }
 0x1fe   :  { %v7006_v54 = vld [vmem:[%s15761_s1 + $0x16a0] sm:$0xff]  ;;  %2575 = vmatpush.msra.mxu1 %v6946_v32  ;;  %15844 = vst [vmem:[#allocation76_spill] sm:$0xff] %v10466_v43 }
 0x1ff   :  { %v7074_v2 = vld [vmem:[%s15761_s1 + $0x18c0] sm:$0xff]  ;;  %2605 = vmatpush.msra.mxu2 %v7006_v54  ;;  %v10450_v14 = vpop.f32.mrf.mxu2 }
 0x200   :  { %v6878_v35 = vld [vmem:[%s15761_s1 + $0x12a0] sm:$0xff]  ;;  %2633 = vmatpush.msra.mxu3 %v7074_v2  ;;  %v10425_v2 = vpop.f32.mrf.mxu1  ;;  %15842 = vst [vmem:[#allocation74_spill] sm:$0xff] %v10450_v14  ;;  %v10464_v14 = vpop.f32.mrf.mxu3 }
 0x201   :  { %v6942_v21 = vld [vmem:[%s15761_s1 + $0x14a0] sm:$0xff]  ;;  %2547 = vmatpush.msra.mxu0 %v6878_v35  ;;  %15841 = vst [vmem:[#allocation73_spill] sm:$0xff] %v10425_v2  ;;  %v2136_v2 = vld [vmem:[#allocation2 + $0x18] sm:$0xfc] }
 0x202   :  { %v7002_v9 = vld [vmem:[%s15761_s1 + $0x1680] sm:$0xff]  ;;  %2576 = vmatpush.msra.mxu1 %v6942_v21  ;;  %2042 = vmatmul.f32.gmra.mxu0 %v8504_v6  ;;  %15843 = vst [vmem:[#allocation75_spill] sm:$0xff] %v10464_v14  ;;  %v15766_v14 = vrot.slane %v8203_v58, 2  ;;  %v2183_v18 = vrot.slane %v2136_v2, 2 }
 0x203   :  { %v7070_v39 = vld [vmem:[%s15761_s1 + $0x18a0] sm:$0xff]  ;;  %2606 = vmatpush.msra.mxu2 %v7002_v9 }
 0x204   :  { %v6874_v28 = vld [vmem:[%s15761_s1 + $0x1280] sm:$0xff]  ;;  %2634 = vmatpush.msra.mxu3 %v7070_v39 }
 0x205   :  { %v6938_v37 = vld [vmem:[%s15761_s1 + $0x1480] sm:$0xff]  ;;  %2548 = vmatpush.msra.mxu0 %v6874_v28  ;;  %v2135_v28 = vld [vmem:[#allocation2 + $0x10] sm:$0xfc]  ;;  %v10550_v43 = vpop.f32.mrf.mxu0 }
 0x206   :  { %v6998_v32 = vld [vmem:[%s15761_s1 + $0x1660] sm:$0xff]  ;;  %2577 = vmatpush.msra.mxu1 %v6938_v37  ;;  %v2180_v25 = vrot.slane %v2135_v28, 2  ;;  %v6983_v28 = vld [vmem:[%s15761_s1 + $0x15e8] sm:$0xff]  ;;  %15848 = vst [vmem:[#allocation80_spill] sm:$0xff] %v10550_v43  ;;  %v15850_v43 = vrot.slane %v10474_v61, 2 }
 0x207   :  { %v7066_v54 = vld [vmem:[%s15761_s1 + $0x1880] sm:$0xff]  ;;  %2607 = vmatpush.msra.mxu2 %v6998_v32  ;;  %v6903_v61 = vld [vmem:[%s15761_s1 + $0x1368] sm:$0xff] }
 0x208   :  { %v6870_v21 = vld [vmem:[%s15761_s1 + $0x1260] sm:$0xff]  ;;  %2635 = vmatpush.msra.mxu3 %v7066_v54  ;;  %v10484_v55 = vpop.f32.mrf.mxu1  ;;  %v10500_v2 = vsel %vm2173_vm10, %v2180_v25, %v15766_v14  ;;  %v10526_v14 = vpop.f32.mrf.mxu2 }
 0x209   :  { %v6934_v35 = vld [vmem:[%s15761_s1 + $0x1460] sm:$0xff]  ;;  %2549 = vmatpush.msra.mxu0 %v6870_v21  ;;  %15845 = vst [vmem:[#allocation77_spill] sm:$0xff] %v10484_v55 }
 0x20a   :  { %v6994_v9 = vld [vmem:[%s15761_s1 + $0x1640] sm:$0xff]  ;;  %2578 = vmatpush.msra.mxu1 %v6934_v35  ;;  %v2134_v35 = vld [vmem:[#allocation2 + $0x8] sm:$0xfc]  ;;  %15846 = vst [vmem:[#allocation78_spill] sm:$0xff] %v10526_v14 }
 0x20b   :  { %v7062_v39 = vld [vmem:[%s15761_s1 + $0x1860] sm:$0xff]  ;;  %2608 = vmatpush.msra.mxu2 %v6994_v9  ;;  %v6911_v14 = vld [vmem:[%s15761_s1 + $0x13a8] sm:$0xff] }
 0x20c   :  { %v6866_v37 = vld [vmem:[%s15761_s1 + $0x1240] sm:$0xff]  ;;  %2636 = vmatpush.msra.mxu3 %v7062_v39 }
 0x20d   :  { %v6930_v32 = vld [vmem:[%s15761_s1 + $0x1440] sm:$0xff]  ;;  %2550 = vmatpush.msra.mxu0 %v6866_v37 }
 0x20e   :  { %v2133_v54 = vld [vmem:[#allocation2] sm:$0xfc]  ;;  %2579 = vmatpush.msra.mxu1 %v6930_v32 }
 0x20f   :  { %v6990_v34 = vld [vmem:[%s15761_s1 + $0x1620] sm:$0xff]  ;;  %v2174_v49 = vrot.slane %v2133_v54, 2  ;;  %2551 = vmatpush.msra.mxu0 %v6862_v50  ;;  %v2177_v54 = vrot.slane %v2134_v35, 2 }
 0x210   :  { %v7058_v45 = vld [vmem:[%s15761_s1 + $0x1840] sm:$0xff]  ;;  %2609 = vmatpush.msra.mxu2 %v6990_v34 }
 0x211   :  { %v6926_v21 = vld [vmem:[%s15761_s1 + $0x1420] sm:$0xff]  ;;  %2637 = vmatpush.msra.mxu3 %v7058_v45  ;;  %v10495_v50 = vsel %vm2173_vm10, %v2174_v49, %v15768_v48  ;;  %v2178_v45 = vrot.slane %v8257_v17, 2  ;;  %v6919_v49 = vld [vmem:[%s15761_s1 + $0x13e8] sm:$0xff]  ;;  %v10542_v48 = vpop.f32.mrf.mxu3 }
 0x212   :  { %v6986_v9 = vld [vmem:[%s15761_s1 + $0x1600] sm:$0xff]  ;;  %2580 = vmatpush.msra.mxu1 %v6926_v21  ;;  %v15767_v21 = vrot.slane %v8207_v59, 2  ;;  %15847 = vst [vmem:[#allocation79_spill] sm:$0xff] %v10542_v48  ;;  %v6907_v48 = vld [vmem:[%s15761_s1 + $0x1388] sm:$0xff] }
 0x213   :  { %v7054_v39 = vld [vmem:[%s15761_s1 + $0x1820] sm:$0xff]  ;;  %2610 = vmatpush.msra.mxu2 %v6986_v9  ;;  %v2138_v9 = vld [vmem:[#allocation2 + $0x50] sm:$0x3]  ;;  %v10513_v25 = vsel %vm2173_vm10, %v2177_v54, %v2178_v45 }
 0x214   :  { %v6858_v37 = vld [vmem:[%s15761_s1 + $0x1200] sm:$0xff]  ;;  %2638 = vmatpush.msra.mxu3 %v7054_v39  ;;  %2611 = vmatmul.f32.vlgmr.msra.gmra.mxu2 %v10500_v2  ;;  %v10518_v17 = vsel %vm2173_vm10, %v2183_v18, %v15767_v21  ;;  %v6979_v39 = vld [vmem:[%s15761_s1 + $0x15c8] sm:$0xff]  ;;  %v2139_v21 = vld [vmem:[#allocation2 + $0x58] sm:$0x3]  ;;  %v2189_v55 = vrot.slane %v2138_v9, 2 }
 0x215   :  { %v6922_v32 = vld [vmem:[%s15761_s1 + $0x1400] sm:$0xff]  ;;  %2552 = vmatpush.msra.mxu0 %v6858_v37  ;;  %2711 = vmatpush.msrb.mxu2 %v6983_v28  ;;  %v7047_v37 = vld [vmem:[%s15761_s1 + $0x17e8] sm:$0xff]  ;;  %v2191_v9 = vrot.slane %v2139_v21, 2  ;;  %v15851_v21 = vrot.slane %v8203_v58, 2 }
 0x216   :  { %v7050_v34 = vld [vmem:[%s15761_s1 + $0x1800] sm:$0xff]  ;;  %2581 = vmatpush.msra.mxu1 %v6922_v32  ;;  %2553 = vmatmul.f32.vlgmr.msra.gmra.mxu0 %v10495_v50  ;;  %v6915_v18 = vld [vmem:[%s15761_s1 + $0x13c8] sm:$0xff] }
 0x217   :  { %v7142_v35 = vld [vmem:[%s15761_s1 + $0x1ae0] sm:$0xff]  ;;  %2639 = vmatpush.msra.mxu3 %v7050_v34  ;;  %2582 = vmatmul.f32.vlgmr.msra.gmra.mxu1 %v10513_v25  ;;  %v6975_v34 = vld [vmem:[%s15761_s1 + $0x15a8] sm:$0xff]  ;;  %v10585_v58 = vsel %vm2173_vm10, %v2178_v45, %v2191_v9 }
 0x218   :  { %v2140_v32 = vld [vmem:[#allocation2 + $0x60] sm:$0x3]  ;;  %2640 = vmatmul.f32.vlgmr.msra.gmra.mxu3 %v10518_v17  ;;  %2661 = vmatpush.msrb.mxu0 %v7142_v35  ;;  %v7043_v28 = vld [vmem:[%s15761_s1 + $0x17c8] sm:$0xff] }
 0x219   :  { %v7138_v54 = vld [vmem:[%s15761_s1 + $0x1ac0] sm:$0xff]  ;;  %2682 = vmatpush.msrb.mxu1 %v6919_v49  ;;  %2712 = vmatpush.msrb.mxu2 %v6979_v39  ;;  %v2193_v35 = vrot.slane %v2140_v32, 2  ;;  %v2141_v49 = vld [vmem:[#allocation2 + $0x68] sm:$0x3]  ;;  %v10558_v32 = vpop.f32.mrf.mxu1 }
 0x21a   :  { %2740 = vmatpush.msrb.mxu3 %v7047_v37  ;;  %v7134_v63 = vld [vmem:[%s15761_s1 + $0x1aa0] sm:$0xff]  ;;  %2662 = vmatpush.msrb.mxu0 %v7138_v54  ;;  %v6971_v39 = vld [vmem:[%s15761_s1 + $0x1588] sm:$0xff]  ;;  %15849 = vst [vmem:[#allocation81_spill] sm:$0xff] %v10558_v32  ;;  %v2195_v54 = vrot.slane %v2141_v49, 2  ;;  %v10593_v49 = vpop.f32.mrf.mxu2 }
 0x21b   :  { %2683 = vmatpush.msrb.mxu1 %v6915_v18  ;;  %v7039_v37 = vld [vmem:[%s15761_s1 + $0x17a8] sm:$0xff]  ;;  %2713 = vmatpush.msrb.mxu2 %v6975_v34  ;;  %v10569_v34 = vsel %vm2173_vm10, %v15850_v43, %v2189_v55  ;;  %15852 = vst [vmem:[#allocation82_spill] sm:$0xff] %v10593_v49  ;;  %v10620_v49 = vld [vmem:[#allocation2 + $0xa0] sm:$0xff] }
 0x21c   :  { %2741 = vmatpush.msrb.mxu3 %v7043_v28  ;;  %v6967_v18 = vld [vmem:[%s15761_s1 + $0x1568] sm:$0xff]  ;;  %2663 = vmatpush.msrb.mxu0 %v7134_v63  ;;  %v7118_v13 = vld [vmem:[%s15761_s1 + $0x1a20] sm:$0xff] }
 0x21d   :  { %2684 = vmatpush.msrb.mxu1 %v6911_v14  ;;  %2714 = vmatpush.msrb.mxu2 %v6971_v39  ;;  %v10574_v14 = vsel %vm2173_vm10, %v15851_v21, %v2193_v35  ;;  %v7035_v28 = vld [vmem:[%s15761_s1 + $0x1788] sm:$0xff]  ;;  %v2143_v35 = vld [vmem:[#allocation2 + $0x78] sm:$0xfc]  ;;  %v2144_v21 = vld [vmem:[#allocation2 + $0x80] sm:$0xfc] }
 0x21e   :  { %2742 = vmatpush.msrb.mxu3 %v7039_v37  ;;  %2556 = vmatmul.f32.gmra.mxu0 %v10569_v34  ;;  %v2145_v63 = vld [vmem:[#allocation2 + $0x88] sm:$0xfc]  ;;  %v7130_v37 = vld [vmem:[%s15761_s1 + $0x1a80] sm:$0xff] }
 0x21f   :  { %2614 = vmatmul.f32.gmra.mxu2 %v10574_v14  ;;  %2685 = vmatpush.msrb.mxu1 %v6907_v48  ;;  %v6963_v55 = vld [vmem:[%s15761_s1 + $0x1548] sm:$0xff]  ;;  %v15853_v48 = vrot.slane %v8207_v59, 2 }
 0x220   :  { %2715 = vmatpush.msrb.mxu2 %v6967_v18  ;;  %v7031_v43 = vld [vmem:[%s15761_s1 + $0x1768] sm:$0xff]  ;;  %2743 = vmatpush.msrb.mxu3 %v7035_v28  ;;  %v2205_v18 = vrot.slane %v2145_v63, 2  ;;  %v10615_v28 = vpop.f32.mrf.mxu3  ;;  %v7126_v63 = vld [vmem:[%s15761_s1 + $0x1a60] sm:$0xff] }
 0x221   :  { %2585 = vmatmul.f32.gmra.mxu1 %v10585_v58  ;;  %v10599_v39 = vsel %vm2173_vm10, %v15853_v48, %v2195_v54  ;;  %v6899_v45 = vld [vmem:[%s15761_s1 + $0x1348] sm:$0xff]  ;;  %15854 = vst [vmem:[#allocation83_spill] sm:$0xff] %v10615_v28  ;;  %v2199_v48 = vrot.slane %v2143_v35, 2  ;;  %2664 = vmatpush.msrb.mxu0 %v7130_v37  ;;  %v10632_v35 = vpop.f32.mrf.mxu0  ;;  %v2202_v54 = vrot.slane %v2144_v21, 2  ;;  %v10634_v32 = vpop.f32.mrf.mxu1  ;;  %v2208_v28 = vrot.slane %v2146_v40, 2 }
 0x222   :  { %2643 = vmatmul.f32.gmra.mxu3 %v10599_v39  ;;  %2686 = vmatpush.msrb.mxu1 %v6903_v61  ;;  %v6959_v9 = vld [vmem:[%s15761_s1 + $0x1528] sm:$0xff]  ;;  %15855 = vst [vmem:[#allocation84_spill] sm:$0xff] %v10632_v35  ;;  %v15857_v35 = vrot.slane %v10620_v49, 2  ;;  %v2209_v40 = vrot.slane %v8453_v46, 2 }
 0x223   :  { %v7027_v59 = vld [vmem:[%s15761_s1 + $0x1748] sm:$0xff]  ;;  %2716 = vmatpush.msrb.mxu2 %v6963_v55  ;;  %2744 = vmatpush.msrb.mxu3 %v7031_v43  ;;  %15856 = vst [vmem:[#allocation85_spill] sm:$0xff] %v10634_v32  ;;  %v2203_v32 = vrot.slane %v8504_v6, 2 }
 0x224   :  { %v6895_v61 = vld [vmem:[%s15761_s1 + $0x1328] sm:$0xff]  ;;  %2687 = vmatpush.msrb.mxu1 %v6899_v45  ;;  %2665 = vmatpush.msrb.mxu0 %v7126_v63 }
 0x225   :  { %v6955_v55 = vld [vmem:[%s15761_s1 + $0x1508] sm:$0xff]  ;;  %2717 = vmatpush.msrb.mxu2 %v6959_v9  ;;  %2745 = vmatpush.msrb.mxu3 %v7027_v59  ;;  %v10645_v9 = vsel %vm2173_vm10, %v2199_v48, %v15857_v35  ;;  %v15858_v59 = vrot.slane %v8401_v23, 2  ;;  %v10675_v35 = vsel %vm2173_vm10, %v2208_v28, %v2209_v40 }
 0x226   :  { %v7023_v43 = vld [vmem:[%s15761_s1 + $0x1728] sm:$0xff]  ;;  %2688 = vmatpush.msrb.mxu1 %v6895_v61  ;;  %2559 = vmatmul.f32.gmra.mxu0 %v10645_v9 }
 0x227   :  { %v6891_v45 = vld [vmem:[%s15761_s1 + $0x1308] sm:$0xff]  ;;  %2718 = vmatpush.msrb.mxu2 %v6955_v55  ;;  %2746 = vmatpush.msrb.mxu3 %v7023_v43  ;;  %v10650_v21 = vsel %vm2173_vm10, %v2205_v18, %v15858_v59  ;;  %v10662_v55 = vpop.f32.mrf.mxu2  ;;  %v10665_v18 = vsel %vm2173_vm10, %v2202_v54, %v2203_v32  ;;  %v2150_v43 = vld [vmem:[#allocation2 + $0xd8] sm:$0x3]  ;;  %v2149_v59 = vld [vmem:[#allocation2 + $0xd0] sm:$0x3] }
 0x228   :  { %v6951_v37 = vld [vmem:[%s15761_s1 + $0x14e8] sm:$0xff]  ;;  %2617 = vmatmul.f32.gmra.mxu2 %v10650_v21  ;;  %15859 = vst [vmem:[#allocation86_spill] sm:$0xff] %v10662_v55  ;;  %2689 = vmatpush.msrb.mxu1 %v6891_v45  ;;  %v7122_v45 = vld [vmem:[%s15761_s1 + $0x1a40] sm:$0xff]  ;;  %v2218_v51 = vrot.slane %v2150_v43, 2 }
 0x229   :  { %v7019_v61 = vld [vmem:[%s15761_s1 + $0x1708] sm:$0xff]  ;;  %2719 = vmatpush.msrb.mxu2 %v6951_v37  ;;  %2588 = vmatmul.f32.gmra.mxu1 %v10665_v18  ;;  %v10706_v43 = vpop.f32.mrf.mxu1 }
 0x22a   :  { %v6887_v48 = vld [vmem:[%s15761_s1 + $0x12e8] sm:$0xff]  ;;  %2747 = vmatpush.msrb.mxu3 %v7019_v61  ;;  %v10690_v61 = vpop.f32.mrf.mxu3  ;;  %2666 = vmatpush.msrb.mxu0 %v7122_v45  ;;  %15862 = vst [vmem:[#allocation89_spill] sm:$0xff] %v10706_v43 }
 0x22b   :  { %v2148_v63 = vld [vmem:[#allocation2 + $0xc8] sm:$0x3]  ;;  %2646 = vmatmul.f32.gmra.mxu3 %v10675_v35  ;;  %2690 = vmatpush.msrb.mxu1 %v6887_v48  ;;  %15860 = vst [vmem:[#allocation87_spill] sm:$0xff] %v10690_v61  ;;  %v2151_v48 = vld [vmem:[#allocation2 + $0xe0] sm:$0x3] }
 0x22c   :  { %v6947_v6 = vld [vmem:[%s15761_s1 + $0x14c8] sm:$0xff]  ;;  %v2214_v19 = vrot.slane %v2148_v63, 2  ;;  %v2216_v63 = vrot.slane %v2149_v59, 2  ;;  %v2220_v61 = vrot.slane %v2151_v48, 2  ;;  %2667 = vmatpush.msrb.mxu0 %v7118_v13 }
 0x22d   :  { %v7015_v46 = vld [vmem:[%s15761_s1 + $0x16e8] sm:$0xff]  ;;  %2720 = vmatpush.msrb.mxu2 %v6947_v6 }
 0x22e   :  { %v6883_v54 = vld [vmem:[%s15761_s1 + $0x12c8] sm:$0xff]  ;;  %2748 = vmatpush.msrb.mxu3 %v7015_v46  ;;  %v10704_v46 = vpop.f32.mrf.mxu0  ;;  %v10745_v48 = vsel %vm2173_vm10, %v2209_v40, %v2220_v61 }
 0x22f   :  { %v6943_v37 = vld [vmem:[%s15761_s1 + $0x14a8] sm:$0xff]  ;;  %2691 = vmatpush.msrb.mxu1 %v6883_v54  ;;  %15861 = vst [vmem:[#allocation88_spill] sm:$0xff] %v10704_v46  ;;  %v15863_v46 = vrot.slane %v10620_v49, 2  ;;  %v10732_v13 = vpop.f32.mrf.mxu2  ;;  %v2137_v49 = vld [vmem:[#allocation2 + $0x20] sm:$0xfc] }
 0x230   :  { %v7011_v28 = vld [vmem:[%s15761_s1 + $0x16c8] sm:$0xff]  ;;  %2721 = vmatpush.msrb.mxu2 %v6943_v37  ;;  %15865 = vst [vmem:[#allocation90_spill] sm:$0xff] %v10732_v13 }
 0x231   :  { %v6879_v55 = vld [vmem:[%s15761_s1 + $0x12a8] sm:$0xff]  ;;  %2749 = vmatpush.msrb.mxu3 %v7011_v28  ;;  %v10717_v37 = vsel %vm2173_vm10, %v15863_v46, %v2214_v19  ;;  %v15864_v28 = vrot.slane %v8401_v23, 2  ;;  %v10735_v23 = vsel %vm2173_vm10, %v2203_v32, %v2216_v63 }
 0x232   :  { %v7007_v6 = vld [vmem:[%s15761_s1 + $0x16a8] sm:$0xff]  ;;  %2692 = vmatpush.msrb.mxu1 %v6879_v55  ;;  %2722 = vmatpush.msrb.mxu2 %v6939_v42  ;;  %v10760_v61 = vpop.f32.mrf.mxu3 }
 0x233   :  { %v6875_v54 = vld [vmem:[%s15761_s1 + $0x1288] sm:$0xff]  ;;  %2750 = vmatpush.msrb.mxu3 %v7007_v6  ;;  %v10722_v55 = vsel %vm2173_vm10, %v15864_v28, %v2218_v51  ;;  %2562 = vmatmul.f32.gmra.mxu0 %v10717_v37  ;;  %v7114_v6 = vld [vmem:[%s15761_s1 + $0x1a00] sm:$0xff]  ;;  %15866 = vst [vmem:[#allocation91_spill] sm:$0xff] %v10760_v61 }
 0x234   :  { %v6935_v45 = vld [vmem:[%s15761_s1 + $0x1468] sm:$0xff]  ;;  %2620 = vmatmul.f32.gmra.mxu2 %v10722_v55  ;;  %2693 = vmatpush.msrb.mxu1 %v6875_v54  ;;  %v2186_v54 = vrot.slane %v2137_v49, 2 }
 0x235   :  { %v7003_v59 = vld [vmem:[%s15761_s1 + $0x1688] sm:$0xff]  ;;  %2723 = vmatpush.msrb.mxu2 %v6935_v45  ;;  %2591 = vmatmul.f32.gmra.mxu1 %v10735_v23 }
 0x236   :  { %v6871_v42 = vld [vmem:[%s15761_s1 + $0x1268] sm:$0xff]  ;;  %2751 = vmatpush.msrb.mxu3 %v7003_v59  ;;  %2668 = vmatpush.msrb.mxu0 %v7114_v6 }
 0x237   :  { %v6931_v51 = vld [vmem:[%s15761_s1 + $0x1448] sm:$0xff]  ;;  %2649 = vmatmul.f32.gmra.mxu3 %v10745_v48  ;;  %2694 = vmatpush.msrb.mxu1 %v6871_v42 }
 0x238   :  { %v6999_v19 = vld [vmem:[%s15761_s1 + $0x1668] sm:$0xff]  ;;  %2724 = vmatpush.msrb.mxu2 %v6931_v51 }
 0x239   :  { %v6867_v32 = vld [vmem:[%s15761_s1 + $0x1248] sm:$0xff]  ;;  %2752 = vmatpush.msrb.mxu3 %v6999_v19  ;;  %v10774_v19 = vpop.f32.mrf.mxu0 }
 0x23a   :  { %v6927_v46 = vld [vmem:[%s15761_s1 + $0x1428] sm:$0xff]  ;;  %2695 = vmatpush.msrb.mxu1 %v6867_v32  ;;  %15867 = vst [vmem:[#allocation92_spill] sm:$0xff] %v10774_v19  ;;  %v10818_v61 = vpop.f32.mrf.mxu3 }
 0x23b   :  { %v6995_v40 = vld [vmem:[%s15761_s1 + $0x1648] sm:$0xff]  ;;  %2725 = vmatpush.msrb.mxu2 %v6927_v46  ;;  %v6920_v46 = vld [vmem:[%s15761_s1 + $0x13f0] sm:$0xff]  ;;  %15870 = vst [vmem:[#allocation95_spill] sm:$0xff] %v10818_v61 }
 0x23c   :  { %v6863_v63 = vld [vmem:[%s15761_s1 + $0x1228] sm:$0xff]  ;;  %2753 = vmatpush.msrb.mxu3 %v6995_v40 }
 0x23d   :  { %v7804_v45 = vld [vmem:[#allocation2 + $0x48] sm:$0xff]  ;;  %2696 = vmatpush.msrb.mxu1 %v6863_v63  ;;  %v10795_v63 = vpop.f32.mrf.mxu2 }
 0x23e   :  { %v2187_v28 = vrot.slane %v7804_v45, 2  ;;  %v7111_v59 = vld [vmem:[%s15761_s1 + $0x19e8] sm:$0xff]  ;;  %v10779_v45 = vpop.f32.mrf.mxu1  ;;  %15869 = vst [vmem:[#allocation94_spill] sm:$0xff] %v10795_v63 }
 0x23f   :  { %v6923_v42 = vld [vmem:[%s15761_s1 + $0x1408] sm:$0xff]  ;;  %15868 = vst [vmem:[#allocation93_spill] sm:$0xff] %v10779_v45  ;;  %2769 = vmatpush.msra.mxu0 %v7111_v59  ;;  %v6984_v59 = vld [vmem:[%s15761_s1 + $0x15f0] sm:$0xff] }
 0x240   :  { %v6991_v51 = vld [vmem:[%s15761_s1 + $0x1628] sm:$0xff]  ;;  %2726 = vmatpush.msrb.mxu2 %v6923_v42  ;;  %v10785_v6 = vsel %vm2173_vm10, %v2186_v54, %v2187_v28  ;;  %v6916_v54 = vld [vmem:[%s15761_s1 + $0x13d0] sm:$0xff] }
 0x241   :  { %v6859_v49 = vld [vmem:[%s15761_s1 + $0x1208] sm:$0xff]  ;;  %2754 = vmatpush.msrb.mxu3 %v6991_v51  ;;  %7146 = vmatmul.msk.f32.vlgmr.msrb.gmra.mxu0 %vm24_vm1, %v10785_v6  ;;  %v2142_v42 = vld [vmem:[#allocation2 + $0x70] sm:$0x3] }
 0x242   :  { %v6987_v32 = vld [vmem:[%s15761_s1 + $0x1608] sm:$0xff]  ;;  %2697 = vmatpush.msrb.mxu1 %v6859_v49  ;;  %2727 = vmatmul.f32.vlgmr.msrb.gmra.mxu2 %v10513_v25  ;;  %v2197_v13 = vrot.slane %v2142_v42, 2  ;;  %v6908_v45 = vld [vmem:[%s15761_s1 + $0x1390] sm:$0xff]  ;;  %v10876_v43 = vpop.f32.mrf.mxu3 }
 0x243   :  { %v7107_v40 = vld [vmem:[%s15761_s1 + $0x19c8] sm:$0xff]  ;;  %2755 = vmatpush.msrb.mxu3 %v6987_v32  ;;  %2827 = vmatpush.msra.mxu2 %v6920_v46  ;;  %v6912_v32 = vld [vmem:[%s15761_s1 + $0x13b0] sm:$0xff]  ;;  %15874 = vst [vmem:[#allocation99_spill] sm:$0xff] %v10876_v43 }
 0x244   :  { %2698 = vmatmul.f32.vlgmr.msrb.gmra.mxu1 %v10495_v50  ;;  %v7143_v51 = vld [vmem:[%s15761_s1 + $0x1ae8] sm:$0xff]  ;;  %2756 = vmatmul.f32.vlgmr.msrb.gmra.mxu3 %v10500_v2  ;;  %v6980_v46 = vld [vmem:[%s15761_s1 + $0x15d0] sm:$0xff] }
 0x245   :  { %v7103_v49 = vld [vmem:[%s15761_s1 + $0x19a8] sm:$0xff]  ;;  %2770 = vmatpush.msra.mxu0 %v7107_v40  ;;  %2828 = vmatpush.msra.mxu2 %v6916_v54  ;;  %v6976_v54 = vld [vmem:[%s15761_s1 + $0x15b0] sm:$0xff] }
 0x246   :  { %2856 = vmatpush.msra.mxu3 %v6984_v59  ;;  %v7099_v63 = vld [vmem:[%s15761_s1 + $0x1988] sm:$0xff]  ;;  %2806 = vmatpush.msra.mxu1 %v7143_v51  ;;  %v10832_v59 = vpop.f32.mrf.mxu0  ;;  %v10834_v61 = vpop.f32.mrf.mxu1  ;;  %v6904_v42 = vld [vmem:[%s15761_s1 + $0x1370] sm:$0xff] }
 0x247   :  { %v7139_v40 = vld [vmem:[%s15761_s1 + $0x1ac8] sm:$0xff]  ;;  %2771 = vmatpush.msra.mxu0 %v7103_v49  ;;  %15871 = vst [vmem:[#allocation96_spill] sm:$0xff] %v10832_v59  ;;  %2829 = vmatpush.msra.mxu2 %v6912_v32  ;;  %v6972_v51 = vld [vmem:[%s15761_s1 + $0x1590] sm:$0xff]  ;;  %v10843_v49 = vsel %vm2173_vm10, %v2187_v28, %v2197_v13 }
 0x248   :  { %2857 = vmatpush.msra.mxu3 %v6980_v46  ;;  %15872 = vst [vmem:[#allocation97_spill] sm:$0xff] %v10834_v61  ;;  %2807 = vmatpush.msra.mxu1 %v7139_v40  ;;  %v6900_v32 = vld [vmem:[%s15761_s1 + $0x1350] sm:$0xff]  ;;  %v2147_v46 = vld [vmem:[#allocation2 + $0x98] sm:$0xfc]  ;;  %v10854_v40 = vpop.f32.mrf.mxu2  ;;  %v7135_v28 = vld [vmem:[%s15761_s1 + $0x1aa8] sm:$0xff] }
 0x249   :  { %2772 = vmatpush.msra.mxu0 %v7099_v63  ;;  %2830 = vmatpush.msra.mxu2 %v6908_v45  ;;  %v7095_v63 = vld [vmem:[%s15761_s1 + $0x1968] sm:$0xff]  ;;  %15873 = vst [vmem:[#allocation98_spill] sm:$0xff] %v10854_v40  ;;  %v6968_v13 = vld [vmem:[%s15761_s1 + $0x1570] sm:$0xff]  ;;  %v7805_v40 = vld [vmem:[#allocation2 + $0xc0] sm:$0xff] }
 0x24a   :  { %2858 = vmatpush.msra.mxu3 %v6976_v54  ;;  %7147 = vmatmul.msk.f32.gmra.mxu0 %vm24_vm1, %v10843_v49  ;;  %v7091_v45 = vld [vmem:[%s15761_s1 + $0x1948] sm:$0xff]  ;;  %v6896_v54 = vld [vmem:[%s15761_s1 + $0x1330] sm:$0xff]  ;;  %v2212_v61 = vrot.slane %v7805_v40, 2 }
 0x24b   :  { %2730 = vmatmul.f32.gmra.mxu2 %v10585_v58  ;;  %2773 = vmatpush.msra.mxu0 %v7095_v63  ;;  %v7131_v59 = vld [vmem:[%s15761_s1 + $0x1a88] sm:$0xff] }
 0x24c   :  { %2831 = vmatpush.msra.mxu2 %v6904_v42  ;;  %2859 = vmatpush.msra.mxu3 %v6972_v51  ;;  %v6964_v42 = vld [vmem:[%s15761_s1 + $0x1550] sm:$0xff]  ;;  %v2211_v51 = vrot.slane %v2147_v46, 2  ;;  %v7087_v63 = vld [vmem:[%s15761_s1 + $0x1928] sm:$0xff] }
 0x24d   :  { %2701 = vmatmul.f32.gmra.mxu1 %v10569_v34  ;;  %2759 = vmatmul.f32.gmra.mxu3 %v10574_v14  ;;  %v6960_v46 = vld [vmem:[%s15761_s1 + $0x1530] sm:$0xff]  ;;  %v7071_v19 = vld [vmem:[%s15761_s1 + $0x18a8] sm:$0xff] }
 0x24e   :  { %2832 = vmatpush.msra.mxu2 %v6900_v32  ;;  %2860 = vmatpush.msra.mxu3 %v6968_v13  ;;  %v6892_v32 = vld [vmem:[%s15761_s1 + $0x1310] sm:$0xff]  ;;  %v10887_v40 = vpop.f32.mrf.mxu0  ;;  %v7083_v13 = vld [vmem:[%s15761_s1 + $0x1908] sm:$0xff]  ;;  %v10895_v43 = vsel %vm2173_vm10, %v2211_v51, %v2212_v61 }
 0x24f   :  { %2808 = vmatpush.msra.mxu1 %v7135_v28  ;;  %2774 = vmatpush.msra.mxu0 %v7091_v45  ;;  %15875 = vst [vmem:[#allocation100_spill] sm:$0xff] %v10887_v40  ;;  %v10892_v28 = vpop.f32.mrf.mxu1  ;;  %v6888_v45 = vld [vmem:[%s15761_s1 + $0x12f0] sm:$0xff]  ;;  %v2152_v51 = vld [vmem:[#allocation2 + $0xe8] sm:$0x3]  ;;  %v10934_v40 = vpop.f32.mrf.mxu3 }
 0x250   :  { %2833 = vmatpush.msra.mxu2 %v6896_v54  ;;  %2861 = vmatpush.msra.mxu3 %v6964_v42  ;;  %15876 = vst [vmem:[#allocation101_spill] sm:$0xff] %v10892_v28  ;;  %v6956_v54 = vld [vmem:[%s15761_s1 + $0x1510] sm:$0xff]  ;;  %v7123_v28 = vld [vmem:[%s15761_s1 + $0x1a48] sm:$0xff] }
 0x251   :  { %2809 = vmatpush.msra.mxu1 %v7131_v59  ;;  %2775 = vmatpush.msra.mxu0 %v7087_v63  ;;  %v7079_v59 = vld [vmem:[%s15761_s1 + $0x18e8] sm:$0xff]  ;;  %v6884_v42 = vld [vmem:[%s15761_s1 + $0x12d0] sm:$0xff]  ;;  %v10912_v63 = vpop.f32.mrf.mxu2  ;;  %15878 = vst [vmem:[#allocation103_spill] sm:$0xff] %v10934_v40 }
 0x252   :  { %2834 = vmatpush.msra.mxu2 %v6892_v32  ;;  %2862 = vmatpush.msra.mxu3 %v6960_v46  ;;  %15877 = vst [vmem:[#allocation102_spill] sm:$0xff] %v10912_v63  ;;  %v6952_v32 = vld [vmem:[%s15761_s1 + $0x14f0] sm:$0xff]  ;;  %v7127_v46 = vld [vmem:[%s15761_s1 + $0x1a68] sm:$0xff]  ;;  %v2222_v63 = vrot.slane %v2152_v51, 2 }
 0x253   :  { %7148 = vmatmul.msk.f32.gmra.mxu0 %vm24_vm1, %v10895_v43  ;;  %2733 = vmatmul.f32.gmra.mxu2 %v10665_v18 }
 0x254   :  { %2776 = vmatpush.msra.mxu0 %v7083_v13  ;;  %2835 = vmatpush.msra.mxu2 %v6888_v45  ;;  %v7075_v13 = vld [vmem:[%s15761_s1 + $0x18c8] sm:$0xff]  ;;  %v6880_v45 = vld [vmem:[%s15761_s1 + $0x12b0] sm:$0xff]  ;;  %v10953_v40 = vsel %vm2173_vm10, %v2212_v61, %v2222_v63 }
 0x255   :  { %2863 = vmatpush.msra.mxu3 %v6956_v54  ;;  %2704 = vmatmul.f32.gmra.mxu1 %v10645_v9  ;;  %v6948_v54 = vld [vmem:[%s15761_s1 + $0x14d0] sm:$0xff]  ;;  %v7063_v61 = vld [vmem:[%s15761_s1 + $0x1868] sm:$0xff] }
 0x256   :  { %2762 = vmatmul.f32.gmra.mxu3 %v10650_v21  ;;  %2777 = vmatpush.msra.mxu0 %v7079_v59  ;;  %v6876_v59 = vld [vmem:[%s15761_s1 + $0x1290] sm:$0xff]  ;;  %v10945_v51 = vpop.f32.mrf.mxu0  ;;  %v7119_v63 = vld [vmem:[%s15761_s1 + $0x1a28] sm:$0xff] }
 0x257   :  { %2836 = vmatpush.msra.mxu2 %v6884_v42  ;;  %2864 = vmatpush.msra.mxu3 %v6952_v32  ;;  %v6944_v42 = vld [vmem:[%s15761_s1 + $0x14b0] sm:$0xff]  ;;  %15879 = vst [vmem:[#allocation104_spill] sm:$0xff] %v10945_v51  ;;  %v7067_v32 = vld [vmem:[%s15761_s1 + $0x1888] sm:$0xff] }
 0x258   :  { %2810 = vmatpush.msra.mxu1 %v7127_v46  ;;  %2778 = vmatpush.msra.mxu0 %v7075_v13  ;;  %v10950_v46 = vpop.f32.mrf.mxu1  ;;  %v6872_v13 = vld [vmem:[%s15761_s1 + $0x1270] sm:$0xff] }
 0x259   :  { %2837 = vmatpush.msra.mxu2 %v6880_v45  ;;  %2865 = vmatpush.msra.mxu3 %v6948_v54  ;;  %15880 = vst [vmem:[#allocation105_spill] sm:$0xff] %v10950_v46  ;;  %v6940_v45 = vld [vmem:[%s15761_s1 + $0x1490] sm:$0xff]  ;;  %v10976_v54 = vpop.f32.mrf.mxu2 }
 0x25a   :  { %2811 = vmatpush.msra.mxu1 %v7123_v28  ;;  %2779 = vmatpush.msra.mxu0 %v7071_v19  ;;  %v6868_v19 = vld [vmem:[%s15761_s1 + $0x1250] sm:$0xff]  ;;  %15881 = vst [vmem:[#allocation106_spill] sm:$0xff] %v10976_v54 }
 0x25b   :  { %2838 = vmatpush.msra.mxu2 %v6876_v59  ;;  %2866 = vmatpush.msra.mxu3 %v6944_v42  ;;  %v6936_v28 = vld [vmem:[%s15761_s1 + $0x1470] sm:$0xff]  ;;  %v7059_v59 = vld [vmem:[%s15761_s1 + $0x1848] sm:$0xff] }
 0x25c   :  { %7149 = vmatmul.msk.f32.gmra.mxu0 %vm24_vm1, %v10953_v40  ;;  %2736 = vmatmul.f32.gmra.mxu2 %v10735_v23  ;;  %v6864_v42 = vld [vmem:[%s15761_s1 + $0x1230] sm:$0xff] }
 0x25d   :  { %2780 = vmatpush.msra.mxu0 %v7067_v32  ;;  %2839 = vmatpush.msra.mxu2 %v6872_v13  ;;  %v6932_v32 = vld [vmem:[%s15761_s1 + $0x1450] sm:$0xff]  ;;  %v7115_v13 = vld [vmem:[%s15761_s1 + $0x1a08] sm:$0xff] }
 0x25e   :  { %2867 = vmatpush.msra.mxu3 %v6940_v45  ;;  %2707 = vmatmul.f32.gmra.mxu1 %v10717_v37  ;;  %v7055_v45 = vld [vmem:[%s15761_s1 + $0x1828] sm:$0xff]  ;;  %v6860_v54 = vld [vmem:[%s15761_s1 + $0x1210] sm:$0xff]  ;;  %v11003_v46 = vpop.f32.mrf.mxu0 }
 0x25f   :  { %2765 = vmatmul.f32.gmra.mxu3 %v10722_v55  ;;  %2781 = vmatpush.msra.mxu0 %v7063_v61  ;;  %v10998_v61 = vpop.f32.mrf.mxu3  ;;  %15883 = vst [vmem:[#allocation108_spill] sm:$0xff] %v11003_v46 }
 0x260   :  { %2840 = vmatpush.msra.mxu2 %v6868_v19  ;;  %2868 = vmatpush.msra.mxu3 %v6936_v28  ;;  %15882 = vst [vmem:[#allocation107_spill] sm:$0xff] %v10998_v61  ;;  %v6928_v19 = vld [vmem:[%s15761_s1 + $0x1430] sm:$0xff]  ;;  %v7051_v28 = vld [vmem:[%s15761_s1 + $0x1808] sm:$0xff]  ;;  %v11011_v51 = vpop.f32.mrf.mxu1 }
 0x261   :  { %2812 = vmatpush.msra.mxu1 %v7119_v63  ;;  %2782 = vmatpush.msra.mxu0 %v7059_v59  ;;  %v7144_v63 = vld [vmem:[%s15761_s1 + $0x1af0] sm:$0xff]  ;;  %15884 = vst [vmem:[#allocation109_spill] sm:$0xff] %v11011_v51 }
 0x262   :  { %2841 = vmatpush.msra.mxu2 %v6864_v42  ;;  %2869 = vmatpush.msra.mxu3 %v6932_v32  ;;  %v6924_v59 = vld [vmem:[%s15761_s1 + $0x1410] sm:$0xff] }
 0x263   :  { %2813 = vmatpush.msra.mxu1 %v7115_v13  ;;  %2783 = vmatpush.msra.mxu0 %v7055_v45  ;;  %v7048_v42 = vld [vmem:[%s15761_s1 + $0x17f0] sm:$0xff]  ;;  %v11030_v45 = vpop.f32.mrf.mxu2 }
 0x264   :  { %2842 = vmatpush.msra.mxu2 %v6860_v54  ;;  %2870 = vmatpush.msra.mxu3 %v6928_v19  ;;  %v7112_v32 = vld [vmem:[%s15761_s1 + $0x19f0] sm:$0xff]  ;;  %v6921_v54 = vld [vmem:[%s15761_s1 + $0x13f8] sm:$0xff]  ;;  %15885 = vst [vmem:[#allocation110_spill] sm:$0xff] %v11030_v45 }
 0x265   :  { %2843 = vmatmul.f32.vlgmr.msra.gmra.mxu2 %v10495_v50  ;;  %2784 = vmatpush.msra.mxu0 %v7051_v28  ;;  %v7140_v13 = vld [vmem:[%s15761_s1 + $0x1ad0] sm:$0xff] }
 0x266   :  { %2951 = vmatpush.msrb.mxu2 %v7144_v63  ;;  %2785 = vmatmul.f32.vlgmr.msra.gmra.mxu0 %v10518_v17  ;;  %v7044_v19 = vld [vmem:[%s15761_s1 + $0x17d0] sm:$0xff]  ;;  %v6917_v63 = vld [vmem:[%s15761_s1 + $0x13d8] sm:$0xff]  ;;  %v11058_v51 = vpop.f32.mrf.mxu0 }
 0x267   :  { %2871 = vmatpush.msra.mxu3 %v6924_v59  ;;  %7150 = vmatmul.msk.f32.vlgmr.msra.gmra.mxu1 %vm24_vm1, %v10785_v6  ;;  %v7108_v28 = vld [vmem:[%s15761_s1 + $0x19d0] sm:$0xff]  ;;  %15887 = vst [vmem:[#allocation112_spill] sm:$0xff] %v11058_v51 }
 0x268   :  { %2872 = vmatmul.f32.vlgmr.msra.gmra.mxu3 %v10513_v25  ;;  %2885 = vmatpush.msrb.mxu0 %v7048_v42  ;;  %v7136_v59 = vld [vmem:[%s15761_s1 + $0x1ab0] sm:$0xff]  ;;  %v11053_v42 = vpop.f32.mrf.mxu3  ;;  %v11066_v46 = vpop.f32.mrf.mxu1 }
 0x269   :  { %2914 = vmatpush.msrb.mxu1 %v7112_v32  ;;  %2972 = vmatpush.msrb.mxu3 %v6921_v54  ;;  %v7040_v61 = vld [vmem:[%s15761_s1 + $0x17b0] sm:$0xff]  ;;  %15886 = vst [vmem:[#allocation111_spill] sm:$0xff] %v11053_v42  ;;  %v6913_v32 = vld [vmem:[%s15761_s1 + $0x13b8] sm:$0xff] }
 0x26a   :  { %2952 = vmatpush.msrb.mxu2 %v7140_v13  ;;  %v7104_v45 = vld [vmem:[%s15761_s1 + $0x19b0] sm:$0xff]  ;;  %2886 = vmatpush.msrb.mxu0 %v7044_v19  ;;  %15888 = vst [vmem:[#allocation113_spill] sm:$0xff] %v11066_v46  ;;  %v6909_v19 = vld [vmem:[%s15761_s1 + $0x1398] sm:$0xff] }
 0x26b   :  { %2915 = vmatpush.msrb.mxu1 %v7108_v28  ;;  %2973 = vmatpush.msrb.mxu3 %v6917_v63  ;;  %v7036_v54 = vld [vmem:[%s15761_s1 + $0x1790] sm:$0xff] }
 0x26c   :  { %v7100_v13 = vld [vmem:[%s15761_s1 + $0x1990] sm:$0xff]  ;;  %2953 = vmatpush.msrb.mxu2 %v7136_v59  ;;  %2887 = vmatpush.msrb.mxu0 %v7040_v61  ;;  %v6905_v61 = vld [vmem:[%s15761_s1 + $0x1378] sm:$0xff]  ;;  %v11085_v59 = vpop.f32.mrf.mxu2 }
 0x26d   :  { %2916 = vmatpush.msrb.mxu1 %v7104_v45  ;;  %2974 = vmatpush.msrb.mxu3 %v6913_v32  ;;  %v7032_v28 = vld [vmem:[%s15761_s1 + $0x1770] sm:$0xff]  ;;  %15889 = vst [vmem:[#allocation114_spill] sm:$0xff] %v11085_v59 }
 0x26e   :  { %2846 = vmatmul.f32.gmra.mxu2 %v10569_v34  ;;  %2888 = vmatpush.msrb.mxu0 %v7036_v54  ;;  %v7096_v63 = vld [vmem:[%s15761_s1 + $0x1970] sm:$0xff]  ;;  %v11113_v46 = vpop.f32.mrf.mxu0 }
 0x26f   :  { %2917 = vmatpush.msrb.mxu1 %v7100_v13  ;;  %2788 = vmatmul.f32.gmra.mxu0 %v10599_v39  ;;  %v7132_v45 = vld [vmem:[%s15761_s1 + $0x1a90] sm:$0xff]  ;;  %v6901_v13 = vld [vmem:[%s15761_s1 + $0x1358] sm:$0xff]  ;;  %15891 = vst [vmem:[#allocation116_spill] sm:$0xff] %v11113_v46 }
 0x270   :  { %2975 = vmatpush.msrb.mxu3 %v6909_v19  ;;  %7151 = vmatmul.msk.f32.gmra.mxu1 %vm24_vm1, %v10843_v49  ;;  %v7028_v32 = vld [vmem:[%s15761_s1 + $0x1750] sm:$0xff]  ;;  %v11121_v51 = vpop.f32.mrf.mxu1 }
 0x271   :  { %2875 = vmatmul.f32.gmra.mxu3 %v10585_v58  ;;  %v7092_v54 = vld [vmem:[%s15761_s1 + $0x1950] sm:$0xff]  ;;  %2889 = vmatpush.msrb.mxu0 %v7032_v28  ;;  %v11108_v28 = vpop.f32.mrf.mxu3  ;;  %15892 = vst [vmem:[#allocation117_spill] sm:$0xff] %v11121_v51 }
 0x272   :  { %2918 = vmatpush.msrb.mxu1 %v7096_v63  ;;  %v7128_v19 = vld [vmem:[%s15761_s1 + $0x1a70] sm:$0xff]  ;;  %2976 = vmatpush.msrb.mxu3 %v6905_v61  ;;  %15890 = vst [vmem:[#allocation115_spill] sm:$0xff] %v11108_v28  ;;  %v6897_v63 = vld [vmem:[%s15761_s1 + $0x1338] sm:$0xff] }
 0x273   :  { %2954 = vmatpush.msrb.mxu2 %v7132_v45  ;;  %v7024_v42 = vld [vmem:[%s15761_s1 + $0x1730] sm:$0xff]  ;;  %2890 = vmatpush.msrb.mxu0 %v7028_v32  ;;  %v6893_v32 = vld [vmem:[%s15761_s1 + $0x1318] sm:$0xff] }
 0x274   :  { %v7088_v59 = vld [vmem:[%s15761_s1 + $0x1930] sm:$0xff]  ;;  %2919 = vmatpush.msrb.mxu1 %v7092_v54  ;;  %2977 = vmatpush.msrb.mxu3 %v6901_v13 }
 0x275   :  { %v7020_v61 = vld [vmem:[%s15761_s1 + $0x1710] sm:$0xff]  ;;  %2955 = vmatpush.msrb.mxu2 %v7128_v19  ;;  %2891 = vmatpush.msrb.mxu0 %v7024_v42  ;;  %v6889_v42 = vld [vmem:[%s15761_s1 + $0x12f8] sm:$0xff]  ;;  %v11140_v19 = vpop.f32.mrf.mxu2 }
 0x276   :  { %v7084_v45 = vld [vmem:[%s15761_s1 + $0x1910] sm:$0xff]  ;;  %2920 = vmatpush.msrb.mxu1 %v7088_v59  ;;  %2978 = vmatpush.msrb.mxu3 %v6897_v63  ;;  %15893 = vst [vmem:[#allocation118_spill] sm:$0xff] %v11140_v19  ;;  %v11168_v28 = vpop.f32.mrf.mxu0 }
 0x277   :  { %2849 = vmatmul.f32.gmra.mxu2 %v10645_v9  ;;  %2892 = vmatpush.msrb.mxu0 %v7020_v61  ;;  %v7016_v54 = vld [vmem:[%s15761_s1 + $0x16f0] sm:$0xff]  ;;  %15895 = vst [vmem:[#allocation120_spill] sm:$0xff] %v11168_v28 }
 0x278   :  { %2921 = vmatpush.msrb.mxu1 %v7084_v45  ;;  %v7080_v13 = vld [vmem:[%s15761_s1 + $0x18f0] sm:$0xff]  ;;  %2791 = vmatmul.f32.gmra.mxu0 %v10675_v35  ;;  %v6885_v45 = vld [vmem:[%s15761_s1 + $0x12d8] sm:$0xff] }
 0x279   :  { %2979 = vmatpush.msrb.mxu3 %v6893_v32  ;;  %v7124_v59 = vld [vmem:[%s15761_s1 + $0x1a50] sm:$0xff]  ;;  %7152 = vmatmul.msk.f32.gmra.mxu1 %vm24_vm1, %v10895_v43 }
 0x27a   :  { %2878 = vmatmul.f32.gmra.mxu3 %v10665_v18  ;;  %v7012_v63 = vld [vmem:[%s15761_s1 + $0x16d0] sm:$0xff]  ;;  %2893 = vmatpush.msrb.mxu0 %v7016_v54  ;;  %v11163_v54 = vpop.f32.mrf.mxu3 }
 0x27b   :  { %v7076_v61 = vld [vmem:[%s15761_s1 + $0x18d0] sm:$0xff]  ;;  %2922 = vmatpush.msrb.mxu1 %v7080_v13  ;;  %2980 = vmatpush.msrb.mxu3 %v6889_v42  ;;  %15894 = vst [vmem:[#allocation119_spill] sm:$0xff] %v11163_v54  ;;  %v6881_v13 = vld [vmem:[%s15761_s1 + $0x12b8] sm:$0xff] }
 0x27c   :  { %v7120_v32 = vld [vmem:[%s15761_s1 + $0x1a30] sm:$0xff]  ;;  %2956 = vmatpush.msrb.mxu2 %v7124_v59  ;;  %2894 = vmatpush.msrb.mxu0 %v7012_v63  ;;  %v6877_v63 = vld [vmem:[%s15761_s1 + $0x1298] sm:$0xff] }
 0x27d   :  { %v7008_v19 = vld [vmem:[%s15761_s1 + $0x16b0] sm:$0xff]  ;;  %2923 = vmatpush.msrb.mxu1 %v7076_v61  ;;  %2981 = vmatpush.msrb.mxu3 %v6885_v45  ;;  %v11179_v61 = vpop.f32.mrf.mxu1  ;;  %v7113_v54 = vld [vmem:[%s15761_s1 + $0x19f8] sm:$0xff] }
 0x27e   :  { %v7072_v51 = vld [vmem:[%s15761_s1 + $0x18b0] sm:$0xff]  ;;  %2957 = vmatpush.msrb.mxu2 %v7120_v32  ;;  %2895 = vmatpush.msrb.mxu0 %v7008_v19  ;;  %15896 = vst [vmem:[#allocation121_spill] sm:$0xff] %v11179_v61  ;;  %v11229_v46 = vpop.f32.mrf.mxu0 }
 0x27f   :  { %v7004_v42 = vld [vmem:[%s15761_s1 + $0x1690] sm:$0xff]  ;;  %2924 = vmatpush.msrb.mxu1 %v7072_v51  ;;  %2982 = vmatpush.msrb.mxu3 %v6881_v13  ;;  %v6873_v51 = vld [vmem:[%s15761_s1 + $0x1278] sm:$0xff]  ;;  %15899 = vst [vmem:[#allocation124_spill] sm:$0xff] %v11229_v46 }
 0x280   :  { %v7068_v59 = vld [vmem:[%s15761_s1 + $0x1890] sm:$0xff]  ;;  %2852 = vmatmul.f32.gmra.mxu2 %v10717_v37  ;;  %2896 = vmatpush.msrb.mxu0 %v7004_v42  ;;  %v6929_v46 = vld [vmem:[%s15761_s1 + $0x1438] sm:$0xff] }
 0x281   :  { %2925 = vmatpush.msrb.mxu1 %v7068_v59  ;;  %v7000_v45 = vld [vmem:[%s15761_s1 + $0x1670] sm:$0xff]  ;;  %2794 = vmatmul.f32.gmra.mxu0 %v10745_v48  ;;  %v11204_v59 = vpop.f32.mrf.mxu2 }
 0x282   :  { %v7064_v19 = vld [vmem:[%s15761_s1 + $0x1870] sm:$0xff]  ;;  %2983 = vmatpush.msrb.mxu3 %v6877_v63  ;;  %7153 = vmatmul.msk.f32.gmra.mxu1 %vm24_vm1, %v10953_v40  ;;  %15897 = vst [vmem:[#allocation122_spill] sm:$0xff] %v11204_v59  ;;  %v6869_v63 = vld [vmem:[%s15761_s1 + $0x1258] sm:$0xff] }
 0x283   :  { %v7116_v32 = vld [vmem:[%s15761_s1 + $0x1a10] sm:$0xff]  ;;  %2881 = vmatmul.f32.gmra.mxu3 %v10735_v23  ;;  %2897 = vmatpush.msrb.mxu0 %v7000_v45  ;;  %v11218_v45 = vpop.f32.mrf.mxu3 }
 0x284   :  { %v6996_v13 = vld [vmem:[%s15761_s1 + $0x1650] sm:$0xff]  ;;  %2926 = vmatpush.msrb.mxu1 %v7064_v19  ;;  %2984 = vmatpush.msrb.mxu3 %v6873_v51  ;;  %15898 = vst [vmem:[#allocation123_spill] sm:$0xff] %v11218_v45  ;;  %v6865_v19 = vld [vmem:[%s15761_s1 + $0x1238] sm:$0xff] }
 0x285   :  { %v7060_v42 = vld [vmem:[%s15761_s1 + $0x1850] sm:$0xff]  ;;  %2958 = vmatpush.msrb.mxu2 %v7116_v32  ;;  %2898 = vmatpush.msrb.mxu0 %v6996_v13  ;;  %v6861_v13 = vld [vmem:[%s15761_s1 + $0x1218] sm:$0xff] }
 0x286   :  { %v6992_v61 = vld [vmem:[%s15761_s1 + $0x1630] sm:$0xff]  ;;  %2927 = vmatpush.msrb.mxu1 %v7060_v42  ;;  %2985 = vmatpush.msrb.mxu3 %v6869_v63  ;;  %v11236_v42 = vpop.f32.mrf.mxu1  ;;  %v7145_v63 = vld [vmem:[%s15761_s1 + $0x1af8] sm:$0xff] }
 0x287   :  { %v7056_v59 = vld [vmem:[%s15761_s1 + $0x1830] sm:$0xff]  ;;  %3059 = vmatpush.msra.mxu2 %v7113_v54  ;;  %2899 = vmatpush.msrb.mxu0 %v6992_v61  ;;  %15900 = vst [vmem:[#allocation125_spill] sm:$0xff] %v11236_v42  ;;  %v6985_v54 = vld [vmem:[%s15761_s1 + $0x15f8] sm:$0xff] }
 0x288   :  { %v6988_v51 = vld [vmem:[%s15761_s1 + $0x1610] sm:$0xff]  ;;  %2928 = vmatpush.msrb.mxu1 %v7056_v59  ;;  %2986 = vmatpush.msrb.mxu3 %v6865_v19  ;;  %v7049_v61 = vld [vmem:[%s15761_s1 + $0x17f8] sm:$0xff] }
 0x289   :  { %v7052_v32 = vld [vmem:[%s15761_s1 + $0x1810] sm:$0xff]  ;;  %7154 = vmatmul.msk.f32.vlgmr.msrb.gmra.mxu2 %vm24_vm1, %v10785_v6  ;;  %2900 = vmatpush.msrb.mxu0 %v6988_v51  ;;  %v7109_v59 = vld [vmem:[%s15761_s1 + $0x19d8] sm:$0xff]  ;;  %v11265_v45 = vpop.f32.mrf.mxu2 }
 0x28a   :  { %2929 = vmatpush.msrb.mxu1 %v7052_v32  ;;  %2901 = vmatmul.f32.vlgmr.msrb.gmra.mxu0 %v10500_v2  ;;  %v6981_v19 = vld [vmem:[%s15761_s1 + $0x15d8] sm:$0xff]  ;;  %15901 = vst [vmem:[#allocation126_spill] sm:$0xff] %v11265_v45 }
 0x28b   :  { %2987 = vmatpush.msrb.mxu3 %v6861_v13  ;;  %2930 = vmatmul.f32.vlgmr.msrb.gmra.mxu1 %v10518_v17  ;;  %v7045_v51 = vld [vmem:[%s15761_s1 + $0x17d8] sm:$0xff] }
 0x28c   :  { %2988 = vmatmul.f32.vlgmr.msrb.gmra.mxu3 %v10495_v50  ;;  %3001 = vmatpush.msra.mxu0 %v6985_v54  ;;  %v7105_v32 = vld [vmem:[%s15761_s1 + $0x19b8] sm:$0xff] }
 0x28d   :  { %3030 = vmatpush.msra.mxu1 %v7049_v61  ;;  %v7141_v13 = vld [vmem:[%s15761_s1 + $0x1ad8] sm:$0xff]  ;;  %3060 = vmatpush.msra.mxu2 %v7109_v59  ;;  %v11279_v59 = vpop.f32.mrf.mxu3 }
 0x28e   :  { %3096 = vmatpush.msra.mxu3 %v7145_v63  ;;  %v6977_v50 = vld [vmem:[%s15761_s1 + $0x15b8] sm:$0xff]  ;;  %3002 = vmatpush.msra.mxu0 %v6981_v19  ;;  %15902 = vst [vmem:[#allocation127_spill] sm:$0xff] %v11279_v59 }
 0x28f   :  { %v7041_v54 = vld [vmem:[%s15761_s1 + $0x17b8] sm:$0xff]  ;;  %3031 = vmatpush.msra.mxu1 %v7045_v51  ;;  %3061 = vmatpush.msra.mxu2 %v7105_v32  ;;  %v11287_v51 = vpop.f32.mrf.mxu0 }
 0x290   :  { %v7101_v61 = vld [vmem:[%s15761_s1 + $0x1998] sm:$0xff]  ;;  %3097 = vmatpush.msra.mxu3 %v7141_v13  ;;  %3003 = vmatpush.msra.mxu0 %v6977_v50  ;;  %15903 = vst [vmem:[#allocation128_spill] sm:$0xff] %v11287_v51  ;;  %v11297_v13 = vpop.f32.mrf.mxu1 }
 0x291   :  { %v7137_v45 = vld [vmem:[%s15761_s1 + $0x1ab8] sm:$0xff]  ;;  %3032 = vmatpush.msra.mxu1 %v7041_v54  ;;  %3062 = vmatpush.msra.mxu2 %v7101_v61  ;;  %15904 = vst [vmem:[#allocation129_spill] sm:$0xff] %v11297_v13 }
 0x292   :  { %v6973_v63 = vld [vmem:[%s15761_s1 + $0x1598] sm:$0xff]  ;;  %3098 = vmatpush.msra.mxu3 %v7137_v45  ;;  %7155 = vmatmul.msk.f32.gmra.mxu2 %vm24_vm1, %v10843_v49 }
 0x293   :  { %v7037_v19 = vld [vmem:[%s15761_s1 + $0x1798] sm:$0xff]  ;;  %3004 = vmatpush.msra.mxu0 %v6973_v63  ;;  %2933 = vmatmul.f32.gmra.mxu1 %v10599_v39 }
 0x294   :  { %v7097_v42 = vld [vmem:[%s15761_s1 + $0x1978] sm:$0xff]  ;;  %2904 = vmatmul.f32.gmra.mxu0 %v10574_v14  ;;  %3033 = vmatpush.msra.mxu1 %v7037_v19 }
 0x295   :  { %v6969_v32 = vld [vmem:[%s15761_s1 + $0x1578] sm:$0xff]  ;;  %3063 = vmatpush.msra.mxu2 %v7097_v42  ;;  %2991 = vmatmul.f32.gmra.mxu3 %v10569_v34  ;;  %v11326_v34 = vpop.f32.mrf.mxu2  ;;  %v11337_v13 = vpop.f32.mrf.mxu3 }
 0x296   :  { %v7033_v50 = vld [vmem:[%s15761_s1 + $0x1778] sm:$0xff]  ;;  %3005 = vmatpush.msra.mxu0 %v6969_v32  ;;  %15905 = vst [vmem:[#allocation130_spill] sm:$0xff] %v11326_v34 }
 0x297   :  { %v7093_v45 = vld [vmem:[%s15761_s1 + $0x1958] sm:$0xff]  ;;  %3034 = vmatpush.msra.mxu1 %v7033_v50  ;;  %15906 = vst [vmem:[#allocation131_spill] sm:$0xff] %v11337_v13 }
 0x298   :  { %v6965_v54 = vld [vmem:[%s15761_s1 + $0x1558] sm:$0xff]  ;;  %3064 = vmatpush.msra.mxu2 %v7093_v45 }
 0x299   :  { %v7133_v61 = vld [vmem:[%s15761_s1 + $0x1a98] sm:$0xff]  ;;  %3006 = vmatpush.msra.mxu0 %v6965_v54 }
 0x29a   :  { %v7029_v63 = vld [vmem:[%s15761_s1 + $0x1758] sm:$0xff]  ;;  %3099 = vmatpush.msra.mxu3 %v7133_v61  ;;  %7156 = vmatmul.msk.f32.gmra.mxu2 %vm24_vm1, %v10895_v43 }
 0x29b   :  { %v7089_v42 = vld [vmem:[%s15761_s1 + $0x1938] sm:$0xff]  ;;  %3035 = vmatpush.msra.mxu1 %v7029_v63  ;;  %v11345_v63 = vpop.f32.mrf.mxu0 }
 0x29c   :  { %v6961_v19 = vld [vmem:[%s15761_s1 + $0x1538] sm:$0xff]  ;;  %3065 = vmatpush.msra.mxu2 %v7089_v42  ;;  %2907 = vmatmul.f32.gmra.mxu0 %v10650_v21 }
 0x29d   :  { %v7129_v59 = vld [vmem:[%s15761_s1 + $0x1a78] sm:$0xff]  ;;  %3007 = vmatpush.msra.mxu0 %v6961_v19  ;;  %2936 = vmatmul.f32.gmra.mxu1 %v10675_v35  ;;  %v11395_v51 = vpop.f32.mrf.mxu3 }
 0x29e   :  { %v7025_v32 = vld [vmem:[%s15761_s1 + $0x1738] sm:$0xff]  ;;  %3100 = vmatpush.msra.mxu3 %v7129_v59 }
 0x29f   :  { %v7085_v50 = vld [vmem:[%s15761_s1 + $0x1918] sm:$0xff]  ;;  %3036 = vmatpush.msra.mxu1 %v7025_v32  ;;  %v11359_v32 = vpop.f32.mrf.mxu1  ;;  %2994 = vmatmul.f32.gmra.mxu3 %v10645_v9 }
 0x2a0   :  { %v6957_v45 = vld [vmem:[%s15761_s1 + $0x1518] sm:$0xff]  ;;  %3066 = vmatpush.msra.mxu2 %v7085_v50 }
 0x2a1   :  { %v7021_v54 = vld [vmem:[%s15761_s1 + $0x1718] sm:$0xff]  ;;  %3008 = vmatpush.msra.mxu0 %v6957_v45 }
 0x2a2   :  { %v7081_v61 = vld [vmem:[%s15761_s1 + $0x18f8] sm:$0xff]  ;;  %3037 = vmatpush.msra.mxu1 %v7021_v54  ;;  %7157 = vmatmul.msk.f32.gmra.mxu2 %vm24_vm1, %v10953_v40 }
 0x2a3   :  { %v6953_v42 = vld [vmem:[%s15761_s1 + $0x14f8] sm:$0xff]  ;;  %3067 = vmatpush.msra.mxu2 %v7081_v61 }
 0x2a4   :  { %v7017_v59 = vld [vmem:[%s15761_s1 + $0x16f8] sm:$0xff]  ;;  %3009 = vmatpush.msra.mxu0 %v6953_v42 }
 0x2a5   :  { %v7077_v19 = vld [vmem:[%s15761_s1 + $0x18d8] sm:$0xff]  ;;  %3038 = vmatpush.msra.mxu1 %v7017_v59  ;;  %v11387_v59 = vpop.f32.mrf.mxu2  ;;  %2910 = vmatmul.f32.gmra.mxu0 %v10722_v55 }
 0x2a6   :  { %v6949_v50 = vld [vmem:[%s15761_s1 + $0x14d8] sm:$0xff]  ;;  %3068 = vmatpush.msra.mxu2 %v7077_v19  ;;  %2939 = vmatmul.f32.gmra.mxu1 %v10745_v48 }
 0x2a7   :  { %v7125_v45 = vld [vmem:[%s15761_s1 + $0x1a58] sm:$0xff]  ;;  %3010 = vmatpush.msra.mxu0 %v6949_v50  ;;  %2997 = vmatmul.f32.gmra.mxu3 %v10717_v37 }
 0x2a8   :  { %v7013_v54 = vld [vmem:[%s15761_s1 + $0x16d8] sm:$0xff]  ;;  %3101 = vmatpush.msra.mxu3 %v7125_v45 }
 0x2a9   :  { %v7073_v61 = vld [vmem:[%s15761_s1 + $0x18b8] sm:$0xff]  ;;  %3039 = vmatpush.msra.mxu1 %v7013_v54  ;;  %v11400_v54 = vpop.f32.mrf.mxu0 }
 0x2aa   :  { %v6945_v13 = vld [vmem:[%s15761_s1 + $0x14b8] sm:$0xff]  ;;  %3069 = vmatpush.msra.mxu2 %v7073_v61 }
 0x2ab   :  { %v7121_v34 = vld [vmem:[%s15761_s1 + $0x1a38] sm:$0xff]  ;;  %3011 = vmatpush.msra.mxu0 %v6945_v13 }
 0x2ac   :  { %v7009_v9 = vld [vmem:[%s15761_s1 + $0x16b8] sm:$0xff]  ;;  %3102 = vmatpush.msra.mxu3 %v7121_v34 }
 0x2ad   :  { %v7069_v42 = vld [vmem:[%s15761_s1 + $0x1898] sm:$0xff]  ;;  %3040 = vmatpush.msra.mxu1 %v7009_v9  ;;  %v11414_v9 = vpop.f32.mrf.mxu1  ;;  %v2615_v28 = vpop.f32.mrf.mxu2 }
 0x2ae   :  { %v6941_v19 = vld [vmem:[%s15761_s1 + $0x1498] sm:$0xff]  ;;  %3070 = vmatpush.msra.mxu2 %v7069_v42 }
 0x2af   :  { %v7005_v50 = vld [vmem:[%s15761_s1 + $0x1698] sm:$0xff]  ;;  %3012 = vmatpush.msra.mxu0 %v6941_v19 }
 0x2b0   :  { %v7065_v45 = vld [vmem:[%s15761_s1 + $0x1878] sm:$0xff]  ;;  %3041 = vmatpush.msra.mxu1 %v7005_v50 }
 0x2b1   :  { %v6937_v13 = vld [vmem:[%s15761_s1 + $0x1478] sm:$0xff]  ;;  %3071 = vmatpush.msra.mxu2 %v7065_v45  ;;  %v2560_v41 = vpop.f32.mrf.mxu0 }
 0x2b2   :  { %v7001_v34 = vld [vmem:[%s15761_s1 + $0x1678] sm:$0xff]  ;;  %3013 = vmatpush.msra.mxu0 %v6937_v13 }
 0x2b3   :  { %v7061_v61 = vld [vmem:[%s15761_s1 + $0x1858] sm:$0xff]  ;;  %3042 = vmatpush.msra.mxu1 %v7001_v34 }
 0x2b4   :  { %v6933_v42 = vld [vmem:[%s15761_s1 + $0x1458] sm:$0xff]  ;;  %3072 = vmatpush.msra.mxu2 %v7061_v61 }
 0x2b5   :  { %v7117_v19 = vld [vmem:[%s15761_s1 + $0x1a18] sm:$0xff]  ;;  %3014 = vmatpush.msra.mxu0 %v6933_v42  ;;  %v11445_v42 = vpop.f32.mrf.mxu3 }
 0x2b6   :  { %v6997_v50 = vld [vmem:[%s15761_s1 + $0x1658] sm:$0xff]  ;;  %3103 = vmatpush.msra.mxu3 %v7117_v19  ;;  %v2589_v19 = vpop.f32.mrf.mxu1 }
 0x2b7   :  { %v7057_v45 = vld [vmem:[%s15761_s1 + $0x1838] sm:$0xff]  ;;  %3043 = vmatpush.msra.mxu1 %v6997_v50  ;;  %3015 = vmatpush.msra.mxu0 %v6929_v46  ;;  %v2618_v46 = vpop.f32.mrf.mxu2 }
 0x2b8   :  { %v6993_v37 = vld [vmem:[%s15761_s1 + $0x1638] sm:$0xff]  ;;  %3073 = vmatpush.msra.mxu2 %v7057_v45  ;;  %7158 = vmatmul.msk.f32.vlgmr.msra.gmra.mxu3 %vm24_vm1, %v10785_v6 }
 0x2b9   :  { %v7053_v13 = vld [vmem:[%s15761_s1 + $0x1818] sm:$0xff]  ;;  %3044 = vmatpush.msra.mxu1 %v6993_v37  ;;  %v11453_v45 = vpop.f32.mrf.mxu0 }
 0x2ba   :  { %v6925_v34 = vld [vmem:[%s15761_s1 + $0x1418] sm:$0xff]  ;;  %3074 = vmatpush.msra.mxu2 %v7053_v13 }
 0x2bb   :  { %v6989_v61 = vld [vmem:[%s15761_s1 + $0x1618] sm:$0xff]  ;;  %3016 = vmatpush.msra.mxu0 %v6925_v34  ;;  %3075 = vmatmul.f32.vlgmr.msra.gmra.mxu2 %v10518_v17  ;;  %v1016_v17 = vadd.f32 %v9234_v53, %v9236_v1  ;;  %s7834_s1 = smov 64  }
 0x2bc   :  { %3017 = vmatmul.f32.vlgmr.msra.gmra.mxu0 %v10513_v25  ;;  %3045 = vmatpush.msra.mxu1 %v6989_v61 }
 0x2bd   :  { %3046 = vmatmul.f32.vlgmr.msra.gmra.mxu1 %v10500_v2  ;;  %v2647_v50 = vpop.f32.mrf.mxu3  ;;  %v1010_v2 = vadd.f32 %v9124_v16, %v9132_v52 }
 0x2be   :  { %v2592_v25 = vpop.f32.mrf.mxu1 }
 0x2bf   :  { %v11465_v6 = vpop.f32.mrf.mxu2 }
 0x2c0   :  { %7159 = vmatmul.msk.f32.gmra.mxu3 %vm24_vm1, %v10843_v49 }
 0x2c1   :  { %v2670_v16 = vpop.f32.mrf.mxu0 }
 0x2c3   :  { %3078 = vmatmul.f32.gmra.mxu2 %v10599_v39  ;;  %v1013_v39 = vadd.f32 %v9185_v33, %v9187_v36  ;;  %v1019_v36 = vadd.f32 %v9283_v12, %v9288_v4 }
 0x2c4   :  { %3020 = vmatmul.f32.gmra.mxu0 %v10585_v58  ;;  %v1045_v58 = vadd.f32 %v9267_v57, %v1016_v17 }
 0x2c5   :  { %3049 = vmatmul.f32.gmra.mxu1 %v10574_v14  ;;  %v1042_v37 = vadd.f32 %v9203_v44, %v1013_v39  ;;  %v1039_v14 = vadd.f32 %v9154_v24, %v1010_v2  ;;  %v11472_v49 = vpop.f32.mrf.mxu3  ;;  %v1048_v1 = vadd.f32 %v9316_v62, %v1019_v36  ;;  %v15913_v39 = vld [vmem:[#allocation76_spill] sm:$0xff] }
 0x2c6   :  { %v11477_v52 = vpop.f32.mrf.mxu1  ;;  %v1074_v44 = vadd.f32 %v9275_v3, %v1045_v58  ;;  %v2587_v3 = vadd.f32 %v11414_v9, %v11400_v54  ;;  %v15907_v54 = vld [vmem:[#allocation63_spill] sm:$0xff] }
 0x2c7   :  { %v1071_v33 = vadd.f32 %v9226_v47, %v1042_v37  ;;  %v1068_v24 = vadd.f32 %v9177_v29, %v1039_v14  ;;  %v11490_v47 = vpop.f32.mrf.mxu2 }
 0x2c8   :  { %7160 = vmatmul.msk.f32.gmra.mxu3 %vm24_vm1, %v10895_v43 }
 0x2c9   :  { %v1100_v53 = vadd.f32 %v9393_v56, %v1071_v33  ;;  %v1097_v57 = vadd.f32 %v9337_v26, %v1068_v24  ;;  %v2673_v62 = vpop.f32.mrf.mxu0  ;;  %v1077_v26 = vadd.f32 %v9324_v22, %v1048_v1  ;;  %v15914_v24 = vld [vmem:[#allocation67_spill] sm:$0xff] }
 0x2cb   :  { %3081 = vmatmul.f32.gmra.mxu2 %v10675_v35  ;;  %v1571_v12 = vadd.f32 %v10158_v60, %v1097_v57  ;;  %v2616_v60 = vadd.f32 %v2615_v28, %v2587_v3  ;;  %v1106_v35 = vadd.f32 %v9502_v10, %v1077_v26 }
 0x2cc   :  { %3023 = vmatmul.f32.gmra.mxu0 %v10665_v18  ;;  %v1574_v18 = vadd.f32 %v10206_v7, %v1100_v53  ;;  %v2590_v7 = vadd.f32 %v2589_v19, %v2560_v41  ;;  %v15915_v53 = vld [vmem:[#allocation80_spill] sm:$0xff] }
 0x2cd   :  { %3052 = vmatmul.f32.gmra.mxu1 %v10650_v21  ;;  %v1103_v21 = vadd.f32 %v9446_v15, %v1074_v44  ;;  %v11500_v4 = vpop.f32.mrf.mxu3  ;;  %v2584_v15 = vadd.f32 %v11359_v32, %v11345_v63  ;;  %v1600_v43 = vadd.f32 %v10167_v0, %v1571_v12  ;;  %v1580_v28 = vadd.f32 %v10304_v38, %v1106_v35  ;;  %v15910_v38 = vld [vmem:[#allocation72_spill] sm:$0xff] }
 0x2ce   :  { %v1603_v56 = vadd.f32 %v10215_v5, %v1574_v18  ;;  %v2619_v22 = vadd.f32 %v2618_v46, %v2590_v7  ;;  %v2645_v41 = vadd.f32 %v11445_v42, %v2616_v60  ;;  %v2593_v42 = vadd.f32 %v2592_v25, %v11453_v45 }
 0x2cf   :  { %v1577_v29 = vadd.f32 %v10252_v8, %v1103_v21  ;;  %v11506_v8 = vpop.f32.mrf.mxu1  ;;  %v1629_v5 = vadd.f32 %v10187_v31, %v1600_v43  ;;  %v11517_v63 = vpop.f32.mrf.mxu2  ;;  %v15908_v31 = vld [vmem:[#allocation64_spill] sm:$0xff] }
 0x2d0   :  { %7161 = vmatmul.msk.f32.gmra.mxu3 %vm24_vm1, %v10953_v40  ;;  %v2674_v32 = vadd.f32 %v2673_v62, %v2645_v41  ;;  %v2622_v14 = vadd.f32 %v11465_v6, %v2593_v42  ;;  %v15919_v41 = vld [vmem:[#allocation4_spill] sm:$0xff] }
 0x2d1   :  { %v1658_v9 = vadd.f32 %v15907_v54, %v1629_v5 }
 0x2d3   :  { %3084 = vmatmul.f32.gmra.mxu2 %v10745_v48  ;;  %v2613_v48 = vadd.f32 %v11387_v59, %v2584_v15  ;;  %v2676_v59 = vpop.f32.mrf.mxu0 }
 0x2d4   :  { %3026 = vmatmul.f32.gmra.mxu0 %v10735_v23  ;;  %v1632_v23 = vadd.f32 %v10239_v27, %v1603_v56 }
 0x2d5   :  { %3055 = vmatmul.f32.gmra.mxu1 %v10722_v55  ;;  %v1606_v55 = vadd.f32 %v10266_v30, %v1577_v29  ;;  %v2642_v0 = vadd.f32 %v11395_v51, %v2613_v48  ;;  %v2648_v30 = vadd.f32 %v2647_v50, %v2619_v22  ;;  %v11521_v27 = vpop.f32.mrf.mxu3  ;;  %v15912_v50 = vld [vmem:[#allocation68_spill] sm:$0xff] }
 0x2d6   :  { %v1661_v10 = vadd.f32 %v10250_v11, %v1632_v23  ;;  %v15911_v11 = vld [vmem:[#allocation66_spill] sm:$0xff]  ;;  %v1687_v17 = vadd.f32 %v15912_v50, %v1658_v9  ;;  %v15917_v23 = vld [vmem:[#allocation7_spill] sm:$0xff] }
 0x2d7   :  { %v1635_v40 = vadd.f32 %v10291_v20, %v1606_v55  ;;  %v15909_v20 = vld [vmem:[#allocation65_spill] sm:$0xff]  ;;  %v2671_v19 = vadd.f32 %v2670_v16, %v2642_v0  ;;  %v2677_v46 = vadd.f32 %v2676_v59, %v2648_v30  ;;  %v11529_v51 = vpop.f32.mrf.mxu1  ;;  %v11541_v25 = vpop.f32.mrf.mxu2  ;;  %v2651_v16 = vadd.f32 %v11472_v49, %v2622_v14  ;;  %v15916_v55 = vld [vmem:[#allocation6_spill] sm:$0xff] }
 0x2d8   :  { %v1609_v34 = vadd.f32 %v15909_v20, %v1580_v28  ;;  %v1690_v61 = vadd.f32 %v15910_v38, %v1661_v10  ;;  %v1158_v48 = vadd.f32 %v15917_v23, %v15916_v55  ;;  %v15918_v28 = vld [vmem:[#allocation3_spill] sm:$0xff]  ;;  %v15920_v0 = vld [vmem:[#allocation9_spill] sm:$0xff]  ;;  %v15921_v30 = vld [vmem:[#allocation10_spill] sm:$0xff]  ;;  %v2732_v55 = vadd.f32 %v11517_v63, %v11506_v8 }
 0x2d9   :  { %v1664_v13 = vadd.f32 %v15908_v31, %v1635_v40  ;;  %v11536_v33 = vadd.f32 %v2671_v19, %v1687_v17  ;;  %v1155_v10 = vadd.f32 %v15919_v41, %v15918_v28  ;;  %v15924_v19 = vld [vmem:[#allocation11_spill] sm:$0xff]  ;;  %v15936_v28 = vld [vmem:[#allocation69_spill] sm:$0xff]  ;;  %v15940_v63 = vld [vmem:[#allocation78_spill] sm:$0xff] }
 0x2da   :  { %v1638_v2 = vadd.f32 %v15911_v11, %v1609_v34  ;;  %v11534_v58 = vadd.f32 %v2674_v32, %v1690_v61  ;;  %v1161_v32 = vadd.f32 %v15921_v30, %v15920_v0  ;;  %v15923_v61 = vld [vmem:[#allocation5_spill] sm:$0xff]  ;;  %v15925_v11 = vld [vmem:[#allocation20_spill] sm:$0xff] }
 0x2db   :  { %v1693_v37 = vadd.f32 %v15913_v39, %v1664_v13  ;;  %v2679_v6 = vpop.f32.mrf.mxu0  ;;  %v3169_v21 = vmul.f32 %v11536_v33, %v11536_v33  ;;  %v15922_v13 = vld [vmem:[#allocation8_spill] sm:$0xff]  ;;  %v1184_v42 = vadd.f32 %v15923_v61, %v1155_v10  ;;  %v15937_v10 = vld [vmem:[#allocation74_spill] sm:$0xff]  ;;  %v15938_v30 = vld [vmem:[#allocation77_spill] sm:$0xff] }
 0x2dc   :  { %v1667_v45 = vadd.f32 %v15914_v24, %v1638_v2  ;;  %v3173_v44 = vmul.f32 %v11534_v58, %v11534_v58  ;;  %v3133_v18 = vadd.f32 %v11534_v58, %v11536_v33  ;;  %v2680_v29 = vadd.f32 %v2679_v6, %v2651_v16  ;;  %v15926_v39 = vld [vmem:[#allocation12_spill] sm:$0xff] }
 0x2dd   :  { %v11538_v36 = vadd.f32 %v2677_v46, %v1693_v37  ;;  %v11547_v57 = vpop.f32.mrf.mxu3  ;;  %v1187_v20 = vadd.f32 %v15922_v13, %v1158_v48  ;;  %v1190_v46 = vadd.f32 %v15924_v19, %v1161_v32  ;;  %v15927_v37 = vld [vmem:[#allocation13_spill] sm:$0xff]  ;;  %v15928_v24 = vld [vmem:[#allocation16_spill] sm:$0xff] }
 0x2de   :  { %v1696_v1 = vadd.f32 %v15915_v53, %v1667_v45  ;;  %v3185_v3 = vadd.f32 %v3173_v44, %v3169_v21  ;;  %v1164_v14 = vadd.f32 %v15927_v37, %v15926_v39  ;;  %v1213_v45 = vadd.f32 %v15928_v24, %v1184_v42  ;;  %v15929_v16 = vld [vmem:[#allocation24_spill] sm:$0xff]  ;;  %v15930_v21 = vld [vmem:[#allocation19_spill] sm:$0xff] }
 0x2df   :  { %v3177_v12 = vmul.f32 %v11538_v36, %v11538_v36  ;;  %v3134_v49 = vadd.f32 %v3133_v18, %v11538_v36  ;;  %v11558_v26 = vpop.f32.mrf.mxu1  ;;  %v11563_v43 = vpop.f32.mrf.mxu2  ;;  %v1216_v2 = vadd.f32 %v15925_v11, %v1187_v20  ;;  %v1219_v44 = vadd.f32 %v15929_v16, %v1190_v46  ;;  %v15939_v20 = vld [vmem:[#allocation70_spill] sm:$0xff]  ;;  %v15941_v42 = vld [vmem:[#allocation27_spill] sm:$0xff] }
 0x2e0   :  { %v11556_v62 = vadd.f32 %v2680_v29, %v1696_v1  ;;  %v15942_v46 = vld [vmem:[#allocation75_spill] sm:$0xff] }
 0x2e1   :  { %v3186_v56 = vadd.f32 %v3185_v3, %v3177_v12  ;;  %v1245_v18 = vadd.f32 %v15930_v21, %v1216_v2  ;;  %v15931_v12 = vld [vmem:[#allocation14_spill] sm:$0xff]  ;;  %v15932_v3 = vld [vmem:[#allocation15_spill] sm:$0xff] }
 0x2e2   :  { %v3135_v15 = vadd.f32 %v3134_v49, %v11556_v62  ;;  %v3181_v60 = vmul.f32 %v11556_v62, %v11556_v62  ;;  %v1193_v29 = vadd.f32 %v15931_v12, %v1164_v14  ;;  %v1242_v49 = vadd.f32 %v15932_v3, %v1213_v45  ;;  %v15945_v37 = vld [vmem:[#allocation79_spill] sm:$0xff]  ;;  %v15946_v14 = vld [vmem:[#allocation88_spill] sm:$0xff] }
 0x2e3   :  { %v2786_v59 = vpop.f32.mrf.mxu0  ;;  %v15948_v12 = vld [vmem:[#allocation84_spill] sm:$0xff] }
 0x2e4   :  { %v3136_v7 = vrot.slane %v3135_v15, 4  ;;  %v3187_v35 = vadd.f32 %v3186_v56, %v3181_v60  ;;  %v1716_v41 = vadd.f32 %v15936_v28, %v1242_v49  ;;  %v15949_v3 = vld [vmem:[#allocation92_spill] sm:$0xff]  ;;  %v15953_v28 = vld [vmem:[#allocation93_spill] sm:$0xff] }
 0x2e5   :  { %v11567_v40 = vpop.f32.mrf.mxu3 }
 0x2e6   :  { %v3137_v22 = vadd.f32 %v3136_v7, %v3135_v15  ;;  %v3188_v5 = vrot.slane %v3187_v35, 4  ;;  %v15933_v15 = vld [vmem:[#allocation23_spill] sm:$0xff]  ;;  %v15934_v7 = vld [vmem:[#allocation73_spill] sm:$0xff]  ;;  %v1745_v8 = vadd.f32 %v15939_v20, %v1716_v41 }
 0x2e7   :  { %v11573_v31 = vpop.f32.mrf.mxu1  ;;  %v1248_v60 = vadd.f32 %v15933_v15, %v1219_v44  ;;  %v15947_v44 = vld [vmem:[#allocation82_spill] sm:$0xff] }
 0x2e8   :  { %v3138_v54 = vrot.slane %v3137_v22, 2  ;;  %v3189_v9 = vadd.f32 %v3188_v5, %v3187_v35  ;;  %v11579_v50 = vpop.f32.mrf.mxu2  ;;  %v1719_v35 = vadd.f32 %v15934_v7, %v1245_v18 }
 0x2e9   :  { %v1722_v32 = vadd.f32 %v15938_v30, %v1248_v60  ;;  %v2738_v60 = vadd.f32 %v11563_v43, %v11558_v26 }
 0x2ea   :  { %v3139_v34 = vadd.f32 %v3138_v54, %v3137_v22  ;;  %v3190_v38 = vrot.slane %v3189_v9, 2  ;;  %v15935_v22 = vld [vmem:[#allocation28_spill] sm:$0xff]  ;;  %v1748_v0 = vadd.f32 %v15937_v10, %v1719_v35  ;;  %v2729_v54 = vadd.f32 %v11490_v47, %v11477_v52 }
 0x2eb   :  { %v1222_v5 = vadd.f32 %v15935_v22, %v1193_v29  ;;  %v15952_v22 = vld [vmem:[#allocation85_spill] sm:$0xff] }
 0x2ec   :  { %v3140_v17 = vrot.slane %v3139_v34, 1  ;;  %v3191_v1 = vadd.f32 %v3190_v38, %v3189_v9  ;;  %v2789_v56 = vpop.f32.mrf.mxu0  ;;  %v2735_v9 = vadd.f32 %v11541_v25, %v11529_v51  ;;  %v2761_v38 = vadd.f32 %v11521_v27, %v2732_v55  ;;  %v15943_v51 = vld [vmem:[#allocation81_spill] sm:$0xff] }
 0x2ed   :  { %v11587_v6 = vpop.f32.mrf.mxu3  ;;  %v1251_v19 = vadd.f32 %v15941_v42, %v1222_v5  ;;  %v1777_v11 = vadd.f32 %v15942_v46, %v1748_v0  ;;  %v2758_v2 = vadd.f32 %v11500_v4, %v2729_v54  ;;  %v15954_v0 = vld [vmem:[#allocation96_spill] sm:$0xff] }
 0x2ee   :  { %v11585_v53 = vadd.f32 %v3140_v17, %v3139_v34  ;;  %v3192_v48 = vrot.slane %v3191_v1, 1  ;;  %v1751_v34 = vadd.f32 %v15940_v63, %v1722_v32  ;;  %v2790_v52 = vadd.f32 %v2789_v56, %v2761_v38  ;;  %v15944_v17 = vld [vmem:[#allocation71_spill] sm:$0xff]  ;;  %v15950_v56 = vld [vmem:[#allocation89_spill] sm:$0xff] }
 0x2ef   :  { %v2818_v23 = vpop.f32.mrf.mxu1  ;;  %v1725_v25 = vadd.f32 %v15943_v51, %v1251_v19  ;;  %v2764_v27 = vadd.f32 %v11547_v57, %v2735_v9  ;;  %v1774_v39 = vadd.f32 %v15944_v17, %v1745_v8  ;;  %v1806_v24 = vadd.f32 %v15946_v14, %v1777_v11  ;;  %v15955_v8 = vld [vmem:[#allocation97_spill] sm:$0xff] }
 0x2f0   :  { %3239 = vrot.lane.b32.xlu1 %v11585_v53, %s7832_s30  ;;  %3231 = vrot.lane.b32.xlu2 %v11585_v53, %s7834_s1  ;;  %v11615_v61 = vadd.f32 %v3192_v48, %v3191_v1  ;;  %v1780_v4 = vadd.f32 %v15945_v37, %v1751_v34  ;;  %v2787_v45 = vadd.f32 %v2786_v59, %v2758_v2  ;;  %v15951_v59 = vld [vmem:[#allocation83_spill] sm:$0xff] }
 0x2f1   :  { %3222 = vrot.lane.b32.xlu0 %v11585_v53, %s7835_s26  ;;  %v11610_v13 = vpop.f32.mrf.mxu2  ;;  %v1754_v1 = vadd.f32 %v15947_v44, %v1725_v25  ;;  %v1803_v29 = vadd.f32 %v15948_v12, %v1774_v39  ;;  %v2819_v57 = vadd.f32 %v2818_v23, %v2790_v52  ;;  %v1835_v15 = vadd.f32 %v15950_v56, %v1806_v24 }
 0x2f2   :  { %v1809_v49 = vadd.f32 %v15949_v3, %v1780_v4  ;;  %v2816_v7 = vadd.f32 %v11573_v31, %v2787_v45  ;;  %v2767_v32 = vadd.f32 %v11567_v40, %v2738_v60  ;;  %v15956_v45 = vld [vmem:[#allocation21_spill] sm:$0xff] }
 0x2f3   :  { %v1783_v48 = vadd.f32 %v15951_v59, %v1754_v1  ;;  %v1832_v5 = vadd.f32 %v15952_v22, %v1803_v29  ;;  %v11645_v10 = vadd.f32 %v2819_v57, %v1835_v15  ;;  %v15958_v1 = vld [vmem:[#allocation17_spill] sm:$0xff]  ;;  %v15961_v57 = vld [vmem:[#allocation26_spill] sm:$0xff]  ;;  %v15962_v15 = vld [vmem:[#allocation36_spill] sm:$0xff] }
 0x2f4   :  { %v1838_v41 = vadd.f32 %v15953_v28, %v1809_v49  ;;  %v15960_v49 = vld [vmem:[#allocation25_spill] sm:$0xff]  ;;  %v15964_v22 = vld [vmem:[#allocation40_spill] sm:$0xff] }
 0x2f5   :  { %v11620_v47 = vpop.f32.mrf.mxu3  ;;  %v2792_v16 = vpop.f32.mrf.mxu0  ;;  %v1812_v23 = vadd.f32 %v15954_v0, %v1783_v48  ;;  %v11651_v26 = vadd.f32 %v2816_v7, %v1832_v5  ;;  %v3174_v54 = vmul.f32 %v11645_v10, %v11645_v10  ;;  %v1306_v56 = vadd.f32 %v15961_v57, %v15960_v49  ;;  %v15963_v7 = vld [vmem:[#allocation32_spill] sm:$0xff]  ;;  %v15965_v0 = vld [vmem:[#allocation35_spill] sm:$0xff] }
 0x2f6   :  { %v2793_v21 = vadd.f32 %v2792_v16, %v2764_v27  ;;  %v15957_v16 = vld [vmem:[#allocation22_spill] sm:$0xff]  ;;  %v15977_v49 = vld [vmem:[#allocation43_spill] sm:$0xff] }
 0x2f7   :  { %v2821_v18 = vpop.f32.mrf.mxu1  ;;  %v1841_v63 = vadd.f32 %v15955_v8, %v1812_v23  ;;  %v3170_v34 = vmul.f32 %v11651_v26, %v11651_v26  ;;  %v3142_v38 = vadd.f32 %v11645_v10, %v11651_v26  ;;  %v1303_v44 = vadd.f32 %v15957_v16, %v15956_v45  ;;  %v15975_v16 = vld [vmem:[#allocation86_spill] sm:$0xff] }
 0x2f8   :  { %3227 = vrot.lane.b32.xlu1 %v11615_v61, %s7835_s26  ;;  %3243 = vrot.lane.b32.xlu2 %v11615_v61, %s7832_s30  ;;  %v2822_v35 = vadd.f32 %v2821_v18, %v2793_v21  ;;  %v15959_v21 = vld [vmem:[#allocation18_spill] sm:$0xff]  ;;  %v1335_v5 = vadd.f32 %v15964_v22, %v1306_v56  ;;  %v15978_v56 = vld [vmem:[#allocation91_spill] sm:$0xff] }
 0x2f9   :  { %3235 = vrot.lane.b32.xlu0 %v11615_v61, %s7834_s1  ;;  %v3194_v46 = vadd.f32 %v3174_v54, %v3170_v34  ;;  %v1300_v18 = vadd.f32 %v15959_v21, %v15958_v1  ;;  %v1332_v60 = vadd.f32 %v15962_v15, %v1303_v44  ;;  %v15967_v54 = vld [vmem:[#allocation30_spill] sm:$0xff] }
 0x2fa   :  { %v11640_v55 = vpop.f32.mrf.mxu2  ;;  %v11653_v43 = vadd.f32 %v2822_v35, %v1838_v41 }
 0x2fb   :  { %v1329_v35 = vadd.f32 %v15963_v7, %v1300_v18  ;;  %v1361_v23 = vadd.f32 %v15965_v0, %v1332_v60  ;;  %v15976_v18 = vld [vmem:[#allocation94_spill] sm:$0xff]  ;;  %v2874_v60 = vadd.f32 %v11587_v6, %v11579_v50 }
 0x2fc   :  { %v3178_v40 = vmul.f32 %v11653_v43, %v11653_v43  ;;  %v3143_v11 = vadd.f32 %v3142_v38, %v11653_v43  ;;  %v15983_v6 = vld [vmem:[#allocation98_spill] sm:$0xff] }
 0x2fd   :  { %v11648_v30 = vpop.f32.mrf.mxu3 }
 0x2fe   :  { %v2795_v31 = vpop.f32.mrf.mxu0  ;;  %v3195_v52 = vadd.f32 %v3194_v46, %v3178_v40  ;;  %v15969_v40 = vld [vmem:[#allocation37_spill] sm:$0xff]  ;;  %v15970_v46 = vld [vmem:[#allocation39_spill] sm:$0xff]  ;;  %v2880_v7 = vadd.f32 %v11648_v30, %v11640_v55  ;;  %v15984_v55 = vld [vmem:[#allocation100_spill] sm:$0xff] }
 0x2ff   :  { %v2796_v9 = vadd.f32 %v2795_v31, %v2767_v32  ;;  %v2824_v20 = vpop.f32.mrf.mxu1  ;;  %v15966_v31 = vld [vmem:[#allocation29_spill] sm:$0xff] }
 0x301   :  { %v2825_v42 = vadd.f32 %v2824_v20, %v2796_v9  ;;  %v1309_v9 = vadd.f32 %v15967_v54, %v15966_v31  ;;  %v15968_v20 = vld [vmem:[#allocation31_spill] sm:$0xff]  ;;  %v15982_v31 = vld [vmem:[#allocation104_spill] sm:$0xff] }
 0x302   :  { %v1358_v8 = vadd.f32 %v15968_v20, %v1329_v35 }
 0x303   :  { %v11664_v19 = vpop.f32.mrf.mxu2  ;;  %v11667_v2 = vadd.f32 %v2825_v42, %v1841_v63  ;;  %v1390_v42 = vadd.f32 %v15969_v40, %v1361_v23 }
 0x305   :  { %v3144_v51 = vadd.f32 %v3143_v11, %v11667_v2  ;;  %v3182_v25 = vmul.f32 %v11667_v2, %v11667_v2  ;;  %v1364_v11 = vadd.f32 %v15970_v46, %v1335_v5  ;;  %v15980_v5 = vld [vmem:[#allocation87_spill] sm:$0xff] }
 0x306   :  { %v11672_v27 = vpop.f32.mrf.mxu3 }
 0x307   :  { %v3145_v17 = vrot.slane %v3144_v51, 4  ;;  %v3196_v39 = vadd.f32 %v3195_v52, %v3182_v25  ;;  %v2902_v37 = vpop.f32.mrf.mxu0  ;;  %v15971_v52 = vld [vmem:[#allocation33_spill] sm:$0xff]  ;;  %v15972_v25 = vld [vmem:[#allocation44_spill] sm:$0xff] }
 0x308   :  { %v2931_v4 = vpop.f32.mrf.mxu1 }
 0x309   :  { %v3146_v14 = vadd.f32 %v3145_v17, %v3144_v51  ;;  %v3197_v24 = vrot.slane %v3196_v39, 4  ;;  %v1387_v51 = vadd.f32 %v15971_v52, %v1358_v8  ;;  %v1338_v17 = vadd.f32 %v15972_v25, %v1309_v9  ;;  %v15987_v25 = vld [vmem:[#allocation99_spill] sm:$0xff] }
 0x30a   :  { %v2903_v9 = vadd.f32 %v2902_v37, %v2874_v60 }
 0x30b   :  { %v3147_v29 = vrot.slane %v3146_v14, 2  ;;  %v3198_v3 = vadd.f32 %v3197_v24, %v3196_v39  ;;  %v15973_v39 = vld [vmem:[#allocation41_spill] sm:$0xff]  ;;  %v15974_v24 = vld [vmem:[#allocation90_spill] sm:$0xff]  ;;  %v1861_v44 = vadd.f32 %v15975_v16, %v1387_v51  ;;  %v1367_v57 = vadd.f32 %v15977_v49, %v1338_v17 }
 0x30c   :  { %v11678_v12 = vpop.f32.mrf.mxu2  ;;  %v1864_v45 = vadd.f32 %v15974_v24, %v1390_v42  ;;  %v15986_v42 = vld [vmem:[#allocation105_spill] sm:$0xff]  ;;  %v2932_v46 = vadd.f32 %v2931_v4, %v2903_v9  ;;  %v15989_v24 = vld [vmem:[#allocation106_spill] sm:$0xff] }
 0x30d   :  { %v3148_v59 = vadd.f32 %v3147_v29, %v3146_v14  ;;  %v3199_v48 = vrot.slane %v3198_v3, 2  ;;  %v1393_v14 = vadd.f32 %v15973_v39, %v1364_v11  ;;  %v15988_v39 = vld [vmem:[#allocation101_spill] sm:$0xff] }
 0x30e   :  { %v1893_v15 = vadd.f32 %v15978_v56, %v1864_v45  ;;  %v15990_v16 = vld [vmem:[#allocation109_spill] sm:$0xff] }
 0x30f   :  { %v11685_v28 = vpop.f32.mrf.mxu3  ;;  %v3149_v41 = vrot.slane %v3148_v59, 1  ;;  %v3200_v38 = vadd.f32 %v3199_v48, %v3198_v3  ;;  %v1867_v29 = vadd.f32 %v15976_v18, %v1393_v14  ;;  %v2877_v3 = vadd.f32 %v11620_v47, %v11610_v13  ;;  %v15979_v48 = vld [vmem:[#allocation45_spill] sm:$0xff]  ;;  %v15981_v13 = vld [vmem:[#allocation95_spill] sm:$0xff]  ;;  %v15991_v18 = vld [vmem:[#allocation112_spill] sm:$0xff] }
 0x310   :  { %v2934_v63 = vpop.f32.mrf.mxu1  ;;  %v1396_v22 = vadd.f32 %v15979_v48, %v1367_v57  ;;  %v1922_v54 = vadd.f32 %v15982_v31, %v1893_v15  ;;  %v15993_v57 = vld [vmem:[#allocation110_spill] sm:$0xff] }
 0x311   :  { %v2905_v32 = vpop.f32.mrf.mxu0  ;;  %v11691_v34 = vadd.f32 %v3149_v41, %v3148_v59  ;;  %v3201_v21 = vrot.slane %v3200_v38, 1  ;;  %v1890_v41 = vadd.f32 %v15980_v5, %v1861_v44  ;;  %v1896_v47 = vadd.f32 %v15981_v13, %v1867_v29 }
 0x312   :  { %v2906_v35 = vadd.f32 %v2905_v32, %v2877_v3  ;;  %v1870_v8 = vadd.f32 %v15983_v6, %v1396_v22  ;;  %v15985_v32 = vld [vmem:[#allocation108_spill] sm:$0xff]  ;;  %v1951_v37 = vadd.f32 %v15986_v42, %v1922_v54  ;;  %v2883_v3 = vadd.f32 %v11672_v27, %v11664_v19  ;;  %v15994_v22 = vld [vmem:[#allocation113_spill] sm:$0xff] }
 0x313   :  { %3267 = vrot.lane.b32.xlu1 %v11691_v34, %s7832_s30  ;;  %3259 = vrot.lane.b32.xlu2 %v11691_v34, %s7834_s1  ;;  %v11719_v23 = vadd.f32 %v3201_v21, %v3200_v38  ;;  %v1919_v30 = vadd.f32 %v15984_v55, %v1890_v41  ;;  %v1925_v38 = vadd.f32 %v15985_v32, %v1896_v47  ;;  %v15995_v41 = vld [vmem:[#allocation114_spill] sm:$0xff]  ;;  %v15999_v42 = vld [vmem:[#allocation48_spill] sm:$0xff] }
 0x314   :  { %3250 = vrot.lane.b32.xlu0 %v11691_v34, %s7835_s26  ;;  %v2935_v40 = vadd.f32 %v2934_v63, %v2906_v35  ;;  %v1899_v17 = vadd.f32 %v15987_v25, %v1870_v8  ;;  %v1980_v45 = vadd.f32 %v15989_v24, %v1951_v37  ;;  %v2961_v21 = vadd.f32 %v11678_v12, %v2932_v46  ;;  %v15996_v55 = vld [vmem:[#allocation38_spill] sm:$0xff] }
 0x315   :  { %v2963_v1 = vpop.f32.mrf.mxu2  ;;  %v1948_v14 = vadd.f32 %v15988_v39, %v1919_v30  ;;  %v1954_v44 = vadd.f32 %v15990_v16, %v1925_v38  ;;  %v15997_v30 = vld [vmem:[#allocation52_spill] sm:$0xff]  ;;  %v16000_v25 = vld [vmem:[#allocation42_spill] sm:$0xff] }
 0x316   :  { %v2964_v11 = vadd.f32 %v2963_v1, %v2935_v40  ;;  %v1928_v29 = vadd.f32 %v15991_v18, %v1899_v17  ;;  %v15992_v1 = vld [vmem:[#allocation102_spill] sm:$0xff]  ;;  %v1448_v32 = vadd.f32 %v15997_v30, %v15996_v55  ;;  %v16001_v17 = vld [vmem:[#allocation56_spill] sm:$0xff] }
 0x317   :  { %v1977_v49 = vadd.f32 %v15992_v1, %v1948_v14  ;;  %v1983_v56 = vadd.f32 %v15993_v57, %v1954_v44  ;;  %v15998_v40 = vld [vmem:[#allocation34_spill] sm:$0xff]  ;;  %v1451_v39 = vadd.f32 %v16001_v17, %v16000_v25  ;;  %v16003_v44 = vld [vmem:[#allocation47_spill] sm:$0xff]  ;;  %v16012_v30 = vld [vmem:[#allocation60_spill] sm:$0xff] }
 0x318   :  { %v11715_v59 = vpop.f32.mrf.mxu3  ;;  %v11745_v15 = vadd.f32 %v2964_v11, %v1980_v45  ;;  %v1957_v5 = vadd.f32 %v15994_v22, %v1928_v29  ;;  %v1445_v37 = vadd.f32 %v15999_v42, %v15998_v40  ;;  %v16002_v45 = vld [vmem:[#allocation51_spill] sm:$0xff]  ;;  %v16013_v42 = vld [vmem:[#allocation58_spill] sm:$0xff]  ;;  %v16015_v25 = vld [vmem:[#allocation61_spill] sm:$0xff] }
 0x319   :  { %v2908_v0 = vpop.f32.mrf.mxu0  ;;  %v11747_v48 = vadd.f32 %v2961_v21, %v1977_v49  ;;  %v1477_v16 = vadd.f32 %v16002_v45, %v1448_v32  ;;  %v16005_v49 = vld [vmem:[#allocation55_spill] sm:$0xff] }
 0x31a   :  { %v2909_v20 = vadd.f32 %v2908_v0, %v2880_v7  ;;  %v2937_v50 = vpop.f32.mrf.mxu1  ;;  %v3175_v19 = vmul.f32 %v11745_v15, %v11745_v15  ;;  %v1986_v0 = vadd.f32 %v15995_v41, %v1957_v5  ;;  %v1474_v21 = vadd.f32 %v16003_v44, %v1445_v37  ;;  %v16009_v41 = vld [vmem:[#allocation57_spill] sm:$0xff]  ;;  %v16017_v44 = vld [vmem:[#allocation111_spill] sm:$0xff] }
 0x31b   :  { %3255 = vrot.lane.b32.xlu1 %v11719_v23, %s7835_s26  ;;  %3271 = vrot.lane.b32.xlu2 %v11719_v23, %s7832_s30  ;;  %v3171_v47 = vmul.f32 %v11747_v48, %v11747_v48  ;;  %v3151_v31 = vadd.f32 %v11745_v15, %v11747_v48  ;;  %v1480_v57 = vadd.f32 %v16005_v49, %v1451_v39  ;;  %v16016_v39 = vld [vmem:[#allocation103_spill] sm:$0xff] }
 0x31c   :  { %3263 = vrot.lane.b32.xlu0 %v11719_v23, %s7834_s1  ;;  %v2938_v52 = vadd.f32 %v2937_v50, %v2909_v20 }
 0x31d   :  { %v2966_v51 = vpop.f32.mrf.mxu2  ;;  %v3203_v20 = vadd.f32 %v3175_v19, %v3171_v47 }
 0x31e   :  { %v2967_v63 = vadd.f32 %v2966_v51, %v2938_v52 }
 0x320   :  { %v11749_v12 = vadd.f32 %v2967_v63, %v1983_v56  ;;  %v16006_v56 = vld [vmem:[#allocation49_spill] sm:$0xff] }
 0x322   :  { %v11741_v4 = vpop.f32.mrf.mxu3  ;;  %v2911_v60 = vpop.f32.mrf.mxu0  ;;  %v3179_v54 = vmul.f32 %v11749_v12, %v11749_v12  ;;  %v3152_v50 = vadd.f32 %v3151_v31, %v11749_v12 }
 0x323   :  { %v2912_v7 = vadd.f32 %v2911_v60, %v2883_v3  ;;  %v2940_v35 = vpop.f32.mrf.mxu1  ;;  %v16004_v3 = vld [vmem:[#allocation53_spill] sm:$0xff]  ;;  %v1503_v60 = vadd.f32 %v16006_v56, %v1474_v21 }
 0x324   :  { %v3204_v46 = vadd.f32 %v3203_v20, %v3179_v54  ;;  %v1506_v1 = vadd.f32 %v16004_v3, %v1477_v16 }
 0x325   :  { %v2941_v27 = vadd.f32 %v2940_v35, %v2912_v7  ;;  %v2969_v13 = vpop.f32.mrf.mxu2  ;;  %v16007_v7 = vld [vmem:[#allocation46_spill] sm:$0xff]  ;;  %v16008_v35 = vld [vmem:[#allocation59_spill] sm:$0xff] }
 0x326   :  { %v1454_v22 = vadd.f32 %v16008_v35, %v16007_v7  ;;  %v16021_v35 = vld [vmem:[#allocation62_spill] sm:$0xff] }
 0x327   :  { %v2970_v9 = vadd.f32 %v2969_v13, %v2941_v27 }
 0x328   :  { %v1483_v32 = vadd.f32 %v16012_v30, %v1454_v22 }
 0x329   :  { %v11762_v6 = vadd.f32 %v2970_v9, %v1986_v0  ;;  %v1509_v0 = vadd.f32 %v16009_v41, %v1480_v57  ;;  %v16010_v9 = vld [vmem:[#allocation54_spill] sm:$0xff] }
 0x32a   :  { %v11764_v8 = vpop.f32.mrf.mxu3  ;;  %v1535_v20 = vadd.f32 %v16010_v9, %v1506_v1  ;;  %v1512_v17 = vadd.f32 %v16015_v25, %v1483_v32  ;;  %v16019_v1 = vld [vmem:[#allocation116_spill] sm:$0xff]  ;;  %v16024_v9 = vld [vmem:[#allocation117_spill] sm:$0xff]  ;;  %v16029_v25 = vld [vmem:[#allocation126_spill] sm:$0xff] }
 0x32b   :  { %v3153_v11 = vadd.f32 %v3152_v50, %v11762_v6  ;;  %v3183_v52 = vmul.f32 %v11762_v6, %v11762_v6  ;;  %v16011_v50 = vld [vmem:[#allocation50_spill] sm:$0xff]  ;;  %v1538_v37 = vadd.f32 %v16013_v42, %v1509_v0  ;;  %v16027_v42 = vld [vmem:[#allocation128_spill] sm:$0xff] }
 0x32c   :  { %v1532_v55 = vadd.f32 %v16011_v50, %v1503_v60  ;;  %v1541_v22 = vadd.f32 %v16021_v35, %v1512_v17  ;;  %v16025_v50 = vld [vmem:[#allocation122_spill] sm:$0xff] }
 0x32d   :  { %v3154_v14 = vrot.slane %v3153_v11, 4  ;;  %v3205_v24 = vadd.f32 %v3204_v46, %v3183_v52  ;;  %v16014_v46 = vld [vmem:[#allocation107_spill] sm:$0xff]  ;;  %v2012_v21 = vadd.f32 %v16017_v44, %v1538_v37 }
 0x32f   :  { %v3155_v63 = vadd.f32 %v3154_v14, %v3153_v11  ;;  %v3206_v18 = vrot.slane %v3205_v24, 4  ;;  %v2009_v11 = vadd.f32 %v16014_v46, %v1535_v20  ;;  %v2006_v14 = vadd.f32 %v16016_v39, %v1532_v55  ;;  %v16026_v55 = vld [vmem:[#allocation125_spill] sm:$0xff] }
 0x331   :  { %v3156_v19 = vrot.slane %v3155_v63, 2  ;;  %v3207_v27 = vadd.f32 %v3206_v18, %v3205_v24  ;;  %v2035_v49 = vadd.f32 %v16019_v1, %v2006_v14  ;;  %v16032_v1 = vld [vmem:[#allocation119_spill] sm:$0xff] }
 0x333   :  { %v3157_v31 = vadd.f32 %v3156_v19, %v3155_v63  ;;  %v3208_v54 = vrot.slane %v3207_v27, 2  ;;  %v16018_v63 = vld [vmem:[#allocation120_spill] sm:$0xff]  ;;  %v2064_v20 = vadd.f32 %v16024_v9, %v2035_v49 }
 0x334   :  { %v2038_v18 = vadd.f32 %v16018_v63, %v2009_v11  ;;  %v16028_v11 = vld [vmem:[#allocation118_spill] sm:$0xff] }
 0x335   :  { %v3158_v40 = vrot.slane %v3157_v31, 1  ;;  %v3209_v16 = vadd.f32 %v3208_v54, %v3207_v27  ;;  %v16022_v27 = vld [vmem:[#allocation121_spill] sm:$0xff] }
 0x336   :  { %v2067_v41 = vadd.f32 %v16022_v27, %v2038_v18 }
 0x337   :  { %v11791_v45 = vadd.f32 %v3158_v40, %v3157_v31  ;;  %v3210_v19 = vrot.slane %v3209_v16, 1  ;;  %v16023_v31 = vld [vmem:[#allocation115_spill] sm:$0xff] }
 0x338   :  { %v2015_v54 = vadd.f32 %v16023_v31, %v1541_v22 }
 0x339   :  { %v3018_v38 = vpop.f32.mrf.mxu0  ;;  %3295 = vrot.lane.b32.xlu1 %v11791_v45, %s7832_s30  ;;  %3287 = vrot.lane.b32.xlu2 %v11791_v45, %s7834_s1 }
 0x33a   :  { %v3047_v51 = vpop.f32.mrf.mxu1  ;;  %v3019_v3 = vadd.f32 %v3018_v38, %v11685_v28  ;;  %3278 = vrot.lane.b32.xlu0 %v11791_v45, %s7835_s26  ;;  %v2044_v37 = vadd.f32 %v16027_v42, %v2015_v54 }
 0x33b   :  { %v3105_v5 = vpop.f32.mrf.mxu3 }
 0x33c   :  { %v3048_v0 = vadd.f32 %v3047_v51, %v3019_v3 }
 0x33e   :  { %v3076_v29 = vpop.f32.mrf.mxu2 }
 0x33f   :  { %v3077_v32 = vadd.f32 %v3076_v29, %v3048_v0  ;;  %v16030_v29 = vld [vmem:[#allocation123_spill] sm:$0xff] }
 0x341   :  { %v3021_v13 = vpop.f32.mrf.mxu0  ;;  %v3106_v44 = vadd.f32 %v3105_v5, %v3077_v32 }
 0x342   :  { %v3050_v47 = vpop.f32.mrf.mxu1  ;;  %v3022_v52 = vadd.f32 %v3021_v13, %v11715_v59  ;;  %v16020_v59 = vld [vmem:[#allocation124_spill] sm:$0xff] }
 0x343   :  { %v3108_v57 = vpop.f32.mrf.mxu3  ;;  %v2041_v56 = vadd.f32 %v16020_v59, %v2012_v21 }
 0x344   :  { %v3051_v60 = vadd.f32 %v3050_v47, %v3022_v52  ;;  %v2096_v47 = vadd.f32 %v16025_v50, %v2067_v41  ;;  %v2093_v52 = vadd.f32 %v16028_v11, %v2064_v20 }
 0x345   :  { %v2070_v30 = vadd.f32 %v16026_v55, %v2041_v56 }
 0x346   :  { %v3079_v24 = vpop.f32.mrf.mxu2  ;;  %v2122_v49 = vadd.f32 %v16032_v1, %v2093_v52 }
 0x347   :  { %v3080_v13 = vadd.f32 %v3079_v24, %v3051_v60  ;;  %v2099_v51 = vadd.f32 %v16029_v25, %v2070_v30  ;;  %v2125_v24 = vadd.f32 %v16030_v29, %v2096_v47  ;;  %v16034_v60 = vld [vmem:[#allocation130_spill] sm:$0xff] }
 0x348   :  { %v11830_v22 = vadd.f32 %v3106_v44, %v2122_v49 }
 0x349   :  { %v3024_v7 = vpop.f32.mrf.mxu0  ;;  %v3109_v17 = vadd.f32 %v3108_v57, %v3080_v13  ;;  %v16033_v57 = vld [vmem:[#allocation127_spill] sm:$0xff] }
 0x34a   :  { %v3025_v28 = vadd.f32 %v3024_v7, %v11741_v4  ;;  %v3053_v38 = vpop.f32.mrf.mxu1  ;;  %v11812_v4 = vadd.f32 %v3210_v19, %v3209_v16  ;;  %v16031_v16 = vld [vmem:[#allocation129_spill] sm:$0xff]  ;;  %v2128_v59 = vadd.f32 %v16033_v57, %v2099_v51  ;;  %v3172_v13 = vmul.f32 %v11830_v22, %v11830_v22 }
 0x34b   :  { %v3111_v14 = vpop.f32.mrf.mxu3  ;;  %v2073_v18 = vadd.f32 %v16031_v16, %v2044_v37  ;;  %v11827_v56 = vadd.f32 %v3109_v17, %v2125_v24 }
 0x34c   :  { %v3054_v40 = vadd.f32 %v3053_v38, %v3025_v28  ;;  %3283 = vrot.lane.b32.xlu1 %v11812_v4, %s7835_s26  ;;  %3299 = vrot.lane.b32.xlu2 %v11812_v4, %s7832_s30 }
 0x34d   :  { %3291 = vrot.lane.b32.xlu0 %v11812_v4, %s7834_s1  ;;  %v2102_v7 = vadd.f32 %v16034_v60, %v2073_v18  ;;  %v3176_v19 = vmul.f32 %v11827_v56, %v11827_v56  ;;  %v3160_v31 = vadd.f32 %v11827_v56, %v11830_v22 }
 0x34e   :  { %v3082_v46 = vpop.f32.mrf.mxu2 }
 0x34f   :  { %v3083_v39 = vadd.f32 %v3082_v46, %v3054_v40  ;;  %v3212_v20 = vadd.f32 %v3176_v19, %v3172_v13 }
 0x351   :  { %v3112_v21 = vadd.f32 %v3111_v14, %v3083_v39  ;;  %v3027_v63 = vpop.f32.mrf.mxu0 }
 0x352   :  { %v3028_v3 = vadd.f32 %v3027_v63, %v11764_v8  ;;  %v3056_v35 = vpop.f32.mrf.mxu1  ;;  %v16035_v8 = vld [vmem:[#allocation131_spill] sm:$0xff] }
 0x353   :  { %v11832_v5 = vadd.f32 %v3112_v21, %v2128_v59  ;;  %v2131_v41 = vadd.f32 %v16035_v8, %v2102_v7  ;;  %v3114_v0 = vpop.f32.mrf.mxu3  ;;  %v3232_v21 = vpop.permute.xlu2 %3231 }
 0x354   :  { %v3057_v28 = vadd.f32 %v3056_v35, %v3028_v3 }
 0x355   :  { %v3180_v54 = vmul.f32 %v11832_v5, %v11832_v5  ;;  %v3161_v50 = vadd.f32 %v3160_v31, %v11832_v5 }
 0x356   :  { %v3085_v38 = vpop.f32.mrf.mxu2 }
 0x357   :  { %v3086_v27 = vadd.f32 %v3085_v38, %v3057_v28  ;;  %v3213_v55 = vadd.f32 %v3212_v20, %v3180_v54 }
 0x359   :  { %v3115_v9 = vadd.f32 %v3114_v0, %v3086_v27 }
 0x35b   :  { %v11844_v47 = vadd.f32 %v3115_v9, %v2131_v41  ;;  %v3244_v18 = vpop.permute.xlu2 %3243 }
 0x35d   :  { %v3162_v30 = vadd.f32 %v3161_v50, %v11844_v47  ;;  %v3184_v32 = vmul.f32 %v11844_v47, %v11844_v47 }
 0x35f   :  { %v3163_v40 = vrot.slane %v3162_v30, 4  ;;  %v3214_v42 = vadd.f32 %v3213_v55, %v3184_v32 }
 0x361   :  { %v3164_v37 = vadd.f32 %v3163_v40, %v3162_v30  ;;  %v3215_v46 = vrot.slane %v3214_v42, 4 }
 0x362   :  { %v3240_v44 = vpop.permute.xlu1 %3239 }
 0x363   :  { %v3165_v11 = vrot.slane %v3164_v37, 2  ;;  %v3216_v52 = vadd.f32 %v3215_v46, %v3214_v42  ;;  %v3223_v63 = vpop.permute.xlu0 %3222 }
 0x364   :  { %v3225_v49 = vadd.f32 %v3223_v63, %v11585_v53 }
 0x365   :  { %v3166_v25 = vadd.f32 %v3165_v11, %v3164_v37  ;;  %v3217_v51 = vrot.slane %v3216_v52, 2 }
 0x366   :  { %v3234_v7 = vadd.f32 %v3232_v21, %v3225_v49 }
 0x367   :  { %v3167_v17 = vrot.slane %v3166_v25, 1  ;;  %v3218_v39 = vadd.f32 %v3217_v51, %v3216_v52 }
 0x368   :  { %v3242_v28 = vadd.f32 %v3240_v44, %v3234_v7 }
 0x369   :  { %v3168_v14 = vadd.f32 %v3167_v17, %v3166_v25  ;;  %v3219_v29 = vrot.slane %v3218_v39, 1 }
 0x36a   :  { %v3228_v16 = vpop.permute.xlu1 %3227  ;;  %v3247_v41 = vadd.f32 %v3242_v28, %v11691_v34 }
 0x36b   :  { %3315 = vrot.lane.b32.xlu2 %v3168_v14, %s7834_s1  ;;  %3306 = vrot.lane.b32.xlu0 %v3168_v14, %s7835_s26  ;;  %v3220_v24 = vadd.f32 %v3219_v29, %v3218_v39  ;;  %v3236_v3 = vpop.permute.xlu0 %3235  ;;  %v3230_v60 = vadd.f32 %v3228_v16, %v11615_v61 }
 0x36d   :  { %3311 = vrot.lane.b32.xlu1 %v3220_v24, %s7835_s26  ;;  %v3260_v57 = vpop.permute.xlu2 %3259  ;;  %v3238_v35 = vadd.f32 %v3236_v3, %v3230_v60 }
 0x36f   :  { %v3246_v19 = vadd.f32 %v3244_v18, %v3238_v35 }
 0x371   :  { %v3248_v13 = vadd.f32 %v3246_v19, %v11719_v23 }
 0x373   :  { %3327 = vrot.lane.b32.xlu2 %v3220_v24, %s7832_s30  ;;  %3319 = vrot.lane.b32.xlu0 %v3220_v24, %s7834_s1 }
 0x375   :  { %3323 = vrot.lane.b32.xlu1 %v3168_v14, %s7832_s30  ;;  %v3272_v27 = vpop.permute.xlu2 %3271 }
 0x385   :  { %v3268_v1 = vpop.permute.xlu1 %3267 }
 0x386   :  { %v3251_v59 = vpop.permute.xlu0 %3250 }
 0x387   :  { %v3253_v0 = vadd.f32 %v3251_v59, %v3247_v41 }
 0x389   :  { %v3262_v9 = vadd.f32 %v3260_v57, %v3253_v0 }
 0x38b   :  { %v3270_v55 = vadd.f32 %v3268_v1, %v3262_v9 }
 0x38d   :  { %v3256_v38 = vpop.permute.xlu1 %3255  ;;  %v3275_v30 = vadd.f32 %v3270_v55, %v11791_v45 }
 0x38e   :  { %v3264_v8 = vpop.permute.xlu0 %3263  ;;  %v3258_v31 = vadd.f32 %v3256_v38, %v3248_v13 }
 0x390   :  { %v3266_v50 = vadd.f32 %v3264_v8, %v3258_v31 }
 0x392   :  { %v3274_v61 = vadd.f32 %v3272_v27, %v3266_v50 }
 0x393   :  { %v3288_v53 = vpop.permute.xlu2 %3287 }
 0x394   :  { %v3276_v42 = vadd.f32 %v3274_v61, %v11812_v4 }
 0x3a6   :  { %v3300_v37 = vpop.permute.xlu2 %3299 }
 0x3ab   :  { %v3296_v54 = vpop.permute.xlu1 %3295 }
 0x3ac   :  { %v3279_v20 = vpop.permute.xlu0 %3278 }
 0x3ad   :  { %v3281_v40 = vadd.f32 %v3279_v20, %v3275_v30 }
 0x3af   :  { %v3290_v11 = vadd.f32 %v3288_v53, %v3281_v40 }
 0x3b1   :  { %v3298_v23 = vadd.f32 %v3296_v54, %v3290_v11  ;;  %v3348_v54 = vld [vmem:[%s15763_s4] sm:$0x1] }
 0x3b3   :  { %v3303_v29 = vadd.f32 %v3298_v23, %v3168_v14 }
 0x3be   :  { %v3284_v32 = vpop.permute.xlu1 %3283 }
 0x3bf   :  { %v3292_v46 = vpop.permute.xlu0 %3291  ;;  %v3286_v34 = vadd.f32 %v3284_v32, %v3276_v42 }
 0x3c1   :  { %v3294_v52 = vadd.f32 %v3292_v46, %v3286_v34 }
 0x3c3   :  { %v3302_v17 = vadd.f32 %v3300_v37, %v3294_v52 }
 0x3c5   :  { %v3316_v25 = vpop.permute.xlu2 %3315  ;;  %v3304_v21 = vadd.f32 %v3302_v17, %v3220_v24  ;;  %v3335_v24 = vld [vmem:[%s15762_s3] sm:$0x1] }
 0x3cd   :  { %v3328_v3 = vpop.permute.xlu2 %3327 }
 0x3dd   :  { %v3307_v51 = vpop.permute.xlu0 %3306 }
 0x3de   :  { %v3309_v44 = vadd.f32 %v3307_v51, %v3303_v29 }
 0x3df   :  { %v3312_v39 = vpop.permute.xlu1 %3311 }
 0x3e0   :  { %v3314_v63 = vadd.f32 %v3312_v39, %v3304_v21  ;;  %v3318_v18 = vadd.f32 %v3316_v25, %v3309_v44 }
 0x3e5   :  { %v3320_v16 = vpop.permute.xlu0 %3319 }
 0x3e6   :  { %v3322_v45 = vadd.f32 %v3320_v16, %v3314_v63 }
 0x3e7   :  { %v3324_v1 = vpop.permute.xlu1 %3323 }
 0x3e8   :  { %v3330_v4 = vadd.f32 %v3328_v3, %v3322_v45  ;;  %v3326_v49 = vadd.f32 %v3324_v1, %v3318_v18 }
 0x3ea   :  { %v3331_v57 = vmul.f32 0.001953125, %v3326_v49  ;;  %v3332_v59 = vmul.f32 0.001953125, %v3330_v4 }
 0x3ec   :  { %v3333_v60 = vmul.f32 %v3331_v57, %v3331_v57 }
 0x3ee   :  { %v3334_v7 = vsub.f32 %v3332_v59, %v3333_v60 }
 0x3f0   :  { %v3336_v35 = vadd.f32 1e-05, %v3334_v7 }
 0x3f2   :  { %7790 = vrsqrt.f32 %v3336_v35  ;;  %vm3343_vm12 = vweird.f32 %v3336_v35 }
 0x3f8   :  { %v7791_v28 = vpop.eup %7790 }
 0x3f9   :  { %v3338_v38 = vmul.f32 %v7791_v28, %v3336_v35  ;;  %vm3344_vm11 = vweird.f32 %v7791_v28 }
 0x3fa   :  { %vm3345_vm13 = vmor %vm3343_vm12, %vm3344_vm11 }
 0x3fb   :  { %v3339_v19 = vmul.f32 %v7791_v28, %v3338_v38 }
 0x3fd   :  { %v3340_v14 = vmul.f32 0.5, %v3339_v19 }
 0x3ff   :  { %v3341_v27 = vsub.f32 1.5, %v3340_v14 }
 0x401   :  { %v3342_v8 = vmul.f32 %v7791_v28, %v3341_v27 }
 0x403   :  { %v3346_v41 = vsel %vm3345_vm13, %v7791_v28, %v3342_v8 }
 0x404   :  { %v3347_v0 = vmul.f32 %v3346_v41, %v3335_v24 }
 0x406   :  { %v3349_v13 = vmul.f32 %v3347_v0, %v3331_v57  ;;  %v3352_v31 = vperm.slane %v3347_v0, 0 }
 0x408   :  { %3359 = vrot.lane.b32.xlu2 %v3352_v31, %s7835_s26  ;;  %3356 = vrot.lane.b32.xlu1 %v3352_v31, %s7834_s1  ;;  %v3350_v9 = vsub.f32 %v3348_v54, %v3349_v13 }
 0x409   :  { %3353 = vrot.lane.b32.xlu0 %v3352_v31, %s7832_s30 }
 0x40a   :  { %v3367_v53 = vperm.slane %v3350_v9, 0 }
 0x410   :  { %3374 = vrot.lane.b32.xlu2 %v3367_v53, %s7835_s26  ;;  %3371 = vrot.lane.b32.xlu1 %v3367_v53, %s7834_s1 }
 0x411   :  { %3368 = vrot.lane.b32.xlu0 %v3367_v53, %s7832_s30 }
 0x462   :  { %v3360_v50 = vpop.permute.xlu2 %3359 }
 0x46a   :  { %v3375_v34 = vpop.permute.xlu2 %3374 }
 0x47a   :  { %v3357_v20 = vpop.permute.xlu1 %3356 }
 0x47b   :  { %v3354_v55 = vpop.permute.xlu0 %3353 }
 0x47c   :  { %v3362_v61 = vsel %vm157_vm3, %v3347_v0, %v3354_v55 }
 0x47d   :  { %v3363_v30 = vsel %vm24_vm1, %v3362_v61, %v3357_v20 }
 0x47e   :  { %v3365_v32 = vsel %vm3364_vm14, %v3363_v30, %v3360_v50 }
 0x47f   :  { %v11875_v42 = vperm.slane %v3365_v32, 0 }
 0x481   :  { %v3386_v25 = vmul.f32 %v11875_v42, %v11645_v10  ;;  %v3383_v51 = vmul.f32 %v11875_v42, %v11747_v48  ;;  %v3382_v17 = vmul.f32 %v11875_v42, %v11651_v26  ;;  %v3385_v21 = vmul.f32 %v11875_v42, %v11534_v58 }
 0x482   :  { %v3372_v40 = vpop.permute.xlu1 %3371  ;;  %v3384_v10 = vmul.f32 %v11875_v42, %v11830_v22  ;;  %v3381_v26 = vmul.f32 %v11875_v42, %v11536_v33  ;;  %v3388_v59 = vmul.f32 %v11875_v42, %v11827_v56  ;;  %v3387_v33 = vmul.f32 %v11875_v42, %v11745_v15 }
 0x483   :  { %v3369_v37 = vpop.permute.xlu0 %3368  ;;  %v3391_v56 = vmul.f32 %v11875_v42, %v11749_v12  ;;  %v3390_v15 = vmul.f32 %v11875_v42, %v11653_v43  ;;  %v3394_v12 = vmul.f32 %v11875_v42, %v11667_v2  ;;  %v3392_v50 = vmul.f32 %v11875_v42, %v11832_v5 }
 0x484   :  { %v3377_v46 = vsel %vm157_vm3, %v3350_v9, %v3369_v37  ;;  %v3396_v2 = vmul.f32 %v11875_v42, %v11844_v47  ;;  %v3389_v32 = vmul.f32 %v11875_v42, %v11538_v36  ;;  %v3393_v47 = vmul.f32 %v11875_v42, %v11556_v62 }
 0x485   :  { %v3378_v11 = vsel %vm24_vm1, %v3377_v46, %v3372_v40  ;;  %v3395_v36 = vmul.f32 %v11875_v42, %v11762_v6 }
 0x486   :  { %v3379_v52 = vsel %vm3364_vm14, %v3378_v11, %v3375_v34 }
 0x487   :  { %v11879_v23 = vperm.slane %v3379_v52, 0 }
 0x489   :  { %v3403_v39 = vadd.f32 %v11879_v23, %v3386_v25  ;;  %v3400_v29 = vadd.f32 %v11879_v23, %v3383_v51  ;;  %v3399_v44 = vadd.f32 %v11879_v23, %v3382_v17  ;;  %v3402_v48 = vadd.f32 %v11879_v23, %v3385_v21 }
 0x48a   :  { %v3401_v4 = vadd.f32 %v11879_v23, %v3384_v10  ;;  %v3398_v49 = vadd.f32 %v11879_v23, %v3381_v26  ;;  %v3405_v35 = vadd.f32 %v11879_v23, %v3388_v59  ;;  %v3404_v38 = vadd.f32 %v11879_v23, %v3387_v33  ;;  %v7350_v10 = vld [vmem:[%s15764_s2 + $0xee0] sm:$0xff] }
 0x48b   :  { %v3419_v63 = vmax.f32 %v3403_v39, 0.0  ;;  %v3416_v16 = vmax.f32 %v3400_v29, 0.0  ;;  %v3415_v45 = vmax.f32 %v3399_v44, 0.0  ;;  %v3418_v58 = vmax.f32 %v3402_v48, 0.0  ;;  %v7286_v48 = vld [vmem:[%s15764_s2 + $0xce0] sm:$0xff]  ;;  %4391 = vmatpush.msrb.mxu2 %v7350_v10 }
 0x48c   :  { %v3417_v22 = vmax.f32 %v3401_v4, 0.0  ;;  %v3414_v57 = vmax.f32 %v3398_v49, 0.0  ;;  %v3421_v19 = vmax.f32 %v3405_v35, 0.0  ;;  %v3420_v14 = vmax.f32 %v3404_v38, 0.0  ;;  %v7414_v26 = vld [vmem:[%s15764_s2 + $0x10e0] sm:$0xff]  ;;  %4362 = vmatpush.msrb.mxu1 %v7286_v48 }
 0x48d   :  { %v3452_v18 = vrot.slane %v3419_v63, 7  ;;  %v3448_v3 = vrot.slane %v3416_v16, 7  ;;  %v3447_v1 = vrot.slane %v3415_v45, 7  ;;  %v3450_v60 = vrot.slane %v3418_v58, 7  ;;  %v7222_v45 = vld [vmem:[%s15764_s2 + $0xae0] sm:$0xff]  ;;  %4420 = vmatpush.msrb.mxu3 %v7414_v26 }
 0x48e   :  { %v3449_v7 = vrot.slane %v3417_v22, 7  ;;  %v3446_v28 = vrot.slane %v3414_v57, 7  ;;  %v3456_v27 = vrot.slane %v3421_v19, 7  ;;  %v3408_v24 = vadd.f32 %v11879_v23, %v3391_v56  ;;  %4333 = vmatpush.msrb.mxu0 %v7222_v45  ;;  %v7410_v4 = vld [vmem:[%s15764_s2 + $0x10c0] sm:$0xff] }
 0x48f   :  { %3488 = vrot.lane.b32.xlu2 %v3452_v18, %s7832_s30  ;;  %3474 = vrot.lane.b32.xlu1 %v3448_v3, %s7832_s30  ;;  %v3453_v8 = vsel %vm84_vm0, %v3447_v1, %v3452_v18  ;;  %v3454_v41 = vrot.slane %v3420_v14, 7  ;;  %v3407_v0 = vadd.f32 %v11879_v23, %v3390_v15  ;;  %v3411_v43 = vadd.f32 %v11879_v23, %v3394_v12  ;;  %v7218_v18 = vld [vmem:[%s15764_s2 + $0xac0] sm:$0xff] }
 0x490   :  { %3472 = vrot.lane.b32.xlu0 %v3447_v1, %s7832_s30  ;;  %v3424_v13 = vmax.f32 %v3408_v24, 0.0  ;;  %v3457_v9 = vsel %vm84_vm0, %v3449_v7, %v3456_v27  ;;  %v3409_v61 = vadd.f32 %v11879_v23, %v3392_v50  ;;  %v3413_v30 = vadd.f32 %v11879_v23, %v3396_v2  ;;  %v7282_v1 = vld [vmem:[%s15764_s2 + $0xcc0] sm:$0xff]  ;;  %4334 = vmatpush.msrb.mxu0 %v7218_v18 }
 0x491   :  { %v3423_v31 = vmax.f32 %v3407_v0, 0.0  ;;  %v3427_v20 = vmax.f32 %v3411_v43, 0.0  ;;  %v3451_v40 = vsel %vm84_vm0, %v3446_v28, %v3450_v60  ;;  %v3406_v11 = vadd.f32 %v11879_v23, %v3389_v32  ;;  %4363 = vmatpush.msrb.mxu1 %v7282_v1  ;;  %4421 = vmatpush.msrb.mxu3 %v7410_v4  ;;  %v7342_v22 = vld [vmem:[%s15764_s2 + $0xea0] sm:$0xff] }
 0x492   :  { %v3460_v54 = vrot.slane %v3424_v13, 7  ;;  %v3425_v46 = vmax.f32 %v3409_v61, 0.0  ;;  %v3429_v34 = vmax.f32 %v3413_v30, 0.0  ;;  %v3455_v5 = vsel %vm84_vm0, %v3448_v3, %v3454_v41  ;;  %v7346_v3 = vld [vmem:[%s15764_s2 + $0xec0] sm:$0xff] }
 0x493   :  { %v3459_v53 = vrot.slane %v3423_v31, 7  ;;  %v3464_v55 = vrot.slane %v3427_v20, 7  ;;  %v3422_v51 = vmax.f32 %v3406_v11, 0.0  ;;  %v3410_v17 = vadd.f32 %v11879_v23, %v3393_v47  ;;  %4392 = vmatpush.msrb.mxu2 %v7346_v3  ;;  %v7278_v57 = vld [vmem:[%s15764_s2 + $0xca0] sm:$0xff] }
 0x494   :  { %v3461_v52 = vrot.slane %v3425_v46, 7  ;;  %v3468_v25 = vrot.slane %v3429_v34, 7  ;;  %v3412_v39 = vadd.f32 %v11879_v23, %v3395_v36  ;;  %v7406_v59 = vld [vmem:[%s15764_s2 + $0x10a0] sm:$0xff]  ;;  %4364 = vmatpush.msrb.mxu1 %v7278_v57 }
 0x495   :  { %v3465_v37 = vsel %vm84_vm0, %v3459_v53, %v3464_v55  ;;  %v3458_v44 = vrot.slane %v3422_v51, 7  ;;  %v3426_v21 = vmax.f32 %v3410_v17, 0.0  ;;  %4393 = vmatpush.msrb.mxu2 %v7342_v22  ;;  %v7214_v33 = vld [vmem:[%s15764_s2 + $0xaa0] sm:$0xff]  ;;  %4422 = vmatpush.msrb.mxu3 %v7406_v59 }
 0x496   :  { %v3469_v29 = vsel %vm84_vm0, %v3461_v52, %v3468_v25  ;;  %v3428_v63 = vmax.f32 %v3412_v39, 0.0  ;;  %4335 = vmatpush.msrb.mxu0 %v7214_v33  ;;  %v7274_v35 = vld [vmem:[%s15764_s2 + $0xc80] sm:$0xff]  ;;  %v7223_v33 = vld [vmem:[%s15764_s2 + $0xae8] sm:$0xff] }
 0x497   :  { %3486 = vrot.lane.b32.xlu2 %v3450_v60, %s7832_s30  ;;  %3476 = vrot.lane.b32.xlu1 %v3449_v7, %s7832_s30  ;;  %v3462_v62 = vrot.slane %v3426_v21, 7  ;;  %v7210_v60 = vld [vmem:[%s15764_s2 + $0xa80] sm:$0xff] }
 0x498   :  { %3470 = vrot.lane.b32.xlu0 %v3446_v28, %s7832_s30  ;;  %v3466_v6 = vrot.slane %v3428_v63, 7  ;;  %v7338_v7 = vld [vmem:[%s15764_s2 + $0xe80] sm:$0xff]  ;;  %4365 = vmatpush.msrb.mxu1 %v7274_v35  ;;  %v7287_v35 = vld [vmem:[%s15764_s2 + $0xce8] sm:$0xff] }
 0x499   :  { %v3463_v42 = vsel %vm84_vm0, %v3458_v44, %v3462_v62  ;;  %4394 = vmatpush.msrb.mxu2 %v7338_v7  ;;  %v7402_v28 = vld [vmem:[%s15764_s2 + $0x1080] sm:$0xff]  ;;  %4336 = vmatpush.msrb.mxu0 %v7210_v60 }
 0x49a   :  { %v3467_v16 = vsel %vm84_vm0, %v3460_v54, %v3466_v6  ;;  %v7206_v38 = vld [vmem:[%s15764_s2 + $0xa60] sm:$0xff]  ;;  %4423 = vmatpush.msrb.mxu3 %v7402_v28  ;;  %v7351_v28 = vld [vmem:[%s15764_s2 + $0xee8] sm:$0xff] }
 0x49b   :  { %v7334_v19 = vld [vmem:[%s15764_s2 + $0xe60] sm:$0xff]  ;;  %4337 = vmatpush.msrb.mxu0 %v7206_v38 }
 0x49c   :  { %v7270_v14 = vld [vmem:[%s15764_s2 + $0xc60] sm:$0xff]  ;;  %4395 = vmatpush.msrb.mxu2 %v7334_v19 }
 0x49d   :  { %v7398_v56 = vld [vmem:[%s15764_s2 + $0x1060] sm:$0xff]  ;;  %4366 = vmatpush.msrb.mxu1 %v7270_v14  ;;  %v7283_v14 = vld [vmem:[%s15764_s2 + $0xcc8] sm:$0xff] }
 0x49e   :  { %v7330_v15 = vld [vmem:[%s15764_s2 + $0xe40] sm:$0xff]  ;;  %4424 = vmatpush.msrb.mxu3 %v7398_v56  ;;  %v7219_v56 = vld [vmem:[%s15764_s2 + $0xac8] sm:$0xff] }
 0x49f   :  { %3492 = vrot.lane.b32.xlu1 %v3456_v27, %s7832_s30  ;;  %3480 = vrot.lane.b32.xlu2 %v3453_v8, %s7832_s30  ;;  %v7266_v27 = vld [vmem:[%s15764_s2 + $0xc40] sm:$0xff] }
 0x4a0   :  { %3490 = vrot.lane.b32.xlu0 %v3454_v41, %s7832_s30  ;;  %v7202_v8 = vld [vmem:[%s15764_s2 + $0xa40] sm:$0xff]  ;;  %4396 = vmatpush.msrb.mxu2 %v7330_v15 }
 0x4a1   :  { %v7394_v41 = vld [vmem:[%s15764_s2 + $0x1040] sm:$0xff]  ;;  %4367 = vmatpush.msrb.mxu1 %v7266_v27  ;;  %4338 = vmatpush.msrb.mxu0 %v7202_v8  ;;  %v7347_v8 = vld [vmem:[%s15764_s2 + $0xec8] sm:$0xff] }
 0x4a2   :  { %4425 = vmatpush.msrb.mxu3 %v7394_v41  ;;  %v7326_v0 = vld [vmem:[%s15764_s2 + $0xe20] sm:$0xff]  ;;  %v7215_v41 = vld [vmem:[%s15764_s2 + $0xaa8] sm:$0xff] }
 0x4a3   :  { %v7262_v12 = vld [vmem:[%s15764_s2 + $0xc20] sm:$0xff]  ;;  %4397 = vmatpush.msrb.mxu2 %v7326_v0  ;;  %v7343_v0 = vld [vmem:[%s15764_s2 + $0xea8] sm:$0xff] }
 0x4a4   :  { %v7390_v13 = vld [vmem:[%s15764_s2 + $0x1020] sm:$0xff]  ;;  %4368 = vmatpush.msrb.mxu1 %v7262_v12 }
 0x4a5   :  { %v7198_v31 = vld [vmem:[%s15764_s2 + $0xa20] sm:$0xff]  ;;  %4426 = vmatpush.msrb.mxu3 %v7390_v13  ;;  %v7275_v13 = vld [vmem:[%s15764_s2 + $0xc88] sm:$0xff] }
 0x4a6   :  { %v7322_v43 = vld [vmem:[%s15764_s2 + $0xe00] sm:$0xff]  ;;  %4339 = vmatpush.msrb.mxu0 %v7198_v31  ;;  %v7211_v31 = vld [vmem:[%s15764_s2 + $0xa88] sm:$0xff] }
 0x4a7   :  { %3498 = vrot.lane.b32.xlu1 %v3460_v54, %s7832_s30  ;;  %3484 = vrot.lane.b32.xlu2 %v3457_v9, %s7832_s30  ;;  %v7194_v54 = vld [vmem:[%s15764_s2 + $0xa00] sm:$0xff] }
 0x4a8   :  { %3496 = vrot.lane.b32.xlu0 %v3459_v53, %s7832_s30  ;;  %v7258_v9 = vld [vmem:[%s15764_s2 + $0xc00] sm:$0xff]  ;;  %4398 = vmatpush.msrb.mxu2 %v7322_v43  ;;  %v7207_v43 = vld [vmem:[%s15764_s2 + $0xa68] sm:$0xff] }
 0x4a9   :  { %v7386_v53 = vld [vmem:[%s15764_s2 + $0x1000] sm:$0xff]  ;;  %4369 = vmatpush.msrb.mxu1 %v7258_v9  ;;  %4340 = vmatpush.msrb.mxu0 %v7194_v54 }
 0x4aa   :  { %v7318_v20 = vld [vmem:[%s15764_s2 + $0xde0] sm:$0xff]  ;;  %4427 = vmatpush.msrb.mxu3 %v7386_v53  ;;  %v7339_v53 = vld [vmem:[%s15764_s2 + $0xe88] sm:$0xff] }
 0x4ab   :  { %v7254_v50 = vld [vmem:[%s15764_s2 + $0xbe0] sm:$0xff]  ;;  %4399 = vmatpush.msrb.mxu2 %v7318_v20  ;;  %v7271_v20 = vld [vmem:[%s15764_s2 + $0xc68] sm:$0xff] }
 0x4ac   :  { %v7382_v2 = vld [vmem:[%s15764_s2 + $0xfe0] sm:$0xff]  ;;  %4370 = vmatpush.msrb.mxu1 %v7254_v50  ;;  %v7335_v50 = vld [vmem:[%s15764_s2 + $0xe68] sm:$0xff] }
 0x4ad   :  { %v7314_v61 = vld [vmem:[%s15764_s2 + $0xdc0] sm:$0xff]  ;;  %4428 = vmatpush.msrb.mxu3 %v7382_v2 }
 0x4ae   :  { %v7250_v30 = vld [vmem:[%s15764_s2 + $0xbc0] sm:$0xff]  ;;  %4400 = vmatpush.msrb.mxu2 %v7314_v61  ;;  %v7267_v61 = vld [vmem:[%s15764_s2 + $0xc48] sm:$0xff] }
 0x4af   :  { %3504 = vrot.lane.b32.xlu2 %v3465_v37, %s7832_s30  ;;  %3478 = vrot.lane.b32.xlu1 %v3451_v40, %s7832_s30  ;;  %v7378_v32 = vld [vmem:[%s15764_s2 + $0xfc0] sm:$0xff] }
 0x4b0   :  { %3482 = vrot.lane.b32.xlu0 %v3455_v5, %s7832_s30  ;;  %v7186_v46 = vld [vmem:[%s15764_s2 + $0x9c0] sm:$0xff]  ;;  %4371 = vmatpush.msrb.mxu1 %v7250_v30  ;;  %v7203_v30 = vld [vmem:[%s15764_s2 + $0xa48] sm:$0xff] }
 0x4b1   :  { %4429 = vmatpush.msrb.mxu3 %v7378_v32  ;;  %v7310_v5 = vld [vmem:[%s15764_s2 + $0xda0] sm:$0xff] }
 0x4b2   :  { %v7246_v47 = vld [vmem:[%s15764_s2 + $0xba0] sm:$0xff]  ;;  %4401 = vmatpush.msrb.mxu2 %v7310_v5 }
 0x4b3   :  { %v7374_v36 = vld [vmem:[%s15764_s2 + $0xfa0] sm:$0xff]  ;;  %4372 = vmatpush.msrb.mxu1 %v7246_v47  ;;  %v7259_v47 = vld [vmem:[%s15764_s2 + $0xc08] sm:$0xff] }
 0x4b4   :  { %4430 = vmatpush.msrb.mxu3 %v7374_v36  ;;  %v7370_v51 = vld [vmem:[%s15764_s2 + $0xf80] sm:$0xff]  ;;  %v7195_v36 = vld [vmem:[%s15764_s2 + $0xa08] sm:$0xff] }
 0x4b5   :  { %v7182_v17 = vld [vmem:[%s15764_s2 + $0x9a0] sm:$0xff] }
 0x4b6   :  { %v7178_v39 = vld [vmem:[%s15764_s2 + $0x980] sm:$0xff]  ;;  %4431 = vmatpush.msrb.mxu3 %v7370_v51 }
 0x4b7   :  { %3508 = vrot.lane.b32.xlu2 %v3469_v29, %s7832_s30  ;;  %3500 = vrot.lane.b32.xlu1 %v3461_v52, %s7832_s30  ;;  %v7306_v52 = vld [vmem:[%s15764_s2 + $0xd80] sm:$0xff] }
 0x4b8   :  { %3494 = vrot.lane.b32.xlu0 %v3458_v44, %s7832_s30  ;;  %4402 = vmatpush.msrb.mxu2 %v7306_v52  ;;  %v7302_v29 = vld [vmem:[%s15764_s2 + $0xd60] sm:$0xff] }
 0x4b9   :  { %v7238_v44 = vld [vmem:[%s15764_s2 + $0xb60] sm:$0xff] }
 0x4ba   :  { %v7366_v21 = vld [vmem:[%s15764_s2 + $0xf60] sm:$0xff]  ;;  %4403 = vmatpush.msrb.mxu2 %v7302_v29 }
 0x4bb   :  { %4432 = vmatpush.msrb.mxu3 %v7366_v21  ;;  %v7170_v48 = vld [vmem:[%s15764_s2 + $0x940] sm:$0xff]  ;;  %v7255_v21 = vld [vmem:[%s15764_s2 + $0xbe8] sm:$0xff] }
 0x4bc   :  { %v7362_v26 = vld [vmem:[%s15764_s2 + $0xf40] sm:$0xff] }
 0x4bd   :  { %v7294_v3 = vld [vmem:[%s15764_s2 + $0xd20] sm:$0xff]  ;;  %4433 = vmatpush.msrb.mxu3 %v7362_v26 }
 0x4be   :  { %v7230_v1 = vld [vmem:[%s15764_s2 + $0xb20] sm:$0xff] }
 0x4bf   :  { %3512 = vrot.lane.b32.xlu2 %v3464_v55, %s7832_s30  ;;  %3502 = vrot.lane.b32.xlu1 %v3463_v42, %s7832_s30  ;;  %v7190_v55 = vld [vmem:[%s15764_s2 + $0x9e0] sm:$0xff] }
 0x4c0   :  { %3506 = vrot.lane.b32.xlu0 %v3467_v16, %s7832_s30  ;;  %4341 = vmatpush.msrb.mxu0 %v7190_v55  ;;  %v7298_v42 = vld [vmem:[%s15764_s2 + $0xd40] sm:$0xff] }
 0x4c1   :  { %v7234_v16 = vld [vmem:[%s15764_s2 + $0xb40] sm:$0xff]  ;;  %4404 = vmatpush.msrb.mxu2 %v7298_v42 }
 0x4c2   :  { %4342 = vmatpush.msrb.mxu0 %v7186_v46  ;;  %v7358_v4 = vld [vmem:[%s15764_s2 + $0xf20] sm:$0xff]  ;;  %v7199_v46 = vld [vmem:[%s15764_s2 + $0xa28] sm:$0xff] }
 0x4c3   :  { %4405 = vmatpush.msrb.mxu2 %v7294_v3  ;;  %4434 = vmatpush.msrb.mxu3 %v7358_v4  ;;  %v7226_v22 = vld [vmem:[%s15764_s2 + $0xb00] sm:$0xff]  ;;  %v7315_v4 = vld [vmem:[%s15764_s2 + $0xdc8] sm:$0xff] }
 0x4c4   :  { %4343 = vmatpush.msrb.mxu0 %v7182_v17  ;;  %v7354_v57 = vld [vmem:[%s15764_s2 + $0xf00] sm:$0xff]  ;;  %v7191_v17 = vld [vmem:[%s15764_s2 + $0x9e8] sm:$0xff] }
 0x4c5   :  { %v7162_v59 = vld [vmem:[%s15764_s2 + $0x900] sm:$0xff]  ;;  %4435 = vmatpush.msrb.mxu3 %v7354_v57  ;;  %v7247_v57 = vld [vmem:[%s15764_s2 + $0xba8] sm:$0xff] }
 0x4c6   :  { %4344 = vmatpush.msrb.mxu0 %v7178_v39  ;;  %v7446_v38 = vld [vmem:[%s15764_s2 + $0x11e0] sm:$0xff] }
 0x4c7   :  { %3510 = vrot.lane.b32.xlu2 %v3462_v62, %s7832_s30  ;;  %3516 = vrot.lane.b32.xlu1 %v3468_v25, %s7832_s30  ;;  %v7242_v25 = vld [vmem:[%s15764_s2 + $0xb80] sm:$0xff] }
 0x4c8   :  { %3514 = vrot.lane.b32.xlu0 %v3466_v6, %s7832_s30  ;;  %4373 = vmatpush.msrb.mxu1 %v7242_v25  ;;  %v7174_v6 = vld [vmem:[%s15764_s2 + $0x960] sm:$0xff] }
 0x4c9   :  { %4345 = vmatpush.msrb.mxu0 %v7174_v6  ;;  %4536 = vmatpush.msra.mxu3 %v7351_v28  ;;  %v7442_v12 = vld [vmem:[%s15764_s2 + $0x11c0] sm:$0xff] }
 0x4ca   :  { %4374 = vmatpush.msrb.mxu1 %v7238_v44  ;;  %v7438_v55 = vld [vmem:[%s15764_s2 + $0x11a0] sm:$0xff]  ;;  %v7323_v44 = vld [vmem:[%s15764_s2 + $0xe08] sm:$0xff] }
 0x4cb   :  { %4346 = vmatpush.msrb.mxu0 %v7170_v48  ;;  %4537 = vmatpush.msra.mxu3 %v7347_v8  ;;  %v7434_v5 = vld [vmem:[%s15764_s2 + $0x1180] sm:$0xff]  ;;  %v7187_v48 = vld [vmem:[%s15764_s2 + $0x9c8] sm:$0xff] }
 0x4cc   :  { %4375 = vmatpush.msrb.mxu1 %v7234_v16  ;;  %v7426_v28 = vld [vmem:[%s15764_s2 + $0x1140] sm:$0xff]  ;;  %v7307_v8 = vld [vmem:[%s15764_s2 + $0xd88] sm:$0xff] }
 0x4cd   :  { %4538 = vmatpush.msra.mxu3 %v7343_v0 }
 0x4ce   :  { %4376 = vmatpush.msrb.mxu1 %v7230_v1 }
 0x4cf   :  { %4539 = vmatpush.msra.mxu3 %v7339_v53 }
 0x4d0   :  { %4377 = vmatpush.msrb.mxu1 %v7226_v22 }
 0x4d1   :  { %4540 = vmatpush.msra.mxu3 %v7335_v50 }
 0x4d2   :  { %4478 = vmatpush.msra.mxu1 %v7223_v33 }
 0x4d4   :  { %4479 = vmatpush.msra.mxu1 %v7219_v56 }
 0x4d6   :  { %4480 = vmatpush.msra.mxu1 %v7215_v41  ;;  %v7239_v41 = vld [vmem:[%s15764_s2 + $0xb68] sm:$0xff] }
 0x4d8   :  { %4481 = vmatpush.msra.mxu1 %v7211_v31  ;;  %v7303_v31 = vld [vmem:[%s15764_s2 + $0xd68] sm:$0xff] }
 0x4da   :  { %4482 = vmatpush.msra.mxu1 %v7207_v43 }
 0x4dc   :  { %4483 = vmatpush.msra.mxu1 %v7203_v30  ;;  %v7171_v30 = vld [vmem:[%s15764_s2 + $0x948] sm:$0xff] }
 0x4de   :  { %4484 = vmatpush.msra.mxu1 %v7199_v46 }
 0x4e0   :  { %4485 = vmatpush.msra.mxu1 %v7195_v36  ;;  %v7295_v36 = vld [vmem:[%s15764_s2 + $0xd28] sm:$0xff] }
 0x4e2   :  { %4486 = vmatpush.msra.mxu1 %v7191_v17  ;;  %v7227_v17 = vld [vmem:[%s15764_s2 + $0xb08] sm:$0xff] }
 0x4e4   :  { %4487 = vmatpush.msra.mxu1 %v7187_v48 }
 0x4e9   :  { %v11961_v23 = vpop.permute.xlu2 %3488 }
 0x4f1   :  { %v3487_v49 = vpop.permute.xlu2 %3486 }
 0x4f2   :  { %v3524_v58 = vsel %vm157_vm3, %v3487_v49, %v11961_v23  ;;  %3576 = vst.msk [vmem:[#allocation2 + $0x50] sm:$0x1] %vm219_vm5, %v3487_v49  ;;  %v7166_v49 = vld [vmem:[%s15764_s2 + $0x920] sm:$0xff] }
 0x4f3   :  { %3577 = vst [vmem:[#allocation2 + $0x58] sm:$0x1] %v3524_v58  ;;  %v7290_v58 = vld [vmem:[%s15764_s2 + $0xd00] sm:$0xff]  ;;  %4347 = vmatpush.msrb.mxu0 %v7166_v49 }
 0x4f4   :  { %4406 = vmatpush.msrb.mxu2 %v7290_v58 }
 0x4f5   :  { %4348 = vmatpush.msrb.mxu0 %v7162_v59  ;;  %v7183_v59 = vld [vmem:[%s15764_s2 + $0x9a8] sm:$0xff] }
 0x4f6   :  { %4507 = vmatpush.msra.mxu2 %v7287_v35  ;;  %v7311_v35 = vld [vmem:[%s15764_s2 + $0xda8] sm:$0xff]  ;;  %4488 = vmatpush.msra.mxu1 %v7183_v59 }
 0x4f7   :  { %4457 = vmatpush.msra.mxu0 %v7446_v38 }
 0x4f8   :  { %4508 = vmatpush.msra.mxu2 %v7283_v14  ;;  %v7179_v14 = vld [vmem:[%s15764_s2 + $0x988] sm:$0xff] }
 0x4f9   :  { %v12032_v24 = vpop.permute.xlu2 %3480  ;;  %4458 = vmatpush.msra.mxu0 %v7442_v12  ;;  %4489 = vmatpush.msra.mxu1 %v7179_v14 }
 0x4fa   :  { %v3926_v38 = vld [vmem:[#allocation2 + $0x58] sm:$0x1] }
 0x4fb   :  { %4459 = vmatpush.msra.mxu0 %v7438_v55 }
 0x4fd   :  { %4460 = vmatpush.msra.mxu0 %v7434_v5  ;;  %v7231_v5 = vld [vmem:[%s15764_s2 + $0xb28] sm:$0xff] }
 0x501   :  { %v3475_v40 = vpop.permute.xlu1 %3474  ;;  %v12085_v37 = vpop.permute.xlu2 %3484 }
 0x502   :  { %v3473_v34 = vpop.permute.xlu0 %3472  ;;  %3575 = vst.msk [vmem:[#allocation2 + $0x48] sm:$0xff] %vm157_vm3, %v12085_v37 }
 0x503   :  { %v3519_v11 = vsel %vm157_vm3, %v3473_v34, %v3475_v40 }
 0x504   :  { %3568 = vst [vmem:[#allocation2 + $0x10] sm:$0xfe] %v3519_v11  ;;  %v7327_v11 = vld [vmem:[%s15764_s2 + $0xe28] sm:$0xff] }
 0x509   :  { %v3477_v63 = vpop.permute.xlu1 %3476  ;;  %v12126_v62 = vpop.permute.xlu2 %3504 }
 0x50a   :  { %v3520_v45 = vsel %vm157_vm3, %v3475_v40, %v3477_v63  ;;  %3570 = vst.msk [vmem:[#allocation2 + $0x20] sm:$0xfe] %vm211_vm2, %v3477_v63  ;;  %v3471_v10 = vpop.permute.xlu0 %3470  ;;  %v7331_v40 = vld [vmem:[%s15764_s2 + $0xe48] sm:$0xff] }
 0x50b   :  { %3569 = vst [vmem:[#allocation2 + $0x18] sm:$0xfe] %v3520_v45  ;;  %v3518_v18 = vsel %vm157_vm3, %v3471_v10, %v3473_v34  ;;  %v7263_v34 = vld [vmem:[%s15764_s2 + $0xc28] sm:$0xff]  ;;  %4541 = vmatpush.msra.mxu3 %v7331_v40  ;;  %v3922_v52 = vld [vmem:[#allocation2 + $0x10] sm:$0xfe]  ;;  %v7430_v45 = vld [vmem:[%s15764_s2 + $0x1160] sm:$0xff] }
 0x50c   :  { %3566 = vst.msk [vmem:[#allocation2] sm:$0xfe] %vm206_vm6, %v3471_v10  ;;  %v7319_v63 = vld [vmem:[%s15764_s2 + $0xde8] sm:$0xff]  ;;  %4461 = vmatpush.msra.mxu0 %v7430_v45  ;;  %v3976_v49 = vrot.slane %v3922_v52, 1 }
 0x50d   :  { %3567 = vst [vmem:[#allocation2 + $0x8] sm:$0xfe] %v3518_v18  ;;  %4542 = vmatpush.msra.mxu3 %v7327_v11  ;;  %v7251_v10 = vld [vmem:[%s15764_s2 + $0xbc8] sm:$0xff] }
 0x50e   :  { %4462 = vmatpush.msra.mxu0 %v7426_v28 }
 0x50f   :  { %4543 = vmatpush.msra.mxu3 %v7323_v44  ;;  %v7291_v44 = vld [vmem:[%s15764_s2 + $0xd08] sm:$0xff] }
 0x511   :  { %v3493_v60 = vpop.permute.xlu1 %3492  ;;  %v12174_v7 = vpop.permute.xlu2 %3508  ;;  %4544 = vmatpush.msra.mxu3 %v7319_v63 }
 0x512   :  { %3580 = vst.msk [vmem:[#allocation2 + $0x70] sm:$0x1] %vm224_vm9, %v3493_v60  ;;  %v3491_v19 = vpop.permute.xlu0 %3490  ;;  %v3923_v51 = vld [vmem:[#allocation2 + $0x18] sm:$0xfe] }
 0x513   :  { %3590 = vst.msk [vmem:[#allocation2 + $0xc0] sm:$0xff] %vm157_vm3, %v12174_v7  ;;  %v3525_v15 = vsel %vm157_vm3, %v11961_v23, %v3491_v19  ;;  %v3526_v27 = vsel %vm157_vm3, %v3491_v19, %v3493_v60  ;;  %v7279_v23 = vld [vmem:[%s15764_s2 + $0xca8] sm:$0xff]  ;;  %4545 = vmatpush.msra.mxu3 %v7315_v4  ;;  %v3920_v53 = vld [vmem:[#allocation2] sm:$0xfe] }
 0x514   :  { %3578 = vst [vmem:[#allocation2 + $0x60] sm:$0x1] %v3525_v15  ;;  %4509 = vmatpush.msra.mxu2 %v7279_v23  ;;  %v3921_v25 = vld [vmem:[#allocation2 + $0x8] sm:$0xfe]  ;;  %v3970_v40 = vrot.slane %v3920_v53, 1 }
 0x515   :  { %3579 = vst [vmem:[#allocation2 + $0x68] sm:$0x1] %v3526_v27  ;;  %v3973_v3 = vrot.slane %v3921_v25, 1  ;;  %v7243_v19 = vld [vmem:[%s15764_s2 + $0xb88] sm:$0xff]  ;;  %4546 = vmatpush.msra.mxu3 %v7311_v35  ;;  %v7220_v35 = vld [vmem:[%s15764_s2 + $0xad0] sm:$0xff] }
 0x516   :  { %4510 = vmatpush.msra.mxu2 %v7275_v13  ;;  %v7175_v23 = vld [vmem:[%s15764_s2 + $0x968] sm:$0xff]  ;;  %v3987_v13 = vrot.slane %v3926_v38, 1  ;;  %v7284_v38 = vld [vmem:[%s15764_s2 + $0xcd0] sm:$0xff] }
 0x517   :  { %4547 = vmatpush.msra.mxu3 %v7307_v8  ;;  %4490 = vmatpush.msra.mxu1 %v7175_v23  ;;  %v7280_v23 = vld [vmem:[%s15764_s2 + $0xcb0] sm:$0xff] }
 0x518   :  { %4511 = vmatpush.msra.mxu2 %v7271_v20  ;;  %v7235_v20 = vld [vmem:[%s15764_s2 + $0xb48] sm:$0xff] }
 0x519   :  { %v12221_v54 = vpop.permute.xlu1 %3498  ;;  %v12223_v9 = vpop.permute.xlu2 %3512  ;;  %4548 = vmatpush.msra.mxu3 %v7303_v31  ;;  %4491 = vmatpush.msra.mxu1 %v7171_v30  ;;  %v7212_v31 = vld [vmem:[%s15764_s2 + $0xa90] sm:$0xff]  ;;  %v7439_v30 = vld [vmem:[%s15764_s2 + $0x11a8] sm:$0xff] }
 0x51a   :  { %v12234_v2 = vpop.permute.xlu0 %3496  ;;  %4512 = vmatpush.msra.mxu2 %v7267_v61 }
 0x51b   :  { %v3528_v32 = vsel %vm157_vm3, %v12234_v2, %v12221_v54  ;;  %v3927_v56 = vld [vmem:[#allocation2 + $0x60] sm:$0x1] }
 0x51c   :  { %3583 = vst [vmem:[#allocation2 + $0x88] sm:$0xfe] %v3528_v32  ;;  %4513 = vmatpush.msra.mxu2 %v7263_v34  ;;  %v3928_v15 = vld [vmem:[#allocation2 + $0x68] sm:$0x1]  ;;  %v3989_v50 = vrot.slane %v3927_v56, 1 }
 0x51d   :  { %v3991_v55 = vrot.slane %v3928_v15, 1  ;;  %v7299_v32 = vld [vmem:[%s15764_s2 + $0xd48] sm:$0xff] }
 0x51e   :  { %4514 = vmatpush.msra.mxu2 %v7259_v47  ;;  %v7167_v47 = vld [vmem:[%s15764_s2 + $0x928] sm:$0xff]  ;;  %4549 = vmatpush.msra.mxu3 %v7299_v32  ;;  %v7272_v32 = vld [vmem:[%s15764_s2 + $0xc70] sm:$0xff] }
 0x51f   :  { %4492 = vmatpush.msra.mxu1 %v7167_v47  ;;  %v7204_v47 = vld [vmem:[%s15764_s2 + $0xa50] sm:$0xff] }
 0x520   :  { %4515 = vmatpush.msra.mxu2 %v7255_v21  ;;  %4550 = vmatpush.msra.mxu3 %v7295_v36  ;;  %v7268_v36 = vld [vmem:[%s15764_s2 + $0xc50] sm:$0xff] }
 0x521   :  { %v3511_v39 = vpop.permute.xlu2 %3510  ;;  %v3479_v29 = vpop.permute.xlu1 %3478 }
 0x522   :  { %v3533_v6 = vsel %vm157_vm3, %v3511_v39, %v12223_v9  ;;  %3591 = vst.msk [vmem:[#allocation2 + $0xc8] sm:$0x1] %vm219_vm5, %v3511_v39  ;;  %v3483_v42 = vpop.permute.xlu0 %3482  ;;  %v12286_v16 = vsel %vm157_vm3, %v3479_v29, %v12032_v24  ;;  %4516 = vmatpush.msra.mxu2 %v7251_v10  ;;  %4551 = vmatpush.msra.mxu3 %v7291_v44 }
 0x523   :  { %3592 = vst [vmem:[#allocation2 + $0xd0] sm:$0x1] %v3533_v6  ;;  %v12299_v26 = vsel %vm157_vm3, %v12032_v24, %v3483_v42  ;;  %v12303_v18 = vsel %vm157_vm3, %v3483_v42, %v12085_v37  ;;  %v3974_v1 = vrot.slane %v12286_v16, 1  ;;  %v3979_v24 = vrot.slane %v3923_v51, 1  ;;  %v3932_v25 = vld [vmem:[#allocation2 + $0x88] sm:$0xfe] }
 0x524   :  { %3573 = vst [vmem:[#allocation2 + $0x38] sm:$0xff] %v12299_v26  ;;  %v3977_v58 = vrot.slane %v12299_v26, 1  ;;  %v3980_v22 = vrot.slane %v12303_v18, 1  ;;  %4517 = vmatpush.msra.mxu2 %v7247_v57  ;;  %v7418_v51 = vld [vmem:[%s15764_s2 + $0x1100] sm:$0xff]  ;;  %v3925_v6 = vld [vmem:[#allocation2 + $0x50] sm:$0x1] }
 0x525   :  { %3574 = vst [vmem:[#allocation2 + $0x40] sm:$0xff] %v12303_v18  ;;  %v12314_v37 = vsel %vm599_vm8, %v3973_v3, %v3974_v1  ;;  %v7415_v42 = vld [vmem:[%s15764_s2 + $0x10e8] sm:$0xff]  ;;  %v4001_v18 = vrot.slane %v3932_v25, 1  ;;  %v7288_v3 = vld [vmem:[%s15764_s2 + $0xcf0] sm:$0xff] }
 0x526   :  { %3571 = vst.msk [vmem:[#allocation2 + $0x28] sm:$0xff] %vm213_vm7, %v3479_v29  ;;  %4378 = vmatmul.f32.vlgmr.msrb.gmra.mxu1 %v12314_v37  ;;  %v12325_v33 = vsel %vm599_vm8, %v3976_v49, %v3977_v58  ;;  %v12328_v60 = vsel %vm599_vm8, %v3979_v24, %v3980_v22  ;;  %4518 = vmatpush.msra.mxu2 %v7243_v19  ;;  %v7163_v29 = vld [vmem:[%s15764_s2 + $0x908] sm:$0xff] }
 0x527   :  { %3572 = vst [vmem:[#allocation2 + $0x30] sm:$0xff] %v12286_v16  ;;  %4407 = vmatmul.f32.vlgmr.msrb.gmra.mxu2 %v12325_v33  ;;  %4436 = vmatmul.f32.vlgmr.msrb.gmra.mxu3 %v12328_v60  ;;  %v12383_v34 = vsel %vm599_vm8, %v3977_v58, %v3989_v50  ;;  %v12386_v11 = vsel %vm599_vm8, %v3980_v22, %v3991_v55  ;;  %v7224_v16 = vld [vmem:[%s15764_s2 + $0xaf0] sm:$0xff]  ;;  %v7411_v58 = vld [vmem:[%s15764_s2 + $0x10c8] sm:$0xff]  ;;  %v3985_v22 = vrot.slane %v3925_v6, 1 }
 0x528   :  { %4519 = vmatpush.msra.mxu2 %v7239_v41  ;;  %4493 = vmatpush.msra.mxu1 %v7163_v29  ;;  %v7447_v24 = vld [vmem:[%s15764_s2 + $0x11e8] sm:$0xff]  ;;  %v7260_v6 = vld [vmem:[%s15764_s2 + $0xc10] sm:$0xff] }
 0x529   :  { %v3501_v27 = vpop.permute.xlu1 %3500  ;;  %4652 = vmatpush.msrb.mxu3 %v7288_v3  ;;  %v7407_v19 = vld [vmem:[%s15764_s2 + $0x10a8] sm:$0xff]  ;;  %v7192_v3 = vld [vmem:[%s15764_s2 + $0x9f0] sm:$0xff] }
 0x52a   :  { %v3495_v0 = vpop.permute.xlu0 %3494  ;;  %v3529_v12 = vsel %vm157_vm3, %v12221_v54, %v3501_v27  ;;  %3585 = vst.msk [vmem:[#allocation2 + $0x98] sm:$0xfe] %vm211_vm2, %v3501_v27  ;;  %v7422_v54 = vld [vmem:[%s15764_s2 + $0x1120] sm:$0xff]  ;;  %4520 = vmatpush.msra.mxu2 %v7235_v20  ;;  %4602 = vmatpush.msrb.mxu1 %v7447_v24  ;;  %v3936_v15 = vld [vmem:[#allocation2 + $0xd0] sm:$0x1]  ;;  %v7399_v50 = vld [vmem:[%s15764_s2 + $0x1068] sm:$0xff] }
 0x52b   :  { %v3527_v43 = vsel %vm157_vm3, %v3495_v0, %v12234_v2  ;;  %3581 = vst.msk [vmem:[#allocation2 + $0x78] sm:$0xfe] %vm206_vm6, %v3495_v0  ;;  %v12372_v2 = vsel %vm599_vm8, %v3974_v1, %v3987_v13  ;;  %4463 = vmatpush.msra.mxu0 %v7422_v54  ;;  %v7216_v27 = vld [vmem:[%s15764_s2 + $0xab0] sm:$0xff]  ;;  %v7403_v0 = vld [vmem:[%s15764_s2 + $0x1088] sm:$0xff]  ;;  %4653 = vmatpush.msrb.mxu3 %v7284_v38 }
 0x52c   :  { %3582 = vst [vmem:[#allocation2 + $0x80] sm:$0xfe] %v3527_v43  ;;  %4521 = vmatpush.msra.mxu2 %v7231_v5  ;;  %v7443_v43 = vld [vmem:[%s15764_s2 + $0x11c8] sm:$0xff]  ;;  %v7276_v20 = vld [vmem:[%s15764_s2 + $0xc90] sm:$0xff] }
 0x52d   :  { %3584 = vst [vmem:[#allocation2 + $0x90] sm:$0xfe] %v3529_v12  ;;  %v12369_v61 = vld [vmem:[#allocation2 + $0x28] sm:$0xff]  ;;  %4464 = vmatpush.msra.mxu0 %v7418_v51  ;;  %4603 = vmatpush.msrb.mxu1 %v7443_v43  ;;  %v7200_v51 = vld [vmem:[%s15764_s2 + $0xa30] sm:$0xff] }
 0x52e   :  { %v3971_v46 = vrot.slane %v12369_v61, 1  ;;  %4381 = vmatmul.f32.gmra.mxu1 %v12372_v2  ;;  %4522 = vmatpush.msra.mxu2 %v7227_v17  ;;  %v4012_v61 = vrot.slane %v3936_v15, 1  ;;  %v7391_v25 = vld [vmem:[%s15764_s2 + $0x1028] sm:$0xff]  ;;  %v7264_v17 = vld [vmem:[%s15764_s2 + $0xc30] sm:$0xff] }
 0x52f   :  { %4410 = vmatmul.f32.gmra.mxu2 %v12383_v34  ;;  %4439 = vmatmul.f32.gmra.mxu3 %v12386_v11  ;;  %v7435_v29 = vld [vmem:[%s15764_s2 + $0x1188] sm:$0xff] }
 0x530   :  { %v12402_v52 = vsel %vm599_vm8, %v3970_v40, %v3971_v46  ;;  %4623 = vmatpush.msrb.mxu2 %v7224_v16  ;;  %v12480_v14 = vsel %vm599_vm8, %v3971_v46, %v3985_v22  ;;  %4654 = vmatpush.msrb.mxu3 %v7280_v23  ;;  %v7395_v40 = vld [vmem:[%s15764_s2 + $0x1048] sm:$0xff] }
 0x531   :  { %4349 = vmatmul.f32.vlgmr.msrb.gmra.mxu0 %v12402_v52  ;;  %v3503_v39 = vpop.permute.xlu1 %3502  ;;  %4604 = vmatpush.msrb.mxu1 %v7439_v30  ;;  %v3935_v44 = vld [vmem:[#allocation2 + $0xc8] sm:$0x1]  ;;  %v7168_v30 = vld [vmem:[%s15764_s2 + $0x930] sm:$0xff] }
 0x532   :  { %v3507_v21 = vpop.permute.xlu0 %3506  ;;  %v12419_v63 = vsel %vm157_vm3, %v3503_v39, %v12126_v62  ;;  %3586 = vst.msk [vmem:[#allocation2 + $0xa0] sm:$0xff] %vm213_vm7, %v3503_v39  ;;  %4565 = vmatpush.msrb.mxu0 %v7415_v42  ;;  %v3930_v56 = vld [vmem:[#allocation2 + $0x78] sm:$0xfe]  ;;  %4624 = vmatpush.msrb.mxu2 %v7220_v35  ;;  %v7387_v39 = vld [vmem:[%s15764_s2 + $0x1008] sm:$0xff]  ;;  %v7184_v35 = vld [vmem:[%s15764_s2 + $0x9b0] sm:$0xff] }
 0x533   :  { %v12430_v45 = vsel %vm157_vm3, %v12126_v62, %v3507_v21  ;;  %v12434_v10 = vsel %vm157_vm3, %v3507_v21, %v12174_v7  ;;  %3587 = vst [vmem:[#allocation2 + $0xa8] sm:$0xff] %v12419_v63  ;;  %v3931_v48 = vld [vmem:[#allocation2 + $0x80] sm:$0xfe]  ;;  %v3999_v26 = vrot.slane %v12419_v63, 1  ;;  %v3995_v55 = vrot.slane %v3930_v56, 1  ;;  %4655 = vmatpush.msrb.mxu3 %v7276_v20  ;;  %v7196_v21 = vld [vmem:[%s15764_s2 + $0xa10] sm:$0xff]  ;;  %4605 = vmatpush.msrb.mxu1 %v7435_v29 }
 0x534   :  { %3588 = vst [vmem:[#allocation2 + $0xb0] sm:$0xff] %v12430_v45  ;;  %v3998_v62 = vrot.slane %v3931_v48, 1  ;;  %v4002_v1 = vrot.slane %v12430_v45, 1  ;;  %v3933_v4 = vld [vmem:[#allocation2 + $0x90] sm:$0xfe]  ;;  %v4005_v7 = vrot.slane %v12434_v10, 1  ;;  %4566 = vmatpush.msrb.mxu0 %v7411_v58  ;;  %4625 = vmatpush.msrb.mxu2 %v7216_v27 }
 0x535   :  { %3589 = vst [vmem:[#allocation2 + $0xb8] sm:$0xff] %v12434_v10  ;;  %v4004_v49 = vrot.slane %v3933_v4, 1  ;;  %v12532_v5 = vsel %vm599_vm8, %v3999_v26, %v4012_v61  ;;  %4656 = vmatpush.msrb.mxu3 %v7272_v32  ;;  %v7383_v42 = vld [vmem:[%s15764_s2 + $0xfe8] sm:$0xff]  ;;  %v3924_v10 = vld [vmem:[#allocation2 + $0x20] sm:$0xfe]  ;;  %v7180_v27 = vld [vmem:[%s15764_s2 + $0x990] sm:$0xff] }
 0x536   :  { %v12454_v57 = vsel %vm599_vm8, %v3998_v62, %v3999_v26  ;;  %v12459_v59 = vsel %vm599_vm8, %v4001_v18, %v4002_v1  ;;  %4567 = vmatpush.msrb.mxu0 %v7407_v19  ;;  %4626 = vmatpush.msrb.mxu2 %v7212_v31  ;;  %v7431_v26 = vld [vmem:[%s15764_s2 + $0x1168] sm:$0xff]  ;;  %v4010_v62 = vrot.slane %v3935_v44, 1  ;;  %v7248_v19 = vld [vmem:[%s15764_s2 + $0xbb0] sm:$0xff]  ;;  %v3934_v44 = vld [vmem:[#allocation2 + $0x98] sm:$0xfe] }
 0x537   :  { %4384 = vmatmul.f32.gmra.mxu1 %v12454_v57  ;;  %4413 = vmatmul.f32.gmra.mxu2 %v12459_v59  ;;  %v12469_v28 = vsel %vm599_vm8, %v4004_v49, %v4005_v7  ;;  %v7256_v49 = vld [vmem:[%s15764_s2 + $0xbf0] sm:$0xff]  ;;  %v7379_v45 = vld [vmem:[%s15764_s2 + $0xfc8] sm:$0xff] }
 0x538   :  { %4442 = vmatmul.f32.gmra.mxu3 %v12469_v28  ;;  %4568 = vmatpush.msrb.mxu0 %v7403_v0  ;;  %v7375_v22 = vld [vmem:[%s15764_s2 + $0xfa8] sm:$0xff]  ;;  %v3929_v20 = vld [vmem:[#allocation2 + $0x70] sm:$0x1] }
 0x539   :  { %4352 = vmatmul.f32.gmra.mxu0 %v12480_v14  ;;  %v3517_v8 = vpop.permute.xlu1 %3516  ;;  %v12487_v41 = vld [vmem:[#allocation2 + $0xa0] sm:$0xff]  ;;  %4657 = vmatpush.msrb.mxu3 %v7268_v36  ;;  %v7427_v38 = vld [vmem:[%s15764_s2 + $0x1148] sm:$0xff]  ;;  %v7236_v61 = vld [vmem:[%s15764_s2 + $0xb50] sm:$0xff] }
 0x53a   :  { %v3515_v12 = vpop.permute.xlu0 %3514  ;;  %3595 = vst.msk [vmem:[#allocation2 + $0xe8] sm:$0x1] %vm224_vm9, %v3517_v8  ;;  %v3996_v13 = vrot.slane %v12487_v41, 1  ;;  %4569 = vmatpush.msrb.mxu0 %v7399_v50  ;;  %4606 = vmatpush.msrb.mxu1 %v7431_v26  ;;  %v3621_v56 = vld [vmem:[#allocation2 + $0x48] sm:$0xff]  ;;  %v7172_v50 = vld [vmem:[%s15764_s2 + $0x950] sm:$0xff] }
 0x53b   :  { %v3534_v53 = vsel %vm157_vm3, %v12223_v9, %v3515_v12  ;;  %v3535_v54 = vsel %vm157_vm3, %v3515_v12, %v3517_v8  ;;  %v7208_v9 = vld [vmem:[%s15764_s2 + $0xa70] sm:$0xff]  ;;  %4658 = vmatpush.msrb.mxu3 %v7264_v17  ;;  %v7371_v15 = vld [vmem:[%s15764_s2 + $0xf88] sm:$0xff]  ;;  %v3982_v8 = vrot.slane %v3924_v10, 1  ;;  %v3983_v0 = vrot.slane %v3621_v56, 1  ;;  %v7209_v56 = vld [vmem:[%s15764_s2 + $0xa78] sm:$0xff] }
 0x53c   :  { %3593 = vst [vmem:[#allocation2 + $0xd8] sm:$0x1] %v3534_v53  ;;  %v12527_v46 = vsel %vm599_vm8, %v3995_v55, %v3996_v13  ;;  %4627 = vmatpush.msrb.mxu2 %v7208_v9  ;;  %4570 = vmatpush.msrb.mxu0 %v7395_v40  ;;  %v12596_v24 = vsel %vm599_vm8, %v3996_v13, %v4010_v62  ;;  %v7423_v41 = vld [vmem:[%s15764_s2 + $0x1128] sm:$0xff]  ;;  %v7244_v12 = vld [vmem:[%s15764_s2 + $0xb90] sm:$0xff]  ;;  %v3993_v40 = vrot.slane %v3929_v20, 1 }
 0x53d   :  { %3594 = vst [vmem:[#allocation2 + $0xe0] sm:$0x1] %v3535_v54  ;;  %4659 = vmatpush.msrb.mxu3 %v7260_v6  ;;  %4607 = vmatpush.msrb.mxu1 %v7427_v38  ;;  %v7367_v23 = vld [vmem:[%s15764_s2 + $0xf68] sm:$0xff]  ;;  %v7176_v13 = vld [vmem:[%s15764_s2 + $0x970] sm:$0xff]  ;;  %v12639_v43 = vsel %vm599_vm8, %v3982_v8, %v3983_v0 }
 0x53e   :  { %4628 = vmatpush.msrb.mxu2 %v7204_v47  ;;  %4571 = vmatpush.msrb.mxu0 %v7391_v25  ;;  %v7363_v31 = vld [vmem:[%s15764_s2 + $0xf48] sm:$0xff]  ;;  %v7240_v53 = vld [vmem:[%s15764_s2 + $0xb70] sm:$0xff]  ;;  %v12683_v17 = vsel %vm599_vm8, %v3983_v0, %v3993_v40  ;;  %v7205_v0 = vld [vmem:[%s15764_s2 + $0xa58] sm:$0xff] }
 0x53f   :  { %4387 = vmatmul.f32.gmra.mxu1 %v12532_v5  ;;  %4660 = vmatpush.msrb.mxu3 %v7256_v49  ;;  %v7419_v54 = vld [vmem:[%s15764_s2 + $0x1108] sm:$0xff]  ;;  %v7416_v9 = vld [vmem:[%s15764_s2 + $0x10f0] sm:$0xff]  ;;  %v7217_v49 = vld [vmem:[%s15764_s2 + $0xab8] sm:$0xff] }
 0x540   :  { %4629 = vmatpush.msrb.mxu2 %v7200_v51  ;;  %4572 = vmatpush.msrb.mxu0 %v7387_v39  ;;  %v7359_v55 = vld [vmem:[%s15764_s2 + $0xf28] sm:$0xff]  ;;  %v7164_v47 = vld [vmem:[%s15764_s2 + $0x910] sm:$0xff]  ;;  %v7193_v40 = vld [vmem:[%s15764_s2 + $0x9f8] sm:$0xff] }
 0x541   :  { %4355 = vmatmul.f32.gmra.mxu0 %v12527_v46  ;;  %4608 = vmatpush.msrb.mxu1 %v7423_v41  ;;  %v7355_v32 = vld [vmem:[%s15764_s2 + $0xf08] sm:$0xff]  ;;  %v7232_v36 = vld [vmem:[%s15764_s2 + $0xb30] sm:$0xff] }
 0x542   :  { %4630 = vmatpush.msrb.mxu2 %v7196_v21  ;;  %4573 = vmatpush.msrb.mxu0 %v7383_v42  ;;  %v7352_v25 = vld [vmem:[%s15764_s2 + $0xef0] sm:$0xff]  ;;  %v7225_v21 = vld [vmem:[%s15764_s2 + $0xaf8] sm:$0xff] }
 0x543   :  { %v3937_v63 = vld [vmem:[#allocation2 + $0xd8] sm:$0x1]  ;;  %4609 = vmatpush.msrb.mxu1 %v7419_v54  ;;  %v7448_v51 = vld [vmem:[%s15764_s2 + $0x11f0] sm:$0xff] }
 0x544   :  { %v4014_v16 = vrot.slane %v3937_v63, 1  ;;  %v3938_v48 = vld [vmem:[#allocation2 + $0xe0] sm:$0x1]  ;;  %4631 = vmatpush.msrb.mxu2 %v7192_v3  ;;  %4574 = vmatpush.msrb.mxu0 %v7379_v45  ;;  %v7228_v39 = vld [vmem:[%s15764_s2 + $0xb10] sm:$0xff] }
 0x545   :  { %v4016_v18 = vrot.slane %v3938_v48, 1  ;;  %v7412_v29 = vld [vmem:[%s15764_s2 + $0x10d0] sm:$0xff]  ;;  %v7221_v48 = vld [vmem:[%s15764_s2 + $0xad8] sm:$0xff] }
 0x546   :  { %v12575_v4 = vsel %vm599_vm8, %v4002_v1, %v4014_v16  ;;  %v7188_v1 = vld [vmem:[%s15764_s2 + $0x9d0] sm:$0xff]  ;;  %4575 = vmatpush.msrb.mxu0 %v7375_v22  ;;  %v3631_v16 = vld [vmem:[#allocation2 + $0xc0] sm:$0xff] }
 0x547   :  { %4416 = vmatmul.f32.gmra.mxu2 %v12575_v4  ;;  %v12584_v58 = vsel %vm599_vm8, %v4005_v7, %v4016_v18  ;;  %4494 = vmatmul.f32.vlgmr.msra.gmra.mxu1 %v12402_v52  ;;  %v7252_v7 = vld [vmem:[%s15764_s2 + $0xbd0] sm:$0xff]  ;;  %v4007_v18 = vrot.slane %v3934_v44, 1  ;;  %v4008_v62 = vrot.slane %v3631_v16, 1  ;;  %v7185_v44 = vld [vmem:[%s15764_s2 + $0x9b8] sm:$0xff] }
 0x548   :  { %4445 = vmatmul.f32.gmra.mxu3 %v12584_v58  ;;  %4632 = vmatpush.msrb.mxu2 %v7188_v1  ;;  %v7348_v63 = vld [vmem:[%s15764_s2 + $0xed0] sm:$0xff]  ;;  %v7181_v16 = vld [vmem:[%s15764_s2 + $0x998] sm:$0xff] }
 0x549   :  { %4358 = vmatmul.f32.gmra.mxu0 %v12596_v24  ;;  %4661 = vmatpush.msrb.mxu3 %v7252_v7  ;;  %v7444_v6 = vld [vmem:[%s15764_s2 + $0x11d0] sm:$0xff]  ;;  %v12727_v10 = vsel %vm599_vm8, %v4007_v18, %v4008_v62  ;;  %v7213_v7 = vld [vmem:[%s15764_s2 + $0xa98] sm:$0xff] }
 0x54a   :  { %4633 = vmatpush.msrb.mxu2 %v7184_v35  ;;  %4576 = vmatpush.msrb.mxu0 %v7371_v15  ;;  %v7408_v42 = vld [vmem:[%s15764_s2 + $0x10b0] sm:$0xff]  ;;  %v3939_v35 = vld [vmem:[#allocation2 + $0xe8] sm:$0x1]  ;;  %v7177_v18 = vld [vmem:[%s15764_s2 + $0x978] sm:$0xff] }
 0x54b   :  { %4662 = vmatpush.msrb.mxu3 %v7248_v19  ;;  %4710 = vmatpush.msra.mxu1 %v7416_v9  ;;  %v7344_v26 = vld [vmem:[%s15764_s2 + $0xeb0] sm:$0xff]  ;;  %v4018_v41 = vrot.slane %v3939_v35, 1  ;;  %v7285_v35 = vld [vmem:[%s15764_s2 + $0xcd8] sm:$0xff] }
 0x54c   :  { %4634 = vmatpush.msrb.mxu2 %v7180_v27  ;;  %4577 = vmatpush.msrb.mxu0 %v7367_v23  ;;  %v7340_v3 = vld [vmem:[%s15764_s2 + $0xe90] sm:$0xff] }
 0x54d   :  { %4663 = vmatpush.msrb.mxu3 %v7244_v12  ;;  %4711 = vmatpush.msra.mxu1 %v7412_v29  ;;  %v7404_v45 = vld [vmem:[%s15764_s2 + $0x1090] sm:$0xff] }
 0x54e   :  { %4635 = vmatpush.msrb.mxu2 %v7176_v13  ;;  %4578 = vmatpush.msrb.mxu0 %v7363_v31  ;;  %v7336_v1 = vld [vmem:[%s15764_s2 + $0xe70] sm:$0xff]  ;;  %v12772_v31 = vsel %vm599_vm8, %v4008_v62, %v4018_v41  ;;  %v7345_v41 = vld [vmem:[%s15764_s2 + $0xeb8] sm:$0xff] }
 0x54f   :  { %4523 = vmatmul.f32.vlgmr.msra.gmra.mxu2 %v12314_v37  ;;  %4497 = vmatmul.f32.gmra.mxu1 %v12480_v14  ;;  %v7440_v22 = vld [vmem:[%s15764_s2 + $0x11b0] sm:$0xff] }
 0x550   :  { %4552 = vmatmul.f32.vlgmr.msra.gmra.mxu3 %v12325_v33  ;;  %4636 = vmatpush.msrb.mxu2 %v7172_v50  ;;  %v7400_v38 = vld [vmem:[%s15764_s2 + $0x1070] sm:$0xff] }
 0x551   :  { %7450 = vmatmul.msk.f32.vlgmr.msra.gmra.mxu0 %vm24_vm1, %v12639_v43  ;;  %4664 = vmatpush.msrb.mxu3 %v7240_v53  ;;  %v7332_v19 = vld [vmem:[%s15764_s2 + $0xe50] sm:$0xff]  ;;  %v7201_v53 = vld [vmem:[%s15764_s2 + $0xa38] sm:$0xff] }
 0x552   :  { %4579 = vmatpush.msrb.mxu0 %v7359_v55  ;;  %4637 = vmatpush.msrb.mxu2 %v7168_v30  ;;  %v7436_v15 = vld [vmem:[%s15764_s2 + $0x1190] sm:$0xff]  ;;  %v7197_v55 = vld [vmem:[%s15764_s2 + $0xa18] sm:$0xff] }
 0x553   :  { %4665 = vmatpush.msrb.mxu3 %v7236_v61  ;;  %4712 = vmatpush.msra.mxu1 %v7408_v42  ;;  %v7396_v27 = vld [vmem:[%s15764_s2 + $0x1050] sm:$0xff] }
 0x554   :  { %4580 = vmatpush.msrb.mxu0 %v7355_v32  ;;  %4638 = vmatpush.msrb.mxu2 %v7164_v47  ;;  %v7328_v8 = vld [vmem:[%s15764_s2 + $0xe30] sm:$0xff] }
 0x555   :  { %4666 = vmatpush.msrb.mxu3 %v7232_v36  ;;  %4713 = vmatpush.msra.mxu1 %v7404_v45  ;;  %v7392_v23 = vld [vmem:[%s15764_s2 + $0x1030] sm:$0xff]  ;;  %v7173_v45 = vld [vmem:[%s15764_s2 + $0x958] sm:$0xff] }
 0x556   :  { %4681 = vmatpush.msra.mxu0 %v7352_v25  ;;  %4747 = vmatpush.msra.mxu2 %v7448_v51  ;;  %v7324_v12 = vld [vmem:[%s15764_s2 + $0xe10] sm:$0xff]  ;;  %v7189_v25 = vld [vmem:[%s15764_s2 + $0x9d8] sm:$0xff] }
 0x557   :  { %4526 = vmatmul.f32.gmra.mxu2 %v12372_v2  ;;  %4500 = vmatmul.f32.gmra.mxu1 %v12527_v46  ;;  %v7388_v13 = vld [vmem:[%s15764_s2 + $0x1010] sm:$0xff] }
 0x558   :  { %4555 = vmatmul.f32.gmra.mxu3 %v12383_v34  ;;  %4682 = vmatpush.msra.mxu0 %v7348_v63  ;;  %v7432_v54 = vld [vmem:[%s15764_s2 + $0x1170] sm:$0xff] }
 0x559   :  { %7451 = vmatmul.msk.f32.gmra.mxu0 %vm24_vm1, %v12683_v17  ;;  %4667 = vmatpush.msrb.mxu3 %v7228_v39  ;;  %v7320_v20 = vld [vmem:[%s15764_s2 + $0xdf0] sm:$0xff] }
 0x55a   :  { %4748 = vmatpush.msra.mxu2 %v7444_v6  ;;  %4683 = vmatpush.msra.mxu0 %v7344_v26  ;;  %v7384_v50 = vld [vmem:[%s15764_s2 + $0xff0] sm:$0xff] }
 0x55b   :  { %4768 = vmatpush.msra.mxu3 %v7225_v21  ;;  %4714 = vmatpush.msra.mxu1 %v7400_v38  ;;  %v7428_v61 = vld [vmem:[%s15764_s2 + $0x1150] sm:$0xff]  ;;  %v7169_v38 = vld [vmem:[%s15764_s2 + $0x938] sm:$0xff] }
 0x55c   :  { %4684 = vmatpush.msra.mxu0 %v7340_v3  ;;  %4749 = vmatpush.msra.mxu2 %v7440_v22  ;;  %v7316_v9 = vld [vmem:[%s15764_s2 + $0xdd0] sm:$0xff]  ;;  %v7417_v3 = vld [vmem:[%s15764_s2 + $0x10f8] sm:$0xff] }
 0x55d   :  { %4769 = vmatpush.msra.mxu3 %v7221_v48  ;;  %4715 = vmatpush.msra.mxu1 %v7396_v27  ;;  %v7380_v30 = vld [vmem:[%s15764_s2 + $0xfd0] sm:$0xff]  ;;  %v7413_v22 = vld [vmem:[%s15764_s2 + $0x10d8] sm:$0xff] }
 0x55e   :  { %4685 = vmatpush.msra.mxu0 %v7336_v1  ;;  %4750 = vmatpush.msra.mxu2 %v7436_v15  ;;  %v7312_v32 = vld [vmem:[%s15764_s2 + $0xdb0] sm:$0xff]  ;;  %v7289_v1 = vld [vmem:[%s15764_s2 + $0xcf8] sm:$0xff] }
 0x55f   :  { %4529 = vmatmul.f32.gmra.mxu2 %v12454_v57  ;;  %4503 = vmatmul.f32.gmra.mxu1 %v12596_v24  ;;  %v7376_v47 = vld [vmem:[%s15764_s2 + $0xfb0] sm:$0xff]  ;;  %v7165_v15 = vld [vmem:[%s15764_s2 + $0x918] sm:$0xff] }
 0x560   :  { %4558 = vmatmul.f32.gmra.mxu3 %v12459_v59  ;;  %4686 = vmatpush.msra.mxu0 %v7332_v19  ;;  %v7308_v36 = vld [vmem:[%s15764_s2 + $0xd90] sm:$0xff]  ;;  %v7349_v19 = vld [vmem:[%s15764_s2 + $0xed8] sm:$0xff] }
 0x561   :  { %7452 = vmatmul.msk.f32.gmra.mxu0 %vm24_vm1, %v12727_v10  ;;  %4770 = vmatpush.msra.mxu3 %v7217_v49  ;;  %v7424_v51 = vld [vmem:[%s15764_s2 + $0x1130] sm:$0xff]  ;;  %v7409_v27 = vld [vmem:[%s15764_s2 + $0x10b8] sm:$0xff] }
 0x562   :  { %4687 = vmatpush.msra.mxu0 %v7328_v8  ;;  %4716 = vmatpush.msra.mxu1 %v7392_v23  ;;  %v7372_v39 = vld [vmem:[%s15764_s2 + $0xf90] sm:$0xff]  ;;  %v7449_v8 = vld [vmem:[%s15764_s2 + $0x11f8] sm:$0xff] }
 0x563   :  { %4771 = vmatpush.msra.mxu3 %v7213_v7  ;;  %4751 = vmatpush.msra.mxu2 %v7432_v54  ;;  %v7304_v29 = vld [vmem:[%s15764_s2 + $0xd70] sm:$0xff]  ;;  %v7353_v7 = vld [vmem:[%s15764_s2 + $0xef8] sm:$0xff] }
 0x564   :  { %4688 = vmatpush.msra.mxu0 %v7324_v12  ;;  %4717 = vmatpush.msra.mxu1 %v7388_v13  ;;  %v7420_v21 = vld [vmem:[%s15764_s2 + $0x1110] sm:$0xff]  ;;  %v7277_v23 = vld [vmem:[%s15764_s2 + $0xc98] sm:$0xff] }
 0x565   :  { %4772 = vmatpush.msra.mxu3 %v7209_v56  ;;  %4752 = vmatpush.msra.mxu2 %v7428_v61  ;;  %v7368_v63 = vld [vmem:[%s15764_s2 + $0xf70] sm:$0xff]  ;;  %v7281_v56 = vld [vmem:[%s15764_s2 + $0xcb8] sm:$0xff] }
 0x566   :  { %4689 = vmatpush.msra.mxu0 %v7320_v20  ;;  %4718 = vmatpush.msra.mxu1 %v7384_v50  ;;  %v7300_v6 = vld [vmem:[%s15764_s2 + $0xd50] sm:$0xff]  ;;  %v7445_v12 = vld [vmem:[%s15764_s2 + $0x11d8] sm:$0xff] }
 0x567   :  { %4532 = vmatmul.f32.gmra.mxu2 %v12532_v5  ;;  %7454 = vmatmul.msk.f32.vlgmr.msrb.gmra.mxu1 %vm24_vm1, %v12639_v43  ;;  %v7364_v42 = vld [vmem:[%s15764_s2 + $0xf50] sm:$0xff]  ;;  %v7341_v13 = vld [vmem:[%s15764_s2 + $0xe98] sm:$0xff] }
 0x568   :  { %4561 = vmatmul.f32.gmra.mxu3 %v12575_v4  ;;  %4690 = vmatpush.msra.mxu0 %v7316_v9  ;;  %v7296_v48 = vld [vmem:[%s15764_s2 + $0xd30] sm:$0xff]  ;;  %v7401_v54 = vld [vmem:[%s15764_s2 + $0x1078] sm:$0xff] }
 0x569   :  { %7453 = vmatmul.msk.f32.gmra.mxu0 %vm24_vm1, %v12772_v31  ;;  %4773 = vmatpush.msra.mxu3 %v7205_v0  ;;  %v7360_v26 = vld [vmem:[%s15764_s2 + $0xf30] sm:$0xff]  ;;  %v7405_v0 = vld [vmem:[%s15764_s2 + $0x1098] sm:$0xff] }
 0x56a   :  { %4719 = vmatpush.msra.mxu1 %v7380_v30  ;;  %4691 = vmatpush.msra.mxu0 %v7312_v32  ;;  %v7292_v62 = vld [vmem:[%s15764_s2 + $0xd10] sm:$0xff]  ;;  %v7337_v20 = vld [vmem:[%s15764_s2 + $0xe78] sm:$0xff] }
 0x56b   :  { %4774 = vmatpush.msra.mxu3 %v7201_v53  ;;  %4753 = vmatpush.msra.mxu2 %v7424_v51  ;;  %v7356_v49 = vld [vmem:[%s15764_s2 + $0xf10] sm:$0xff]  ;;  %v7273_v53 = vld [vmem:[%s15764_s2 + $0xc78] sm:$0xff] }
 0x56c   :  { %4720 = vmatpush.msra.mxu1 %v7376_v47  ;;  %4692 = vmatpush.msra.mxu0 %v7308_v36  ;;  %v7269_v50 = vld [vmem:[%s15764_s2 + $0xc58] sm:$0xff] }
 0x56d   :  { %4775 = vmatpush.msra.mxu3 %v7197_v55  ;;  %4754 = vmatpush.msra.mxu2 %v7420_v21  ;;  %v7397_v55 = vld [vmem:[%s15764_s2 + $0x1058] sm:$0xff] }
 0x56e   :  { %4721 = vmatpush.msra.mxu1 %v7372_v39  ;;  %4693 = vmatpush.msra.mxu0 %v7304_v29  ;;  %v7441_v61 = vld [vmem:[%s15764_s2 + $0x11b8] sm:$0xff] }
 0x56f   :  { %4639 = vmatmul.f32.vlgmr.msrb.gmra.mxu2 %v12402_v52  ;;  %7455 = vmatmul.msk.f32.gmra.mxu1 %vm24_vm1, %v12683_v17  ;;  %v7333_v9 = vld [vmem:[%s15764_s2 + $0xe58] sm:$0xff] }
 0x570   :  { %4668 = vmatmul.f32.vlgmr.msrb.gmra.mxu3 %v12314_v37  ;;  %4722 = vmatpush.msra.mxu1 %v7368_v63  ;;  %v7265_v30 = vld [vmem:[%s15764_s2 + $0xc38] sm:$0xff] }
 0x571   :  { %4581 = vmatmul.f32.vlgmr.msrb.gmra.mxu0 %v12328_v60  ;;  %4776 = vmatpush.msra.mxu3 %v7193_v40  ;;  %v7393_v32 = vld [vmem:[%s15764_s2 + $0x1038] sm:$0xff] }
 0x572   :  { %4694 = vmatpush.msra.mxu0 %v7300_v6  ;;  %4723 = vmatpush.msra.mxu1 %v7364_v42  ;;  %v7437_v40 = vld [vmem:[%s15764_s2 + $0x1198] sm:$0xff] }
 0x573   :  { %4777 = vmatpush.msra.mxu3 %v7189_v25  ;;  %4855 = vmatpush.msrb.mxu2 %v7417_v3  ;;  %v7329_v47 = vld [vmem:[%s15764_s2 + $0xe38] sm:$0xff] }
 0x574   :  { %4695 = vmatpush.msra.mxu0 %v7296_v48  ;;  %4724 = vmatpush.msra.mxu1 %v7360_v26  ;;  %v7261_v36 = vld [vmem:[%s15764_s2 + $0xc18] sm:$0xff] }
 0x575   :  { %4778 = vmatpush.msra.mxu3 %v7185_v44  ;;  %4856 = vmatpush.msrb.mxu2 %v7413_v22  ;;  %v7389_v25 = vld [vmem:[%s15764_s2 + $0x1018] sm:$0xff] }
 0x576   :  { %4696 = vmatpush.msra.mxu0 %v7292_v62  ;;  %4725 = vmatpush.msra.mxu1 %v7356_v49  ;;  %v7325_v51 = vld [vmem:[%s15764_s2 + $0xe18] sm:$0xff] }
 0x577   :  { %4642 = vmatmul.f32.gmra.mxu2 %v12480_v14  ;;  %7456 = vmatmul.msk.f32.gmra.mxu1 %vm24_vm1, %v12727_v10  ;;  %v7257_v39 = vld [vmem:[%s15764_s2 + $0xbf8] sm:$0xff] }
 0x578   :  { %4671 = vmatmul.f32.gmra.mxu3 %v12372_v2  ;;  %4797 = vmatpush.msrb.mxu0 %v7289_v1  ;;  %v7385_v29 = vld [vmem:[%s15764_s2 + $0xff8] sm:$0xff] }
 0x579   :  { %4584 = vmatmul.f32.gmra.mxu0 %v12386_v11  ;;  %4779 = vmatpush.msra.mxu3 %v7181_v16  ;;  %v7321_v44 = vld [vmem:[%s15764_s2 + $0xdf8] sm:$0xff] }
 0x57a   :  { %4826 = vmatpush.msrb.mxu1 %v7353_v7  ;;  %4798 = vmatpush.msrb.mxu0 %v7285_v35  ;;  %v7433_v21 = vld [vmem:[%s15764_s2 + $0x1178] sm:$0xff] }
 0x57b   :  { %4780 = vmatpush.msra.mxu3 %v7177_v18  ;;  %4857 = vmatpush.msrb.mxu2 %v7409_v27  ;;  %v7253_v63 = vld [vmem:[%s15764_s2 + $0xbd8] sm:$0xff] }
 0x57c   :  { %4827 = vmatpush.msrb.mxu1 %v7349_v19  ;;  %4799 = vmatpush.msrb.mxu0 %v7281_v56  ;;  %v7317_v6 = vld [vmem:[%s15764_s2 + $0xdd8] sm:$0xff] }
 0x57d   :  { %4781 = vmatpush.msra.mxu3 %v7173_v45  ;;  %4858 = vmatpush.msrb.mxu2 %v7405_v0  ;;  %v7429_v42 = vld [vmem:[%s15764_s2 + $0x1158] sm:$0xff]  ;;  %v3756_v0 = vld [vmem:[%s15764_s2 + $0x3e0] sm:$0xff] }
 0x57e   :  { %4828 = vmatpush.msrb.mxu1 %v7345_v41  ;;  %4800 = vmatpush.msrb.mxu0 %v7277_v23  ;;  %v7249_v16 = vld [vmem:[%s15764_s2 + $0xbb8] sm:$0xff]  ;;  %v3692_v41 = vld [vmem:[%s15764_s2 + $0x1e0] sm:$0xff] }
 0x57f   :  { %4645 = vmatmul.f32.gmra.mxu2 %v12527_v46  ;;  %7457 = vmatmul.msk.f32.gmra.mxu1 %vm24_vm1, %v12772_v31  ;;  %v7377_v48 = vld [vmem:[%s15764_s2 + $0xfb8] sm:$0xff] }
 0x580   :  { %4674 = vmatmul.f32.gmra.mxu3 %v12454_v57  ;;  %4829 = vmatpush.msrb.mxu1 %v7341_v13  ;;  %v7313_v26 = vld [vmem:[%s15764_s2 + $0xdb8] sm:$0xff] }
 0x581   :  { %4587 = vmatmul.f32.gmra.mxu0 %v12469_v28  ;;  %4782 = vmatpush.msra.mxu3 %v7169_v38  ;;  %v7373_v18 = vld [vmem:[%s15764_s2 + $0xf98] sm:$0xff] }
 0x582   :  { %4801 = vmatpush.msrb.mxu0 %v7273_v53  ;;  %4859 = vmatpush.msrb.mxu2 %v7401_v54  ;;  %v7245_v3 = vld [vmem:[%s15764_s2 + $0xb98] sm:$0xff]  ;;  %v3688_v53 = vld [vmem:[%s15764_s2 + $0x1c0] sm:$0xff] }
 0x583   :  { %4783 = vmatpush.msra.mxu3 %v7165_v15  ;;  %4830 = vmatpush.msrb.mxu1 %v7337_v20  ;;  %v7309_v62 = vld [vmem:[%s15764_s2 + $0xd98] sm:$0xff]  ;;  %v3816_v54 = vld [vmem:[%s15764_s2 + $0x5c0] sm:$0xff] }
 0x584   :  { %4802 = vmatpush.msrb.mxu0 %v7269_v50  ;;  %4860 = vmatpush.msrb.mxu2 %v7397_v55  ;;  %v7369_v49 = vld [vmem:[%s15764_s2 + $0xf78] sm:$0xff]  ;;  %v3752_v20 = vld [vmem:[%s15764_s2 + $0x3c0] sm:$0xff] }
 0x585   :  { %4892 = vmatpush.msrb.mxu3 %v7449_v8  ;;  %4831 = vmatpush.msrb.mxu1 %v7333_v9  ;;  %v7425_v45 = vld [vmem:[%s15764_s2 + $0x1138] sm:$0xff]  ;;  %v3880_v50 = vld [vmem:[%s15764_s2 + $0x7c0] sm:$0xff] }
 0x586   :  { %4803 = vmatpush.msrb.mxu0 %v7265_v30  ;;  %4861 = vmatpush.msrb.mxu2 %v7393_v32  ;;  %v7241_v1 = vld [vmem:[%s15764_s2 + $0xb78] sm:$0xff]  ;;  %v3684_v55 = vld [vmem:[%s15764_s2 + $0x1a0] sm:$0xff] }
 0x587   :  { %4893 = vmatpush.msrb.mxu3 %v7445_v12  ;;  %4648 = vmatmul.f32.gmra.mxu2 %v12596_v24  ;;  %v7365_v7 = vld [vmem:[%s15764_s2 + $0xf58] sm:$0xff]  ;;  %v3884_v12 = vld [vmem:[%s15764_s2 + $0x7e0] sm:$0xff] }
 0x588   :  { %4726 = vmatmul.f32.vlgmr.msra.gmra.mxu1 %v12328_v60  ;;  %4677 = vmatmul.f32.gmra.mxu3 %v12532_v5  ;;  %v7421_v22 = vld [vmem:[%s15764_s2 + $0x1118] sm:$0xff]  ;;  %v3748_v9 = vld [vmem:[%s15764_s2 + $0x3a0] sm:$0xff] }
 0x589   :  { %4590 = vmatmul.f32.gmra.mxu0 %v12584_v58  ;;  %4894 = vmatpush.msrb.mxu3 %v7441_v61  ;;  %v7237_v35 = vld [vmem:[%s15764_s2 + $0xb58] sm:$0xff]  ;;  %v3812_v61 = vld [vmem:[%s15764_s2 + $0x5a0] sm:$0xff] }
 0x58a   :  { %4832 = vmatpush.msrb.mxu1 %v7329_v47  ;;  %4804 = vmatpush.msrb.mxu0 %v7261_v36  ;;  %v7301_v38 = vld [vmem:[%s15764_s2 + $0xd58] sm:$0xff]  ;;  %v3876_v30 = vld [vmem:[%s15764_s2 + $0x7a0] sm:$0xff] }
 0x58b   :  { %4895 = vmatpush.msrb.mxu3 %v7437_v40  ;;  %4862 = vmatpush.msrb.mxu2 %v7389_v25  ;;  %v7233_v19 = vld [vmem:[%s15764_s2 + $0xb38] sm:$0xff]  ;;  %v3744_v32 = vld [vmem:[%s15764_s2 + $0x380] sm:$0xff] }
 0x58c   :  { %4833 = vmatpush.msrb.mxu1 %v7325_v51  ;;  %4805 = vmatpush.msrb.mxu0 %v7257_v39  ;;  %v7361_v56 = vld [vmem:[%s15764_s2 + $0xf38] sm:$0xff]  ;;  %v3872_v40 = vld [vmem:[%s15764_s2 + $0x780] sm:$0xff] }
 0x58d   :  { %4863 = vmatpush.msrb.mxu2 %v7385_v29  ;;  %4896 = vmatpush.msrb.mxu3 %v7433_v21  ;;  %v7297_v15 = vld [vmem:[%s15764_s2 + $0xd38] sm:$0xff]  ;;  %v3676_v36 = vld [vmem:[%s15764_s2 + $0x160] sm:$0xff] }
 0x58e   :  { %4834 = vmatpush.msrb.mxu1 %v7321_v44  ;;  %4806 = vmatpush.msrb.mxu0 %v7253_v63  ;;  %v7229_v27 = vld [vmem:[%s15764_s2 + $0xb18] sm:$0xff]  ;;  %v3804_v25 = vld [vmem:[%s15764_s2 + $0x560] sm:$0xff] }
 0x58f   :  { %7458 = vmatmul.msk.f32.vlgmr.msra.gmra.mxu2 %vm24_vm1, %v12639_v43  ;;  %4897 = vmatpush.msrb.mxu3 %v7429_v42  ;;  %v7357_v8 = vld [vmem:[%s15764_s2 + $0xf18] sm:$0xff]  ;;  %v3740_v51 = vld [vmem:[%s15764_s2 + $0x360] sm:$0xff] }
 0x590   :  { %4729 = vmatmul.f32.gmra.mxu1 %v12386_v11  ;;  %4784 = vmatmul.f32.vlgmr.msra.gmra.mxu3 %v12402_v52  ;;  %v7381_v52 = vld [vmem:[%s15764_s2 + $0xfd8] sm:$0xff]  ;;  %v3868_v44 = vld [vmem:[%s15764_s2 + $0x760] sm:$0xff] }
 0x591   :  { %4697 = vmatmul.f32.vlgmr.msra.gmra.mxu0 %v12325_v33  ;;  %4864 = vmatpush.msrb.mxu2 %v7381_v52  ;;  %v7293_v23 = vld [vmem:[%s15764_s2 + $0xd18] sm:$0xff]  ;;  %v3672_v63 = vld [vmem:[%s15764_s2 + $0x140] sm:$0xff] }
 0x592   :  { %4835 = vmatpush.msrb.mxu1 %v7317_v6  ;;  %4807 = vmatpush.msrb.mxu0 %v7249_v16  ;;  %v3800_v52 = vld [vmem:[%s15764_s2 + $0x540] sm:$0xff] }
 0x593   :  { %4865 = vmatpush.msrb.mxu2 %v7377_v48  ;;  %4898 = vmatpush.msrb.mxu3 %v7425_v45  ;;  %v3668_v6 = vld [vmem:[%s15764_s2 + $0x120] sm:$0xff] }
 0x594   :  { %4836 = vmatpush.msrb.mxu1 %v7313_v26  ;;  %4808 = vmatpush.msrb.mxu0 %v7245_v3  ;;  %v3732_v42 = vld [vmem:[%s15764_s2 + $0x320] sm:$0xff] }
 0x595   :  { %4866 = vmatpush.msrb.mxu2 %v7373_v18  ;;  %4899 = vmatpush.msrb.mxu3 %v7421_v22  ;;  %v3860_v16 = vld [vmem:[%s15764_s2 + $0x720] sm:$0xff] }
 0x596   :  { %4837 = vmatpush.msrb.mxu1 %v7309_v62  ;;  %4809 = vmatpush.msrb.mxu0 %v7241_v1  ;;  %v3792_v48 = vld [vmem:[%s15764_s2 + $0x500] sm:$0xff] }
 0x597   :  { %7459 = vmatmul.msk.f32.gmra.mxu2 %vm24_vm1, %v12683_v17  ;;  %5010 = vmatpush.msra.mxu3 %v3884_v12  ;;  %v3728_v18 = vld [vmem:[%s15764_s2 + $0x300] sm:$0xff] }
 0x598   :  { %4732 = vmatmul.f32.gmra.mxu1 %v12469_v28  ;;  %4787 = vmatmul.f32.gmra.mxu3 %v12480_v14  ;;  %v7305_v14 = vld [vmem:[%s15764_s2 + $0xd78] sm:$0xff]  ;;  %v3856_v62 = vld [vmem:[%s15764_s2 + $0x700] sm:$0xff] }
 0x599   :  { %4700 = vmatmul.f32.gmra.mxu0 %v12383_v34  ;;  %4867 = vmatpush.msrb.mxu2 %v7369_v49  ;;  %v3660_v49 = vld [vmem:[%s15764_s2 + $0xe0] sm:$0xff] }
 0x59a   :  { %4838 = vmatpush.msrb.mxu1 %v7305_v14  ;;  %4810 = vmatpush.msrb.mxu0 %v7237_v35  ;;  %v3788_v45 = vld [vmem:[%s15764_s2 + $0x4e0] sm:$0xff] }
 0x59b   :  { %4868 = vmatpush.msrb.mxu2 %v7365_v7  ;;  %5011 = vmatpush.msra.mxu3 %v3880_v50  ;;  %v3852_v14 = vld [vmem:[%s15764_s2 + $0x6e0] sm:$0xff] }
 0x59c   :  { %4839 = vmatpush.msrb.mxu1 %v7301_v38  ;;  %4811 = vmatpush.msrb.mxu0 %v7233_v19  ;;  %v3720_v22 = vld [vmem:[%s15764_s2 + $0x2c0] sm:$0xff] }
 0x59d   :  { %4869 = vmatpush.msrb.mxu2 %v7361_v56  ;;  %5012 = vmatpush.msra.mxu3 %v3876_v30  ;;  %v3652_v35 = vld [vmem:[%s15764_s2 + $0xa0] sm:$0xff] }
 0x59e   :  { %4840 = vmatpush.msrb.mxu1 %v7297_v15  ;;  %4812 = vmatpush.msrb.mxu0 %v7229_v27  ;;  %v3780_v38 = vld [vmem:[%s15764_s2 + $0x4a0] sm:$0xff] }
 0x59f   :  { %7460 = vmatmul.msk.f32.gmra.mxu2 %vm24_vm1, %v12727_v10  ;;  %5013 = vmatpush.msra.mxu3 %v3872_v40  ;;  %v3716_v56 = vld [vmem:[%s15764_s2 + $0x2a0] sm:$0xff] }
 0x5a0   :  { %4735 = vmatmul.f32.gmra.mxu1 %v12584_v58  ;;  %4790 = vmatmul.f32.gmra.mxu3 %v12527_v46  ;;  %v3820_v46 = vld [vmem:[%s15764_s2 + $0x5e0] sm:$0xff] }
 0x5a1   :  { %4703 = vmatmul.f32.gmra.mxu0 %v12459_v59  ;;  %4870 = vmatpush.msrb.mxu2 %v7357_v8  ;;  %v3648_v15 = vld [vmem:[%s15764_s2 + $0x80] sm:$0xff] }
 0x5a2   :  { %4923 = vmatpush.msra.mxu0 %v3692_v41  ;;  %4841 = vmatpush.msrb.mxu1 %v7293_v23  ;;  %v3844_v8 = vld [vmem:[%s15764_s2 + $0x6a0] sm:$0xff] }
 0x5a3   :  { %v13081_v13 = vpop.f32.mrf.mxu1  ;;  %4981 = vmatpush.msra.mxu2 %v3820_v46  ;;  %5014 = vmatpush.msra.mxu3 %v3868_v44  ;;  %v3776_v41 = vld [vmem:[%s15764_s2 + $0x480] sm:$0xff]  ;;  %v13325_v44 = vld [vmem:[#allocation2 + $0x8] sm:$0xff] }
 0x5a4   :  { %4952 = vmatpush.msra.mxu1 %v3756_v0  ;;  %4924 = vmatpush.msra.mxu0 %v3688_v53  ;;  %v3712_v23 = vld [vmem:[%s15764_s2 + $0x280] sm:$0xff] }
 0x5a5   :  { %4982 = vmatpush.msra.mxu2 %v3816_v54  ;;  %v3840_v46 = vld [vmem:[%s15764_s2 + $0x680] sm:$0xff] }
 0x5a6   :  { %4953 = vmatpush.msra.mxu1 %v3752_v20  ;;  %4925 = vmatpush.msra.mxu0 %v3684_v55  ;;  %v3772_v0 = vld [vmem:[%s15764_s2 + $0x460] sm:$0xff] }
 0x5a7   :  { %7461 = vmatmul.msk.f32.gmra.mxu2 %vm24_vm1, %v12772_v31  ;;  %v3640_v54 = vld [vmem:[%s15764_s2 + $0x40] sm:$0xff] }
 0x5a8   :  { %4842 = vmatmul.f32.vlgmr.msrb.gmra.mxu1 %v12325_v33  ;;  %4793 = vmatmul.f32.gmra.mxu3 %v12596_v24  ;;  %v3680_v33 = vld [vmem:[%s15764_s2 + $0x180] sm:$0xff] }
 0x5a9   :  { %4706 = vmatmul.f32.gmra.mxu0 %v12575_v4  ;;  %v3808_v24 = vld [vmem:[%s15764_s2 + $0x580] sm:$0xff]  ;;  %4983 = vmatpush.msra.mxu2 %v3812_v61 }
 0x5aa   :  { %4954 = vmatpush.msra.mxu1 %v3748_v9  ;;  %4926 = vmatpush.msra.mxu0 %v3680_v33  ;;  %v13137_v29 = vpop.f32.mrf.mxu2  ;;  %v13143_v21 = vpop.f32.mrf.mxu3  ;;  %v3768_v20 = vld [vmem:[%s15764_s2 + $0x440] sm:$0xff] }
 0x5ab   :  { %v13124_v47 = vpop.f32.mrf.mxu1  ;;  %4984 = vmatpush.msra.mxu2 %v3808_v24  ;;  %v3704_v50 = vld [vmem:[%s15764_s2 + $0x240] sm:$0xff] }
 0x5ac   :  { %4955 = vmatpush.msra.mxu1 %v3744_v32  ;;  %4927 = vmatpush.msra.mxu0 %v3676_v36  ;;  %v3832_v9 = vld [vmem:[%s15764_s2 + $0x640] sm:$0xff] }
 0x5ad   :  { %4985 = vmatpush.msra.mxu2 %v3804_v25  ;;  %v3764_v30 = vld [vmem:[%s15764_s2 + $0x420] sm:$0xff] }
 0x5ae   :  { %v13135_v39 = vpop.f32.mrf.mxu0  ;;  %4956 = vmatpush.msra.mxu1 %v3740_v51  ;;  %4928 = vmatpush.msra.mxu0 %v3672_v63  ;;  %v3700_v33 = vld [vmem:[%s15764_s2 + $0x220] sm:$0xff]  ;;  %v3693_v51 = vld [vmem:[%s15764_s2 + $0x1e8] sm:$0xff] }
 0x5af   :  { %4871 = vmatmul.f32.vlgmr.msrb.gmra.mxu2 %v12328_v60  ;;  %v3736_v60 = vld [vmem:[%s15764_s2 + $0x340] sm:$0xff]  ;;  %v3821_v63 = vld [vmem:[%s15764_s2 + $0x5e8] sm:$0xff] }
 0x5b0   :  { %4845 = vmatmul.f32.gmra.mxu1 %v12383_v34  ;;  %7462 = vmatmul.msk.f32.vlgmr.msrb.gmra.mxu3 %vm24_vm1, %v12639_v43  ;;  %v3864_v34 = vld [vmem:[%s15764_s2 + $0x740] sm:$0xff] }
 0x5b1   :  { %4813 = vmatmul.f32.vlgmr.msrb.gmra.mxu0 %v12314_v37  ;;  %v3796_v43 = vld [vmem:[%s15764_s2 + $0x520] sm:$0xff]  ;;  %4986 = vmatpush.msra.mxu2 %v3800_v52 }
 0x5b2   :  { %4957 = vmatpush.msra.mxu1 %v3736_v60  ;;  %5015 = vmatpush.msra.mxu3 %v3864_v34  ;;  %v3664_v37 = vld [vmem:[%s15764_s2 + $0x100] sm:$0xff]  ;;  %v13198_v1 = vpop.f32.mrf.mxu2  ;;  %v13208_v7 = vpop.f32.mrf.mxu3 }
 0x5b3   :  { %4929 = vmatpush.msra.mxu0 %v3668_v6  ;;  %4987 = vmatpush.msra.mxu2 %v3796_v43  ;;  %16037 = vst [vmem:[#allocation64_spill] sm:$0xff] %v13208_v7  ;;  %v3828_v24 = vld [vmem:[%s15764_s2 + $0x620] sm:$0xff]  ;;  %v13338_v6 = vld [vmem:[#allocation2 + $0x10] sm:$0xff]  ;;  %v3753_v43 = vld [vmem:[%s15764_s2 + $0x3c8] sm:$0xff] }
 0x5b4   :  { %v13179_v26 = vpop.f32.mrf.mxu1  ;;  %4958 = vmatpush.msra.mxu1 %v3732_v42  ;;  %5016 = vmatpush.msra.mxu3 %v3860_v16  ;;  %v3760_v32 = vld [vmem:[%s15764_s2 + $0x400] sm:$0xff]  ;;  %v13344_v42 = vld [vmem:[#allocation2 + $0x18] sm:$0xff]  ;;  %v3689_v16 = vld [vmem:[%s15764_s2 + $0x1c8] sm:$0xff] }
 0x5b5   :  { %16036 = vst [vmem:[#allocation63_spill] sm:$0xff] %v13179_v26  ;;  %4930 = vmatpush.msra.mxu0 %v3664_v37  ;;  %4988 = vmatpush.msra.mxu2 %v3792_v48  ;;  %v3824_v36 = vld [vmem:[%s15764_s2 + $0x600] sm:$0xff]  ;;  %v3817_v37 = vld [vmem:[%s15764_s2 + $0x5c8] sm:$0xff] }
 0x5b6   :  { %v13184_v3 = vpop.f32.mrf.mxu0  ;;  %4959 = vmatpush.msra.mxu1 %v3728_v18  ;;  %5017 = vmatpush.msra.mxu3 %v3856_v62  ;;  %v3916_v60 = vld [vmem:[%s15764_s2 + $0x8e0] sm:$0xff]  ;;  %v3749_v18 = vld [vmem:[%s15764_s2 + $0x3a8] sm:$0xff] }
 0x5b7   :  { %4874 = vmatmul.f32.gmra.mxu2 %v12386_v11  ;;  %v3724_v11 = vld [vmem:[%s15764_s2 + $0x2e0] sm:$0xff]  ;;  %4931 = vmatpush.msra.mxu0 %v3660_v49  ;;  %v3685_v49 = vld [vmem:[%s15764_s2 + $0x1a8] sm:$0xff] }
 0x5b8   :  { %7463 = vmatmul.msk.f32.gmra.mxu3 %vm24_vm1, %v12683_v17  ;;  %4848 = vmatmul.f32.gmra.mxu1 %v12459_v59  ;;  %v3656_v17 = vld [vmem:[%s15764_s2 + $0xc0] sm:$0xff]  ;;  %v7563_v26 = vld [vmem:[%s15764_s2 + $0x1488] sm:$0xff] }
 0x5b9   :  { %4816 = vmatmul.f32.gmra.mxu0 %v12372_v2  ;;  %v3784_v59 = vld [vmem:[%s15764_s2 + $0x4c0] sm:$0xff]  ;;  %4989 = vmatpush.msra.mxu2 %v3788_v45  ;;  %v3813_v45 = vld [vmem:[%s15764_s2 + $0x5a8] sm:$0xff] }
 0x5ba   :  { %v3848_v2 = vld [vmem:[%s15764_s2 + $0x6c0] sm:$0xff]  ;;  %4960 = vmatpush.msra.mxu1 %v3724_v11  ;;  %5018 = vmatpush.msra.mxu3 %v3852_v14  ;;  %v13260_v12 = vpop.f32.mrf.mxu2  ;;  %v3745_v14 = vld [vmem:[%s15764_s2 + $0x388] sm:$0xff] }
 0x5bb   :  { %4932 = vmatpush.msra.mxu0 %v3656_v17  ;;  %4990 = vmatpush.msra.mxu2 %v3784_v59  ;;  %16040 = vst [vmem:[#allocation66_spill] sm:$0xff] %v13260_v12  ;;  %v13268_v53 = vpop.f32.mrf.mxu3  ;;  %v13352_v48 = vld [vmem:[#allocation2] sm:$0xff]  ;;  %v3681_v59 = vld [vmem:[%s15764_s2 + $0x188] sm:$0xff] }
 0x5bc   :  { %v13228_v19 = vpop.f32.mrf.mxu1  ;;  %4961 = vmatpush.msra.mxu1 %v3720_v22  ;;  %5019 = vmatpush.msra.mxu3 %v3848_v2  ;;  %16041 = vst [vmem:[#allocation68_spill] sm:$0xff] %v13268_v53  ;;  %v3912_v62 = vld [vmem:[%s15764_s2 + $0x8c0] sm:$0xff]  ;;  %v3809_v22 = vld [vmem:[%s15764_s2 + $0x588] sm:$0xff] }
 0x5bd   :  { %16038 = vst [vmem:[#allocation65_spill] sm:$0xff] %v13228_v19  ;;  %4933 = vmatpush.msra.mxu0 %v3652_v35  ;;  %4991 = vmatpush.msra.mxu2 %v3780_v38  ;;  %v3908_v2 = vld [vmem:[%s15764_s2 + $0x8a0] sm:$0xff]  ;;  %v13386_v38 = vld [vmem:[#allocation2 + $0x30] sm:$0xff] }
 0x5be   :  { %v13236_v27 = vpop.f32.mrf.mxu0  ;;  %4962 = vmatpush.msra.mxu1 %v3716_v56  ;;  %5020 = vmatpush.msra.mxu3 %v3844_v8  ;;  %v3741_v56 = vld [vmem:[%s15764_s2 + $0x368] sm:$0xff]  ;;  %v5510_v53 = vld [vmem:[#allocation2 + $0x60] sm:$0x3] }
 0x5bf   :  { %16039 = vst [vmem:[#allocation72_spill] sm:$0xff] %v13236_v27  ;;  %4877 = vmatmul.f32.gmra.mxu2 %v12469_v28  ;;  %4934 = vmatpush.msra.mxu0 %v3648_v15  ;;  %v3644_v28 = vld [vmem:[%s15764_s2 + $0x60] sm:$0xff]  ;;  %v3677_v8 = vld [vmem:[%s15764_s2 + $0x168] sm:$0xff]  ;;  %v5562_v12 = vrot.slane %v5510_v53, 2 }
 0x5c0   :  { %7464 = vmatmul.msk.f32.gmra.mxu3 %vm24_vm1, %v12727_v10  ;;  %4992 = vmatpush.msra.mxu2 %v3776_v41  ;;  %v3708_v10 = vld [vmem:[%s15764_s2 + $0x260] sm:$0xff]  ;;  %v13397_v41 = vld [vmem:[#allocation2 + $0x38] sm:$0xff]  ;;  %v7527_v53 = vld [vmem:[%s15764_s2 + $0x1368] sm:$0xff] }
 0x5c1   :  { %4819 = vmatmul.f32.gmra.mxu0 %v12454_v57  ;;  %4963 = vmatpush.msra.mxu1 %v3712_v23  ;;  %v3836_v57 = vld [vmem:[%s15764_s2 + $0x660] sm:$0xff]  ;;  %v3805_v23 = vld [vmem:[%s15764_s2 + $0x568] sm:$0xff] }
 0x5c2   :  { %5021 = vmatpush.msra.mxu3 %v3840_v46  ;;  %4851 = vmatmul.f32.gmra.mxu1 %v12575_v4  ;;  %v3636_v4 = vld [vmem:[%s15764_s2 + $0x20] sm:$0xff]  ;;  %v3737_v46 = vld [vmem:[%s15764_s2 + $0x348] sm:$0xff] }
 0x5c3   :  { %4935 = vmatpush.msra.mxu0 %v3644_v28  ;;  %4993 = vmatpush.msra.mxu2 %v3772_v0  ;;  %v13406_v28 = vld [vmem:[#allocation2 + $0x40] sm:$0xff]  ;;  %v3673_v0 = vld [vmem:[%s15764_s2 + $0x148] sm:$0xff] }
 0x5c4   :  { %v13280_v55 = vpop.f32.mrf.mxu1  ;;  %4964 = vmatpush.msra.mxu1 %v3708_v10  ;;  %5022 = vmatpush.msra.mxu3 %v3836_v57  ;;  %v3904_v10 = vld [vmem:[%s15764_s2 + $0x880] sm:$0xff]  ;;  %v13415_v57 = vld [vmem:[#allocation2 + $0x28] sm:$0xff] }
 0x5c5   :  { %16042 = vst [vmem:[#allocation76_spill] sm:$0xff] %v13280_v55  ;;  %4936 = vmatpush.msra.mxu0 %v3640_v54  ;;  %4994 = vmatpush.msra.mxu2 %v3768_v20  ;;  %v3801_v54 = vld [vmem:[%s15764_s2 + $0x548] sm:$0xff]  ;;  %v7714_v55 = vld [vmem:[%s15764_s2 + $0x1940] sm:$0xff] }
 0x5c6   :  { %v13285_v61 = vpop.f32.mrf.mxu0  ;;  %4965 = vmatpush.msra.mxu1 %v3704_v50  ;;  %5023 = vmatpush.msra.mxu3 %v3832_v9  ;;  %v3733_v20 = vld [vmem:[%s15764_s2 + $0x328] sm:$0xff]  ;;  %v3900_v9 = vld [vmem:[%s15764_s2 + $0x860] sm:$0xff] }
 0x5c7   :  { %16043 = vst [vmem:[#allocation67_spill] sm:$0xff] %v13285_v61  ;;  %4880 = vmatmul.f32.gmra.mxu2 %v12584_v58  ;;  %4937 = vmatpush.msra.mxu0 %v3636_v4  ;;  %v3632_v58 = vld [vmem:[%s15764_s2] sm:$0xff]  ;;  %v3669_v4 = vld [vmem:[%s15764_s2 + $0x128] sm:$0xff] }
 0x5c8   :  { %7465 = vmatmul.msk.f32.gmra.mxu3 %vm24_vm1, %v12772_v31  ;;  %v3696_v31 = vld [vmem:[%s15764_s2 + $0x200] sm:$0xff]  ;;  %4995 = vmatpush.msra.mxu2 %v3764_v30  ;;  %v5504_v61 = vld [vmem:[#allocation2 + $0x8] sm:$0xfc] }
 0x5c9   :  { %4822 = vmatmul.f32.gmra.mxu0 %v12532_v5  ;;  %4966 = vmatpush.msra.mxu1 %v3700_v33  ;;  %v3757_v5 = vld [vmem:[%s15764_s2 + $0x3e8] sm:$0xff] }
 0x5ca   :  { %v13312_v40 = vpop.f32.mrf.mxu2  ;;  %5024 = vmatpush.msra.mxu3 %v3828_v24  ;;  %4938 = vmatpush.msra.mxu0 %v3632_v58  ;;  %v3797_v33 = vld [vmem:[%s15764_s2 + $0x528] sm:$0xff] }
 0x5cb   :  { %16044 = vst [vmem:[#allocation80_spill] sm:$0xff] %v13312_v40  ;;  %v13317_v25 = vpop.f32.mrf.mxu3  ;;  %4996 = vmatpush.msra.mxu2 %v3760_v32  ;;  %4967 = vmatpush.msra.mxu1 %v3696_v31  ;;  %v3729_v24 = vld [vmem:[%s15764_s2 + $0x308] sm:$0xff]  ;;  %v5505_v40 = vld [vmem:[#allocation2 + $0x10] sm:$0xfc] }
 0x5cc   :  { %16045 = vst [vmem:[#allocation6_spill] sm:$0xff] %v13317_v25  ;;  %v13330_v52 = vpop.f32.mrf.mxu1  ;;  %5025 = vmatpush.msra.mxu3 %v3824_v36  ;;  %4968 = vmatmul.f32.vlgmr.msra.gmra.mxu1 %v13325_v44  ;;  %v3665_v58 = vld [vmem:[%s15764_s2 + $0x108] sm:$0xff] }
 0x5cd   :  { %16046 = vst [vmem:[#allocation7_spill] sm:$0xff] %v13330_v52  ;;  %5097 = vmatpush.msrb.mxu2 %v3757_v5  ;;  %5068 = vmatpush.msrb.mxu1 %v3693_v51  ;;  %v3793_v31 = vld [vmem:[%s15764_s2 + $0x508] sm:$0xff]  ;;  %v13450_v5 = vld [vmem:[#allocation2 + $0x78] sm:$0xff] }
 0x5ce   :  { %v13336_v34 = vpop.f32.mrf.mxu0  ;;  %5126 = vmatpush.msrb.mxu3 %v3821_v63  ;;  %5047 = vmatpush.msrb.mxu0 %v3916_v60  ;;  %v13452_v51 = vld [vmem:[#allocation2 + $0x88] sm:$0xff]  ;;  %v13454_v63 = vld [vmem:[#allocation2 + $0x80] sm:$0xff]  ;;  %v3779_v52 = vld [vmem:[%s15764_s2 + $0x498] sm:$0xff] }
 0x5cf   :  { %4997 = vmatmul.f32.vlgmr.msra.gmra.mxu2 %v13338_v6  ;;  %5069 = vmatpush.msrb.mxu1 %v3689_v16  ;;  %v3725_v60 = vld [vmem:[%s15764_s2 + $0x2e8] sm:$0xff]  ;;  %v13464_v16 = vld [vmem:[#allocation2 + $0x90] sm:$0xff] }
 0x5d0   :  { %5026 = vmatmul.f32.vlgmr.msra.gmra.mxu3 %v13344_v42  ;;  %5098 = vmatpush.msrb.mxu2 %v3753_v43  ;;  %v3661_v43 = vld [vmem:[%s15764_s2 + $0xe8] sm:$0xff] }
 0x5d1   :  { %4939 = vmatmul.f32.vlgmr.msra.gmra.mxu0 %v13352_v48  ;;  %5127 = vmatpush.msrb.mxu3 %v3817_v37  ;;  %v3789_v37 = vld [vmem:[%s15764_s2 + $0x4e8] sm:$0xff] }
 0x5d2   :  { %v13368_v11 = vpop.f32.mrf.mxu2  ;;  %5099 = vmatpush.msrb.mxu2 %v3749_v18  ;;  %5048 = vmatpush.msrb.mxu0 %v3912_v62  ;;  %v3896_v18 = vld [vmem:[%s15764_s2 + $0x840] sm:$0xff]  ;;  %v3721_v62 = vld [vmem:[%s15764_s2 + $0x2c8] sm:$0xff] }
 0x5d3   :  { %16047 = vst [vmem:[#allocation3_spill] sm:$0xff] %v13368_v11  ;;  %v13373_v17 = vpop.f32.mrf.mxu3  ;;  %5070 = vmatpush.msrb.mxu1 %v3685_v49  ;;  %5128 = vmatpush.msrb.mxu3 %v3813_v45  ;;  %v3657_v49 = vld [vmem:[%s15764_s2 + $0xc8] sm:$0xff] }
 0x5d4   :  { %16048 = vst [vmem:[#allocation4_spill] sm:$0xff] %v13373_v17  ;;  %v13384_v35 = vpop.f32.mrf.mxu1  ;;  %5100 = vmatpush.msrb.mxu2 %v3745_v14  ;;  %4971 = vmatmul.f32.gmra.mxu1 %v13386_v38  ;;  %v3785_v14 = vld [vmem:[%s15764_s2 + $0x4c8] sm:$0xff]  ;;  %v3763_v17 = vld [vmem:[%s15764_s2 + $0x418] sm:$0xff] }
 0x5d5   :  { %16049 = vst [vmem:[#allocation9_spill] sm:$0xff] %v13384_v35  ;;  %5071 = vmatpush.msrb.mxu1 %v3681_v59  ;;  %5129 = vmatpush.msrb.mxu3 %v3809_v22  ;;  %v3892_v59 = vld [vmem:[%s15764_s2 + $0x820] sm:$0xff]  ;;  %v3830_v35 = vld [vmem:[%s15764_s2 + $0x630] sm:$0xff]  ;;  %v7816_v11 = vld [vmem:[#allocation2 + $0x8] sm:$0xff] }
 0x5d6   :  { %v13392_v15 = vpop.f32.mrf.mxu0  ;;  %5049 = vmatpush.msrb.mxu0 %v3908_v2  ;;  %5101 = vmatpush.msrb.mxu2 %v3741_v56  ;;  %v3717_v2 = vld [vmem:[%s15764_s2 + $0x2a8] sm:$0xff] }
 0x5d7   :  { %16050 = vst [vmem:[#allocation10_spill] sm:$0xff] %v13392_v15  ;;  %5000 = vmatmul.f32.gmra.mxu2 %v13397_v41  ;;  %5072 = vmatpush.msrb.mxu1 %v3677_v8  ;;  %v3653_v56 = vld [vmem:[%s15764_s2 + $0xa8] sm:$0xff] }
 0x5d8   :  { %5029 = vmatmul.f32.gmra.mxu3 %v13406_v28  ;;  %5102 = vmatpush.msrb.mxu2 %v3737_v46  ;;  %v3781_v8 = vld [vmem:[%s15764_s2 + $0x4a8] sm:$0xff] }
 0x5d9   :  { %4942 = vmatmul.f32.gmra.mxu0 %v13415_v57  ;;  %5130 = vmatpush.msrb.mxu3 %v3805_v23  ;;  %v3713_v46 = vld [vmem:[%s15764_s2 + $0x288] sm:$0xff] }
 0x5da   :  { %v13424_v50 = vpop.f32.mrf.mxu2  ;;  %5073 = vmatpush.msrb.mxu1 %v3673_v0  ;;  %5050 = vmatpush.msrb.mxu0 %v3904_v10  ;;  %v3649_v0 = vld [vmem:[%s15764_s2 + $0x88] sm:$0xff] }
 0x5db   :  { %16051 = vst [vmem:[#allocation8_spill] sm:$0xff] %v13424_v50  ;;  %v13432_v30 = vpop.f32.mrf.mxu3  ;;  %5131 = vmatpush.msrb.mxu3 %v3801_v54  ;;  %5103 = vmatpush.msrb.mxu2 %v3733_v20  ;;  %v3777_v54 = vld [vmem:[%s15764_s2 + $0x488] sm:$0xff]  ;;  %v13512_v20 = vld [vmem:[#allocation2 + $0xb0] sm:$0xff] }
 0x5dc   :  { %16052 = vst [vmem:[#allocation5_spill] sm:$0xff] %v13432_v30  ;;  %v13443_v32 = vpop.f32.mrf.mxu1  ;;  %5074 = vmatpush.msrb.mxu1 %v3669_v4  ;;  %5051 = vmatpush.msrb.mxu0 %v3900_v9  ;;  %v3709_v4 = vld [vmem:[%s15764_s2 + $0x268] sm:$0xff]  ;;  %v3762_v30 = vld [vmem:[%s15764_s2 + $0x410] sm:$0xff] }
 0x5dd   :  { %16053 = vst [vmem:[#allocation11_spill] sm:$0xff] %v13443_v32  ;;  %5132 = vmatpush.msrb.mxu3 %v3797_v33  ;;  %5104 = vmatpush.msrb.mxu2 %v3729_v24  ;;  %v3645_v9 = vld [vmem:[%s15764_s2 + $0x68] sm:$0xff]  ;;  %v13521_v33 = vld [vmem:[#allocation2 + $0xa0] sm:$0xff] }
 0x5de   :  { %v13448_v36 = vpop.f32.mrf.mxu0  ;;  %5075 = vmatpush.msrb.mxu1 %v3665_v58  ;;  %5052 = vmatpush.msrb.mxu0 %v3896_v18  ;;  %v3773_v24 = vld [vmem:[%s15764_s2 + $0x468] sm:$0xff]  ;;  %v3888_v58 = vld [vmem:[%s15764_s2 + $0x800] sm:$0xff] }
 0x5df   :  { %16054 = vst [vmem:[#allocation20_spill] sm:$0xff] %v13448_v36  ;;  %5003 = vmatmul.f32.gmra.mxu2 %v13452_v51  ;;  %5133 = vmatpush.msrb.mxu3 %v3793_v31  ;;  %v13530_v31 = vld [vmem:[#allocation2 + $0xa8] sm:$0xff] }
 0x5e0   :  { %4974 = vmatmul.f32.gmra.mxu1 %v13454_v63  ;;  %5032 = vmatmul.f32.gmra.mxu3 %v13464_v16  ;;  %v3641_v18 = vld [vmem:[%s15764_s2 + $0x48] sm:$0xff] }
 0x5e1   :  { %4945 = vmatmul.f32.gmra.mxu0 %v13450_v5  ;;  %5105 = vmatpush.msrb.mxu2 %v3725_v60  ;;  %v13533_v60 = vld [vmem:[#allocation2 + $0xb8] sm:$0xff]  ;;  %v3829_v32 = vld [vmem:[%s15764_s2 + $0x628] sm:$0xff] }
 0x5e2   :  { %5076 = vmatpush.msrb.mxu1 %v3661_v43  ;;  %v13480_v45 = vpop.f32.mrf.mxu2  ;;  %5134 = vmatpush.msrb.mxu3 %v3789_v37  ;;  %v3705_v43 = vld [vmem:[%s15764_s2 + $0x248] sm:$0xff] }
 0x5e3   :  { %16055 = vst [vmem:[#allocation12_spill] sm:$0xff] %v13480_v45  ;;  %v13488_v22 = vpop.f32.mrf.mxu3  ;;  %5106 = vmatpush.msrb.mxu2 %v3721_v62  ;;  %5053 = vmatpush.msrb.mxu0 %v3892_v59  ;;  %v3701_v59 = vld [vmem:[%s15764_s2 + $0x228] sm:$0xff] }
 0x5e4   :  { %16056 = vst [vmem:[#allocation13_spill] sm:$0xff] %v13488_v22  ;;  %5077 = vmatpush.msrb.mxu1 %v3657_v49  ;;  %v13499_v23 = vpop.f32.mrf.mxu1  ;;  %5135 = vmatpush.msrb.mxu3 %v3785_v14  ;;  %v3769_v49 = vld [vmem:[%s15764_s2 + $0x448] sm:$0xff] }
 0x5e5   :  { %16057 = vst [vmem:[#allocation16_spill] sm:$0xff] %v13499_v23  ;;  %5107 = vmatpush.msrb.mxu2 %v3717_v2  ;;  %v3885_v14 = vld [vmem:[%s15764_s2 + $0x7e8] sm:$0xff]  ;;  %5054 = vmatpush.msrb.mxu0 %v3888_v58  ;;  %v3694_v58 = vld [vmem:[%s15764_s2 + $0x1f0] sm:$0xff] }
 0x5e6   :  { %v13507_v10 = vpop.f32.mrf.mxu0  ;;  %5078 = vmatpush.msrb.mxu1 %v3653_v56  ;;  %5136 = vmatpush.msrb.mxu3 %v3781_v8  ;;  %v3637_v2 = vld [vmem:[%s15764_s2 + $0x28] sm:$0xff] }
 0x5e7   :  { %16058 = vst [vmem:[#allocation24_spill] sm:$0xff] %v13507_v10  ;;  %5006 = vmatmul.f32.gmra.mxu2 %v13512_v20  ;;  %v3765_v8 = vld [vmem:[%s15764_s2 + $0x428] sm:$0xff]  ;;  %5155 = vmatpush.msra.mxu0 %v3885_v14  ;;  %v3690_v14 = vld [vmem:[%s15764_s2 + $0x1d0] sm:$0xff]  ;;  %v7594_v10 = vld [vmem:[%s15764_s2 + $0x1580] sm:$0xff] }
 0x5e8   :  { %5108 = vmatpush.msrb.mxu2 %v3713_v46  ;;  %5079 = vmatpush.msrb.mxu1 %v3649_v0  ;;  %v3881_v46 = vld [vmem:[%s15764_s2 + $0x7c8] sm:$0xff] }
 0x5e9   :  { %4948 = vmatmul.f32.gmra.mxu0 %v13521_v33  ;;  %5137 = vmatpush.msrb.mxu3 %v3777_v54  ;;  %v3697_v54 = vld [vmem:[%s15764_s2 + $0x208] sm:$0xff] }
 0x5ea   :  { %4977 = vmatmul.f32.gmra.mxu1 %v13530_v31  ;;  %5035 = vmatmul.f32.gmra.mxu3 %v13533_v60  ;;  %v13539_v37 = vpop.f32.mrf.mxu2  ;;  %v7499_v27 = vld [vmem:[%s15764_s2 + $0x1288] sm:$0xff] }
 0x5eb   :  { %16059 = vst [vmem:[#allocation19_spill] sm:$0xff] %v13539_v37  ;;  %5109 = vmatpush.msrb.mxu2 %v3709_v4  ;;  %5080 = vmatpush.msrb.mxu1 %v3645_v9  ;;  %v13544_v62 = vpop.f32.mrf.mxu3  ;;  %v3633_v4 = vld [vmem:[%s15764_s2 + $0x8] sm:$0xff] }
 0x5ec   :  { %16060 = vst [vmem:[#allocation14_spill] sm:$0xff] %v13544_v62  ;;  %5138 = vmatpush.msrb.mxu3 %v3773_v24  ;;  %v13558_v56 = vpop.f32.mrf.mxu1  ;;  %v3761_v9 = vld [vmem:[%s15764_s2 + $0x408] sm:$0xff]  ;;  %v13577_v24 = vld [vmem:[#allocation2 + $0x20] sm:$0xff]  ;;  %5156 = vmatpush.msra.mxu0 %v3881_v46 }
 0x5ed   :  { %16061 = vst [vmem:[#allocation15_spill] sm:$0xff] %v13558_v56  ;;  %5110 = vmatpush.msrb.mxu2 %v3705_v43  ;;  %5081 = vmatpush.msrb.mxu1 %v3641_v18  ;;  %v3758_v43 = vld [vmem:[%s15764_s2 + $0x3f0] sm:$0xff]  ;;  %v3873_v46 = vld [vmem:[%s15764_s2 + $0x788] sm:$0xff] }
 0x5ee   :  { %5139 = vmatpush.msrb.mxu3 %v3769_v49  ;;  %v13566_v0 = vpop.f32.mrf.mxu0  ;;  %v3877_v49 = vld [vmem:[%s15764_s2 + $0x7a8] sm:$0xff]  ;;  %v3842_v56 = vld [vmem:[%s15764_s2 + $0x690] sm:$0xff] }
 0x5ef   :  { %16062 = vst [vmem:[#allocation23_spill] sm:$0xff] %v13566_v0  ;;  %5111 = vmatpush.msrb.mxu2 %v3701_v59  ;;  %5082 = vmatpush.msrb.mxu1 %v3637_v2  ;;  %v3917_v2 = vld [vmem:[%s15764_s2 + $0x8e8] sm:$0xff] }
 0x5f0   :  { %5140 = vmatpush.msrb.mxu3 %v3765_v8  ;;  %v3754_v8 = vld [vmem:[%s15764_s2 + $0x3d0] sm:$0xff]  ;;  %5157 = vmatpush.msra.mxu0 %v3877_v49  ;;  %v3869_v49 = vld [vmem:[%s15764_s2 + $0x768] sm:$0xff] }
 0x5f1   :  { %5112 = vmatpush.msrb.mxu2 %v3697_v54  ;;  %7466 = vmatmul.msk.f32.vlgmr.msrb.gmra.mxu0 %vm24_vm1, %v13577_v24  ;;  %v3845_v37 = vld [vmem:[%s15764_s2 + $0x6a8] sm:$0xff] }
 0x5f2   :  { %5083 = vmatpush.msrb.mxu1 %v3633_v4  ;;  %5141 = vmatpush.msrb.mxu3 %v3761_v9  ;;  %v13587_v18 = vpop.f32.mrf.mxu2  ;;  %v3686_v4 = vld [vmem:[%s15764_s2 + $0x1b0] sm:$0xff]  ;;  %v3913_v9 = vld [vmem:[%s15764_s2 + $0x8c8] sm:$0xff] }
 0x5f3   :  { %16063 = vst [vmem:[#allocation73_spill] sm:$0xff] %v13587_v18  ;;  %5084 = vmatmul.f32.vlgmr.msrb.gmra.mxu1 %v13352_v48  ;;  %5113 = vmatmul.f32.vlgmr.msrb.gmra.mxu2 %v13325_v44  ;;  %v13597_v59 = vpop.f32.mrf.mxu3  ;;  %v3905_v18 = vld [vmem:[%s15764_s2 + $0x888] sm:$0xff] }
 0x5f4   :  { %16064 = vst [vmem:[#allocation28_spill] sm:$0xff] %v13597_v59  ;;  %5142 = vmatmul.f32.vlgmr.msrb.gmra.mxu3 %v13338_v6  ;;  %5213 = vmatpush.msra.mxu2 %v3694_v58  ;;  %v13609_v54 = vpop.f32.mrf.mxu1  ;;  %v3750_v59 = vld [vmem:[%s15764_s2 + $0x3b0] sm:$0xff] }
 0x5f5   :  { %16065 = vst [vmem:[#allocation69_spill] sm:$0xff] %v13609_v54  ;;  %5242 = vmatpush.msra.mxu3 %v3758_v43  ;;  %5192 = vmatpush.msra.mxu1 %v3917_v2  ;;  %v3682_v43 = vld [vmem:[%s15764_s2 + $0x190] sm:$0xff]  ;;  %v13631_v2 = vld [vmem:[#allocation2 + $0x48] sm:$0xff] }
 0x5f6   :  { %5214 = vmatpush.msra.mxu2 %v3690_v14  ;;  %v13617_v58 = vpop.f32.mrf.mxu0  ;;  %5158 = vmatpush.msra.mxu0 %v3873_v46  ;;  %v3746_v14 = vld [vmem:[%s15764_s2 + $0x390] sm:$0xff] }
 0x5f7   :  { %16066 = vst [vmem:[#allocation74_spill] sm:$0xff] %v13617_v58  ;;  %5243 = vmatpush.msra.mxu3 %v3754_v8  ;;  %5193 = vmatpush.msra.mxu1 %v3913_v9  ;;  %v3678_v8 = vld [vmem:[%s15764_s2 + $0x170] sm:$0xff] }
 0x5f8   :  { %5215 = vmatpush.msra.mxu2 %v3686_v4  ;;  %5159 = vmatpush.msra.mxu0 %v3869_v49  ;;  %v3742_v46 = vld [vmem:[%s15764_s2 + $0x370] sm:$0xff] }
 0x5f9   :  { %5244 = vmatpush.msra.mxu3 %v3750_v59  ;;  %7467 = vmatmul.msk.f32.gmra.mxu0 %vm24_vm1, %v13631_v2  ;;  %v3865_v59 = vld [vmem:[%s15764_s2 + $0x748] sm:$0xff]  ;;  %v3674_v49 = vld [vmem:[%s15764_s2 + $0x150] sm:$0xff] }
 0x5fa   :  { %5216 = vmatpush.msra.mxu2 %v3682_v43  ;;  %v13641_v4 = vpop.f32.mrf.mxu2  ;;  %v3909_v43 = vld [vmem:[%s15764_s2 + $0x8a8] sm:$0xff]  ;;  %5160 = vmatpush.msra.mxu0 %v3865_v59  ;;  %v3670_v54 = vld [vmem:[%s15764_s2 + $0x130] sm:$0xff] }
 0x5fb   :  { %16067 = vst [vmem:[#allocation77_spill] sm:$0xff] %v13641_v4  ;;  %5245 = vmatpush.msra.mxu3 %v3746_v14  ;;  %5087 = vmatmul.f32.gmra.mxu1 %v13415_v57  ;;  %v13647_v9 = vpop.f32.mrf.mxu3  ;;  %v3738_v14 = vld [vmem:[%s15764_s2 + $0x350] sm:$0xff]  ;;  %v3901_v59 = vld [vmem:[%s15764_s2 + $0x868] sm:$0xff] }
 0x5fc   :  { %16068 = vst [vmem:[#allocation70_spill] sm:$0xff] %v13647_v9  ;;  %5116 = vmatmul.f32.gmra.mxu2 %v13386_v38  ;;  %5145 = vmatmul.f32.gmra.mxu3 %v13397_v41  ;;  %v13660_v4 = vpop.f32.mrf.mxu1  ;;  %v3861_v9 = vld [vmem:[%s15764_s2 + $0x728] sm:$0xff] }
 0x5fd   :  { %16069 = vst [vmem:[#allocation78_spill] sm:$0xff] %v13660_v4  ;;  %5217 = vmatpush.msra.mxu2 %v3678_v8  ;;  %5246 = vmatpush.msra.mxu3 %v3742_v46  ;;  %v3734_v8 = vld [vmem:[%s15764_s2 + $0x330] sm:$0xff]  ;;  %v3857_v46 = vld [vmem:[%s15764_s2 + $0x708] sm:$0xff] }
 0x5fe   :  { %v13668_v62 = vpop.f32.mrf.mxu0  ;;  %5194 = vmatpush.msra.mxu1 %v3909_v43  ;;  %5161 = vmatpush.msra.mxu0 %v3861_v9  ;;  %v3666_v43 = vld [vmem:[%s15764_s2 + $0x110] sm:$0xff] }
 0x5ff   :  { %16070 = vst [vmem:[#allocation27_spill] sm:$0xff] %v13668_v62  ;;  %5218 = vmatpush.msra.mxu2 %v3674_v49  ;;  %5247 = vmatpush.msra.mxu3 %v3738_v14  ;;  %v3730_v49 = vld [vmem:[%s15764_s2 + $0x310] sm:$0xff]  ;;  %v13688_v14 = vld [vmem:[#allocation2 + $0x98] sm:$0xff] }
 0x600   :  { %5195 = vmatpush.msra.mxu1 %v3905_v18  ;;  %5162 = vmatpush.msra.mxu0 %v3857_v46  ;;  %v3853_v18 = vld [vmem:[%s15764_s2 + $0x6e8] sm:$0xff]  ;;  %v3638_v62 = vld [vmem:[%s15764_s2 + $0x30] sm:$0xff] }
 0x601   :  { %5219 = vmatpush.msra.mxu2 %v3670_v54  ;;  %5248 = vmatpush.msra.mxu3 %v3734_v8  ;;  %v3662_v54 = vld [vmem:[%s15764_s2 + $0xf0] sm:$0xff]  ;;  %v3897_v46 = vld [vmem:[%s15764_s2 + $0x848] sm:$0xff] }
 0x602   :  { %v13690_v4 = vpop.f32.mrf.mxu2  ;;  %5196 = vmatpush.msra.mxu1 %v3901_v59  ;;  %7468 = vmatmul.msk.f32.gmra.mxu0 %vm24_vm1, %v13688_v14  ;;  %v3726_v8 = vld [vmem:[%s15764_s2 + $0x2f0] sm:$0xff] }
 0x603   :  { %16071 = vst [vmem:[#allocation75_spill] sm:$0xff] %v13690_v4  ;;  %5220 = vmatpush.msra.mxu2 %v3666_v43  ;;  %v13700_v9 = vpop.f32.mrf.mxu3  ;;  %5249 = vmatpush.msra.mxu3 %v3730_v49  ;;  %v3849_v43 = vld [vmem:[%s15764_s2 + $0x6c8] sm:$0xff]  ;;  %v3658_v49 = vld [vmem:[%s15764_s2 + $0xd0] sm:$0xff] }
 0x604   :  { %16072 = vst [vmem:[#allocation81_spill] sm:$0xff] %v13700_v9  ;;  %5090 = vmatmul.f32.gmra.mxu1 %v13450_v5  ;;  %5119 = vmatmul.f32.gmra.mxu2 %v13454_v63  ;;  %v3722_v9 = vld [vmem:[%s15764_s2 + $0x2d0] sm:$0xff] }
 0x605   :  { %v13709_v59 = vpop.f32.mrf.mxu1  ;;  %5148 = vmatmul.f32.gmra.mxu3 %v13452_v51  ;;  %5163 = vmatpush.msra.mxu0 %v3853_v18  ;;  %v3654_v18 = vld [vmem:[%s15764_s2 + $0xb0] sm:$0xff] }
 0x606   :  { %16073 = vst [vmem:[#allocation71_spill] sm:$0xff] %v13709_v59  ;;  %5221 = vmatpush.msra.mxu2 %v3662_v54  ;;  %v13722_v4 = vpop.f32.mrf.mxu0  ;;  %v3893_v59 = vld [vmem:[%s15764_s2 + $0x828] sm:$0xff]  ;;  %5250 = vmatpush.msra.mxu3 %v3726_v8  ;;  %v3718_v54 = vld [vmem:[%s15764_s2 + $0x2b0] sm:$0xff] }
 0x607   :  { %16074 = vst [vmem:[#allocation79_spill] sm:$0xff] %v13722_v4  ;;  %5197 = vmatpush.msra.mxu1 %v3897_v46  ;;  %5164 = vmatpush.msra.mxu0 %v3849_v43  ;;  %v3841_v8 = vld [vmem:[%s15764_s2 + $0x688] sm:$0xff]  ;;  %v3650_v4 = vld [vmem:[%s15764_s2 + $0x90] sm:$0xff] }
 0x608   :  { %5222 = vmatpush.msra.mxu2 %v3658_v49  ;;  %5251 = vmatpush.msra.mxu3 %v3722_v9  ;;  %v3714_v46 = vld [vmem:[%s15764_s2 + $0x290] sm:$0xff]  ;;  %v13747_v49 = vld [vmem:[#allocation2 + $0xc0] sm:$0xff] }
 0x609   :  { %5198 = vmatpush.msra.mxu1 %v3893_v59  ;;  %5165 = vmatpush.msra.mxu0 %v3845_v37  ;;  %v3837_v37 = vld [vmem:[%s15764_s2 + $0x668] sm:$0xff]  ;;  %v3646_v59 = vld [vmem:[%s15764_s2 + $0x70] sm:$0xff] }
 0x60a   :  { %5223 = vmatpush.msra.mxu2 %v3654_v18  ;;  %v13745_v43 = vpop.f32.mrf.mxu2  ;;  %5252 = vmatpush.msra.mxu3 %v3718_v54  ;;  %v3710_v54 = vld [vmem:[%s15764_s2 + $0x270] sm:$0xff] }
 0x60b   :  { %16075 = vst [vmem:[#allocation88_spill] sm:$0xff] %v13745_v43  ;;  %7469 = vmatmul.msk.f32.gmra.mxu0 %vm24_vm1, %v13747_v49  ;;  %v13751_v9 = vpop.f32.mrf.mxu3  ;;  %v3706_v43 = vld [vmem:[%s15764_s2 + $0x250] sm:$0xff] }
 0x60c   :  { %16076 = vst [vmem:[#allocation82_spill] sm:$0xff] %v13751_v9  ;;  %5166 = vmatpush.msra.mxu0 %v3841_v8  ;;  %5224 = vmatpush.msra.mxu2 %v3650_v4  ;;  %v3889_v4 = vld [vmem:[%s15764_s2 + $0x808] sm:$0xff] }
 0x60d   :  { %v13759_v18 = vpop.f32.mrf.mxu1  ;;  %5253 = vmatpush.msra.mxu3 %v3714_v46  ;;  %5093 = vmatmul.f32.gmra.mxu1 %v13521_v33  ;;  %v3833_v8 = vld [vmem:[%s15764_s2 + $0x648] sm:$0xff]  ;;  %v3642_v46 = vld [vmem:[%s15764_s2 + $0x50] sm:$0xff] }
 0x60e   :  { %16077 = vst [vmem:[#allocation84_spill] sm:$0xff] %v13759_v18  ;;  %5122 = vmatmul.f32.gmra.mxu2 %v13530_v31  ;;  %5151 = vmatmul.f32.gmra.mxu3 %v13512_v20  ;;  %v13776_v9 = vpop.f32.mrf.mxu0  ;;  %v3886_v18 = vld [vmem:[%s15764_s2 + $0x7f0] sm:$0xff] }
 0x60f   :  { %16078 = vst [vmem:[#allocation92_spill] sm:$0xff] %v13776_v9  ;;  %5167 = vmatpush.msra.mxu0 %v3837_v37  ;;  %5225 = vmatpush.msra.mxu2 %v3646_v59  ;;  %v3702_v37 = vld [vmem:[%s15764_s2 + $0x230] sm:$0xff] }
 0x610   :  { %5254 = vmatpush.msra.mxu3 %v3710_v54  ;;  %5199 = vmatpush.msra.mxu1 %v3889_v4  ;;  %v3882_v59 = vld [vmem:[%s15764_s2 + $0x7d0] sm:$0xff]  ;;  %v3825_v54 = vld [vmem:[%s15764_s2 + $0x608] sm:$0xff] }
 0x611   :  { %5168 = vmatpush.msra.mxu0 %v3833_v8  ;;  %5226 = vmatpush.msra.mxu2 %v3642_v46  ;;  %v3634_v9 = vld [vmem:[%s15764_s2 + $0x10] sm:$0xff] }
 0x612   :  { %5255 = vmatpush.msra.mxu3 %v3706_v43  ;;  %5300 = vmatpush.msrb.mxu1 %v3886_v18  ;;  %v13802_v4 = vpop.f32.mrf.mxu2  ;;  %v3698_v8 = vld [vmem:[%s15764_s2 + $0x210] sm:$0xff] }
 0x613   :  { %16079 = vst [vmem:[#allocation89_spill] sm:$0xff] %v13802_v4  ;;  %5169 = vmatpush.msra.mxu0 %v3829_v32  ;;  %5227 = vmatpush.msra.mxu2 %v3638_v62  ;;  %v13807_v46 = vpop.f32.mrf.mxu3  ;;  %v3822_v18 = vld [vmem:[%s15764_s2 + $0x5f0] sm:$0xff]  ;;  %v3695_v62 = vld [vmem:[%s15764_s2 + $0x1f8] sm:$0xff] }
 0x614   :  { %5256 = vmatpush.msra.mxu3 %v3702_v37  ;;  %5301 = vmatpush.msrb.mxu1 %v3882_v59  ;;  %v3918_v32 = vld [vmem:[%s15764_s2 + $0x8f0] sm:$0xff]  ;;  %v3683_v4 = vld [vmem:[%s15764_s2 + $0x198] sm:$0xff] }
 0x615   :  { %v13809_v43 = vpop.f32.mrf.mxu1  ;;  %5170 = vmatpush.msra.mxu0 %v3825_v54  ;;  %5228 = vmatpush.msra.mxu2 %v3634_v9  ;;  %v3818_v9 = vld [vmem:[%s15764_s2 + $0x5d0] sm:$0xff]  ;;  %v3691_v54 = vld [vmem:[%s15764_s2 + $0x1d8] sm:$0xff] }
 0x616   :  { %16080 = vst [vmem:[#allocation83_spill] sm:$0xff] %v13809_v43  ;;  %5171 = vmatmul.f32.vlgmr.msra.gmra.mxu0 %v13344_v42  ;;  %5257 = vmatpush.msra.mxu3 %v3698_v8  ;;  %v13821_v37 = vpop.f32.mrf.mxu0  ;;  %v3878_v59 = vld [vmem:[%s15764_s2 + $0x7b0] sm:$0xff] }
 0x617   :  { %16081 = vst [vmem:[#allocation85_spill] sm:$0xff] %v13821_v37  ;;  %7470 = vmatmul.msk.f32.vlgmr.msra.gmra.mxu1 %vm24_vm1, %v13577_v24  ;;  %5229 = vmatmul.f32.vlgmr.msra.gmra.mxu2 %v13352_v48  ;;  %v3914_v8 = vld [vmem:[%s15764_s2 + $0x8d0] sm:$0xff] }
 0x618   :  { %5258 = vmatmul.f32.vlgmr.msra.gmra.mxu3 %v13325_v44  ;;  %5271 = vmatpush.msrb.mxu0 %v3822_v18  ;;  %v3814_v43 = vld [vmem:[%s15764_s2 + $0x5b0] sm:$0xff]  ;;  %v3687_v44 = vld [vmem:[%s15764_s2 + $0x1b8] sm:$0xff] }
 0x619   :  { %5337 = vmatpush.msrb.mxu2 %v3918_v32  ;;  %5358 = vmatpush.msrb.mxu3 %v3695_v62  ;;  %v3874_v37 = vld [vmem:[%s15764_s2 + $0x790] sm:$0xff] }
 0x61a   :  { %5272 = vmatpush.msrb.mxu0 %v3818_v9  ;;  %5302 = vmatpush.msrb.mxu1 %v3878_v59  ;;  %v3910_v18 = vld [vmem:[%s15764_s2 + $0x8b0] sm:$0xff]  ;;  %v13851_v32 = vpop.f32.mrf.mxu2 }
 0x61b   :  { %16082 = vst [vmem:[#allocation93_spill] sm:$0xff] %v13851_v32  ;;  %5359 = vmatpush.msrb.mxu3 %v3691_v54  ;;  %5338 = vmatpush.msrb.mxu2 %v3914_v8  ;;  %v3810_v62 = vld [vmem:[%s15764_s2 + $0x590] sm:$0xff]  ;;  %v13859_v59 = vpop.f32.mrf.mxu3 }
 0x61c   :  { %v3870_v9 = vld [vmem:[%s15764_s2 + $0x770] sm:$0xff]  ;;  %5273 = vmatpush.msrb.mxu0 %v3814_v43  ;;  %5303 = vmatpush.msrb.mxu1 %v3874_v37  ;;  %v3679_v43 = vld [vmem:[%s15764_s2 + $0x178] sm:$0xff] }
 0x61d   :  { %v13864_v22 = vpop.f32.mrf.mxu1  ;;  %5360 = vmatpush.msrb.mxu3 %v3687_v44  ;;  %5339 = vmatpush.msrb.mxu2 %v3910_v18  ;;  %v3806_v54 = vld [vmem:[%s15764_s2 + $0x570] sm:$0xff]  ;;  %v3675_v18 = vld [vmem:[%s15764_s2 + $0x158] sm:$0xff] }
 0x61e   :  { %16083 = vst [vmem:[#allocation96_spill] sm:$0xff] %v13864_v22  ;;  %5274 = vmatpush.msrb.mxu0 %v3810_v62  ;;  %5304 = vmatpush.msrb.mxu1 %v3870_v9  ;;  %v13869_v8 = vpop.f32.mrf.mxu0  ;;  %v3866_v37 = vld [vmem:[%s15764_s2 + $0x750] sm:$0xff] }
 0x61f   :  { %16084 = vst [vmem:[#allocation97_spill] sm:$0xff] %v13869_v8  ;;  %5174 = vmatmul.f32.gmra.mxu0 %v13406_v28  ;;  %5361 = vmatpush.msrb.mxu3 %v3683_v4  ;;  %v3802_v44 = vld [vmem:[%s15764_s2 + $0x550] sm:$0xff] }
 0x620   :  { %7471 = vmatmul.msk.f32.gmra.mxu1 %vm24_vm1, %v13631_v2  ;;  %5232 = vmatmul.f32.gmra.mxu2 %v13415_v57  ;;  %v3906_v4 = vld [vmem:[%s15764_s2 + $0x890] sm:$0xff] }
 0x621   :  { %5261 = vmatmul.f32.gmra.mxu3 %v13386_v38  ;;  %5275 = vmatpush.msrb.mxu0 %v3806_v54  ;;  %v3862_v62 = vld [vmem:[%s15764_s2 + $0x730] sm:$0xff]  ;;  %v3671_v54 = vld [vmem:[%s15764_s2 + $0x138] sm:$0xff] }
 0x622   :  { %5362 = vmatpush.msrb.mxu3 %v3679_v43  ;;  %5305 = vmatpush.msrb.mxu1 %v3866_v37  ;;  %v3798_v9 = vld [vmem:[%s15764_s2 + $0x530] sm:$0xff]  ;;  %v13900_v38 = vpop.f32.mrf.mxu2 }
 0x623   :  { %v3902_v22 = vld [vmem:[%s15764_s2 + $0x870] sm:$0xff]  ;;  %16085 = vst [vmem:[#allocation21_spill] sm:$0xff] %v13900_v38  ;;  %5276 = vmatpush.msrb.mxu0 %v3802_v44  ;;  %5340 = vmatpush.msrb.mxu2 %v3906_v4  ;;  %v13908_v37 = vpop.f32.mrf.mxu3  ;;  %v3667_v38 = vld [vmem:[%s15764_s2 + $0x118] sm:$0xff] }
 0x624   :  { %v3858_v43 = vld [vmem:[%s15764_s2 + $0x710] sm:$0xff]  ;;  %5363 = vmatpush.msrb.mxu3 %v3675_v18  ;;  %5306 = vmatpush.msrb.mxu1 %v3862_v62 }
 0x625   :  { %v3794_v8 = vld [vmem:[%s15764_s2 + $0x510] sm:$0xff]  ;;  %v13916_v4 = vpop.f32.mrf.mxu1  ;;  %5277 = vmatpush.msrb.mxu0 %v3798_v9  ;;  %5341 = vmatpush.msrb.mxu2 %v3902_v22  ;;  %v3663_v22 = vld [vmem:[%s15764_s2 + $0xf8] sm:$0xff] }
 0x626   :  { %v3898_v44 = vld [vmem:[%s15764_s2 + $0x850] sm:$0xff]  ;;  %5364 = vmatpush.msrb.mxu3 %v3671_v54  ;;  %5307 = vmatpush.msrb.mxu1 %v3858_v43  ;;  %v13921_v18 = vpop.f32.mrf.mxu0  ;;  %v3659_v43 = vld [vmem:[%s15764_s2 + $0xd8] sm:$0xff] }
 0x627   :  { %16086 = vst [vmem:[#allocation22_spill] sm:$0xff] %v13921_v18  ;;  %5278 = vmatpush.msrb.mxu0 %v3794_v8  ;;  %v3790_v62 = vld [vmem:[%s15764_s2 + $0x4f0] sm:$0xff]  ;;  %5342 = vmatpush.msrb.mxu2 %v3898_v44 }
 0x628   :  { %5177 = vmatmul.f32.gmra.mxu0 %v13464_v16  ;;  %5365 = vmatpush.msrb.mxu3 %v3667_v38  ;;  %v3854_v9 = vld [vmem:[%s15764_s2 + $0x6f0] sm:$0xff] }
 0x629   :  { %7472 = vmatmul.msk.f32.gmra.mxu1 %vm24_vm1, %v13688_v14  ;;  %5235 = vmatmul.f32.gmra.mxu2 %v13450_v5  ;;  %v3786_v8 = vld [vmem:[%s15764_s2 + $0x4d0] sm:$0xff] }
 0x62a   :  { %v3894_v38 = vld [vmem:[%s15764_s2 + $0x830] sm:$0xff]  ;;  %5264 = vmatmul.f32.gmra.mxu3 %v13454_v63  ;;  %5279 = vmatpush.msrb.mxu0 %v3790_v62  ;;  %v13949_v44 = vpop.f32.mrf.mxu2 }
 0x62b   :  { %v3850_v54 = vld [vmem:[%s15764_s2 + $0x6d0] sm:$0xff]  ;;  %16087 = vst [vmem:[#allocation17_spill] sm:$0xff] %v13949_v44  ;;  %5308 = vmatpush.msrb.mxu1 %v3854_v9  ;;  %5366 = vmatpush.msrb.mxu3 %v3663_v22  ;;  %v13954_v32 = vpop.f32.mrf.mxu3  ;;  %v3655_v9 = vld [vmem:[%s15764_s2 + $0xb8] sm:$0xff] }
 0x62c   :  { %v3782_v18 = vld [vmem:[%s15764_s2 + $0x4b0] sm:$0xff]  ;;  %5280 = vmatpush.msrb.mxu0 %v3786_v8  ;;  %5343 = vmatpush.msrb.mxu2 %v3894_v38  ;;  %v3887_v8 = vld [vmem:[%s15764_s2 + $0x7f8] sm:$0xff] }
 0x62d   :  { %v3890_v63 = vld [vmem:[%s15764_s2 + $0x810] sm:$0xff]  ;;  %v13965_v22 = vpop.f32.mrf.mxu1  ;;  %5309 = vmatpush.msrb.mxu1 %v3850_v54  ;;  %5367 = vmatpush.msrb.mxu3 %v3659_v43  ;;  %v3651_v38 = vld [vmem:[%s15764_s2 + $0x98] sm:$0xff] }
 0x62e   :  { %v3846_v62 = vld [vmem:[%s15764_s2 + $0x6b0] sm:$0xff]  ;;  %5281 = vmatpush.msrb.mxu0 %v3782_v18  ;;  %v13976_v45 = vpop.f32.mrf.mxu0  ;;  %5344 = vmatpush.msrb.mxu2 %v3890_v63  ;;  %v3647_v43 = vld [vmem:[%s15764_s2 + $0x78] sm:$0xff] }
 0x62f   :  { %v3778_v44 = vld [vmem:[%s15764_s2 + $0x490] sm:$0xff]  ;;  %5310 = vmatpush.msrb.mxu1 %v3846_v62  ;;  %5368 = vmatpush.msrb.mxu3 %v3655_v9 }
 0x630   :  { %5282 = vmatpush.msrb.mxu0 %v3778_v44  ;;  %5445 = vmatpush.msra.mxu2 %v3887_v8  ;;  %v3774_v18 = vld [vmem:[%s15764_s2 + $0x470] sm:$0xff]  ;;  %v3643_v8 = vld [vmem:[%s15764_s2 + $0x58] sm:$0xff] }
 0x631   :  { %5180 = vmatmul.f32.gmra.mxu0 %v13533_v60  ;;  %5311 = vmatpush.msrb.mxu1 %v3842_v56  ;;  %v3838_v54 = vld [vmem:[%s15764_s2 + $0x670] sm:$0xff]  ;;  %v3883_v56 = vld [vmem:[%s15764_s2 + $0x7d8] sm:$0xff] }
 0x632   :  { %5369 = vmatpush.msrb.mxu3 %v3651_v38  ;;  %7473 = vmatmul.msk.f32.gmra.mxu1 %vm24_vm1, %v13747_v49  ;;  %v13996_v44 = vpop.f32.mrf.mxu2  ;;  %v3770_v63 = vld [vmem:[%s15764_s2 + $0x450] sm:$0xff] }
 0x633   :  { %5238 = vmatmul.f32.gmra.mxu2 %v13521_v33  ;;  %5267 = vmatmul.f32.gmra.mxu3 %v13530_v31  ;;  %v3834_v62 = vld [vmem:[%s15764_s2 + $0x650] sm:$0xff]  ;;  %v14006_v9 = vpop.f32.mrf.mxu3  ;;  %v3879_v31 = vld [vmem:[%s15764_s2 + $0x7b8] sm:$0xff] }
 0x634   :  { %5283 = vmatpush.msrb.mxu0 %v3774_v18  ;;  %5312 = vmatpush.msrb.mxu1 %v3838_v54  ;;  %v3766_v38 = vld [vmem:[%s15764_s2 + $0x430] sm:$0xff]  ;;  %v3639_v18 = vld [vmem:[%s15764_s2 + $0x38] sm:$0xff] }
 0x635   :  { %5370 = vmatpush.msrb.mxu3 %v3647_v43  ;;  %5446 = vmatpush.msra.mxu2 %v3883_v56  ;;  %v3875_v43 = vld [vmem:[%s15764_s2 + $0x798] sm:$0xff]  ;;  %v14028_v58 = vpop.f32.mrf.mxu1  ;;  %v3826_v56 = vld [vmem:[%s15764_s2 + $0x610] sm:$0xff] }
 0x636   :  { %5284 = vmatpush.msrb.mxu0 %v3770_v63  ;;  %5313 = vmatpush.msrb.mxu1 %v3834_v62  ;;  %v14023_v54 = vpop.f32.mrf.mxu0  ;;  %v3635_v63 = vld [vmem:[%s15764_s2 + $0x18] sm:$0xff] }
 0x637   :  { %5371 = vmatpush.msrb.mxu3 %v3643_v8  ;;  %5447 = vmatpush.msra.mxu2 %v3879_v31  ;;  %v3759_v62 = vld [vmem:[%s15764_s2 + $0x3f8] sm:$0xff] }
 0x638   :  { %5285 = vmatpush.msrb.mxu0 %v3766_v38  ;;  %5314 = vmatpush.msrb.mxu1 %v3830_v35  ;;  %v3823_v35 = vld [vmem:[%s15764_s2 + $0x5f8] sm:$0xff] }
 0x639   :  { %5372 = vmatpush.msrb.mxu3 %v3639_v18  ;;  %5448 = vmatpush.msra.mxu2 %v3875_v43  ;;  %v3919_v31 = vld [vmem:[%s15764_s2 + $0x8f8] sm:$0xff] }
 0x63a   :  { %5286 = vmatpush.msrb.mxu0 %v3762_v30  ;;  %5315 = vmatpush.msrb.mxu1 %v3826_v56  ;;  %v14042_v8 = vpop.f32.mrf.mxu2  ;;  %v3871_v30 = vld [vmem:[%s15764_s2 + $0x778] sm:$0xff] }
 0x63b   :  { %5287 = vmatmul.f32.vlgmr.msrb.gmra.mxu0 %v13338_v6  ;;  %5373 = vmatpush.msrb.mxu3 %v3635_v63  ;;  %v14051_v38 = vpop.f32.mrf.mxu3  ;;  %v3755_v6 = vld [vmem:[%s15764_s2 + $0x3d8] sm:$0xff] }
 0x63c   :  { %5316 = vmatmul.f32.vlgmr.msrb.gmra.mxu1 %v13344_v42  ;;  %7474 = vmatmul.msk.f32.vlgmr.msrb.gmra.mxu2 %vm24_vm1, %v13577_v24  ;;  %v3819_v18 = vld [vmem:[%s15764_s2 + $0x5d8] sm:$0xff] }
 0x63d   :  { %5374 = vmatmul.f32.vlgmr.msrb.gmra.mxu3 %v13352_v48  ;;  %5387 = vmatpush.msra.mxu0 %v3759_v62  ;;  %v3915_v42 = vld [vmem:[%s15764_s2 + $0x8d8] sm:$0xff] }
 0x63e   :  { %5416 = vmatpush.msra.mxu1 %v3823_v35  ;;  %5482 = vmatpush.msra.mxu3 %v3919_v31  ;;  %v3751_v43 = vld [vmem:[%s15764_s2 + $0x3b8] sm:$0xff]  ;;  %v14075_v48 = vpop.f32.mrf.mxu0 }
 0x63f   :  { %v3867_v56 = vld [vmem:[%s15764_s2 + $0x758] sm:$0xff]  ;;  %5388 = vmatpush.msra.mxu0 %v3755_v6  ;;  %5449 = vmatpush.msra.mxu2 %v3871_v30  ;;  %v14089_v6 = vpop.f32.mrf.mxu1 }
 0x640   :  { %v3815_v63 = vld [vmem:[%s15764_s2 + $0x5b8] sm:$0xff]  ;;  %5417 = vmatpush.msra.mxu1 %v3819_v18  ;;  %5483 = vmatpush.msra.mxu3 %v3915_v42 }
 0x641   :  { %v3911_v62 = vld [vmem:[%s15764_s2 + $0x8b8] sm:$0xff]  ;;  %5389 = vmatpush.msra.mxu0 %v3751_v43  ;;  %5450 = vmatpush.msra.mxu2 %v3867_v56 }
 0x642   :  { %v3747_v35 = vld [vmem:[%s15764_s2 + $0x398] sm:$0xff]  ;;  %5418 = vmatpush.msra.mxu1 %v3815_v63  ;;  %5484 = vmatpush.msra.mxu3 %v3911_v62  ;;  %v14094_v18 = vpop.f32.mrf.mxu2 }
 0x643   :  { %v3863_v31 = vld [vmem:[%s15764_s2 + $0x738] sm:$0xff]  ;;  %5390 = vmatpush.msra.mxu0 %v3747_v35  ;;  %v14099_v23 = vpop.f32.mrf.mxu3 }
 0x644   :  { %v3811_v30 = vld [vmem:[%s15764_s2 + $0x598] sm:$0xff]  ;;  %5451 = vmatpush.msra.mxu2 %v3863_v31  ;;  %5290 = vmatmul.f32.gmra.mxu0 %v13397_v41 }
 0x645   :  { %v3743_v42 = vld [vmem:[%s15764_s2 + $0x378] sm:$0xff]  ;;  %5419 = vmatpush.msra.mxu1 %v3811_v30  ;;  %7475 = vmatmul.msk.f32.gmra.mxu2 %vm24_vm1, %v13631_v2 }
 0x646   :  { %v3807_v43 = vld [vmem:[%s15764_s2 + $0x578] sm:$0xff]  ;;  %5319 = vmatmul.f32.gmra.mxu1 %v13406_v28  ;;  %5377 = vmatmul.f32.gmra.mxu3 %v13415_v57  ;;  %v14124_v35 = vpop.f32.mrf.mxu0 }
 0x647   :  { %v3859_v56 = vld [vmem:[%s15764_s2 + $0x718] sm:$0xff]  ;;  %5391 = vmatpush.msra.mxu0 %v3743_v42  ;;  %5420 = vmatpush.msra.mxu1 %v3807_v43 }
 0x648   :  { %v3739_v63 = vld [vmem:[%s15764_s2 + $0x358] sm:$0xff]  ;;  %5452 = vmatpush.msra.mxu2 %v3859_v56 }
 0x649   :  { %v3907_v41 = vld [vmem:[%s15764_s2 + $0x898] sm:$0xff]  ;;  %5392 = vmatpush.msra.mxu0 %v3739_v63  ;;  %v14149_v50 = vpop.f32.mrf.mxu1 }
 0x64a   :  { %v3803_v62 = vld [vmem:[%s15764_s2 + $0x558] sm:$0xff]  ;;  %5485 = vmatpush.msra.mxu3 %v3907_v41  ;;  %v14147_v41 = vpop.f32.mrf.mxu2 }
 0x64b   :  { %v3855_v28 = vld [vmem:[%s15764_s2 + $0x6f8] sm:$0xff]  ;;  %5421 = vmatpush.msra.mxu1 %v3803_v62  ;;  %v14151_v62 = vpop.f32.mrf.mxu3 }
 0x64c   :  { %v3735_v31 = vld [vmem:[%s15764_s2 + $0x338] sm:$0xff]  ;;  %5453 = vmatpush.msra.mxu2 %v3855_v28  ;;  %5293 = vmatmul.f32.gmra.mxu0 %v13452_v51 }
 0x64d   :  { %v3903_v57 = vld [vmem:[%s15764_s2 + $0x878] sm:$0xff]  ;;  %5393 = vmatpush.msra.mxu0 %v3735_v31  ;;  %7476 = vmatmul.msk.f32.gmra.mxu2 %vm24_vm1, %v13688_v14 }
 0x64e   :  { %v3799_v30 = vld [vmem:[%s15764_s2 + $0x538] sm:$0xff]  ;;  %5486 = vmatpush.msra.mxu3 %v3903_v57  ;;  %5322 = vmatmul.f32.gmra.mxu1 %v13464_v16 }
 0x64f   :  { %v3851_v42 = vld [vmem:[%s15764_s2 + $0x6d8] sm:$0xff]  ;;  %5422 = vmatpush.msra.mxu1 %v3799_v30  ;;  %5380 = vmatmul.f32.gmra.mxu3 %v13450_v5 }
 0x650   :  { %v3731_v43 = vld [vmem:[%s15764_s2 + $0x318] sm:$0xff]  ;;  %5454 = vmatpush.msra.mxu2 %v3851_v42  ;;  %v14172_v42 = vpop.f32.mrf.mxu0 }
 0x651   :  { %v3899_v56 = vld [vmem:[%s15764_s2 + $0x858] sm:$0xff]  ;;  %5394 = vmatpush.msra.mxu0 %v3731_v43 }
 0x652   :  { %v3795_v63 = vld [vmem:[%s15764_s2 + $0x518] sm:$0xff]  ;;  %5487 = vmatpush.msra.mxu3 %v3899_v56 }
 0x653   :  { %v3727_v28 = vld [vmem:[%s15764_s2 + $0x2f8] sm:$0xff]  ;;  %5423 = vmatpush.msra.mxu1 %v3795_v63  ;;  %v14204_v0 = vpop.f32.mrf.mxu3 }
 0x654   :  { %v3791_v31 = vld [vmem:[%s15764_s2 + $0x4f8] sm:$0xff]  ;;  %5395 = vmatpush.msra.mxu0 %v3727_v28  ;;  %16089 = vst [vmem:[#allocation25_spill] sm:$0xff] %v14204_v0  ;;  %v7515_v0 = vld [vmem:[%s15764_s2 + $0x1308] sm:$0xff] }
 0x655   :  { %v3847_v57 = vld [vmem:[%s15764_s2 + $0x6b8] sm:$0xff]  ;;  %5424 = vmatpush.msra.mxu1 %v3791_v31  ;;  %5296 = vmatmul.f32.gmra.mxu0 %v13512_v20 }
 0x656   :  { %v3723_v30 = vld [vmem:[%s15764_s2 + $0x2d8] sm:$0xff]  ;;  %5455 = vmatpush.msra.mxu2 %v3847_v57  ;;  %v7734_v57 = vld [vmem:[%s15764_s2 + $0x19e0] sm:$0xff]  ;;  %5325 = vmatmul.f32.gmra.mxu1 %v13533_v60 }
 0x657   :  { %v3895_v51 = vld [vmem:[%s15764_s2 + $0x838] sm:$0xff]  ;;  %5396 = vmatpush.msra.mxu0 %v3723_v30  ;;  %v14199_v30 = vpop.f32.mrf.mxu2  ;;  %7477 = vmatmul.msk.f32.gmra.mxu2 %vm24_vm1, %v13747_v49 }
 0x658   :  { %v3787_v16 = vld [vmem:[%s15764_s2 + $0x4d8] sm:$0xff]  ;;  %5488 = vmatpush.msra.mxu3 %v3895_v51  ;;  %16088 = vst [vmem:[#allocation18_spill] sm:$0xff] %v14199_v30  ;;  %v14206_v51 = vpop.f32.mrf.mxu1  ;;  %v7500_v30 = vld [vmem:[%s15764_s2 + $0x1290] sm:$0xff] }
 0x659   :  { %v3843_v43 = vld [vmem:[%s15764_s2 + $0x698] sm:$0xff]  ;;  %5425 = vmatpush.msra.mxu1 %v3787_v16  ;;  %16090 = vst [vmem:[#allocation26_spill] sm:$0xff] %v14206_v51  ;;  %5383 = vmatmul.f32.gmra.mxu3 %v13521_v33 }
 0x65a   :  { %v3719_v56 = vld [vmem:[%s15764_s2 + $0x2b8] sm:$0xff]  ;;  %5456 = vmatpush.msra.mxu2 %v3843_v43 }
 0x65b   :  { %v3891_v63 = vld [vmem:[%s15764_s2 + $0x818] sm:$0xff]  ;;  %5397 = vmatpush.msra.mxu0 %v3719_v56 }
 0x65c   :  { %v3783_v5 = vld [vmem:[%s15764_s2 + $0x4b8] sm:$0xff]  ;;  %5489 = vmatpush.msra.mxu3 %v3891_v63  ;;  %v14218_v63 = vpop.f32.mrf.mxu0 }
 0x65d   :  { %v3839_v28 = vld [vmem:[%s15764_s2 + $0x678] sm:$0xff]  ;;  %5426 = vmatpush.msra.mxu1 %v3783_v5  ;;  %16091 = vst [vmem:[#allocation36_spill] sm:$0xff] %v14218_v63 }
 0x65e   :  { %v3715_v31 = vld [vmem:[%s15764_s2 + $0x298] sm:$0xff]  ;;  %5457 = vmatpush.msra.mxu2 %v3839_v28  ;;  %5993 = vmatpush.msrb.mxu3 %v7734_v57 }
 0x65f   :  { %5398 = vmatpush.msra.mxu0 %v3715_v31  ;;  %v3711_v16 = vld [vmem:[%s15764_s2 + $0x278] sm:$0xff]  ;;  %5427 = vmatpush.msra.mxu1 %v3779_v52  ;;  %v7730_v52 = vld [vmem:[%s15764_s2 + $0x19c0] sm:$0xff] }
 0x660   :  { %v3775_v43 = vld [vmem:[%s15764_s2 + $0x478] sm:$0xff]  ;;  %v7726_v31 = vld [vmem:[%s15764_s2 + $0x19a0] sm:$0xff]  ;;  %5994 = vmatpush.msrb.mxu3 %v7730_v52  ;;  %v14261_v52 = vpop.f32.mrf.mxu1 }
 0x661   :  { %v3835_v56 = vld [vmem:[%s15764_s2 + $0x658] sm:$0xff]  ;;  %5399 = vmatpush.msra.mxu0 %v3711_v16  ;;  %5428 = vmatpush.msra.mxu1 %v3775_v43  ;;  %v14248_v16 = vpop.f32.mrf.mxu2  ;;  %16094 = vst [vmem:[#allocation35_spill] sm:$0xff] %v14261_v52  ;;  %v7642_v52 = vld [vmem:[%s15764_s2 + $0x1700] sm:$0xff] }
 0x662   :  { %v3707_v20 = vld [vmem:[%s15764_s2 + $0x258] sm:$0xff]  ;;  %5458 = vmatpush.msra.mxu2 %v3835_v56  ;;  %16092 = vst [vmem:[#allocation32_spill] sm:$0xff] %v14248_v16  ;;  %v7670_v56 = vld [vmem:[%s15764_s2 + $0x17e0] sm:$0xff]  ;;  %5995 = vmatpush.msrb.mxu3 %v7726_v31 }
 0x663   :  { %v3771_v5 = vld [vmem:[%s15764_s2 + $0x458] sm:$0xff]  ;;  %5400 = vmatpush.msra.mxu0 %v3707_v20  ;;  %v14256_v20 = vpop.f32.mrf.mxu3  ;;  %v7666_v31 = vld [vmem:[%s15764_s2 + $0x17c0] sm:$0xff]  ;;  %7478 = vmatmul.msk.f32.vlgmr.msra.gmra.mxu3 %vm24_vm1, %v13577_v24 }
 0x664   :  { %v3831_v60 = vld [vmem:[%s15764_s2 + $0x638] sm:$0xff]  ;;  %5429 = vmatpush.msra.mxu1 %v3771_v5  ;;  %16093 = vst [vmem:[#allocation40_spill] sm:$0xff] %v14256_v20  ;;  %v7542_v5 = vld [vmem:[%s15764_s2 + $0x13e0] sm:$0xff] }
 0x665   :  { %v3703_v28 = vld [vmem:[%s15764_s2 + $0x238] sm:$0xff]  ;;  %5459 = vmatpush.msra.mxu2 %v3831_v60  ;;  %v14266_v60 = vpop.f32.mrf.mxu0  ;;  %v7610_v20 = vld [vmem:[%s15764_s2 + $0x1600] sm:$0xff] }
 0x666   :  { %v3767_v33 = vld [vmem:[%s15764_s2 + $0x438] sm:$0xff]  ;;  %5401 = vmatpush.msra.mxu0 %v3703_v28  ;;  %16095 = vst [vmem:[#allocation29_spill] sm:$0xff] %v14266_v60  ;;  %v7606_v28 = vld [vmem:[%s15764_s2 + $0x15e0] sm:$0xff] }
 0x667   :  { %v3827_v57 = vld [vmem:[%s15764_s2 + $0x618] sm:$0xff]  ;;  %5430 = vmatpush.msra.mxu1 %v3767_v33  ;;  %v7817_v33 = vld [vmem:[#allocation2 + $0x10] sm:$0xff] }
 0x668   :  { %v3699_v43 = vld [vmem:[%s15764_s2 + $0x218] sm:$0xff]  ;;  %5460 = vmatpush.msra.mxu2 %v3827_v57 }
 0x669   :  { %5402 = vmatpush.msra.mxu0 %v3699_v43  ;;  %5431 = vmatpush.msra.mxu1 %v3763_v17  ;;  %v7818_v57 = vld [vmem:[#allocation2 + $0x18] sm:$0xff]  ;;  %v7538_v43 = vld [vmem:[%s15764_s2 + $0x13c0] sm:$0xff]  ;;  %v14294_v24 = vpop.f32.mrf.mxu2 }
 0x66a   :  { %5964 = vmatpush.msrb.mxu2 %v7670_v56  ;;  %5403 = vmatmul.f32.vlgmr.msra.gmra.mxu0 %v7816_v11  ;;  %v7722_v11 = vld [vmem:[%s15764_s2 + $0x1980] sm:$0xff]  ;;  %16096 = vst [vmem:[#allocation30_spill] sm:$0xff] %v14294_v24  ;;  %v14320_v24 = vld [vmem:[#allocation2 + $0x30] sm:$0xff] }
 0x66b   :  { %5432 = vmatmul.f32.vlgmr.msra.gmra.mxu1 %v7817_v33  ;;  %5461 = vmatmul.f32.vlgmr.msra.gmra.mxu2 %v7818_v57  ;;  %v7602_v17 = vld [vmem:[%s15764_s2 + $0x15c0] sm:$0xff] }
 0x66c   :  { %5906 = vmatpush.msrb.mxu0 %v7542_v5  ;;  %v7662_v56 = vld [vmem:[%s15764_s2 + $0x17a0] sm:$0xff]  ;;  %5935 = vmatpush.msrb.mxu1 %v7606_v28 }
 0x66d   :  { %5965 = vmatpush.msrb.mxu2 %v7666_v31  ;;  %v7534_v33 = vld [vmem:[%s15764_s2 + $0x13a0] sm:$0xff]  ;;  %5996 = vmatpush.msrb.mxu3 %v7722_v11  ;;  %v14313_v11 = vpop.f32.mrf.mxu0 }
 0x66e   :  { %v7718_v57 = vld [vmem:[%s15764_s2 + $0x1960] sm:$0xff]  ;;  %5907 = vmatpush.msrb.mxu0 %v7538_v43  ;;  %5936 = vmatpush.msrb.mxu1 %v7602_v17  ;;  %v14308_v43 = vpop.f32.mrf.mxu3  ;;  %16098 = vst [vmem:[#allocation37_spill] sm:$0xff] %v14313_v11 }
 0x66f   :  { %v7598_v5 = vld [vmem:[%s15764_s2 + $0x15a0] sm:$0xff]  ;;  %5966 = vmatpush.msrb.mxu2 %v7662_v56  ;;  %16097 = vst [vmem:[#allocation31_spill] sm:$0xff] %v14308_v43  ;;  %5997 = vmatpush.msrb.mxu3 %v7718_v57  ;;  %v14318_v56 = vpop.f32.mrf.mxu1 }
 0x670   :  { %v7658_v28 = vld [vmem:[%s15764_s2 + $0x1780] sm:$0xff]  ;;  %5908 = vmatpush.msrb.mxu0 %v7534_v33  ;;  %5937 = vmatpush.msrb.mxu1 %v7598_v5  ;;  %16099 = vst [vmem:[#allocation39_spill] sm:$0xff] %v14318_v56  ;;  %v14329_v5 = vld [vmem:[#allocation2 + $0x38] sm:$0xff] }
 0x671   :  { %v7530_v31 = vld [vmem:[%s15764_s2 + $0x1380] sm:$0xff]  ;;  %5967 = vmatpush.msrb.mxu2 %v7658_v28  ;;  %5998 = vmatpush.msrb.mxu3 %v7714_v55 }
 0x672   :  { %5909 = vmatpush.msrb.mxu0 %v7530_v31  ;;  %v7526_v17 = vld [vmem:[%s15764_s2 + $0x1360] sm:$0xff]  ;;  %5938 = vmatpush.msrb.mxu1 %v7594_v10 }
 0x673   :  { %5406 = vmatmul.f32.gmra.mxu0 %v14320_v24  ;;  %v7654_v33 = vld [vmem:[%s15764_s2 + $0x1760] sm:$0xff]  ;;  %5435 = vmatmul.f32.gmra.mxu1 %v14329_v5 }
 0x674   :  { %v7590_v57 = vld [vmem:[%s15764_s2 + $0x1560] sm:$0xff]  ;;  %7479 = vmatmul.msk.f32.gmra.mxu3 %vm24_vm1, %v13631_v2  ;;  %5910 = vmatpush.msrb.mxu0 %v7526_v17 }
 0x675   :  { %v14332_v55 = vld [vmem:[#allocation2 + $0x40] sm:$0xff]  ;;  %5968 = vmatpush.msrb.mxu2 %v7654_v33  ;;  %5939 = vmatpush.msrb.mxu1 %v7590_v57  ;;  %v14361_v33 = vpop.f32.mrf.mxu2 }
 0x676   :  { %5464 = vmatmul.f32.gmra.mxu2 %v14332_v55  ;;  %v7522_v10 = vld [vmem:[%s15764_s2 + $0x1340] sm:$0xff]  ;;  %16100 = vst [vmem:[#allocation33_spill] sm:$0xff] %v14361_v33  ;;  %v14369_v25 = vpop.f32.mrf.mxu3 }
 0x677   :  { %v7710_v28 = vld [vmem:[%s15764_s2 + $0x1920] sm:$0xff]  ;;  %5911 = vmatpush.msrb.mxu0 %v7522_v10  ;;  %16101 = vst [vmem:[#allocation44_spill] sm:$0xff] %v14369_v25 }
 0x678   :  { %v7650_v31 = vld [vmem:[%s15764_s2 + $0x1740] sm:$0xff]  ;;  %5999 = vmatpush.msrb.mxu3 %v7710_v28  ;;  %v14374_v28 = vpop.f32.mrf.mxu0 }
 0x679   :  { %v7586_v56 = vld [vmem:[%s15764_s2 + $0x1540] sm:$0xff]  ;;  %5969 = vmatpush.msrb.mxu2 %v7650_v31  ;;  %16102 = vst [vmem:[#allocation41_spill] sm:$0xff] %v14374_v28  ;;  %v14379_v31 = vpop.f32.mrf.mxu1  ;;  %v7531_v28 = vld [vmem:[%s15764_s2 + $0x1388] sm:$0xff] }
 0x67a   :  { %v7518_v43 = vld [vmem:[%s15764_s2 + $0x1320] sm:$0xff]  ;;  %5940 = vmatpush.msrb.mxu1 %v7586_v56  ;;  %16103 = vst [vmem:[#allocation90_spill] sm:$0xff] %v14379_v31 }
 0x67b   :  { %v7706_v11 = vld [vmem:[%s15764_s2 + $0x1900] sm:$0xff]  ;;  %5912 = vmatpush.msrb.mxu0 %v7518_v43 }
 0x67c   :  { %v7646_v2 = vld [vmem:[%s15764_s2 + $0x1720] sm:$0xff]  ;;  %6000 = vmatpush.msrb.mxu3 %v7706_v11 }
 0x67d   :  { %v7582_v17 = vld [vmem:[%s15764_s2 + $0x1520] sm:$0xff]  ;;  %5970 = vmatpush.msrb.mxu2 %v7646_v2  ;;  %v7823_v2 = vld [vmem:[#allocation2 + $0x90] sm:$0xff]  ;;  %7480 = vmatmul.msk.f32.gmra.mxu3 %vm24_vm1, %v13688_v14 }
 0x67e   :  { %v7514_v57 = vld [vmem:[%s15764_s2 + $0x1300] sm:$0xff]  ;;  %5941 = vmatpush.msrb.mxu1 %v7582_v17  ;;  %5467 = vmatmul.f32.gmra.mxu2 %v7823_v2 }
 0x67f   :  { %v7702_v10 = vld [vmem:[%s15764_s2 + $0x18e0] sm:$0xff]  ;;  %5913 = vmatpush.msrb.mxu0 %v7514_v57  ;;  %5971 = vmatpush.msrb.mxu2 %v7642_v52 }
 0x680   :  { %v7578_v56 = vld [vmem:[%s15764_s2 + $0x1500] sm:$0xff]  ;;  %6001 = vmatpush.msrb.mxu3 %v7702_v10  ;;  %v14418_v31 = vpop.f32.mrf.mxu0 }
 0x681   :  { %v7822_v25 = vld [vmem:[#allocation2 + $0x80] sm:$0xff]  ;;  %5942 = vmatpush.msrb.mxu1 %v7578_v56  ;;  %16105 = vst [vmem:[#allocation94_spill] sm:$0xff] %v14418_v31 }
 0x682   :  { %5409 = vmatmul.f32.gmra.mxu0 %v7822_v25  ;;  %v7510_v43 = vld [vmem:[%s15764_s2 + $0x12e0] sm:$0xff]  ;;  %v7824_v25 = vld [vmem:[#allocation2 + $0x88] sm:$0xff] }
 0x683   :  { %v7638_v11 = vld [vmem:[%s15764_s2 + $0x16e0] sm:$0xff]  ;;  %5438 = vmatmul.f32.gmra.mxu1 %v7824_v25  ;;  %5914 = vmatpush.msrb.mxu0 %v7510_v43 }
 0x684   :  { %v7574_v17 = vld [vmem:[%s15764_s2 + $0x14e0] sm:$0xff]  ;;  %5972 = vmatpush.msrb.mxu2 %v7638_v11  ;;  %v14416_v11 = vpop.f32.mrf.mxu2 }
 0x685   :  { %v7698_v52 = vld [vmem:[%s15764_s2 + $0x18c0] sm:$0xff]  ;;  %5943 = vmatpush.msrb.mxu1 %v7574_v17  ;;  %16104 = vst [vmem:[#allocation86_spill] sm:$0xff] %v14416_v11  ;;  %v14436_v11 = vld [vmem:[#allocation2 + $0xa8] sm:$0xff]  ;;  %7481 = vmatmul.msk.f32.gmra.mxu3 %vm24_vm1, %v13747_v49 }
 0x686   :  { %v7506_v57 = vld [vmem:[%s15764_s2 + $0x12c0] sm:$0xff]  ;;  %6002 = vmatpush.msrb.mxu3 %v7698_v52 }
 0x687   :  { %v7634_v10 = vld [vmem:[%s15764_s2 + $0x16c0] sm:$0xff]  ;;  %5915 = vmatpush.msrb.mxu0 %v7506_v57  ;;  %v14426_v57 = vpop.f32.mrf.mxu3 }
 0x688   :  { %v7570_v56 = vld [vmem:[%s15764_s2 + $0x14c0] sm:$0xff]  ;;  %5973 = vmatpush.msrb.mxu2 %v7634_v10  ;;  %16106 = vst [vmem:[#allocation43_spill] sm:$0xff] %v14426_v57  ;;  %v14493_v36 = vpop.f32.mrf.mxu0 }
 0x689   :  { %v7694_v2 = vld [vmem:[%s15764_s2 + $0x18a0] sm:$0xff]  ;;  %5944 = vmatpush.msrb.mxu1 %v7570_v56  ;;  %16110 = vst [vmem:[#allocation95_spill] sm:$0xff] %v14493_v36 }
 0x68a   :  { %v7502_v14 = vld [vmem:[%s15764_s2 + $0x12a0] sm:$0xff]  ;;  %6003 = vmatpush.msrb.mxu3 %v7694_v2  ;;  %v14434_v2 = vpop.f32.mrf.mxu1  ;;  %5412 = vmatmul.f32.gmra.mxu0 %v14436_v11 }
 0x68b   :  { %v7630_v25 = vld [vmem:[%s15764_s2 + $0x16a0] sm:$0xff]  ;;  %5916 = vmatpush.msrb.mxu0 %v7502_v14  ;;  %16107 = vst [vmem:[#allocation91_spill] sm:$0xff] %v14434_v2  ;;  %v14448_v2 = vld [vmem:[#allocation2 + $0xb0] sm:$0xff] }
 0x68c   :  { %v7566_v43 = vld [vmem:[%s15764_s2 + $0x14a0] sm:$0xff]  ;;  %5974 = vmatpush.msrb.mxu2 %v7630_v25  ;;  %5441 = vmatmul.f32.gmra.mxu1 %v14448_v2  ;;  %v14483_v60 = vpop.f32.mrf.mxu2 }
 0x68d   :  { %v7498_v17 = vld [vmem:[%s15764_s2 + $0x1280] sm:$0xff]  ;;  %5945 = vmatpush.msrb.mxu1 %v7566_v43  ;;  %16108 = vst [vmem:[#allocation45_spill] sm:$0xff] %v14483_v60  ;;  %v5506_v60 = vld [vmem:[#allocation2 + $0x18] sm:$0xfc] }
 0x68e   :  { %v7626_v52 = vld [vmem:[%s15764_s2 + $0x1680] sm:$0xff]  ;;  %5917 = vmatpush.msrb.mxu0 %v7498_v17  ;;  %v14451_v17 = vld [vmem:[#allocation2 + $0xb8] sm:$0xff] }
 0x68f   :  { %v7562_v10 = vld [vmem:[%s15764_s2 + $0x1480] sm:$0xff]  ;;  %5975 = vmatpush.msrb.mxu2 %v7626_v52  ;;  %v14485_v19 = vpop.f32.mrf.mxu3 }
 0x690   :  { %v7690_v56 = vld [vmem:[%s15764_s2 + $0x1880] sm:$0xff]  ;;  %5946 = vmatpush.msrb.mxu1 %v7562_v10  ;;  %5470 = vmatmul.f32.gmra.mxu2 %v14451_v17  ;;  %16109 = vst [vmem:[#allocation87_spill] sm:$0xff] %v14485_v19  ;;  %v14570_v51 = vpop.f32.mrf.mxu0 }
 0x691   :  { %v7494_v14 = vld [vmem:[%s15764_s2 + $0x1260] sm:$0xff]  ;;  %6004 = vmatpush.msrb.mxu3 %v7690_v56  ;;  %16117 = vst [vmem:[#allocation108_spill] sm:$0xff] %v14570_v51  ;;  %v7659_v51 = vld [vmem:[%s15764_s2 + $0x1788] sm:$0xff] }
 0x692   :  { %v7622_v25 = vld [vmem:[%s15764_s2 + $0x1660] sm:$0xff]  ;;  %5918 = vmatpush.msrb.mxu0 %v7494_v14  ;;  %v14500_v16 = vpop.f32.mrf.mxu1 }
 0x693   :  { %v7558_v43 = vld [vmem:[%s15764_s2 + $0x1460] sm:$0xff]  ;;  %5976 = vmatpush.msrb.mxu2 %v7622_v25  ;;  %16111 = vst [vmem:[#allocation104_spill] sm:$0xff] %v14500_v16  ;;  %v7607_v16 = vld [vmem:[%s15764_s2 + $0x15e8] sm:$0xff] }
 0x694   :  { %v7686_v52 = vld [vmem:[%s15764_s2 + $0x1860] sm:$0xff]  ;;  %5947 = vmatpush.msrb.mxu1 %v7558_v43  ;;  %v14480_v43 = vld [vmem:[#allocation2 + $0x28] sm:$0xff] }
 0x695   :  { %v7490_v10 = vld [vmem:[%s15764_s2 + $0x1240] sm:$0xff]  ;;  %6005 = vmatpush.msrb.mxu3 %v7686_v52 }
 0x696   :  { %v7618_v56 = vld [vmem:[%s15764_s2 + $0x1640] sm:$0xff]  ;;  %5919 = vmatpush.msrb.mxu0 %v7490_v10 }
 0x697   :  { %v7554_v57 = vld [vmem:[%s15764_s2 + $0x1440] sm:$0xff]  ;;  %5977 = vmatpush.msrb.mxu2 %v7618_v56 }
 0x698   :  { %v7682_v33 = vld [vmem:[%s15764_s2 + $0x1840] sm:$0xff]  ;;  %5948 = vmatpush.msrb.mxu1 %v7554_v57  ;;  %v5546_v57 = vrot.slane %v5504_v61, 2 }
 0x699   :  { %v7486_v31 = vld [vmem:[%s15764_s2 + $0x1220] sm:$0xff]  ;;  %6006 = vmatpush.msrb.mxu3 %v7682_v33 }
 0x69a   :  { %v5503_v49 = vld [vmem:[#allocation2] sm:$0xfc]  ;;  %5920 = vmatpush.msrb.mxu0 %v7486_v31  ;;  %v15769_v31 = vrot.slane %v14332_v55, 2 }
 0x69b   :  { %v7614_v14 = vld [vmem:[%s15764_s2 + $0x1620] sm:$0xff]  ;;  %v5543_v19 = vrot.slane %v5503_v49, 2  ;;  %v16112_v49 = vrot.slane %v14480_v43, 2 }
 0x69c   :  { %v7550_v25 = vld [vmem:[%s15764_s2 + $0x1420] sm:$0xff]  ;;  %5978 = vmatpush.msrb.mxu2 %v7614_v14  ;;  %v5549_v14 = vrot.slane %v5505_v40, 2  ;;  %v7543_v40 = vld [vmem:[%s15764_s2 + $0x13e8] sm:$0xff] }
 0x69d   :  { %v7678_v52 = vld [vmem:[%s15764_s2 + $0x1820] sm:$0xff]  ;;  %5949 = vmatpush.msrb.mxu1 %v7550_v25  ;;  %v14512_v56 = vsel %vm2173_vm10, %v5543_v19, %v16112_v49  ;;  %v5552_v25 = vrot.slane %v5506_v60, 2  ;;  %v16114_v19 = vrot.slane %v14329_v5, 2  ;;  %v7667_v49 = vld [vmem:[%s15764_s2 + $0x17c8] sm:$0xff] }
 0x69e   :  { %v7482_v10 = vld [vmem:[%s15764_s2 + $0x1200] sm:$0xff]  ;;  %6007 = vmatpush.msrb.mxu3 %v7678_v52  ;;  %5979 = vmatpush.msrb.mxu2 %v7610_v20  ;;  %v16113_v52 = vrot.slane %v14320_v24, 2  ;;  %v7671_v20 = vld [vmem:[%s15764_s2 + $0x17e8] sm:$0xff] }
 0x69f   :  { %v7546_v36 = vld [vmem:[%s15764_s2 + $0x1400] sm:$0xff]  ;;  %5921 = vmatpush.msrb.mxu0 %v7482_v10  ;;  %v14526_v61 = vsel %vm2173_vm10, %v5549_v14, %v16114_v19  ;;  %v5508_v14 = vld [vmem:[#allocation2 + $0x50] sm:$0x3]  ;;  %v14560_v19 = vpop.f32.mrf.mxu2 }
 0x6a0   :  { %v7674_v33 = vld [vmem:[%s15764_s2 + $0x1800] sm:$0xff]  ;;  %5922 = vmatmul.f32.vlgmr.msrb.gmra.mxu0 %v14512_v56  ;;  %5950 = vmatpush.msrb.mxu1 %v7546_v36  ;;  %v14521_v10 = vsel %vm2173_vm10, %v5546_v57, %v16113_v52  ;;  %v14539_v36 = vsel %vm2173_vm10, %v5552_v25, %v15769_v31  ;;  %v7603_v57 = vld [vmem:[%s15764_s2 + $0x15c8] sm:$0xff]  ;;  %16115 = vst [vmem:[#allocation98_spill] sm:$0xff] %v14560_v19  ;;  %v14562_v31 = vpop.f32.mrf.mxu3 }
 0x6a1   :  { %6008 = vmatpush.msrb.mxu3 %v7674_v33  ;;  %5951 = vmatmul.f32.vlgmr.msrb.gmra.mxu1 %v14521_v10  ;;  %v7766_v60 = vld [vmem:[%s15764_s2 + $0x1ae0] sm:$0xff]  ;;  %v7539_v33 = vld [vmem:[%s15764_s2 + $0x13c8] sm:$0xff]  ;;  %16116 = vst [vmem:[#allocation100_spill] sm:$0xff] %v14562_v31  ;;  %v5558_v31 = vrot.slane %v5508_v14, 2 }
 0x6a2   :  { %5980 = vmatmul.f32.vlgmr.msrb.gmra.mxu2 %v14526_v61  ;;  %6009 = vmatmul.f32.vlgmr.msrb.gmra.mxu3 %v14539_v36  ;;  %v7599_v25 = vld [vmem:[%s15764_s2 + $0x15a8] sm:$0xff]  ;;  %v7762_v52 = vld [vmem:[%s15764_s2 + $0x1ac0] sm:$0xff] }
 0x6a3   :  { %6080 = vmatpush.msra.mxu2 %v7607_v16  ;;  %6051 = vmatpush.msra.mxu1 %v7543_v40  ;;  %v5509_v16 = vld [vmem:[#allocation2 + $0x58] sm:$0x3]  ;;  %v7535_v40 = vld [vmem:[%s15764_s2 + $0x13a8] sm:$0xff] }
 0x6a4   :  { %6109 = vmatpush.msra.mxu3 %v7671_v20  ;;  %6030 = vmatpush.msra.mxu0 %v7766_v60  ;;  %v7663_v20 = vld [vmem:[%s15764_s2 + $0x17a8] sm:$0xff]  ;;  %v5560_v14 = vrot.slane %v5509_v16, 2 }
 0x6a5   :  { %6081 = vmatpush.msra.mxu2 %v7603_v57  ;;  %6052 = vmatpush.msra.mxu1 %v7539_v33  ;;  %v7595_v19 = vld [vmem:[%s15764_s2 + $0x1588] sm:$0xff]  ;;  %v14575_v57 = vpop.f32.mrf.mxu1  ;;  %v16119_v33 = vrot.slane %v14480_v43, 2  ;;  %v16121_v43 = vrot.slane %v14329_v5, 2 }
 0x6a6   :  { %6110 = vmatpush.msra.mxu3 %v7667_v49  ;;  %v5511_v60 = vld [vmem:[#allocation2 + $0x68] sm:$0x3]  ;;  %16118 = vst [vmem:[#allocation105_spill] sm:$0xff] %v14575_v57  ;;  %6031 = vmatpush.msra.mxu0 %v7762_v52  ;;  %v5515_v57 = vld [vmem:[#allocation2 + $0x88] sm:$0xfc] }
 0x6a7   :  { %6082 = vmatpush.msra.mxu2 %v7599_v25  ;;  %6053 = vmatpush.msra.mxu1 %v7535_v40  ;;  %v14586_v49 = vsel %vm2173_vm10, %v16119_v33, %v5558_v31  ;;  %v5564_v25 = vrot.slane %v5511_v60, 2  ;;  %v7591_v52 = vld [vmem:[%s15764_s2 + $0x1568] sm:$0xff]  ;;  %v16120_v40 = vrot.slane %v14320_v24, 2  ;;  %v14600_v31 = vsel %vm2173_vm10, %v16121_v43, %v5562_v12  ;;  %v7758_v12 = vld [vmem:[%s15764_s2 + $0x1aa0] sm:$0xff]  ;;  %v14637_v43 = vpop.f32.mrf.mxu2 }
 0x6a8   :  { %6111 = vmatpush.msra.mxu3 %v7663_v20  ;;  %5925 = vmatmul.f32.gmra.mxu0 %v14586_v49  ;;  %v7655_v16 = vld [vmem:[%s15764_s2 + $0x1768] sm:$0xff]  ;;  %v5514_v60 = vld [vmem:[#allocation2 + $0x80] sm:$0xfc]  ;;  %16123 = vst [vmem:[#allocation99_spill] sm:$0xff] %v14637_v43 }
 0x6a9   :  { %6083 = vmatpush.msra.mxu2 %v7595_v19  ;;  %6054 = vmatpush.msra.mxu1 %v7531_v28  ;;  %v14595_v20 = vsel %vm2173_vm10, %v16120_v40, %v5560_v14  ;;  %v7587_v5 = vld [vmem:[%s15764_s2 + $0x1548] sm:$0xff]  ;;  %v5513_v28 = vld [vmem:[#allocation2 + $0x78] sm:$0xfc]  ;;  %v7754_v14 = vld [vmem:[%s15764_s2 + $0x1a80] sm:$0xff]  ;;  %v5571_v63 = vrot.slane %v5514_v60, 2 }
 0x6aa   :  { %6112 = vmatpush.msra.mxu3 %v7659_v51  ;;  %5954 = vmatmul.f32.gmra.mxu1 %v14595_v20  ;;  %v16122_v51 = vrot.slane %v14332_v55, 2  ;;  %v7523_v19 = vld [vmem:[%s15764_s2 + $0x1348] sm:$0xff]  ;;  %v5516_v40 = vld [vmem:[#allocation2 + $0x90] sm:$0xfc]  ;;  %v5568_v43 = vrot.slane %v5513_v28, 2  ;;  %v15770_v28 = vrot.slane %v14451_v17, 2 }
 0x6ab   :  { %5983 = vmatmul.f32.gmra.mxu2 %v14600_v31  ;;  %v7651_v55 = vld [vmem:[%s15764_s2 + $0x1748] sm:$0xff]  ;;  %6055 = vmatpush.msra.mxu1 %v7527_v53 }
 0x6ac   :  { %v14613_v24 = vsel %vm2173_vm10, %v16122_v51, %v5564_v25  ;;  %6084 = vmatpush.msra.mxu2 %v7591_v52  ;;  %6113 = vmatpush.msra.mxu3 %v7655_v16  ;;  %v7583_v33 = vld [vmem:[%s15764_s2 + $0x1528] sm:$0xff]  ;;  %v14634_v25 = vld [vmem:[#allocation2 + $0xa0] sm:$0xff]  ;;  %v14639_v51 = vpop.f32.mrf.mxu3 }
 0x6ad   :  { %6012 = vmatmul.f32.gmra.mxu3 %v14613_v24  ;;  %16124 = vst [vmem:[#allocation101_spill] sm:$0xff] %v14639_v51  ;;  %6032 = vmatpush.msra.mxu0 %v7758_v12  ;;  %v7519_v53 = vld [vmem:[%s15764_s2 + $0x1328] sm:$0xff]  ;;  %v14652_v51 = vpop.f32.mrf.mxu0  ;;  %v14661_v60 = vpop.f32.mrf.mxu1 }
 0x6ae   :  { %6085 = vmatpush.msra.mxu2 %v7587_v5  ;;  %v7647_v16 = vld [vmem:[%s15764_s2 + $0x1728] sm:$0xff]  ;;  %6056 = vmatpush.msra.mxu1 %v7523_v19  ;;  %16125 = vst [vmem:[#allocation106_spill] sm:$0xff] %v14652_v51  ;;  %v16127_v5 = vrot.slane %v14634_v25, 2 }
 0x6af   :  { %6114 = vmatpush.msra.mxu3 %v7651_v55  ;;  %v7579_v52 = vld [vmem:[%s15764_s2 + $0x1508] sm:$0xff]  ;;  %6033 = vmatpush.msra.mxu0 %v7754_v14  ;;  %v5577_v55 = vrot.slane %v5516_v40, 2  ;;  %16126 = vst [vmem:[#allocation109_spill] sm:$0xff] %v14661_v60  ;;  %v5574_v14 = vrot.slane %v5515_v57, 2  ;;  %v16128_v40 = vrot.slane %v14436_v11, 2  ;;  %v14714_v60 = vpop.f32.mrf.mxu2 }
 0x6b0   :  { %6086 = vmatpush.msra.mxu2 %v7583_v33  ;;  %v7643_v19 = vld [vmem:[%s15764_s2 + $0x1708] sm:$0xff]  ;;  %6057 = vmatpush.msra.mxu1 %v7519_v53  ;;  %v14666_v33 = vsel %vm2173_vm10, %v5568_v43, %v16127_v5  ;;  %16130 = vst [vmem:[#allocation112_spill] sm:$0xff] %v14714_v60 }
 0x6b1   :  { %6115 = vmatpush.msra.mxu3 %v7647_v16  ;;  %5928 = vmatmul.f32.gmra.mxu0 %v14666_v33  ;;  %v7575_v12 = vld [vmem:[%s15764_s2 + $0x14e8] sm:$0xff]  ;;  %v14675_v53 = vsel %vm2173_vm10, %v5571_v63, %v16128_v40  ;;  %v16129_v16 = vrot.slane %v14448_v2, 2  ;;  %v7750_v63 = vld [vmem:[%s15764_s2 + $0x1a60] sm:$0xff]  ;;  %v5520_v40 = vld [vmem:[#allocation2 + $0xd8] sm:$0x3] }
 0x6b2   :  { %6087 = vmatpush.msra.mxu2 %v7579_v52  ;;  %6058 = vmatpush.msra.mxu1 %v7515_v0  ;;  %v7511_v57 = vld [vmem:[%s15764_s2 + $0x12e8] sm:$0xff]  ;;  %v14693_v0 = vsel %vm2173_vm10, %v5577_v55, %v15770_v28  ;;  %v7746_v28 = vld [vmem:[%s15764_s2 + $0x1a40] sm:$0xff] }
 0x6b3   :  { %6116 = vmatpush.msra.mxu3 %v7643_v19  ;;  %v14680_v43 = vsel %vm2173_vm10, %v5574_v14, %v16129_v16  ;;  %v7639_v52 = vld [vmem:[%s15764_s2 + $0x16e8] sm:$0xff]  ;;  %5957 = vmatmul.f32.gmra.mxu1 %v14675_v53 }
 0x6b4   :  { %5986 = vmatmul.f32.gmra.mxu2 %v14680_v43  ;;  %v7571_v5 = vld [vmem:[%s15764_s2 + $0x14c8] sm:$0xff]  ;;  %6059 = vmatpush.msra.mxu1 %v7511_v57  ;;  %v14722_v15 = vpop.f32.mrf.mxu3 }
 0x6b5   :  { %v5518_v19 = vld [vmem:[#allocation2 + $0xc8] sm:$0x3]  ;;  %6015 = vmatmul.f32.gmra.mxu3 %v14693_v0  ;;  %6088 = vmatpush.msra.mxu2 %v7575_v12  ;;  %v5521_v12 = vld [vmem:[#allocation2 + $0xe0] sm:$0x3]  ;;  %16131 = vst [vmem:[#allocation102_spill] sm:$0xff] %v14722_v15 }
 0x6b6   :  { %v7507_v14 = vld [vmem:[%s15764_s2 + $0x12c8] sm:$0xff]  ;;  %6117 = vmatpush.msra.mxu3 %v7639_v52  ;;  %6034 = vmatpush.msra.mxu0 %v7750_v63  ;;  %v5519_v52 = vld [vmem:[#allocation2 + $0xd0] sm:$0x3]  ;;  %v5583_v60 = vrot.slane %v5518_v19, 2  ;;  %v5587_v63 = vrot.slane %v5520_v40, 2  ;;  %v16134_v19 = vrot.slane %v14634_v25, 2 }
 0x6b7   :  { %v7635_v55 = vld [vmem:[%s15764_s2 + $0x16c8] sm:$0xff]  ;;  %6089 = vmatpush.msra.mxu2 %v7571_v5  ;;  %6060 = vmatpush.msra.mxu1 %v7507_v14  ;;  %v14727_v5 = vpop.f32.mrf.mxu0  ;;  %v5589_v14 = vrot.slane %v5521_v12, 2  ;;  %v16135_v12 = vrot.slane %v14436_v11, 2  ;;  %v16136_v25 = vrot.slane %v14448_v2, 2  ;;  %v7742_v2 = vld [vmem:[%s15764_s2 + $0x1a20] sm:$0xff] }
 0x6b8   :  { %v7567_v16 = vld [vmem:[%s15764_s2 + $0x14a8] sm:$0xff]  ;;  %6118 = vmatpush.msra.mxu3 %v7635_v55  ;;  %16132 = vst [vmem:[#allocation110_spill] sm:$0xff] %v14727_v5  ;;  %6035 = vmatpush.msra.mxu0 %v7746_v28  ;;  %v14735_v55 = vpop.f32.mrf.mxu1  ;;  %v14740_v40 = vsel %vm2173_vm10, %v16134_v19, %v5583_v60  ;;  %v7738_v19 = vld [vmem:[%s15764_s2 + $0x1a00] sm:$0xff] }
 0x6b9   :  { %v7503_v51 = vld [vmem:[%s15764_s2 + $0x12a8] sm:$0xff]  ;;  %6090 = vmatpush.msra.mxu2 %v7567_v16  ;;  %16133 = vst [vmem:[#allocation113_spill] sm:$0xff] %v14735_v55  ;;  %v5585_v16 = vrot.slane %v5519_v52, 2  ;;  %5931 = vmatmul.f32.gmra.mxu0 %v14740_v40  ;;  %v14754_v60 = vsel %vm2173_vm10, %v16136_v25, %v5587_v63 }
 0x6ba   :  { %v7631_v57 = vld [vmem:[%s15764_s2 + $0x16a8] sm:$0xff]  ;;  %6061 = vmatpush.msra.mxu1 %v7503_v51  ;;  %6036 = vmatpush.msra.mxu0 %v7742_v2 }
 0x6bb   :  { %v7627_v15 = vld [vmem:[%s15764_s2 + $0x1688] sm:$0xff]  ;;  %6119 = vmatpush.msra.mxu3 %v7631_v57  ;;  %6091 = vmatpush.msra.mxu2 %v7563_v26  ;;  %v14749_v51 = vsel %vm2173_vm10, %v16135_v12, %v5585_v16 }
 0x6bc   :  { %v7559_v28 = vld [vmem:[%s15764_s2 + $0x1468] sm:$0xff]  ;;  %6062 = vmatpush.msra.mxu1 %v7499_v27  ;;  %v5507_v27 = vld [vmem:[#allocation2 + $0x20] sm:$0xfc]  ;;  %5989 = vmatmul.f32.gmra.mxu2 %v14754_v60 }
 0x6bd   :  { %6120 = vmatpush.msra.mxu3 %v7627_v15  ;;  %v7495_v26 = vld [vmem:[%s15764_s2 + $0x1268] sm:$0xff]  ;;  %5960 = vmatmul.f32.gmra.mxu1 %v14749_v51  ;;  %v16137_v15 = vrot.slane %v14451_v17, 2  ;;  %v5555_v16 = vrot.slane %v5507_v27, 2 }
 0x6be   :  { %v7623_v57 = vld [vmem:[%s15764_s2 + $0x1668] sm:$0xff]  ;;  %6092 = vmatpush.msra.mxu2 %v7559_v28  ;;  %6063 = vmatpush.msra.mxu1 %v7495_v26  ;;  %v14788_v28 = vpop.f32.mrf.mxu2  ;;  %v14796_v26 = vpop.f32.mrf.mxu3 }
 0x6bf   :  { %v14767_v11 = vsel %vm2173_vm10, %v16137_v15, %v5589_v14  ;;  %v7555_v52 = vld [vmem:[%s15764_s2 + $0x1448] sm:$0xff]  ;;  %6121 = vmatpush.msra.mxu3 %v7623_v57  ;;  %16138 = vst [vmem:[#allocation114_spill] sm:$0xff] %v14788_v28  ;;  %v14801_v2 = vpop.f32.mrf.mxu0  ;;  %6037 = vmatpush.msra.mxu0 %v7738_v19  ;;  %v7544_v19 = vld [vmem:[%s15764_s2 + $0x13f0] sm:$0xff] }
 0x6c0   :  { %6018 = vmatmul.f32.gmra.mxu3 %v14767_v11  ;;  %v7491_v63 = vld [vmem:[%s15764_s2 + $0x1248] sm:$0xff]  ;;  %6093 = vmatpush.msra.mxu2 %v7555_v52  ;;  %16139 = vst [vmem:[#allocation38_spill] sm:$0xff] %v14796_v26 }
 0x6c1   :  { %v7619_v17 = vld [vmem:[%s15764_s2 + $0x1648] sm:$0xff]  ;;  %6064 = vmatpush.msra.mxu1 %v7491_v63  ;;  %16140 = vst [vmem:[#allocation52_spill] sm:$0xff] %v14801_v2  ;;  %v14809_v63 = vpop.f32.mrf.mxu1 }
 0x6c2   :  { %v7551_v14 = vld [vmem:[%s15764_s2 + $0x1428] sm:$0xff]  ;;  %6122 = vmatpush.msra.mxu3 %v7619_v17  ;;  %16141 = vst [vmem:[#allocation34_spill] sm:$0xff] %v14809_v63 }
 0x6c3   :  { %v7487_v12 = vld [vmem:[%s15764_s2 + $0x1228] sm:$0xff]  ;;  %6094 = vmatpush.msra.mxu2 %v7551_v14 }
 0x6c4   :  { %v7615_v25 = vld [vmem:[%s15764_s2 + $0x1628] sm:$0xff]  ;;  %6065 = vmatpush.msra.mxu1 %v7487_v12  ;;  %v7608_v12 = vld [vmem:[%s15764_s2 + $0x15f0] sm:$0xff] }
 0x6c5   :  { %v7547_v57 = vld [vmem:[%s15764_s2 + $0x1408] sm:$0xff]  ;;  %6123 = vmatpush.msra.mxu3 %v7615_v25 }
 0x6c6   :  { %v7830_v27 = vld [vmem:[#allocation2 + $0x48] sm:$0xff]  ;;  %6095 = vmatpush.msra.mxu2 %v7547_v57  ;;  %v7540_v57 = vld [vmem:[%s15764_s2 + $0x13d0] sm:$0xff]  ;;  %v14846_v63 = vpop.f32.mrf.mxu2  ;;  %v14854_v2 = vpop.f32.mrf.mxu3 }
 0x6c7   :  { %v5556_v15 = vrot.slane %v7830_v27, 2  ;;  %v7483_v52 = vld [vmem:[%s15764_s2 + $0x1208] sm:$0xff]  ;;  %6096 = vmatmul.f32.vlgmr.msra.gmra.mxu2 %v14521_v10  ;;  %v7604_v27 = vld [vmem:[%s15764_s2 + $0x15d0] sm:$0xff]  ;;  %16142 = vst [vmem:[#allocation48_spill] sm:$0xff] %v14846_v63 }
 0x6c8   :  { %v7611_v26 = vld [vmem:[%s15764_s2 + $0x1608] sm:$0xff]  ;;  %6066 = vmatpush.msra.mxu1 %v7483_v52  ;;  %6196 = vmatpush.msrb.mxu2 %v7544_v19  ;;  %v7600_v19 = vld [vmem:[%s15764_s2 + $0x15b0] sm:$0xff]  ;;  %16143 = vst [vmem:[#allocation42_spill] sm:$0xff] %v14854_v2 }
 0x6c9   :  { %v14812_v17 = vsel %vm2173_vm10, %v5555_v16, %v5556_v15  ;;  %v7735_v14 = vld [vmem:[%s15764_s2 + $0x19e8] sm:$0xff]  ;;  %6124 = vmatpush.msra.mxu3 %v7611_v26  ;;  %6067 = vmatmul.f32.vlgmr.msra.gmra.mxu1 %v14512_v56  ;;  %v5512_v26 = vld [vmem:[#allocation2 + $0x70] sm:$0x3] }
 0x6ca   :  { %7770 = vmatmul.msk.f32.vlgmr.msra.gmra.mxu0 %vm24_vm1, %v14812_v17  ;;  %v7731_v16 = vld [vmem:[%s15764_s2 + $0x19c8] sm:$0xff]  ;;  %6125 = vmatmul.f32.vlgmr.msra.gmra.mxu3 %v14526_v61  ;;  %v7532_v63 = vld [vmem:[%s15764_s2 + $0x1390] sm:$0xff] }
 0x6cb   :  { %v7767_v25 = vld [vmem:[%s15764_s2 + $0x1ae8] sm:$0xff]  ;;  %6138 = vmatpush.msrb.mxu0 %v7735_v14  ;;  %6225 = vmatpush.msrb.mxu3 %v7608_v12  ;;  %v7536_v14 = vld [vmem:[%s15764_s2 + $0x13b0] sm:$0xff]  ;;  %v5566_v12 = vrot.slane %v5512_v26, 2  ;;  %v14867_v26 = vpop.f32.mrf.mxu1 }
 0x6cc   :  { %v7727_v52 = vld [vmem:[%s15764_s2 + $0x19a8] sm:$0xff]  ;;  %6175 = vmatpush.msrb.mxu1 %v7767_v25  ;;  %6197 = vmatpush.msrb.mxu2 %v7540_v57  ;;  %v14862_v25 = vpop.f32.mrf.mxu0  ;;  %16145 = vst [vmem:[#allocation51_spill] sm:$0xff] %v14867_v26  ;;  %v7596_v57 = vld [vmem:[%s15764_s2 + $0x1590] sm:$0xff] }
 0x6cd   :  { %v7763_v28 = vld [vmem:[%s15764_s2 + $0x1ac8] sm:$0xff]  ;;  %6139 = vmatpush.msrb.mxu0 %v7731_v16  ;;  %6226 = vmatpush.msrb.mxu3 %v7604_v27  ;;  %16144 = vst [vmem:[#allocation56_spill] sm:$0xff] %v14862_v25  ;;  %v14873_v27 = vsel %vm2173_vm10, %v5556_v15, %v5566_v12  ;;  %v7588_v12 = vld [vmem:[%s15764_s2 + $0x1550] sm:$0xff] }
 0x6ce   :  { %v7723_v55 = vld [vmem:[%s15764_s2 + $0x1988] sm:$0xff]  ;;  %6176 = vmatpush.msrb.mxu1 %v7763_v28  ;;  %6198 = vmatpush.msrb.mxu2 %v7536_v14  ;;  %v5517_v14 = vld [vmem:[#allocation2 + $0x98] sm:$0xfc]  ;;  %v7520_v26 = vld [vmem:[%s15764_s2 + $0x1330] sm:$0xff] }
 0x6cf   :  { %v7759_v16 = vld [vmem:[%s15764_s2 + $0x1aa8] sm:$0xff]  ;;  %6140 = vmatpush.msrb.mxu0 %v7727_v52  ;;  %6227 = vmatpush.msrb.mxu3 %v7600_v19  ;;  %v7528_v52 = vld [vmem:[%s15764_s2 + $0x1370] sm:$0xff] }
 0x6d0   :  { %6177 = vmatpush.msrb.mxu1 %v7759_v16  ;;  %6199 = vmatpush.msrb.mxu2 %v7532_v63  ;;  %v7719_v28 = vld [vmem:[%s15764_s2 + $0x1968] sm:$0xff]  ;;  %v7524_v19 = vld [vmem:[%s15764_s2 + $0x1350] sm:$0xff]  ;;  %v5580_v16 = vrot.slane %v5517_v14, 2 }
 0x6d1   :  { %6141 = vmatpush.msrb.mxu0 %v7723_v55  ;;  %6228 = vmatpush.msrb.mxu3 %v7596_v57  ;;  %v7592_v55 = vld [vmem:[%s15764_s2 + $0x1570] sm:$0xff]  ;;  %v7755_v15 = vld [vmem:[%s15764_s2 + $0x1a88] sm:$0xff] }
 0x6d2   :  { %7771 = vmatmul.msk.f32.gmra.mxu0 %vm24_vm1, %v14873_v27  ;;  %6070 = vmatmul.f32.gmra.mxu1 %v14586_v49  ;;  %v7715_v63 = vld [vmem:[%s15764_s2 + $0x1948] sm:$0xff]  ;;  %v7584_v14 = vld [vmem:[%s15764_s2 + $0x1530] sm:$0xff] }
 0x6d3   :  { %6099 = vmatmul.f32.gmra.mxu2 %v14595_v20  ;;  %6128 = vmatmul.f32.gmra.mxu3 %v14600_v31  ;;  %v7751_v57 = vld [vmem:[%s15764_s2 + $0x1a68] sm:$0xff] }
 0x6d4   :  { %6142 = vmatpush.msrb.mxu0 %v7719_v28  ;;  %6200 = vmatpush.msrb.mxu2 %v7528_v52  ;;  %v7711_v2 = vld [vmem:[%s15764_s2 + $0x1928] sm:$0xff]  ;;  %v14910_v28 = vpop.f32.mrf.mxu2  ;;  %v14912_v52 = vpop.f32.mrf.mxu3 }
 0x6d5   :  { %6229 = vmatpush.msrb.mxu3 %v7592_v55  ;;  %6178 = vmatpush.msrb.mxu1 %v7755_v15  ;;  %16146 = vst [vmem:[#allocation47_spill] sm:$0xff] %v14910_v28  ;;  %v7831_v55 = vld [vmem:[#allocation2 + $0xc0] sm:$0xff]  ;;  %v7707_v5 = vld [vmem:[%s15764_s2 + $0x1908] sm:$0xff]  ;;  %v7516_v15 = vld [vmem:[%s15764_s2 + $0x1310] sm:$0xff]  ;;  %v14923_v28 = vpop.f32.mrf.mxu0 }
 0x6d6   :  { %16147 = vst [vmem:[#allocation53_spill] sm:$0xff] %v14912_v52  ;;  %6143 = vmatpush.msrb.mxu0 %v7715_v63  ;;  %6201 = vmatpush.msrb.mxu2 %v7524_v19  ;;  %v5581_v25 = vrot.slane %v7831_v55, 2  ;;  %v7580_v19 = vld [vmem:[%s15764_s2 + $0x1510] sm:$0xff]  ;;  %v7743_v52 = vld [vmem:[%s15764_s2 + $0x1a28] sm:$0xff] }
 0x6d7   :  { %6230 = vmatpush.msrb.mxu3 %v7588_v12  ;;  %6179 = vmatpush.msrb.mxu1 %v7751_v57  ;;  %16148 = vst [vmem:[#allocation55_spill] sm:$0xff] %v14923_v28  ;;  %v14931_v12 = vpop.f32.mrf.mxu1  ;;  %v7576_v57 = vld [vmem:[%s15764_s2 + $0x14f0] sm:$0xff] }
 0x6d8   :  { %6144 = vmatpush.msrb.mxu0 %v7711_v2  ;;  %6202 = vmatpush.msrb.mxu2 %v7520_v26  ;;  %v14926_v63 = vsel %vm2173_vm10, %v5580_v16, %v5581_v25  ;;  %16149 = vst [vmem:[#allocation49_spill] sm:$0xff] %v14931_v12  ;;  %v7703_v2 = vld [vmem:[%s15764_s2 + $0x18e8] sm:$0xff]  ;;  %v7512_v26 = vld [vmem:[%s15764_s2 + $0x12f0] sm:$0xff] }
 0x6d9   :  { %6231 = vmatpush.msrb.mxu3 %v7584_v14  ;;  %v5522_v16 = vld [vmem:[#allocation2 + $0xe8] sm:$0x3]  ;;  %v7508_v55 = vld [vmem:[%s15764_s2 + $0x12d0] sm:$0xff] }
 0x6da   :  { %7772 = vmatmul.msk.f32.gmra.mxu0 %vm24_vm1, %v14926_v63  ;;  %6203 = vmatpush.msrb.mxu2 %v7516_v15  ;;  %v7699_v14 = vld [vmem:[%s15764_s2 + $0x18c8] sm:$0xff]  ;;  %v7572_v15 = vld [vmem:[%s15764_s2 + $0x14d0] sm:$0xff] }
 0x6db   :  { %6145 = vmatpush.msrb.mxu0 %v7707_v5  ;;  %6232 = vmatpush.msrb.mxu3 %v7580_v19  ;;  %v7747_v5 = vld [vmem:[%s15764_s2 + $0x1a48] sm:$0xff]  ;;  %v5591_v19 = vrot.slane %v5522_v16, 2  ;;  %v7504_v28 = vld [vmem:[%s15764_s2 + $0x12b0] sm:$0xff] }
 0x6dc   :  { %6073 = vmatmul.f32.gmra.mxu1 %v14666_v33  ;;  %6102 = vmatmul.f32.gmra.mxu2 %v14675_v53  ;;  %v7695_v12 = vld [vmem:[%s15764_s2 + $0x18a8] sm:$0xff]  ;;  %v14973_v16 = vpop.f32.mrf.mxu3 }
 0x6dd   :  { %6131 = vmatmul.f32.gmra.mxu3 %v14680_v43  ;;  %6146 = vmatpush.msrb.mxu0 %v7703_v2  ;;  %v14968_v2 = vpop.f32.mrf.mxu2 }
 0x6de   :  { %6204 = vmatpush.msrb.mxu2 %v7512_v26  ;;  %6233 = vmatpush.msrb.mxu3 %v7576_v57  ;;  %16150 = vst [vmem:[#allocation46_spill] sm:$0xff] %v14968_v2  ;;  %v7568_v26 = vld [vmem:[%s15764_s2 + $0x14b0] sm:$0xff]  ;;  %v7691_v57 = vld [vmem:[%s15764_s2 + $0x1888] sm:$0xff] }
 0x6df   :  { %6180 = vmatpush.msrb.mxu1 %v7747_v5  ;;  %6147 = vmatpush.msrb.mxu0 %v7699_v14  ;;  %v14981_v5 = vpop.f32.mrf.mxu0  ;;  %v14984_v14 = vsel %vm2173_vm10, %v5581_v25, %v5591_v19  ;;  %v7496_v25 = vld [vmem:[%s15764_s2 + $0x1270] sm:$0xff]  ;;  %v7675_v2 = vld [vmem:[%s15764_s2 + $0x1808] sm:$0xff] }
 0x6e0   :  { %6205 = vmatpush.msrb.mxu2 %v7508_v55  ;;  %6234 = vmatpush.msrb.mxu3 %v7572_v15  ;;  %16151 = vst [vmem:[#allocation59_spill] sm:$0xff] %v14981_v5  ;;  %v7564_v55 = vld [vmem:[%s15764_s2 + $0x1490] sm:$0xff]  ;;  %v14989_v15 = vpop.f32.mrf.mxu1 }
 0x6e1   :  { %6181 = vmatpush.msrb.mxu1 %v7743_v52  ;;  %6148 = vmatpush.msrb.mxu0 %v7695_v12  ;;  %16152 = vst [vmem:[#allocation57_spill] sm:$0xff] %v14989_v15  ;;  %v7687_v52 = vld [vmem:[%s15764_s2 + $0x1868] sm:$0xff]  ;;  %v7492_v19 = vld [vmem:[%s15764_s2 + $0x1250] sm:$0xff] }
 0x6e2   :  { %6206 = vmatpush.msrb.mxu2 %v7504_v28  ;;  %6235 = vmatpush.msrb.mxu3 %v7568_v26  ;;  %v7560_v28 = vld [vmem:[%s15764_s2 + $0x1470] sm:$0xff]  ;;  %v7739_v12 = vld [vmem:[%s15764_s2 + $0x1a08] sm:$0xff] }
 0x6e3   :  { %7773 = vmatmul.msk.f32.gmra.mxu0 %vm24_vm1, %v14984_v14  ;;  %v7556_v26 = vld [vmem:[%s15764_s2 + $0x1450] sm:$0xff]  ;;  %6182 = vmatpush.msrb.mxu1 %v7739_v12 }
 0x6e4   :  { %6149 = vmatpush.msrb.mxu0 %v7691_v57  ;;  %6207 = vmatpush.msrb.mxu2 %v7500_v30  ;;  %v7683_v30 = vld [vmem:[%s15764_s2 + $0x1848] sm:$0xff]  ;;  %v7736_v57 = vld [vmem:[%s15764_s2 + $0x19f0] sm:$0xff]  ;;  %v15034_v5 = vpop.f32.mrf.mxu3 }
 0x6e5   :  { %6236 = vmatpush.msrb.mxu3 %v7564_v55  ;;  %6076 = vmatmul.f32.gmra.mxu1 %v14740_v40  ;;  %v7679_v55 = vld [vmem:[%s15764_s2 + $0x1828] sm:$0xff]  ;;  %v7488_v15 = vld [vmem:[%s15764_s2 + $0x1230] sm:$0xff] }
 0x6e6   :  { %6105 = vmatmul.f32.gmra.mxu2 %v14749_v51  ;;  %6134 = vmatmul.f32.gmra.mxu3 %v14754_v60  ;;  %v7484_v12 = vld [vmem:[%s15764_s2 + $0x1210] sm:$0xff] }
 0x6e7   :  { %6150 = vmatpush.msrb.mxu0 %v7687_v52  ;;  %6208 = vmatpush.msrb.mxu2 %v7496_v25  ;;  %v15026_v52 = vpop.f32.mrf.mxu2  ;;  %v7552_v25 = vld [vmem:[%s15764_s2 + $0x1430] sm:$0xff] }
 0x6e8   :  { %6237 = vmatpush.msrb.mxu3 %v7560_v28  ;;  %16153 = vst [vmem:[#allocation54_spill] sm:$0xff] %v15026_v52  ;;  %v7732_v28 = vld [vmem:[%s15764_s2 + $0x19d0] sm:$0xff]  ;;  %6283 = vmatpush.msra.mxu1 %v7736_v57  ;;  %v15047_v52 = vpop.f32.mrf.mxu1  ;;  %v7545_v57 = vld [vmem:[%s15764_s2 + $0x13f8] sm:$0xff] }
 0x6e9   :  { %6151 = vmatpush.msrb.mxu0 %v7683_v30  ;;  %6209 = vmatpush.msrb.mxu2 %v7492_v19  ;;  %v15042_v30 = vpop.f32.mrf.mxu0  ;;  %v7548_v19 = vld [vmem:[%s15764_s2 + $0x1410] sm:$0xff]  ;;  %16155 = vst [vmem:[#allocation60_spill] sm:$0xff] %v15047_v52 }
 0x6ea   :  { %6238 = vmatpush.msrb.mxu3 %v7556_v26  ;;  %16154 = vst [vmem:[#allocation50_spill] sm:$0xff] %v15042_v30  ;;  %6284 = vmatpush.msra.mxu1 %v7732_v28  ;;  %v7672_v26 = vld [vmem:[%s15764_s2 + $0x17f0] sm:$0xff]  ;;  %v7533_v30 = vld [vmem:[%s15764_s2 + $0x1398] sm:$0xff] }
 0x6eb   :  { %6152 = vmatpush.msrb.mxu0 %v7679_v55  ;;  %6210 = vmatpush.msrb.mxu2 %v7488_v15  ;;  %v7768_v15 = vld [vmem:[%s15764_s2 + $0x1af0] sm:$0xff]  ;;  %v4815_v55 = vadd.f32 %v13976_v45, %v13807_v46  ;;  %v7541_v45 = vld [vmem:[%s15764_s2 + $0x13d8] sm:$0xff] }
 0x6ec   :  { %6239 = vmatpush.msrb.mxu3 %v7552_v25  ;;  %v7728_v25 = vld [vmem:[%s15764_s2 + $0x19b0] sm:$0xff] }
 0x6ed   :  { %6153 = vmatpush.msrb.mxu0 %v7675_v2  ;;  %6211 = vmatpush.msrb.mxu2 %v7484_v12  ;;  %v7668_v2 = vld [vmem:[%s15764_s2 + $0x17d0] sm:$0xff]  ;;  %v4844_v52 = vadd.f32 %v13916_v4, %v4815_v55 }
 0x6ee   :  { %6154 = vmatmul.f32.vlgmr.msrb.gmra.mxu0 %v14539_v36  ;;  %6240 = vmatpush.msrb.mxu3 %v7548_v19  ;;  %v7764_v46 = vld [vmem:[%s15764_s2 + $0x1ad0] sm:$0xff] }
 0x6ef   :  { %7774 = vmatmul.msk.f32.vlgmr.msrb.gmra.mxu1 %vm24_vm1, %v14812_v17  ;;  %6212 = vmatmul.f32.vlgmr.msrb.gmra.mxu2 %v14512_v56  ;;  %v7664_v28 = vld [vmem:[%s15764_s2 + $0x17b0] sm:$0xff]  ;;  %v15083_v19 = vpop.f32.mrf.mxu2  ;;  %v4873_v4 = vadd.f32 %v13996_v44, %v4844_v52  ;;  %v4818_v44 = vadd.f32 %v14023_v54, %v13859_v59  ;;  %v7525_v59 = vld [vmem:[%s15764_s2 + $0x1358] sm:$0xff] }
 0x6f0   :  { %6241 = vmatmul.f32.vlgmr.msrb.gmra.mxu3 %v14521_v10  ;;  %6254 = vmatpush.msra.mxu0 %v7672_v26  ;;  %v7724_v12 = vld [vmem:[%s15764_s2 + $0x1990] sm:$0xff]  ;;  %16156 = vst [vmem:[#allocation58_spill] sm:$0xff] %v15083_v19  ;;  %v7537_v26 = vld [vmem:[%s15764_s2 + $0x13b8] sm:$0xff]  ;;  %v15105_v7 = vpop.f32.mrf.mxu1 }
 0x6f1   :  { %6320 = vmatpush.msra.mxu2 %v7768_v15  ;;  %6341 = vmatpush.msra.mxu3 %v7545_v57  ;;  %v7760_v15 = vld [vmem:[%s15764_s2 + $0x1ab0] sm:$0xff]  ;;  %v15091_v57 = vpop.f32.mrf.mxu3 }
 0x6f2   :  { %6255 = vmatpush.msra.mxu0 %v7668_v2  ;;  %6285 = vmatpush.msra.mxu1 %v7728_v25  ;;  %v7660_v19 = vld [vmem:[%s15764_s2 + $0x1790] sm:$0xff]  ;;  %v15100_v25 = vpop.f32.mrf.mxu0 }
 0x6f3   :  { %6342 = vmatpush.msra.mxu3 %v7541_v45  ;;  %6321 = vmatpush.msra.mxu2 %v7764_v46  ;;  %v7720_v2 = vld [vmem:[%s15764_s2 + $0x1970] sm:$0xff]  ;;  %v7529_v45 = vld [vmem:[%s15764_s2 + $0x1378] sm:$0xff] }
 0x6f4   :  { %6256 = vmatpush.msra.mxu0 %v7664_v28  ;;  %6286 = vmatpush.msra.mxu1 %v7724_v12  ;;  %v7656_v55 = vld [vmem:[%s15764_s2 + $0x1770] sm:$0xff]  ;;  %v4902_v28 = vadd.f32 %v14006_v9, %v4873_v4 }
 0x6f5   :  { %6343 = vmatpush.msra.mxu3 %v7537_v26  ;;  %6322 = vmatpush.msra.mxu2 %v7760_v15  ;;  %v7716_v46 = vld [vmem:[%s15764_s2 + $0x1950] sm:$0xff]  ;;  %v7521_v15 = vld [vmem:[%s15764_s2 + $0x1338] sm:$0xff] }
 0x6f6   :  { %6257 = vmatpush.msra.mxu0 %v7660_v19  ;;  %6287 = vmatpush.msra.mxu1 %v7720_v2  ;;  %v7652_v52 = vld [vmem:[%s15764_s2 + $0x1750] sm:$0xff]  ;;  %v5376_v26 = vadd.f32 %v14973_v16, %v4902_v28 }
 0x6f7   :  { %6157 = vmatmul.f32.gmra.mxu0 %v14613_v24  ;;  %6344 = vmatpush.msra.mxu3 %v7533_v30  ;;  %v7756_v30 = vld [vmem:[%s15764_s2 + $0x1a90] sm:$0xff]  ;;  %v15143_v19 = vpop.f32.mrf.mxu2 }
 0x6f8   :  { %7775 = vmatmul.msk.f32.gmra.mxu1 %vm24_vm1, %v14873_v27  ;;  %6215 = vmatmul.f32.gmra.mxu2 %v14586_v49  ;;  %v7712_v54 = vld [vmem:[%s15764_s2 + $0x1930] sm:$0xff]  ;;  %v5433_v28 = vpop.f32.mrf.mxu1 }
 0x6f9   :  { %6244 = vmatmul.f32.gmra.mxu3 %v14595_v20  ;;  %6258 = vmatpush.msra.mxu0 %v7656_v55  ;;  %v7648_v12 = vld [vmem:[%s15764_s2 + $0x1730] sm:$0xff]  ;;  %v15152_v4 = vpop.f32.mrf.mxu3  ;;  %v4847_v55 = vadd.f32 %v13965_v22, %v4818_v44 }
 0x6fa   :  { %6345 = vmatpush.msra.mxu3 %v7529_v45  ;;  %6288 = vmatpush.msra.mxu1 %v7716_v46  ;;  %v7752_v9 = vld [vmem:[%s15764_s2 + $0x1a70] sm:$0xff]  ;;  %v5404_v46 = vpop.f32.mrf.mxu0 }
 0x6fb   :  { %6259 = vmatpush.msra.mxu0 %v7652_v52  ;;  %6323 = vmatpush.msra.mxu2 %v7756_v30  ;;  %v7708_v2 = vld [vmem:[%s15764_s2 + $0x1910] sm:$0xff]  ;;  %v7517_v52 = vld [vmem:[%s15764_s2 + $0x1318] sm:$0xff]  ;;  %v5405_v30 = vadd.f32 %v5404_v46, %v5376_v26  ;;  %v4876_v22 = vadd.f32 %v14042_v8, %v4847_v55 }
 0x6fc   :  { %6346 = vmatpush.msra.mxu3 %v7525_v59  ;;  %6289 = vmatpush.msra.mxu1 %v7712_v54  ;;  %v7644_v16 = vld [vmem:[%s15764_s2 + $0x1710] sm:$0xff]  ;;  %v7513_v8 = vld [vmem:[%s15764_s2 + $0x12f8] sm:$0xff] }
 0x6fd   :  { %v7748_v45 = vld [vmem:[%s15764_s2 + $0x1a50] sm:$0xff]  ;;  %6260 = vmatpush.msra.mxu0 %v7648_v12  ;;  %6324 = vmatpush.msra.mxu2 %v7752_v9  ;;  %v5434_v59 = vadd.f32 %v5433_v28, %v5405_v30  ;;  %v4821_v12 = vadd.f32 %v14075_v48, %v13908_v37  ;;  %v7509_v48 = vld [vmem:[%s15764_s2 + $0x12d8] sm:$0xff] }
 0x6fe   :  { %6347 = vmatpush.msra.mxu3 %v7521_v15  ;;  %6290 = vmatpush.msra.mxu1 %v7708_v2  ;;  %v7640_v44 = vld [vmem:[%s15764_s2 + $0x16f0] sm:$0xff]  ;;  %v4905_v15 = vadd.f32 %v14051_v38, %v4876_v22  ;;  %v7505_v46 = vld [vmem:[%s15764_s2 + $0x12b8] sm:$0xff] }
 0x6ff   :  { %6261 = vmatpush.msra.mxu0 %v7644_v16  ;;  %6325 = vmatpush.msra.mxu2 %v7748_v45  ;;  %v7704_v54 = vld [vmem:[%s15764_s2 + $0x18f0] sm:$0xff]  ;;  %v5462_v55 = vpop.f32.mrf.mxu2  ;;  %v4850_v28 = vadd.f32 %v14028_v58, %v4821_v12  ;;  %v7737_v22 = vld [vmem:[%s15764_s2 + $0x19f8] sm:$0xff] }
 0x700   :  { %6160 = vmatmul.f32.gmra.mxu0 %v14693_v0  ;;  %6348 = vmatpush.msra.mxu3 %v7517_v52  ;;  %v7636_v9 = vld [vmem:[%s15764_s2 + $0x16d0] sm:$0xff]  ;;  %v5379_v16 = vadd.f32 %v15034_v5, %v4905_v15  ;;  %v5463_v52 = vadd.f32 %v5462_v55, %v5434_v59  ;;  %v4824_v15 = vadd.f32 %v14124_v35, %v13954_v32  ;;  %v7733_v32 = vld [vmem:[%s15764_s2 + $0x19d8] sm:$0xff] }
 0x701   :  { %7776 = vmatmul.msk.f32.gmra.mxu1 %vm24_vm1, %v14926_v63  ;;  %6218 = vmatmul.f32.gmra.mxu2 %v14666_v33  ;;  %v7744_v26 = vld [vmem:[%s15764_s2 + $0x1a30] sm:$0xff]  ;;  %v5491_v30 = vpop.f32.mrf.mxu3  ;;  %v4879_v12 = vadd.f32 %v14094_v18, %v4850_v28  ;;  %v7493_v55 = vld [vmem:[%s15764_s2 + $0x1258] sm:$0xff] }
 0x702   :  { %6247 = vmatmul.f32.gmra.mxu3 %v14675_v53  ;;  %6262 = vmatpush.msra.mxu0 %v7640_v44  ;;  %v7700_v37 = vld [vmem:[%s15764_s2 + $0x18d0] sm:$0xff]  ;;  %v5407_v44 = vpop.f32.mrf.mxu0  ;;  %v15217_v59 = vadd.f32 %v5491_v30, %v5463_v52 }
 0x703   :  { %6291 = vmatpush.msra.mxu1 %v7704_v54  ;;  %6349 = vmatpush.msra.mxu3 %v7513_v8  ;;  %v7632_v2 = vld [vmem:[%s15764_s2 + $0x16b0] sm:$0xff]  ;;  %v5408_v58 = vadd.f32 %v5407_v44, %v5379_v16  ;;  %v5436_v8 = vpop.f32.mrf.mxu1  ;;  %v4908_v35 = vadd.f32 %v14099_v23, %v4879_v12  ;;  %v7729_v23 = vld [vmem:[%s15764_s2 + $0x19b8] sm:$0xff] }
 0x704   :  { %v7740_v38 = vld [vmem:[%s15764_s2 + $0x1a10] sm:$0xff]  ;;  %6263 = vmatpush.msra.mxu0 %v7636_v9  ;;  %6326 = vmatpush.msra.mxu2 %v7744_v26  ;;  %v7501_v9 = vld [vmem:[%s15764_s2 + $0x1298] sm:$0xff] }
 0x705   :  { %v7696_v45 = vld [vmem:[%s15764_s2 + $0x18b0] sm:$0xff]  ;;  %6292 = vmatpush.msra.mxu1 %v7700_v37  ;;  %6350 = vmatpush.msra.mxu3 %v7509_v48  ;;  %v5437_v26 = vadd.f32 %v5436_v8, %v5408_v58  ;;  %v7497_v48 = vld [vmem:[%s15764_s2 + $0x1278] sm:$0xff] }
 0x706   :  { %v7628_v5 = vld [vmem:[%s15764_s2 + $0x1690] sm:$0xff]  ;;  %6264 = vmatpush.msra.mxu0 %v7632_v2  ;;  %6327 = vmatpush.msra.mxu2 %v7740_v38 }
 0x707   :  { %v7692_v54 = vld [vmem:[%s15764_s2 + $0x1890] sm:$0xff]  ;;  %6293 = vmatpush.msra.mxu1 %v7696_v45  ;;  %6351 = vmatpush.msra.mxu3 %v7505_v46  ;;  %v5465_v16 = vpop.f32.mrf.mxu2  ;;  %v4853_v45 = vadd.f32 %v14089_v6, %v4824_v15  ;;  %v5382_v46 = vadd.f32 %v15091_v57, %v4908_v35  ;;  %v7489_v6 = vld [vmem:[%s15764_s2 + $0x1238] sm:$0xff] }
 0x708   :  { %6265 = vmatpush.msra.mxu0 %v7628_v5  ;;  %6428 = vmatpush.msrb.mxu2 %v7737_v22  ;;  %v7624_v37 = vld [vmem:[%s15764_s2 + $0x1670] sm:$0xff]  ;;  %v5466_v28 = vadd.f32 %v5465_v16, %v5437_v26  ;;  %v7725_v57 = vld [vmem:[%s15764_s2 + $0x1998] sm:$0xff] }
 0x709   :  { %6163 = vmatmul.f32.gmra.mxu0 %v14767_v11  ;;  %6294 = vmatpush.msra.mxu1 %v7692_v54  ;;  %v7688_v18 = vld [vmem:[%s15764_s2 + $0x1870] sm:$0xff]  ;;  %v5494_v5 = vpop.f32.mrf.mxu3  ;;  %v4882_v44 = vadd.f32 %v14147_v41, %v4853_v45  ;;  %v7609_v15 = vld [vmem:[%s15764_s2 + $0x15f8] sm:$0xff] }
 0x70a   :  { %6352 = vmatpush.msra.mxu3 %v7501_v9  ;;  %7777 = vmatmul.msk.f32.gmra.mxu1 %vm24_vm1, %v14984_v14  ;;  %v7620_v2 = vld [vmem:[%s15764_s2 + $0x1650] sm:$0xff]  ;;  %v5410_v22 = vpop.f32.mrf.mxu0  ;;  %v15276_v8 = vadd.f32 %v5494_v5, %v5466_v28  ;;  %v7485_v9 = vld [vmem:[%s15764_s2 + $0x1218] sm:$0xff] }
 0x70b   :  { %6221 = vmatmul.f32.gmra.mxu2 %v14740_v40  ;;  %6250 = vmatmul.f32.gmra.mxu3 %v14749_v51  ;;  %v7684_v38 = vld [vmem:[%s15764_s2 + $0x1850] sm:$0xff]  ;;  %v5411_v12 = vadd.f32 %v5410_v22, %v5382_v46  ;;  %v5439_v41 = vpop.f32.mrf.mxu1  ;;  %v7665_v46 = vld [vmem:[%s15764_s2 + $0x17b8] sm:$0xff] }
 0x70c   :  { %6266 = vmatpush.msra.mxu0 %v7624_v37  ;;  %6295 = vmatpush.msra.mxu1 %v7688_v18  ;;  %v7616_v52 = vld [vmem:[%s15764_s2 + $0x1630] sm:$0xff]  ;;  %v4911_v37 = vadd.f32 %v14151_v62, %v4882_v44  ;;  %v7673_v18 = vld [vmem:[%s15764_s2 + $0x17f8] sm:$0xff] }
 0x70d   :  { %6353 = vmatpush.msra.mxu3 %v7497_v48  ;;  %v7680_v30 = vld [vmem:[%s15764_s2 + $0x1830] sm:$0xff]  ;;  %6429 = vmatpush.msrb.mxu2 %v7733_v32  ;;  %v5440_v26 = vadd.f32 %v5439_v41, %v5411_v12  ;;  %v7769_v48 = vld [vmem:[%s15764_s2 + $0x1af8] sm:$0xff] }
 0x70e   :  { %6267 = vmatpush.msra.mxu0 %v7620_v2  ;;  %6296 = vmatpush.msra.mxu1 %v7684_v38  ;;  %v7612_v54 = vld [vmem:[%s15764_s2 + $0x1610] sm:$0xff]  ;;  %v7605_v62 = vld [vmem:[%s15764_s2 + $0x15d8] sm:$0xff]  ;;  %v5385_v35 = vadd.f32 %v15152_v4, %v4911_v37 }
 0x70f   :  { %6354 = vmatpush.msra.mxu3 %v7493_v55  ;;  %v7676_v58 = vld [vmem:[%s15764_s2 + $0x1810] sm:$0xff]  ;;  %6430 = vmatpush.msrb.mxu2 %v7729_v23  ;;  %v7721_v32 = vld [vmem:[%s15764_s2 + $0x1978] sm:$0xff]  ;;  %v5468_v55 = vpop.f32.mrf.mxu2 }
 0x710   :  { %6268 = vmatpush.msra.mxu0 %v7616_v52  ;;  %6297 = vmatpush.msra.mxu1 %v7680_v30  ;;  %v7669_v2 = vld [vmem:[%s15764_s2 + $0x17d8] sm:$0xff]  ;;  %v5469_v4 = vadd.f32 %v5468_v55, %v5440_v26 }
 0x711   :  { %6355 = vmatpush.msra.mxu3 %v7489_v6  ;;  %6431 = vmatpush.msrb.mxu2 %v7725_v57  ;;  %v7765_v38 = vld [vmem:[%s15764_s2 + $0x1ad8] sm:$0xff]  ;;  %v5497_v16 = vpop.f32.mrf.mxu3 }
 0x712   :  { %6269 = vmatpush.msra.mxu0 %v7612_v54  ;;  %6298 = vmatpush.msra.mxu1 %v7676_v58  ;;  %v7601_v23 = vld [vmem:[%s15764_s2 + $0x15b8] sm:$0xff]  ;;  %v5413_v45 = vpop.f32.mrf.mxu0  ;;  %v15327_v6 = vadd.f32 %v5497_v16, %v5469_v4 }
 0x713   :  { %6270 = vmatmul.f32.vlgmr.msra.gmra.mxu0 %v14526_v61  ;;  %6356 = vmatpush.msra.mxu3 %v7485_v9  ;;  %v7761_v52 = vld [vmem:[%s15764_s2 + $0x1ab8] sm:$0xff]  ;;  %v5414_v30 = vadd.f32 %v5413_v45, %v5385_v35  ;;  %v5442_v22 = vpop.f32.mrf.mxu1 }
 0x714   :  { %6299 = vmatmul.f32.vlgmr.msra.gmra.mxu1 %v14539_v36  ;;  %7778 = vmatmul.msk.f32.vlgmr.msra.gmra.mxu2 %vm24_vm1, %v14812_v17  ;;  %v7597_v28 = vld [vmem:[%s15764_s2 + $0x1598] sm:$0xff] }
 0x715   :  { %6357 = vmatmul.f32.vlgmr.msra.gmra.mxu3 %v14512_v56  ;;  %6370 = vmatpush.msrb.mxu0 %v7609_v15  ;;  %v7717_v56 = vld [vmem:[%s15764_s2 + $0x1958] sm:$0xff]  ;;  %v5443_v44 = vadd.f32 %v5442_v22, %v5414_v30 }
 0x716   :  { %6399 = vmatpush.msrb.mxu1 %v7673_v18  ;;  %6465 = vmatpush.msrb.mxu3 %v7769_v48  ;;  %v7713_v5 = vld [vmem:[%s15764_s2 + $0x1938] sm:$0xff] }
 0x717   :  { %6371 = vmatpush.msrb.mxu0 %v7605_v62  ;;  %6432 = vmatpush.msrb.mxu2 %v7721_v32  ;;  %v7661_v57 = vld [vmem:[%s15764_s2 + $0x1798] sm:$0xff] }
 0x718   :  { %6400 = vmatpush.msrb.mxu1 %v7669_v2  ;;  %6466 = vmatpush.msrb.mxu3 %v7765_v38  ;;  %v7593_v54 = vld [vmem:[%s15764_s2 + $0x1578] sm:$0xff] }
 0x719   :  { %6372 = vmatpush.msrb.mxu0 %v7601_v23  ;;  %6433 = vmatpush.msrb.mxu2 %v7717_v56  ;;  %v7657_v58 = vld [vmem:[%s15764_s2 + $0x1778] sm:$0xff]  ;;  %v5500_v35 = vpop.f32.mrf.mxu3 }
 0x71a   :  { %6401 = vmatpush.msrb.mxu1 %v7665_v46  ;;  %6467 = vmatpush.msrb.mxu3 %v7761_v52  ;;  %v7709_v12 = vld [vmem:[%s15764_s2 + $0x1918] sm:$0xff] }
 0x71b   :  { %6373 = vmatpush.msrb.mxu0 %v7597_v28  ;;  %6434 = vmatpush.msrb.mxu2 %v7713_v5  ;;  %v7589_v9 = vld [vmem:[%s15764_s2 + $0x1558] sm:$0xff] }
 0x71c   :  { %6273 = vmatmul.f32.gmra.mxu0 %v14600_v31  ;;  %6402 = vmatpush.msrb.mxu1 %v7661_v57  ;;  %v7757_v41 = vld [vmem:[%s15764_s2 + $0x1a98] sm:$0xff] }
 0x71d   :  { %6302 = vmatmul.f32.gmra.mxu1 %v14613_v24  ;;  %7779 = vmatmul.msk.f32.gmra.mxu2 %vm24_vm1, %v14873_v27  ;;  %v7653_v26 = vld [vmem:[%s15764_s2 + $0x1758] sm:$0xff]  ;;  %v15376_v55 = vpop.f32.mrf.mxu0 }
 0x71e   :  { %6360 = vmatmul.f32.gmra.mxu3 %v14586_v49  ;;  %6374 = vmatpush.msrb.mxu0 %v7593_v54  ;;  %v7705_v15 = vld [vmem:[%s15764_s2 + $0x18f8] sm:$0xff]  ;;  %v5471_v49 = vpop.f32.mrf.mxu2  ;;  %v15383_v4 = vpop.f32.mrf.mxu1 }
 0x71f   :  { %6403 = vmatpush.msrb.mxu1 %v7657_v58  ;;  %v7585_v37 = vld [vmem:[%s15764_s2 + $0x1538] sm:$0xff]  ;;  %6435 = vmatpush.msrb.mxu2 %v7709_v12  ;;  %v5472_v32 = vadd.f32 %v5471_v49, %v5443_v44 }
 0x720   :  { %v7753_v18 = vld [vmem:[%s15764_s2 + $0x1a78] sm:$0xff]  ;;  %6375 = vmatpush.msrb.mxu0 %v7589_v9  ;;  %6468 = vmatpush.msrb.mxu3 %v7757_v41 }
 0x721   :  { %v7649_v48 = vld [vmem:[%s15764_s2 + $0x1738] sm:$0xff]  ;;  %6404 = vmatpush.msrb.mxu1 %v7653_v26  ;;  %6436 = vmatpush.msrb.mxu2 %v7705_v15  ;;  %v15381_v56 = vadd.f32 %v5500_v35, %v5472_v32 }
 0x722   :  { %v7701_v62 = vld [vmem:[%s15764_s2 + $0x18d8] sm:$0xff]  ;;  %6376 = vmatpush.msrb.mxu0 %v7585_v37  ;;  %6469 = vmatpush.msrb.mxu3 %v7753_v18  ;;  %v4380_v37 = vadd.f32 %v13081_v13, %v13135_v39 }
 0x723   :  { %v7581_v2 = vld [vmem:[%s15764_s2 + $0x1518] sm:$0xff]  ;;  %6405 = vmatpush.msrb.mxu1 %v7649_v48  ;;  %6437 = vmatpush.msrb.mxu2 %v7701_v62 }
 0x724   :  { %v7749_v38 = vld [vmem:[%s15764_s2 + $0x1a58] sm:$0xff]  ;;  %6377 = vmatpush.msrb.mxu0 %v7581_v2  ;;  %v4409_v32 = vadd.f32 %v13137_v29, %v4380_v37 }
 0x725   :  { %v7645_v23 = vld [vmem:[%s15764_s2 + $0x1718] sm:$0xff]  ;;  %6470 = vmatpush.msrb.mxu3 %v7749_v38  ;;  %6276 = vmatmul.f32.gmra.mxu0 %v14680_v43  ;;  %v15428_v12 = vpop.f32.mrf.mxu3  ;;  %v15430_v9 = vpop.f32.mrf.mxu0 }
 0x726   :  { %v7577_v16 = vld [vmem:[%s15764_s2 + $0x14f8] sm:$0xff]  ;;  %6406 = vmatpush.msrb.mxu1 %v7645_v23  ;;  %7780 = vmatmul.msk.f32.gmra.mxu2 %vm24_vm1, %v14926_v63  ;;  %v15423_v54 = vpop.f32.mrf.mxu2 }
 0x727   :  { %v7641_v45 = vld [vmem:[%s15764_s2 + $0x16f8] sm:$0xff]  ;;  %6305 = vmatmul.f32.gmra.mxu1 %v14693_v0  ;;  %6363 = vmatmul.f32.gmra.mxu3 %v14666_v33  ;;  %v15435_v26 = vpop.f32.mrf.mxu1 }
 0x728   :  { %v7697_v46 = vld [vmem:[%s15764_s2 + $0x18b8] sm:$0xff]  ;;  %6378 = vmatpush.msrb.mxu0 %v7577_v16  ;;  %6407 = vmatpush.msrb.mxu1 %v7641_v45 }
 0x729   :  { %v7573_v52 = vld [vmem:[%s15764_s2 + $0x14d8] sm:$0xff]  ;;  %6438 = vmatpush.msrb.mxu2 %v7697_v46  ;;  %v4438_v46 = vadd.f32 %v13143_v21, %v4409_v32  ;;  %v5956_v32 = vadd.f32 %v15435_v26, %v15430_v9 }
 0x72a   :  { %v7745_v30 = vld [vmem:[%s15764_s2 + $0x1a38] sm:$0xff]  ;;  %6379 = vmatpush.msrb.mxu0 %v7573_v52  ;;  %v4383_v52 = vadd.f32 %v13124_v47, %v13184_v3  ;;  %v5953_v3 = vadd.f32 %v15383_v4, %v15376_v55  ;;  %v16161_v55 = vld [vmem:[#allocation10_spill] sm:$0xff] }
 0x72b   :  { %v7637_v28 = vld [vmem:[%s15764_s2 + $0x16d8] sm:$0xff]  ;;  %6471 = vmatpush.msrb.mxu3 %v7745_v30  ;;  %v4467_v30 = vadd.f32 %v13336_v34, %v4438_v46 }
 0x72c   :  { %v7693_v5 = vld [vmem:[%s15764_s2 + $0x1898] sm:$0xff]  ;;  %6408 = vmatpush.msrb.mxu1 %v7637_v28  ;;  %v4412_v21 = vadd.f32 %v13198_v1, %v4383_v52 }
 0x72d   :  { %v7569_v57 = vld [vmem:[%s15764_s2 + $0x14b8] sm:$0xff]  ;;  %6439 = vmatpush.msrb.mxu2 %v7693_v5  ;;  %6279 = vmatmul.f32.gmra.mxu0 %v14754_v60  ;;  %v4941_v28 = vadd.f32 %v14172_v42, %v4467_v30 }
 0x72e   :  { %v7741_v22 = vld [vmem:[%s15764_s2 + $0x1a18] sm:$0xff]  ;;  %6380 = vmatpush.msrb.mxu0 %v7569_v57  ;;  %7781 = vmatmul.msk.f32.gmra.mxu2 %vm24_vm1, %v14984_v14  ;;  %v5984_v2 = vpop.f32.mrf.mxu2  ;;  %v15477_v16 = vpop.f32.mrf.mxu0 }
 0x72f   :  { %v7633_v33 = vld [vmem:[%s15764_s2 + $0x16b8] sm:$0xff]  ;;  %6472 = vmatpush.msrb.mxu3 %v7741_v22  ;;  %6308 = vmatmul.f32.gmra.mxu1 %v14767_v11  ;;  %v4970_v47 = vadd.f32 %v14149_v50, %v4941_v28  ;;  %v5982_v22 = vadd.f32 %v15423_v54, %v5953_v3  ;;  %v16164_v54 = vld [vmem:[#allocation66_spill] sm:$0xff]  ;;  %v5985_v46 = vadd.f32 %v5984_v2, %v5956_v32 }
 0x730   :  { %v7689_v44 = vld [vmem:[%s15764_s2 + $0x1878] sm:$0xff]  ;;  %6409 = vmatpush.msrb.mxu1 %v7633_v33  ;;  %6366 = vmatmul.f32.gmra.mxu3 %v14740_v40  ;;  %v15475_v23 = vpop.f32.mrf.mxu3  ;;  %v15482_v45 = vpop.f32.mrf.mxu1  ;;  %v16160_v33 = vld [vmem:[#allocation63_spill] sm:$0xff] }
 0x731   :  { %v7565_v58 = vld [vmem:[%s15764_s2 + $0x1498] sm:$0xff]  ;;  %6440 = vmatpush.msrb.mxu2 %v7689_v44  ;;  %v16162_v44 = vld [vmem:[#allocation25_spill] sm:$0xff] }
 0x732   :  { %v7629_v41 = vld [vmem:[%s15764_s2 + $0x1698] sm:$0xff]  ;;  %6381 = vmatpush.msrb.mxu0 %v7565_v58 }
 0x733   :  { %v7561_v15 = vld [vmem:[%s15764_s2 + $0x1478] sm:$0xff]  ;;  %6410 = vmatpush.msrb.mxu1 %v7629_v41 }
 0x734   :  { %v7625_v18 = vld [vmem:[%s15764_s2 + $0x1678] sm:$0xff]  ;;  %6382 = vmatpush.msrb.mxu0 %v7561_v15  ;;  %v6011_v15 = vadd.f32 %v15428_v12, %v5982_v22  ;;  %v16175_v22 = vld [vmem:[#allocation94_spill] sm:$0xff] }
 0x735   :  { %v7685_v49 = vld [vmem:[%s15764_s2 + $0x1858] sm:$0xff]  ;;  %6411 = vmatpush.msrb.mxu1 %v7625_v18 }
 0x736   :  { %v7557_v13 = vld [vmem:[%s15764_s2 + $0x1458] sm:$0xff]  ;;  %6441 = vmatpush.msrb.mxu2 %v7685_v49  ;;  %v16165_v49 = vld [vmem:[#allocation41_spill] sm:$0xff] }
 0x737   :  { %v7621_v39 = vld [vmem:[%s15764_s2 + $0x1658] sm:$0xff]  ;;  %6383 = vmatpush.msrb.mxu0 %v7557_v13  ;;  %v5987_v5 = vpop.f32.mrf.mxu2 }
 0x738   :  { %v7681_v48 = vld [vmem:[%s15764_s2 + $0x1838] sm:$0xff]  ;;  %6412 = vmatpush.msrb.mxu1 %v7621_v39  ;;  %7782 = vmatmul.msk.f32.vlgmr.msrb.gmra.mxu3 %vm24_vm1, %v14812_v17  ;;  %v15495_v57 = vpop.f32.mrf.mxu3  ;;  %v16158_v17 = vld [vmem:[#allocation18_spill] sm:$0xff] }
 0x739   :  { %v7553_v62 = vld [vmem:[%s15764_s2 + $0x1438] sm:$0xff]  ;;  %6442 = vmatpush.msrb.mxu2 %v7681_v48  ;;  %v4999_v42 = vadd.f32 %v16158_v17, %v4970_v47  ;;  %v16171_v47 = vld [vmem:[#allocation65_spill] sm:$0xff]  ;;  %v6014_v17 = vadd.f32 %v15475_v23, %v5985_v46  ;;  %v16177_v23 = vld [vmem:[#allocation6_spill] sm:$0xff] }
 0x73a   :  { %v7617_v40 = vld [vmem:[%s15764_s2 + $0x1638] sm:$0xff]  ;;  %6384 = vmatpush.msrb.mxu0 %v7553_v62  ;;  %v15502_v34 = vpop.f32.mrf.mxu1  ;;  %v16166_v62 = vld [vmem:[#allocation26_spill] sm:$0xff]  ;;  %v16186_v46 = vld [vmem:[#allocation39_spill] sm:$0xff] }
 0x73b   :  { %v7677_v35 = vld [vmem:[%s15764_s2 + $0x1818] sm:$0xff]  ;;  %6413 = vmatpush.msrb.mxu1 %v7617_v40 }
 0x73c   :  { %v7549_v38 = vld [vmem:[%s15764_s2 + $0x1418] sm:$0xff]  ;;  %6443 = vmatpush.msrb.mxu2 %v7677_v35 }
 0x73d   :  { %v7613_v29 = vld [vmem:[%s15764_s2 + $0x1618] sm:$0xff]  ;;  %6385 = vmatpush.msrb.mxu0 %v7549_v38  ;;  %6444 = vmatmul.f32.vlgmr.msrb.gmra.mxu2 %v14539_v36 }
 0x73e   :  { %6386 = vmatmul.f32.vlgmr.msrb.gmra.mxu0 %v14521_v10  ;;  %6414 = vmatpush.msrb.mxu1 %v7613_v29  ;;  %v15497_v10 = vpop.f32.mrf.mxu0  ;;  %v16159_v1 = vld [vmem:[#allocation72_spill] sm:$0xff] }
 0x73f   :  { %6415 = vmatmul.f32.vlgmr.msrb.gmra.mxu1 %v14526_v61  ;;  %v16157_v61 = vld [vmem:[#allocation64_spill] sm:$0xff]  ;;  %v4386_v50 = vadd.f32 %v16160_v33, %v16159_v1  ;;  %v15518_v37 = vpop.f32.mrf.mxu2 }
 0x740   :  { %v4441_v36 = vadd.f32 %v16157_v61, %v4412_v21  ;;  %7783 = vmatmul.msk.f32.gmra.mxu3 %vm24_vm1, %v14873_v27  ;;  %v16163_v58 = vld [vmem:[#allocation36_spill] sm:$0xff]  ;;  %v3596_v27 = vld [vmem:[%s15760_s0] sm:$0xff]  ;;  %v16170_v21 = vld [vmem:[#allocation67_spill] sm:$0xff] }
 0x741   :  { %v16167_v35 = vld [vmem:[#allocation68_spill] sm:$0xff]  ;;  %v4389_v3 = vadd.f32 %v16171_v47, %v16170_v21  ;;  %v16187_v21 = vld [vmem:[#allocation23_spill] sm:$0xff] }
 0x742   :  { %v4470_v4 = vadd.f32 %v16161_v55, %v4441_v36  ;;  %v16169_v30 = vld [vmem:[#allocation20_spill] sm:$0xff]  ;;  %v16176_v55 = vld [vmem:[#allocation35_spill] sm:$0xff] }
 0x743   :  { %v15521_v18 = vpop.f32.mrf.mxu3  ;;  %v16173_v26 = vld [vmem:[#allocation80_spill] sm:$0xff] }
 0x744   :  { %v4944_v41 = vadd.f32 %v16163_v58, %v4470_v4  ;;  %v4418_v61 = vadd.f32 %v16173_v26, %v4389_v3  ;;  %v16174_v36 = vld [vmem:[#allocation40_spill] sm:$0xff]  ;;  %v16178_v58 = vld [vmem:[#allocation30_spill] sm:$0xff]  ;;  %v16188_v3 = vld [vmem:[#allocation33_spill] sm:$0xff] }
 0x745   :  { %6447 = vmatmul.f32.gmra.mxu2 %v14613_v24 }
 0x746   :  { %6389 = vmatmul.f32.gmra.mxu0 %v14595_v20  ;;  %v5028_v20 = vadd.f32 %v16162_v44, %v4999_v42  ;;  %v15528_v48 = vpop.f32.mrf.mxu1  ;;  %v4973_v12 = vadd.f32 %v16166_v62, %v4944_v41  ;;  %v5959_v44 = vadd.f32 %v15482_v45, %v15477_v16  ;;  %v16182_v16 = vld [vmem:[#allocation37_spill] sm:$0xff] }
 0x747   :  { %6418 = vmatmul.f32.gmra.mxu1 %v14600_v31  ;;  %v4415_v31 = vadd.f32 %v16164_v54, %v4386_v50  ;;  %v6039_v24 = vpop.f32.mrf.mxu0 }
 0x748   :  { %v5057_v13 = vadd.f32 %v16165_v49, %v5028_v20  ;;  %v6040_v39 = vadd.f32 %v6039_v24, %v6011_v15  ;;  %7784 = vmatmul.msk.f32.gmra.mxu3 %vm24_vm1, %v14926_v63  ;;  %v4447_v20 = vadd.f32 %v16177_v23, %v4418_v61  ;;  %v5988_v41 = vadd.f32 %v5987_v5, %v5959_v44  ;;  %v16179_v15 = vld [vmem:[#allocation24_spill] sm:$0xff]  ;;  %v16181_v49 = vld [vmem:[#allocation3_spill] sm:$0xff] }
 0x749   :  { %v4444_v38 = vadd.f32 %v16167_v35, %v4415_v31  ;;  %v16180_v24 = vld [vmem:[#allocation76_spill] sm:$0xff]  ;;  %v16184_v5 = vld [vmem:[#allocation95_spill] sm:$0xff] }
 0x74a   :  { %v6486_v40 = vadd.f32 %v6040_v39, %v5057_v13  ;;  %v6097_v9 = vpop.f32.mrf.mxu2  ;;  %v4476_v54 = vadd.f32 %v16179_v15, %v4447_v20  ;;  %v4525_v13 = vadd.f32 %v16181_v49, %v16180_v24  ;;  %v16189_v61 = vld [vmem:[#allocation7_spill] sm:$0xff] }
 0x74b   :  { %v4473_v28 = vadd.f32 %v16169_v30, %v4444_v38  ;;  %v5962_v30 = vadd.f32 %v15502_v34, %v15497_v10  ;;  %v16191_v10 = vld [vmem:[#allocation16_spill] sm:$0xff]  ;;  %v6098_v24 = vadd.f32 %v6097_v9, %v15528_v48 }
 0x74c   :  { %v6502_v52 = vadd.f32 %v6486_v40, %v3596_v27  ;;  %v4950_v45 = vadd.f32 %v16182_v16, %v4476_v54  ;;  %v6017_v27 = vadd.f32 %v15495_v57, %v5988_v41  ;;  %v16196_v41 = vld [vmem:[#allocation86_spill] sm:$0xff]  ;;  %v16199_v16 = vld [vmem:[#allocation12_spill] sm:$0xff] }
 0x74d   :  { %6450 = vmatmul.f32.gmra.mxu2 %v14693_v0  ;;  %v15549_v2 = vpop.f32.mrf.mxu3 }
 0x74e   :  { %6392 = vmatmul.f32.gmra.mxu0 %v14675_v53  ;;  %v16168_v53 = vld [vmem:[#allocation32_spill] sm:$0xff]  ;;  %6518 = vst [vmem:[%s15765_s5] sm:$0xff] %v6502_v52  ;;  %v4979_v52 = vadd.f32 %v16186_v46, %v4950_v45  ;;  %v16203_v46 = vld [vmem:[#allocation91_spill] sm:$0xff] }
 0x74f   :  { %6421 = vmatmul.f32.gmra.mxu1 %v14680_v43  ;;  %v5002_v29 = vadd.f32 %v16168_v53, %v4973_v12  ;;  %v16172_v43 = vld [vmem:[#allocation29_spill] sm:$0xff]  ;;  %v6042_v42 = vpop.f32.mrf.mxu0  ;;  %v15555_v50 = vpop.f32.mrf.mxu1  ;;  %v16185_v53 = vld [vmem:[#allocation4_spill] sm:$0xff] }
 0x750   :  { %v4947_v0 = vadd.f32 %v16172_v43, %v4473_v28  ;;  %v6043_v33 = vadd.f32 %v6042_v42, %v6014_v17  ;;  %7785 = vmatmul.msk.f32.gmra.mxu3 %vm24_vm1, %v14984_v14  ;;  %v16183_v14 = vld [vmem:[#allocation31_spill] sm:$0xff]  ;;  %v3604_v28 = vld [vmem:[%s15760_s0 + $0x40] sm:$0xff]  ;;  %v5008_v43 = vadd.f32 %v16188_v3, %v4979_v52  ;;  %v16192_v17 = vld [vmem:[#allocation44_spill] sm:$0xff] }
 0x751   :  { %v5031_v63 = vadd.f32 %v16174_v36, %v5002_v29  ;;  %v4554_v29 = vadd.f32 %v16185_v53, %v4525_v13  ;;  %v16190_v36 = vld [vmem:[#allocation8_spill] sm:$0xff]  ;;  %v16198_v13 = vld [vmem:[#allocation9_spill] sm:$0xff]  ;;  %v16206_v3 = vld [vmem:[#allocation27_spill] sm:$0xff] }
 0x752   :  { %v4976_v4 = vadd.f32 %v16176_v55, %v4947_v0  ;;  %v5991_v0 = vadd.f32 %v15518_v37, %v5962_v30  ;;  %v5037_v42 = vadd.f32 %v16192_v17, %v5008_v43  ;;  %v16194_v37 = vld [vmem:[#allocation108_spill] sm:$0xff]  ;;  %v4531_v45 = vadd.f32 %v16199_v16, %v16198_v13  ;;  %v16204_v52 = vld [vmem:[#allocation13_spill] sm:$0xff] }
 0x753   :  { %v5060_v1 = vadd.f32 %v16175_v22, %v5031_v63  ;;  %v4583_v47 = vadd.f32 %v16187_v21, %v4554_v29  ;;  %v4528_v63 = vadd.f32 %v16190_v36, %v16189_v61  ;;  %v6127_v29 = vadd.f32 %v15549_v2, %v6098_v24  ;;  %v16205_v21 = vld [vmem:[#allocation45_spill] sm:$0xff]  ;;  %v3597_v2 = vld [vmem:[%s15760_s0 + $0x8] sm:$0xff] }
 0x754   :  { %v6020_v22 = vadd.f32 %v15521_v18, %v5991_v0  ;;  %v16197_v18 = vld [vmem:[#allocation74_spill] sm:$0xff]  ;;  %v4560_v30 = vadd.f32 %v16204_v52, %v4531_v45  ;;  %v16207_v0 = vld [vmem:[#allocation109_spill] sm:$0xff] }
 0x755   :  { %6453 = vmatmul.f32.gmra.mxu2 %v14767_v11  ;;  %v5005_v11 = vadd.f32 %v16178_v58, %v4976_v4  ;;  %v4612_v34 = vadd.f32 %v16191_v10, %v4583_v47  ;;  %v16193_v4 = vld [vmem:[#allocation90_spill] sm:$0xff]  ;;  %v16208_v10 = vld [vmem:[#allocation11_spill] sm:$0xff]  ;;  %v16217_v16 = vld [vmem:[#allocation113_spill] sm:$0xff] }
 0x756   :  { %6395 = vmatmul.f32.gmra.mxu0 %v14749_v51  ;;  %v3600_v51 = vld [vmem:[%s15760_s0 + $0x20] sm:$0xff]  ;;  %v6100_v62 = vpop.f32.mrf.mxu2  ;;  %v6129_v12 = vpop.f32.mrf.mxu3  ;;  %v4589_v43 = vadd.f32 %v16206_v3, %v4560_v30  ;;  %v16222_v3 = vld [vmem:[#allocation99_spill] sm:$0xff] }
 0x757   :  { %6424 = vmatmul.f32.gmra.mxu1 %v14754_v60  ;;  %v6490_v60 = vadd.f32 %v6043_v33, %v5060_v1  ;;  %v5034_v39 = vadd.f32 %v16183_v14, %v5005_v11  ;;  %v6045_v32 = vpop.f32.mrf.mxu0  ;;  %v5086_v44 = vadd.f32 %v16193_v4, %v4612_v34  ;;  %v3608_v11 = vld [vmem:[%s15760_s0 + $0x60] sm:$0xff]  ;;  %v16200_v14 = vld [vmem:[#allocation43_spill] sm:$0xff]  ;;  %v6101_v36 = vadd.f32 %v6100_v62, %v15555_v50 }
 0x758   :  { %v6046_v35 = vadd.f32 %v6045_v32, %v6017_v27  ;;  %v16201_v27 = vld [vmem:[#allocation15_spill] sm:$0xff] }
 0x759   :  { %v6506_v31 = vadd.f32 %v6490_v60, %v3600_v51  ;;  %v5063_v40 = vadd.f32 %v16184_v5, %v5034_v39  ;;  %v15577_v38 = vpop.f32.mrf.mxu1  ;;  %v5066_v51 = vadd.f32 %v16194_v37, %v5037_v42  ;;  %v16195_v60 = vld [vmem:[#allocation5_spill] sm:$0xff]  ;;  %v5115_v15 = vadd.f32 %v16196_v41, %v5086_v44  ;;  %v16209_v34 = vld [vmem:[#allocation19_spill] sm:$0xff]  ;;  %v16214_v41 = vld [vmem:[#allocation14_spill] sm:$0xff] }
 0x75a   :  { %v4557_v58 = vadd.f32 %v16195_v60, %v4528_v63  ;;  %v4534_v17 = vadd.f32 %v16209_v34, %v16208_v10  ;;  %v16210_v42 = vld [vmem:[#allocation87_spill] sm:$0xff]  ;;  %v6130_v60 = vadd.f32 %v6129_v12, %v6101_v36 }
 0x75b   :  { %6522 = vst [vmem:[%s15765_s5 + $0x20] sm:$0xff] %v6506_v31  ;;  %v6494_v57 = vadd.f32 %v6046_v35, %v5063_v40  ;;  %v5144_v39 = vadd.f32 %v16200_v14, %v5115_v15  ;;  %v16202_v35 = vld [vmem:[#allocation106_spill] sm:$0xff] }
 0x75c   :  { %v4586_v31 = vadd.f32 %v16197_v18, %v4557_v58  ;;  %v4563_v15 = vadd.f32 %v16214_v41, %v4534_v17  ;;  %v16226_v17 = vld [vmem:[#allocation101_spill] sm:$0xff] }
 0x75d   :  { %v6510_v26 = vadd.f32 %v6494_v57, %v3604_v28  ;;  %v5173_v53 = vadd.f32 %v16202_v35, %v5144_v39  ;;  %v3601_v39 = vld [vmem:[%s15760_s0 + $0x28] sm:$0xff] }
 0x75e   :  { %v4615_v32 = vadd.f32 %v16201_v27, %v4586_v31  ;;  %v16215_v31 = vld [vmem:[#allocation98_spill] sm:$0xff] }
 0x75f   :  { %6526 = vst [vmem:[%s15765_s5 + $0x40] sm:$0xff] %v6510_v26  ;;  %v6103_v1 = vpop.f32.mrf.mxu2  ;;  %v5202_v26 = vadd.f32 %v16207_v0, %v5173_v53  ;;  %v16219_v53 = vld [vmem:[#allocation78_spill] sm:$0xff] }
 0x760   :  { %v6132_v33 = vpop.f32.mrf.mxu3  ;;  %v6048_v55 = vpop.f32.mrf.mxu0  ;;  %v5089_v48 = vadd.f32 %v16203_v46, %v4615_v32  ;;  %v6104_v12 = vadd.f32 %v6103_v1, %v15577_v38  ;;  %v16218_v32 = vld [vmem:[#allocation100_spill] sm:$0xff]  ;;  %v16223_v0 = vld [vmem:[#allocation34_spill] sm:$0xff] }
 0x761   :  { %v6049_v23 = vadd.f32 %v6048_v55, %v6020_v22  ;;  %v16211_v55 = vld [vmem:[#allocation69_spill] sm:$0xff] }
 0x762   :  { %v15599_v20 = vpop.f32.mrf.mxu1  ;;  %v5118_v47 = vadd.f32 %v16205_v21, %v5089_v48  ;;  %v4618_v4 = vadd.f32 %v16211_v55, %v4589_v43  ;;  %v6133_v30 = vadd.f32 %v6132_v33, %v6104_v12  ;;  %v3605_v33 = vld [vmem:[%s15760_s0 + $0x48] sm:$0xff] }
 0x763   :  { %v6498_v54 = vadd.f32 %v6049_v23, %v5066_v51  ;;  %v16212_v51 = vld [vmem:[#allocation110_spill] sm:$0xff] }
 0x764   :  { %v5147_v22 = vadd.f32 %v16210_v42, %v5118_v47 }
 0x765   :  { %v6514_v49 = vadd.f32 %v6498_v54, %v3608_v11  ;;  %v16213_v11 = vld [vmem:[#allocation104_spill] sm:$0xff] }
 0x766   :  { %v5176_v23 = vadd.f32 %v16212_v51, %v5147_v22  ;;  %v5092_v50 = vadd.f32 %v16213_v11, %v4618_v4  ;;  %v16227_v22 = vld [vmem:[#allocation92_spill] sm:$0xff] }
 0x767   :  { %6530 = vst [vmem:[%s15765_s5 + $0x60] sm:$0xff] %v6514_v49  ;;  %v16216_v49 = vld [vmem:[#allocation79_spill] sm:$0xff]  ;;  %v16228_v51 = vld [vmem:[#allocation56_spill] sm:$0xff] }
 0x768   :  { %v5121_v24 = vadd.f32 %v16215_v31, %v5092_v50  ;;  %v4592_v13 = vadd.f32 %v16216_v49, %v4563_v15  ;;  %v5205_v45 = vadd.f32 %v16217_v16, %v5176_v23  ;;  %v16230_v15 = vld [vmem:[#allocation51_spill] sm:$0xff]  ;;  %v16231_v31 = vld [vmem:[#allocation89_spill] sm:$0xff]  ;;  %v3609_v49 = vld [vmem:[%s15760_s0 + $0x68] sm:$0xff] }
 0x769   :  { %v6106_v5 = vpop.f32.mrf.mxu2  ;;  %v6135_v40 = vpop.f32.mrf.mxu3 }
 0x76a   :  { %v5150_v35 = vadd.f32 %v16218_v32, %v5121_v24  ;;  %v6107_v36 = vadd.f32 %v6106_v5, %v15599_v20 }
 0x76b   :  { %v6155_v9 = vpop.f32.mrf.mxu0 }
 0x76c   :  { %v6156_v28 = vadd.f32 %v6155_v9, %v6127_v29  ;;  %v6184_v57 = vpop.f32.mrf.mxu1  ;;  %v4621_v29 = vadd.f32 %v16219_v53, %v4592_v13  ;;  %v16220_v9 = vld [vmem:[#allocation52_spill] sm:$0xff]  ;;  %v16233_v13 = vld [vmem:[#allocation70_spill] sm:$0xff] }
 0x76d   :  { %v5179_v52 = vadd.f32 %v16220_v9, %v5150_v35 }
 0x76e   :  { %v6185_v61 = vadd.f32 %v6184_v57, %v6156_v28  ;;  %v16221_v57 = vld [vmem:[#allocation105_spill] sm:$0xff] }
 0x76f   :  { %v5095_v21 = vadd.f32 %v16221_v57, %v4621_v29  ;;  %v16236_v29 = vld [vmem:[#allocation102_spill] sm:$0xff] }
 0x770   :  { %v6487_v63 = vadd.f32 %v6185_v61, %v5202_v26  ;;  %v5208_v26 = vadd.f32 %v16223_v0, %v5179_v52  ;;  %v16240_v0 = vld [vmem:[#allocation75_spill] sm:$0xff] }
 0x771   :  { %v5124_v43 = vadd.f32 %v16222_v3, %v5095_v21  ;;  %v16239_v3 = vld [vmem:[#allocation93_spill] sm:$0xff] }
 0x772   :  { %v6503_v44 = vadd.f32 %v6487_v63, %v3597_v2  ;;  %v6213_v37 = vpop.f32.mrf.mxu2  ;;  %v16224_v2 = vld [vmem:[#allocation73_spill] sm:$0xff]  ;;  %v16225_v63 = vld [vmem:[#allocation28_spill] sm:$0xff] }
 0x773   :  { %v6242_v58 = vpop.f32.mrf.mxu3  ;;  %v4670_v10 = vadd.f32 %v16225_v63, %v16224_v2  ;;  %v5153_v42 = vadd.f32 %v16226_v17, %v5124_v43  ;;  %v16243_v2 = vld [vmem:[#allocation97_spill] sm:$0xff] }
 0x774   :  { %6519 = vst [vmem:[%s15765_s5 + $0x8] sm:$0xff] %v6503_v44  ;;  %v6158_v62 = vpop.f32.mrf.mxu0  ;;  %v6243_v9 = vadd.f32 %v6242_v58, %v6213_v37  ;;  %v16245_v58 = vld [vmem:[#allocation46_spill] sm:$0xff] }
 0x775   :  { %v6159_v54 = vadd.f32 %v6158_v62, %v6130_v60  ;;  %v6187_v18 = vpop.f32.mrf.mxu1  ;;  %v4699_v55 = vadd.f32 %v16227_v22, %v4670_v10  ;;  %v5182_v23 = vadd.f32 %v16228_v51, %v5153_v42  ;;  %v6136_v60 = vadd.f32 %v6135_v40, %v6107_v36  ;;  %v16229_v62 = vld [vmem:[#allocation71_spill] sm:$0xff]  ;;  %v16232_v40 = vld [vmem:[#allocation77_spill] sm:$0xff]  ;;  %v16242_v36 = vld [vmem:[#allocation114_spill] sm:$0xff] }
 0x776   :  { %v4673_v16 = vadd.f32 %v16233_v13, %v16232_v40  ;;  %v16244_v10 = vld [vmem:[#allocation49_spill] sm:$0xff]  ;;  %v16250_v40 = vld [vmem:[#allocation88_spill] sm:$0xff]  ;;  %v16251_v13 = vld [vmem:[#allocation82_spill] sm:$0xff] }
 0x777   :  { %v6188_v14 = vadd.f32 %v6187_v18, %v6159_v54  ;;  %v4728_v41 = vadd.f32 %v16229_v62, %v4699_v55  ;;  %v5211_v54 = vadd.f32 %v16230_v15, %v5182_v23  ;;  %v16248_v15 = vld [vmem:[#allocation59_spill] sm:$0xff] }
 0x779   :  { %v6491_v27 = vadd.f32 %v6188_v14, %v5205_v45  ;;  %v4757_v24 = vadd.f32 %v16231_v31, %v4728_v41  ;;  %v16234_v14 = vld [vmem:[#allocation112_spill] sm:$0xff]  ;;  %v16249_v31 = vld [vmem:[#allocation21_spill] sm:$0xff] }
 0x77b   :  { %v6507_v46 = vadd.f32 %v6491_v27, %v3601_v39  ;;  %v6216_v48 = vpop.f32.mrf.mxu2  ;;  %v5231_v12 = vadd.f32 %v16234_v14, %v4757_v24  ;;  %v16235_v39 = vld [vmem:[#allocation85_spill] sm:$0xff] }
 0x77c   :  { %v6245_v28 = vpop.f32.mrf.mxu3  ;;  %v4702_v27 = vadd.f32 %v16235_v39, %v4673_v16  ;;  %v4679_v16 = vadd.f32 %v16251_v13, %v16250_v40  ;;  %v3610_v40 = vld [vmem:[%s15760_s0 + $0x70] sm:$0xff] }
 0x77d   :  { %6523 = vst [vmem:[%s15765_s5 + $0x28] sm:$0xff] %v6507_v46  ;;  %v6161_v38 = vpop.f32.mrf.mxu0  ;;  %v5260_v46 = vadd.f32 %v16236_v29, %v5231_v12  ;;  %v6246_v23 = vadd.f32 %v6245_v28, %v6216_v48  ;;  %v16253_v28 = vld [vmem:[#allocation22_spill] sm:$0xff]  ;;  %v16254_v12 = vld [vmem:[#allocation57_spill] sm:$0xff] }
 0x77e   :  { %v6162_v1 = vadd.f32 %v6161_v38, %v6133_v30  ;;  %v6190_v47 = vpop.f32.mrf.mxu1  ;;  %v16237_v30 = vld [vmem:[#allocation84_spill] sm:$0xff]  ;;  %v16238_v38 = vld [vmem:[#allocation55_spill] sm:$0xff]  ;;  %v4708_v14 = vadd.f32 %v16253_v28, %v4679_v16  ;;  %v16255_v29 = vld [vmem:[#allocation54_spill] sm:$0xff] }
 0x77f   :  { %v4731_v57 = vadd.f32 %v16237_v30, %v4702_v27  ;;  %v16256_v30 = vld [vmem:[#allocation42_spill] sm:$0xff] }
 0x780   :  { %v6191_v61 = vadd.f32 %v6190_v47, %v6162_v1  ;;  %v5289_v1 = vadd.f32 %v16238_v38, %v5260_v46  ;;  %v3602_v38 = vld [vmem:[%s15760_s0 + $0x30] sm:$0xff] }
 0x781   :  { %v4760_v43 = vadd.f32 %v16239_v3, %v4731_v57 }
 0x782   :  { %v6495_v34 = vadd.f32 %v6191_v61, %v5208_v26  ;;  %v16241_v26 = vld [vmem:[#allocation81_spill] sm:$0xff] }
 0x783   :  { %v4676_v61 = vadd.f32 %v16241_v26, %v16240_v0  ;;  %v16258_v26 = vld [vmem:[#allocation50_spill] sm:$0xff] }
 0x784   :  { %v6511_v4 = vadd.f32 %v6495_v34, %v3605_v33  ;;  %v6219_v44 = vpop.f32.mrf.mxu2  ;;  %v5234_v33 = vadd.f32 %v16242_v36, %v4760_v43  ;;  %v5318_v34 = vadd.f32 %v16244_v10, %v5289_v1  ;;  %v16260_v10 = vld [vmem:[#allocation47_spill] sm:$0xff] }
 0x785   :  { %v6248_v11 = vpop.f32.mrf.mxu3  ;;  %v4705_v63 = vadd.f32 %v16243_v2, %v4676_v61 }
 0x786   :  { %6527 = vst [vmem:[%s15765_s5 + $0x48] sm:$0xff] %v6511_v4  ;;  %v6164_v20 = vpop.f32.mrf.mxu0  ;;  %v5347_v42 = vadd.f32 %v16245_v58, %v5318_v34  ;;  %v16246_v4 = vld [vmem:[#allocation38_spill] sm:$0xff] }
 0x787   :  { %v6165_v5 = vadd.f32 %v6164_v20, %v6136_v60  ;;  %v6193_v50 = vpop.f32.mrf.mxu1  ;;  %v5263_v51 = vadd.f32 %v16246_v4, %v5234_v33  ;;  %v3598_v60 = vld [vmem:[%s15760_s0 + $0x10] sm:$0xff]  ;;  %v16259_v33 = vld [vmem:[#allocation17_spill] sm:$0xff]  ;;  %v16262_v58 = vld [vmem:[#allocation58_spill] sm:$0xff] }
 0x789   :  { %v6194_v18 = vadd.f32 %v6193_v50, %v6165_v5  ;;  %v16247_v5 = vld [vmem:[#allocation83_spill] sm:$0xff] }
 0x78a   :  { %v4734_v50 = vadd.f32 %v16247_v5, %v4705_v63 }
 0x78b   :  { %v6499_v45 = vadd.f32 %v6194_v18, %v5211_v54  ;;  %v5292_v54 = vadd.f32 %v16248_v15, %v5263_v51  ;;  %v16263_v51 = vld [vmem:[#allocation53_spill] sm:$0xff] }
 0x78c   :  { %v4763_v24 = vadd.f32 %v16249_v31, %v4734_v50 }
 0x78d   :  { %v6515_v32 = vadd.f32 %v6499_v45, %v3609_v49  ;;  %v16252_v45 = vld [vmem:[#allocation48_spill] sm:$0xff]  ;;  %v5321_v39 = vadd.f32 %v16254_v12, %v5292_v54 }
 0x78e   :  { %v6222_v35 = vpop.f32.mrf.mxu2  ;;  %v6251_v53 = vpop.f32.mrf.mxu3  ;;  %v5237_v48 = vadd.f32 %v16252_v45, %v4763_v24 }
 0x78f   :  { %6531 = vst [vmem:[%s15765_s5 + $0x68] sm:$0xff] %v6515_v32  ;;  %v5350_v46 = vadd.f32 %v16255_v29, %v5321_v39  ;;  %v3599_v29 = vld [vmem:[%s15760_s0 + $0x18] sm:$0xff] }
 0x790   :  { %v6271_v52 = vpop.f32.mrf.mxu0  ;;  %v5266_v57 = vadd.f32 %v16256_v30, %v5237_v48 }
 0x791   :  { %v6300_v21 = vpop.f32.mrf.mxu1  ;;  %v6272_v47 = vadd.f32 %v6271_v52, %v6243_v9 }
 0x792   :  { %v5295_v61 = vadd.f32 %v16258_v26, %v5266_v57 }
 0x793   :  { %v6301_v17 = vadd.f32 %v6300_v21, %v6272_v47  ;;  %v6249_v21 = vadd.f32 %v6248_v11, %v6219_v44  ;;  %v16257_v47 = vld [vmem:[#allocation96_spill] sm:$0xff] }
 0x794   :  { %v4737_v3 = vadd.f32 %v16257_v47, %v4708_v14  ;;  %v16261_v44 = vld [vmem:[#allocation60_spill] sm:$0xff] }
 0x795   :  { %v5324_v11 = vadd.f32 %v16261_v44, %v5295_v61 }
 0x796   :  { %v4766_v2 = vadd.f32 %v16259_v33, %v4737_v3 }
 0x797   :  { %v6329_v37 = vpop.f32.mrf.mxu2 }
 0x798   :  { %v6330_v22 = vadd.f32 %v6329_v37, %v6301_v17  ;;  %v6358_v55 = vpop.f32.mrf.mxu3  ;;  %v5240_v34 = vadd.f32 %v16260_v10, %v4766_v2  ;;  %v3607_v10 = vld [vmem:[%s15760_s0 + $0x58] sm:$0xff] }
 0x799   :  { %v6274_v20 = vpop.f32.mrf.mxu0 }
 0x79a   :  { %v6488_v62 = vadd.f32 %v6330_v22, %v5347_v42  ;;  %v6303_v41 = vpop.f32.mrf.mxu1  ;;  %v6275_v18 = vadd.f32 %v6274_v20, %v6246_v23  ;;  %v5353_v42 = vadd.f32 %v16262_v58, %v5324_v11  ;;  %v5269_v23 = vadd.f32 %v16263_v51, %v5240_v34  ;;  %v3606_v20 = vld [vmem:[%s15760_s0 + $0x50] sm:$0xff] }
 0x79c   :  { %v6504_v49 = vadd.f32 %v6488_v62, %v3598_v60  ;;  %v6304_v27 = vadd.f32 %v6303_v41, %v6275_v18  ;;  %v6252_v60 = vadd.f32 %v6251_v53, %v6222_v35  ;;  %v5298_v41 = vadd.f32 %v15100_v25, %v5269_v23 }
 0x79e   :  { %6520 = vst [vmem:[%s15765_s5 + $0x10] sm:$0xff] %v6504_v49  ;;  %v5327_v18 = vadd.f32 %v15105_v7, %v5298_v41 }
 0x7a0   :  { %v6332_v32 = vpop.f32.mrf.mxu2  ;;  %v5356_v35 = vadd.f32 %v15143_v19, %v5327_v18 }
 0x7a1   :  { %v6333_v9 = vadd.f32 %v6332_v32, %v6304_v27  ;;  %v6361_v52 = vpop.f32.mrf.mxu3 }
 0x7a2   :  { %v6277_v1 = vpop.f32.mrf.mxu0 }
 0x7a3   :  { %v6492_v43 = vadd.f32 %v6333_v9, %v5350_v46  ;;  %v6278_v36 = vadd.f32 %v6277_v1, %v6249_v21 }
 0x7a4   :  { %v6306_v0 = vpop.f32.mrf.mxu1 }
 0x7a5   :  { %v6508_v63 = vadd.f32 %v6492_v43, %v3602_v38  ;;  %v6307_v17 = vadd.f32 %v6306_v0, %v6278_v36 }
 0x7a7   :  { %6524 = vst [vmem:[%s15765_s5 + $0x30] sm:$0xff] %v6508_v63 }
 0x7a9   :  { %v6335_v37 = vpop.f32.mrf.mxu2 }
 0x7aa   :  { %v6336_v22 = vadd.f32 %v6335_v37, %v6307_v17  ;;  %v6364_v4 = vpop.f32.mrf.mxu3  ;;  %v6280_v5 = vpop.f32.mrf.mxu0 }
 0x7ab   :  { %v6281_v15 = vadd.f32 %v6280_v5, %v6252_v60 }
 0x7ac   :  { %v6496_v50 = vadd.f32 %v6336_v22, %v5353_v42  ;;  %v6309_v62 = vpop.f32.mrf.mxu1  ;;  %v3611_v22 = vld [vmem:[%s15760_s0 + $0x78] sm:$0xff] }
 0x7ad   :  { %v6310_v31 = vadd.f32 %v6309_v62, %v6281_v15 }
 0x7ae   :  { %v6512_v54 = vadd.f32 %v6496_v50, %v3606_v20 }
 0x7b0   :  { %6528 = vst [vmem:[%s15765_s5 + $0x50] sm:$0xff] %v6512_v54 }
 0x7b1   :  { %v6338_v24 = vpop.f32.mrf.mxu2 }
 0x7b2   :  { %v6339_v53 = vadd.f32 %v6338_v24, %v6310_v31 }
 0x7b3   :  { %v6367_v49 = vpop.f32.mrf.mxu3 }
 0x7b4   :  { %v6500_v25 = vadd.f32 %v6339_v53, %v5356_v35 }
 0x7b6   :  { %v6516_v48 = vadd.f32 %v6500_v25, %v3610_v40 }
 0x7b8   :  { %6532 = vst [vmem:[%s15765_s5 + $0x70] sm:$0xff] %v6516_v48 }
 0x7bb   :  { %v6387_v13 = vpop.f32.mrf.mxu0  ;;  %v6474_v12 = vpop.f32.mrf.mxu3 }
 0x7bc   :  { %v6416_v16 = vpop.f32.mrf.mxu1  ;;  %v6388_v45 = vadd.f32 %v6387_v13, %v6358_v55 }
 0x7be   :  { %v6417_v7 = vadd.f32 %v6416_v16, %v6388_v45 }
 0x7c0   :  { %v6445_v28 = vpop.f32.mrf.mxu2 }
 0x7c1   :  { %v6446_v14 = vadd.f32 %v6445_v28, %v6417_v7 }
 0x7c3   :  { %v6390_v19 = vpop.f32.mrf.mxu0  ;;  %v6475_v27 = vadd.f32 %v6474_v12, %v6446_v14  ;;  %v6477_v21 = vpop.f32.mrf.mxu3 }
 0x7c4   :  { %v6419_v39 = vpop.f32.mrf.mxu1  ;;  %v6391_v32 = vadd.f32 %v6390_v19, %v6361_v52  ;;  %v3603_v52 = vld [vmem:[%s15760_s0 + $0x38] sm:$0xff] }
 0x7c5   :  { %v6489_v46 = vadd.f32 %v6475_v27, %v15217_v59 }
 0x7c6   :  { %v6420_v9 = vadd.f32 %v6419_v39, %v6391_v32 }
 0x7c7   :  { %v6505_v55 = vadd.f32 %v6489_v46, %v3599_v29 }
 0x7c8   :  { %v6448_v30 = vpop.f32.mrf.mxu2 }
 0x7c9   :  { %6521 = vst [vmem:[%s15765_s5 + $0x18] sm:$0xff] %v6505_v55  ;;  %v6449_v57 = vadd.f32 %v6448_v30, %v6420_v9 }
 0x7cb   :  { %v6393_v38 = vpop.f32.mrf.mxu0  ;;  %v6478_v1 = vadd.f32 %v6477_v21, %v6449_v57  ;;  %v6480_v36 = vpop.f32.mrf.mxu3 }
 0x7cc   :  { %v6394_v47 = vadd.f32 %v6393_v38, %v6364_v4  ;;  %v6422_v3 = vpop.f32.mrf.mxu1 }
 0x7cd   :  { %v6493_v43 = vadd.f32 %v6478_v1, %v15276_v8 }
 0x7ce   :  { %v6423_v0 = vadd.f32 %v6422_v3, %v6394_v47 }
 0x7cf   :  { %v6509_v59 = vadd.f32 %v6493_v43, %v3603_v52 }
 0x7d0   :  { %v6451_v26 = vpop.f32.mrf.mxu2 }
 0x7d1   :  { %6525 = vst [vmem:[%s15765_s5 + $0x38] sm:$0xff] %v6509_v59  ;;  %v6452_v61 = vadd.f32 %v6451_v26, %v6423_v0 }
 0x7d3   :  { %v6396_v33 = vpop.f32.mrf.mxu0  ;;  %v6481_v2 = vadd.f32 %v6480_v36, %v6452_v61  ;;  %v6483_v58 = vpop.f32.mrf.mxu3 }
 0x7d4   :  { %v6397_v63 = vadd.f32 %v6396_v33, %v6367_v49  ;;  %v6425_v44 = vpop.f32.mrf.mxu1 }
 0x7d5   :  { %v6497_v34 = vadd.f32 %v6481_v2, %v15327_v6 }
 0x7d6   :  { %v6426_v11 = vadd.f32 %v6425_v44, %v6397_v63 }
 0x7d7   :  { %v6513_v8 = vadd.f32 %v6497_v34, %v3607_v10 }
 0x7d8   :  { %v6454_v17 = vpop.f32.mrf.mxu2 }
 0x7d9   :  { %6529 = vst [vmem:[%s15765_s5 + $0x58] sm:$0xff] %v6513_v8  ;;  %v6455_v37 = vadd.f32 %v6454_v17, %v6426_v11 }
 0x7db   :  { %v6484_v42 = vadd.f32 %v6483_v58, %v6455_v37 }
 0x7dd   :  { %v6501_v4 = vadd.f32 %v6484_v42, %v15381_v56 }
 0x7df   :  { %v6517_v51 = vadd.f32 %v6501_v4, %v3611_v22 }
 0x7e1   :  { %6533 = vst [vmem:[%s15765_s5 + $0x78] sm:$0xff] %v6517_v51 }

</bundles_post_ra>
